<compile_context>
chip_gen: v6e
topology: v6e:2x2x1
jax: 0.10.0
libtpu: 0.0.40
codegen_flags: <defaults>
</compile_context>

<pallas_src>
import jax
import jax.numpy as jnp
from jax.experimental import pallas as pl
from jax.experimental.pallas import tpu as pltpu


def _make_residual_kernel(B, Ho, Wo, Cin, Cout, has_conv3, eps):
    M = B * Ho * Wo
    inv_m = 1.0 / float(M)

    def kernel(*refs):
        if has_conv3:
            (xc, w1, g1, be1, w2, g2, be2, w3, b3,
             out_ref, pad_scr, col_scr) = refs
        else:
            (xc, w1, g1, be1, w2, g2, be2, xsc,
             out_ref, pad_scr, col_scr) = refs

        # ---- conv1: ONE wide-K MXU matmul (K = 9*Cin), f32 accumulation.
        #      xc is the wrapper-built bf16 im2col slab (M, 9*Cin).
        acc1 = jnp.dot(xc[...], w1[...], preferred_element_type=jnp.float32)
        # (conv1 bias omitted: a bias immediately before BN cancels exactly)

        # ---- bn1: single-pass biased batch stats, folded affine, then relu.
        s1 = jnp.sum(acc1, axis=0, keepdims=True)
        s2 = jnp.sum(acc1 * acc1, axis=0, keepdims=True)
        mean1 = s1 * inv_m
        var1 = jnp.maximum(s2 * inv_m - mean1 * mean1, 0.0)   # clamp: f32 cancellation
        scale1 = g1[...] * jax.lax.rsqrt(var1 + eps)
        shift1 = be1[...] - mean1 * scale1
        y1 = jnp.maximum(acc1 * scale1 + shift1, 0.0)          # (M, Cout) f32

        # ---- conv2 input buffer: zero only the 1-pixel border, write the
        #      interior exactly once.
        zrow = jnp.zeros((B, 1, Wo + 2, Cout), jnp.float32)
        zcol = jnp.zeros((B, Ho, 1, Cout), jnp.float32)
        pad_scr[:, 0:1, :, :] = zrow
        pad_scr[:, Ho + 1:Ho + 2, :, :] = zrow
        pad_scr[:, 1:Ho + 1, 0:1, :] = zcol
        pad_scr[:, 1:Ho + 1, Wo + 1:Wo + 2, :] = zcol
        pad_scr[:, 1:Ho + 1, 1:Wo + 1, :] = y1.reshape(B, Ho, Wo, Cout)

        # ---- conv2: build the (M, 9*Cout) im2col slab with 9 shifted-slab
        #      stores, cast ONCE to bf16, and do ONE wide-K matmul (K = 9*Cout).
        for kh in range(3):
            for kw in range(3):
                k = kh * 3 + kw
                tap = pad_scr[:, kh:kh + Ho, kw:kw + Wo, :].reshape(M, Cout)
                col_scr[:, k * Cout:(k + 1) * Cout] = tap
        col2 = col_scr[...].astype(jnp.bfloat16)               # single hoisted cast
        acc2 = jnp.dot(col2, w2[...], preferred_element_type=jnp.float32)
        # (conv2 bias omitted: cancels inside bn2)

        # ---- bn2: single-pass stats + folded affine (no relu here).
        t1 = jnp.sum(acc2, axis=0, keepdims=True)
        t2 = jnp.sum(acc2 * acc2, axis=0, keepdims=True)
        mean2 = t1 * inv_m
        var2 = jnp.maximum(t2 * inv_m - mean2 * mean2, 0.0)
        scale2 = g2[...] * jax.lax.rsqrt(var2 + eps)
        shift2 = be2[...] - mean2 * scale2
        y2 = acc2 * scale2 + shift2

        # ---- shortcut (identity or 1x1 stride-s conv), residual add, relu.
        if has_conv3:
            # 1x1 stride-s conv input == center tap (kh=kw=1) of the conv1
            # im2col slab -> zero extra input bytes.
            x_ctr = xc[:, 4 * Cin:5 * Cin]                     # (M, Cin) bf16
            sc = jnp.dot(x_ctr, w3[...],
                         preferred_element_type=jnp.float32) + b3[...]
        else:
            sc = xsc[...]                                      # identity, exact f32
        out_ref[...] = jnp.maximum(y2 + sc, 0.0)

    return kernel


def residual_forward(x, params, *, strides=1, use_1x1conv=False, eps=1e-5):
    """x: (B, H, W, Cin) float32 NHWC.  Returns (B, Ho, Wo, Cout) float32."""
    B, H, W, Cin = x.shape
    Cout = params["w1"].shape[-1]
    s = strides
    Ho = (H + 2 - 3) // s + 1
    Wo = (W + 2 - 3) // s + 1
    M = B * Ho * Wo

    # conv1 im2col in the wrapper (plain XLA): one zero-padded copy of x,
    # 9 shifted strided taps concatenated on the channel axis, flattened to
    # (M, 9*Cin) and pre-cast to bf16 ONCE (MXU operand dtype).
    x_pad = jnp.pad(x, ((0, 0), (1, 1), (1, 1), (0, 0)))
    taps = [x_pad[:, kh:kh + (Ho - 1) * s + 1:s, kw:kw + (Wo - 1) * s + 1:s, :]
            for kh in range(3) for kw in range(3)]
    x_col = (jnp.concatenate(taps, axis=-1)
             .reshape(M, 9 * Cin).astype(jnp.bfloat16))

    w1f = params["w1"].reshape(9 * Cin, Cout).astype(jnp.bfloat16)
    w2f = params["w2"].reshape(9 * Cout, Cout).astype(jnp.bfloat16)
    g1 = params["gamma1"].reshape(1, Cout).astype(jnp.float32)
    be1 = params["beta1"].reshape(1, Cout).astype(jnp.float32)
    g2 = params["gamma2"].reshape(1, Cout).astype(jnp.float32)
    be2 = params["beta2"].reshape(1, Cout).astype(jnp.float32)
    # conv biases b1/b2 are intentionally not passed: they cancel inside BN.

    args = [x_col, w1f, g1, be1, w2f, g2, be2]
    flops = 2 * M * Cout * (9 * Cin + 9 * Cout)
    if use_1x1conv:
        args += [params["w3"].reshape(Cin, Cout).astype(jnp.bfloat16),
                 params["b3"].reshape(1, Cout).astype(jnp.float32)]
        flops += 2 * M * Cin * Cout
    else:
        assert s == 1 and Cin == Cout, "identity shortcut needs matching shape"
        # Small f32 copy of x so the identity residual add stays exact
        # (the bf16 im2col slab is only ever an MXU operand).
        args += [x.reshape(M, Cin)]

    bytes_accessed = int(sum(int(a.size) * a.dtype.itemsize for a in args)
                         + M * Cout * 4)
    cost = pl.CostEstimate(flops=int(flops), transcendentals=2 * Cout,
                           bytes_accessed=bytes_accessed)

    vmem = pl.BlockSpec(memory_space=pltpu.MemorySpace.VMEM)
    kernel = _make_residual_kernel(B, Ho, Wo, Cin, Cout, use_1x1conv, eps)

    out2d = pl.pallas_call(
        kernel,
        out_shape=jax.ShapeDtypeStruct((M, Cout), jnp.float32),
        in_specs=[vmem] * len(args),
        out_specs=vmem,
        scratch_shapes=[pltpu.VMEM((B, Ho + 2, Wo + 2, Cout), jnp.float32),
                        pltpu.VMEM((M, 9 * Cout), jnp.float32)],
        cost_estimate=cost,
    )(*args)
    return out2d.reshape(B, Ho, Wo, Cout)


# ---------------- pure-JAX reference (for correctness check) ----------------
def residual_reference(x, params, *, strides=1, use_1x1conv=False, eps=1e-5):
    def conv(inp, w, b, stride, pad):
        y = jax.lax.conv_general_dilated(
            inp, w, window_strides=(stride, stride),
            padding=[(pad, pad), (pad, pad)],
            dimension_numbers=("NHWC", "HWIO", "NHWC"))
        return y + b.reshape(1, 1, 1, -1)

    def bn(y, g, b):
        mean = y.mean(axis=(0, 1, 2), keepdims=True)
        var = ((y - mean) ** 2).mean(axis=(0, 1, 2), keepdims=True)
        return (y - mean) * jax.lax.rsqrt(var + eps) * g.reshape(1, 1, 1, -1) \
            + b.reshape(1, 1, 1, -1)

    y = jax.nn.relu(bn(conv(x, params["w1"], params["b1"], strides, 1),
                       params["gamma1"], params["beta1"]))
    y = bn(conv(y, params["w2"], params["b2"], 1, 1),
           params["gamma2"], params["beta2"])
    sc = conv(x, params["w3"], params["b3"], strides, 0) if use_1x1conv else x
    return jax.nn.relu(y + sc)


def make_params(key, Cin, Cout, use_1x1conv):
    keys = jax.random.split(key, 10)
    p = {
        "w1": 0.1 * jax.random.normal(keys[0], (3, 3, Cin, Cout), jnp.float32),
        "b1": 0.1 * jax.random.normal(keys[1], (Cout,), jnp.float32),
        "w2": 0.1 * jax.random.normal(keys[2], (3, 3, Cout, Cout), jnp.float32),
        "b2": 0.1 * jax.random.normal(keys[3], (Cout,), jnp.float32),
        "gamma1": 1.0 + 0.1 * jax.random.normal(keys[4], (Cout,), jnp.float32),
        "beta1": 0.1 * jax.random.normal(keys[5], (Cout,), jnp.float32),
        "gamma2": 1.0 + 0.1 * jax.random.normal(keys[6], (Cout,), jnp.float32),
        "beta2": 0.1 * jax.random.normal(keys[7], (Cout,), jnp.float32),
    }
    if use_1x1conv:
        p["w3"] = 0.1 * jax.random.normal(keys[8], (1, 1, Cin, Cout), jnp.float32)
        p["b3"] = 0.1 * jax.random.normal(keys[9], (Cout,), jnp.float32)
    return p


if __name__ == "__main__":
    key = jax.random.PRNGKey(0)
    kx, kp1, kp2 = jax.random.split(key, 3)

    # Tolerance: MXU operands are rounded to bf16 in the kernel (stats, BN and
    # the residual add stay f32), so compare against the f32 reference loosely.
    ATOL = RTOL = 5e-2

    # Config A: identity shortcut (input_channels == num_channels, stride 1)
    B, H, W, Cin = 2, 16, 16, 4
    x = jax.random.normal(kx, (B, H, W, Cin), jnp.float32)
    params_a = make_params(kp1, Cin, Cin, use_1x1conv=False)
    out_a = jax.block_until_ready(
        residual_forward(x, params_a, strides=1, use_1x1conv=False))
    ref_a = residual_reference(x, params_a, strides=1, use_1x1conv=False)
    assert out_a.shape == (B, H, W, Cin)
    assert bool(jnp.allclose(out_a, ref_a, atol=ATOL, rtol=RTOL)), "config A mismatch"

    # Config B: 1x1-conv shortcut, stride 2, channel expansion 4 -> 8
    Cout = 8
    params_b = make_params(kp2, Cin, Cout, use_1x1conv=True)
    out_b = jax.block_until_ready(
        residual_forward(x, params_b, strides=2, use_1x1conv=True))
    ref_b = residual_reference(x, params_b, strides=2, use_1x1conv=True)
    assert out_b.shape == (B, 8, 8, Cout)
    assert bool(jnp.allclose(out_b, ref_b, atol=ATOL, rtol=RTOL)), "config B mismatch"

    print("KERNEL_OK")
</pallas_src>

<mosaic_0001>
module attributes {stable_mosaic.version = 11 : i64} {
  func.func @kernel(%arg0: memref<512x36xbf16, #tpu.memory_space<vmem>>, %arg1: memref<36x4xbf16, #tpu.memory_space<vmem>>, %arg2: memref<1x4xf32, #tpu.memory_space<vmem>>, %arg3: memref<1x4xf32, #tpu.memory_space<vmem>>, %arg4: memref<36x4xbf16, #tpu.memory_space<vmem>>, %arg5: memref<1x4xf32, #tpu.memory_space<vmem>>, %arg6: memref<1x4xf32, #tpu.memory_space<vmem>>, %arg7: memref<512x4xf32, #tpu.memory_space<vmem>>, %arg8: memref<512x4xf32, #tpu.memory_space<vmem>>, %arg9: memref<2x18x18x4xf32, #tpu.memory_space<vmem>>, %arg10: memref<512x36xf32, #tpu.memory_space<vmem>>) attributes {dimension_semantics = [], scalar_prefetch = 0 : i64, scratch_operands = 2 : i64, tpu.core_type = #tpu.core_type<tc>} {
    %c0 = arith.constant 0 : index
    %c0_0 = arith.constant 0 : index
    %0 = vector.load %arg0[%c0, %c0_0] : memref<512x36xbf16, #tpu.memory_space<vmem>>, vector<512x36xbf16>
    %c0_1 = arith.constant 0 : index
    %c0_2 = arith.constant 0 : index
    %1 = vector.load %arg1[%c0_1, %c0_2] : memref<36x4xbf16, #tpu.memory_space<vmem>>, vector<36x4xbf16>
    %cst = arith.constant dense<0.000000e+00> : vector<512x4xf32>
    %2 = tpu.matmul %0, %1, %cst {dimension_numbers = #tpu.dot_dimension_numbers<[1], [0], [0], [1], [0, 0, 1, 1], [], []>} : vector<512x36xbf16>, vector<36x4xbf16>, vector<512x4xf32> -> vector<512x4xf32>
    %cst_3 = arith.constant dense<0.000000e+00> : vector<4xf32>
    %3 = vector.multi_reduction <add>, %2, %cst_3 [0] : vector<512x4xf32> to vector<4xf32>
    %4 = vector.shape_cast %3 : vector<4xf32> to vector<1x4xf32>
    %5 = arith.mulf %2, %2 : vector<512x4xf32>
    %cst_4 = arith.constant dense<0.000000e+00> : vector<4xf32>
    %6 = vector.multi_reduction <add>, %5, %cst_4 [0] : vector<512x4xf32> to vector<4xf32>
    %7 = vector.shape_cast %6 : vector<4xf32> to vector<1x4xf32>
    %cst_5 = arith.constant 0.001953125 : f32
    %8 = vector.broadcast %cst_5 : f32 to vector<1x4xf32>
    %9 = arith.mulf %4, %8 : vector<1x4xf32>
    %cst_6 = arith.constant 0.001953125 : f32
    %10 = vector.broadcast %cst_6 : f32 to vector<1x4xf32>
    %11 = arith.mulf %7, %10 : vector<1x4xf32>
    %12 = arith.mulf %9, %9 : vector<1x4xf32>
    %13 = arith.subf %11, %12 : vector<1x4xf32>
    %cst_7 = arith.constant 0.000000e+00 : f32
    %14 = vector.broadcast %cst_7 : f32 to vector<1x4xf32>
    %15 = arith.maximumf %13, %14 : vector<1x4xf32>
    %c0_8 = arith.constant 0 : index
    %c0_9 = arith.constant 0 : index
    %16 = vector.load %arg2[%c0_8, %c0_9] : memref<1x4xf32, #tpu.memory_space<vmem>>, vector<1x4xf32>
    %cst_10 = arith.constant 9.99999974E-6 : f32
    %17 = vector.broadcast %cst_10 : f32 to vector<1x4xf32>
    %18 = arith.addf %15, %17 : vector<1x4xf32>
    %19 = math.rsqrt %18 : vector<1x4xf32>
    %20 = arith.mulf %16, %19 : vector<1x4xf32>
    %c0_11 = arith.constant 0 : index
    %c0_12 = arith.constant 0 : index
    %21 = vector.load %arg3[%c0_11, %c0_12] : memref<1x4xf32, #tpu.memory_space<vmem>>, vector<1x4xf32>
    %22 = arith.mulf %9, %20 : vector<1x4xf32>
    %23 = arith.subf %21, %22 : vector<1x4xf32>
    %24 = vector.broadcast %20 : vector<1x4xf32> to vector<512x4xf32>
    %25 = arith.mulf %2, %24 : vector<512x4xf32>
    %26 = vector.broadcast %23 : vector<1x4xf32> to vector<512x4xf32>
    %27 = arith.addf %25, %26 : vector<512x4xf32>
    %cst_13 = arith.constant 0.000000e+00 : f32
    %28 = vector.broadcast %cst_13 : f32 to vector<512x4xf32>
    %29 = arith.maximumf %27, %28 : vector<512x4xf32>
    %cst_14 = arith.constant 0.000000e+00 : f32
    %30 = vector.broadcast %cst_14 : f32 to vector<2x1x18x4xf32>
    %cst_15 = arith.constant 0.000000e+00 : f32
    %31 = vector.broadcast %cst_15 : f32 to vector<2x16x1x4xf32>
    %c0_16 = arith.constant 0 : index
    %c0_17 = arith.constant 0 : index
    %c0_18 = arith.constant 0 : index
    %c0_19 = arith.constant 0 : index
    %32 = vector.load %arg9[%c0_16, %c0_17, %c0_18, %c0_19] : memref<2x18x18x4xf32, #tpu.memory_space<vmem>>, vector<2x1x18x4xf32>
    tpu.vector_store %arg9[%c0_16, %c0_17, %c0_18, %c0_19], %30 {strides = array<i32>} : memref<2x18x18x4xf32, #tpu.memory_space<vmem>>, vector<2x1x18x4xf32>,
    %c0_20 = arith.constant 0 : index
    %c17 = arith.constant 17 : index
    %c0_21 = arith.constant 0 : index
    %c0_22 = arith.constant 0 : index
    %33 = vector.load %arg9[%c0_20, %c17, %c0_21, %c0_22] : memref<2x18x18x4xf32, #tpu.memory_space<vmem>>, vector<2x1x18x4xf32>
    tpu.vector_store %arg9[%c0_20, %c17, %c0_21, %c0_22], %30 {strides = array<i32>} : memref<2x18x18x4xf32, #tpu.memory_space<vmem>>, vector<2x1x18x4xf32>,
    %c0_23 = arith.constant 0 : index
    %c1 = arith.constant 1 : index
    %c0_24 = arith.constant 0 : index
    %c0_25 = arith.constant 0 : index
    %34 = vector.load %arg9[%c0_23, %c1, %c0_24, %c0_25] : memref<2x18x18x4xf32, #tpu.memory_space<vmem>>, vector<2x16x1x4xf32>
    tpu.vector_store %arg9[%c0_23, %c1, %c0_24, %c0_25], %31 {strides = array<i32>} : memref<2x18x18x4xf32, #tpu.memory_space<vmem>>, vector<2x16x1x4xf32>,
    %c0_26 = arith.constant 0 : index
    %c1_27 = arith.constant 1 : index
    %c17_28 = arith.constant 17 : index
    %c0_29 = arith.constant 0 : index
    %35 = vector.load %arg9[%c0_26, %c1_27, %c17_28, %c0_29] : memref<2x18x18x4xf32, #tpu.memory_space<vmem>>, vector<2x16x1x4xf32>
    tpu.vector_store %arg9[%c0_26, %c1_27, %c17_28, %c0_29], %31 {strides = array<i32>} : memref<2x18x18x4xf32, #tpu.memory_space<vmem>>, vector<2x16x1x4xf32>,
    %36 = vector.shape_cast %29 : vector<512x4xf32> to vector<2x16x16x4xf32>
    %c0_30 = arith.constant 0 : index
    %c1_31 = arith.constant 1 : index
    %c1_32 = arith.constant 1 : index
    %c0_33 = arith.constant 0 : index
    %37 = vector.load %arg9[%c0_30, %c1_31, %c1_32, %c0_33] : memref<2x18x18x4xf32, #tpu.memory_space<vmem>>, vector<2x16x16x4xf32>
    tpu.vector_store %arg9[%c0_30, %c1_31, %c1_32, %c0_33], %36 {strides = array<i32>} : memref<2x18x18x4xf32, #tpu.memory_space<vmem>>, vector<2x16x16x4xf32>,
    %c0_34 = arith.constant 0 : index
    %c0_35 = arith.constant 0 : index
    %c0_36 = arith.constant 0 : index
    %c0_37 = arith.constant 0 : index
    %38 = vector.load %arg9[%c0_34, %c0_35, %c0_36, %c0_37] : memref<2x18x18x4xf32, #tpu.memory_space<vmem>>, vector<2x16x16x4xf32>
    %39 = vector.shape_cast %38 : vector<2x16x16x4xf32> to vector<512x4xf32>
    %c0_38 = arith.constant 0 : index
    %c0_39 = arith.constant 0 : index
    %40 = vector.load %arg10[%c0_38, %c0_39] : memref<512x36xf32, #tpu.memory_space<vmem>>, vector<512x4xf32>
    tpu.vector_store %arg10[%c0_38, %c0_39], %39 {strides = array<i32>} : memref<512x36xf32, #tpu.memory_space<vmem>>, vector<512x4xf32>,
    %c0_40 = arith.constant 0 : index
    %c0_41 = arith.constant 0 : index
    %c1_42 = arith.constant 1 : index
    %c0_43 = arith.constant 0 : index
    %41 = vector.load %arg9[%c0_40, %c0_41, %c1_42, %c0_43] : memref<2x18x18x4xf32, #tpu.memory_space<vmem>>, vector<2x16x16x4xf32>
    %42 = vector.shape_cast %41 : vector<2x16x16x4xf32> to vector<512x4xf32>
    %c0_44 = arith.constant 0 : index
    %c4 = arith.constant 4 : index
    %43 = vector.load %arg10[%c0_44, %c4] : memref<512x36xf32, #tpu.memory_space<vmem>>, vector<512x4xf32>
    tpu.vector_store %arg10[%c0_44, %c4], %42 {strides = array<i32>} : memref<512x36xf32, #tpu.memory_space<vmem>>, vector<512x4xf32>,
    %c0_45 = arith.constant 0 : index
    %c0_46 = arith.constant 0 : index
    %c2 = arith.constant 2 : index
    %c0_47 = arith.constant 0 : index
    %44 = vector.load %arg9[%c0_45, %c0_46, %c2, %c0_47] : memref<2x18x18x4xf32, #tpu.memory_space<vmem>>, vector<2x16x16x4xf32>
    %45 = vector.shape_cast %44 : vector<2x16x16x4xf32> to vector<512x4xf32>
    %c0_48 = arith.constant 0 : index
    %c8 = arith.constant 8 : index
    %46 = vector.load %arg10[%c0_48, %c8] : memref<512x36xf32, #tpu.memory_space<vmem>>, vector<512x4xf32>
    tpu.vector_store %arg10[%c0_48, %c8], %45 {strides = array<i32>} : memref<512x36xf32, #tpu.memory_space<vmem>>, vector<512x4xf32>,
    %c0_49 = arith.constant 0 : index
    %c1_50 = arith.constant 1 : index
    %c0_51 = arith.constant 0 : index
    %c0_52 = arith.constant 0 : index
    %47 = vector.load %arg9[%c0_49, %c1_50, %c0_51, %c0_52] : memref<2x18x18x4xf32, #tpu.memory_space<vmem>>, vector<2x16x16x4xf32>
    %48 = vector.shape_cast %47 : vector<2x16x16x4xf32> to vector<512x4xf32>
    %c0_53 = arith.constant 0 : index
    %c12 = arith.constant 12 : index
    %49 = vector.load %arg10[%c0_53, %c12] : memref<512x36xf32, #tpu.memory_space<vmem>>, vector<512x4xf32>
    tpu.vector_store %arg10[%c0_53, %c12], %48 {strides = array<i32>} : memref<512x36xf32, #tpu.memory_space<vmem>>, vector<512x4xf32>,
    %c0_54 = arith.constant 0 : index
    %c1_55 = arith.constant 1 : index
    %c1_56 = arith.constant 1 : index
    %c0_57 = arith.constant 0 : index
    %50 = vector.load %arg9[%c0_54, %c1_55, %c1_56, %c0_57] : memref<2x18x18x4xf32, #tpu.memory_space<vmem>>, vector<2x16x16x4xf32>
    %51 = vector.shape_cast %50 : vector<2x16x16x4xf32> to vector<512x4xf32>
    %c0_58 = arith.constant 0 : index
    %c16 = arith.constant 16 : index
    %52 = vector.load %arg10[%c0_58, %c16] : memref<512x36xf32, #tpu.memory_space<vmem>>, vector<512x4xf32>
    tpu.vector_store %arg10[%c0_58, %c16], %51 {strides = array<i32>} : memref<512x36xf32, #tpu.memory_space<vmem>>, vector<512x4xf32>,
    %c0_59 = arith.constant 0 : index
    %c1_60 = arith.constant 1 : index
    %c2_61 = arith.constant 2 : index
    %c0_62 = arith.constant 0 : index
    %53 = vector.load %arg9[%c0_59, %c1_60, %c2_61, %c0_62] : memref<2x18x18x4xf32, #tpu.memory_space<vmem>>, vector<2x16x16x4xf32>
    %54 = vector.shape_cast %53 : vector<2x16x16x4xf32> to vector<512x4xf32>
    %c0_63 = arith.constant 0 : index
    %c20 = arith.constant 20 : index
    %55 = vector.load %arg10[%c0_63, %c20] : memref<512x36xf32, #tpu.memory_space<vmem>>, vector<512x4xf32>
    tpu.vector_store %arg10[%c0_63, %c20], %54 {strides = array<i32>} : memref<512x36xf32, #tpu.memory_space<vmem>>, vector<512x4xf32>,
    %c0_64 = arith.constant 0 : index
    %c2_65 = arith.constant 2 : index
    %c0_66 = arith.constant 0 : index
    %c0_67 = arith.constant 0 : index
    %56 = vector.load %arg9[%c0_64, %c2_65, %c0_66, %c0_67] : memref<2x18x18x4xf32, #tpu.memory_space<vmem>>, vector<2x16x16x4xf32>
    %57 = vector.shape_cast %56 : vector<2x16x16x4xf32> to vector<512x4xf32>
    %c0_68 = arith.constant 0 : index
    %c24 = arith.constant 24 : index
    %58 = vector.load %arg10[%c0_68, %c24] : memref<512x36xf32, #tpu.memory_space<vmem>>, vector<512x4xf32>
    tpu.vector_store %arg10[%c0_68, %c24], %57 {strides = array<i32>} : memref<512x36xf32, #tpu.memory_space<vmem>>, vector<512x4xf32>,
    %c0_69 = arith.constant 0 : index
    %c2_70 = arith.constant 2 : index
    %c1_71 = arith.constant 1 : index
    %c0_72 = arith.constant 0 : index
    %59 = vector.load %arg9[%c0_69, %c2_70, %c1_71, %c0_72] : memref<2x18x18x4xf32, #tpu.memory_space<vmem>>, vector<2x16x16x4xf32>
    %60 = vector.shape_cast %59 : vector<2x16x16x4xf32> to vector<512x4xf32>
    %c0_73 = arith.constant 0 : index
    %c28 = arith.constant 28 : index
    %61 = vector.load %arg10[%c0_73, %c28] : memref<512x36xf32, #tpu.memory_space<vmem>>, vector<512x4xf32>
    tpu.vector_store %arg10[%c0_73, %c28], %60 {strides = array<i32>} : memref<512x36xf32, #tpu.memory_space<vmem>>, vector<512x4xf32>,
    %c0_74 = arith.constant 0 : index
    %c2_75 = arith.constant 2 : index
    %c2_76 = arith.constant 2 : index
    %c0_77 = arith.constant 0 : index
    %62 = vector.load %arg9[%c0_74, %c2_75, %c2_76, %c0_77] : memref<2x18x18x4xf32, #tpu.memory_space<vmem>>, vector<2x16x16x4xf32>
    %63 = vector.shape_cast %62 : vector<2x16x16x4xf32> to vector<512x4xf32>
    %c0_78 = arith.constant 0 : index
    %c32 = arith.constant 32 : index
    %64 = vector.load %arg10[%c0_78, %c32] : memref<512x36xf32, #tpu.memory_space<vmem>>, vector<512x4xf32>
    tpu.vector_store %arg10[%c0_78, %c32], %63 {strides = array<i32>} : memref<512x36xf32, #tpu.memory_space<vmem>>, vector<512x4xf32>,
    %c0_79 = arith.constant 0 : index
    %c0_80 = arith.constant 0 : index
    %65 = vector.load %arg10[%c0_79, %c0_80] : memref<512x36xf32, #tpu.memory_space<vmem>>, vector<512x36xf32>
    %66 = arith.truncf %65 : vector<512x36xf32> to vector<512x36xbf16>
    %c0_81 = arith.constant 0 : index
    %c0_82 = arith.constant 0 : index
    %67 = vector.load %arg4[%c0_81, %c0_82] : memref<36x4xbf16, #tpu.memory_space<vmem>>, vector<36x4xbf16>
    %cst_83 = arith.constant dense<0.000000e+00> : vector<512x4xf32>
    %68 = tpu.matmul %66, %67, %cst_83 {dimension_numbers = #tpu.dot_dimension_numbers<[1], [0], [0], [1], [0, 0, 1, 1], [], []>} : vector<512x36xbf16>, vector<36x4xbf16>, vector<512x4xf32> -> vector<512x4xf32>
    %cst_84 = arith.constant dense<0.000000e+00> : vector<4xf32>
    %69 = vector.multi_reduction <add>, %68, %cst_84 [0] : vector<512x4xf32> to vector<4xf32>
    %70 = vector.shape_cast %69 : vector<4xf32> to vector<1x4xf32>
    %71 = arith.mulf %68, %68 : vector<512x4xf32>
    %cst_85 = arith.constant dense<0.000000e+00> : vector<4xf32>
    %72 = vector.multi_reduction <add>, %71, %cst_85 [0] : vector<512x4xf32> to vector<4xf32>
    %73 = vector.shape_cast %72 : vector<4xf32> to vector<1x4xf32>
    %cst_86 = arith.constant 0.001953125 : f32
    %74 = vector.broadcast %cst_86 : f32 to vector<1x4xf32>
    %75 = arith.mulf %70, %74 : vector<1x4xf32>
    %cst_87 = arith.constant 0.001953125 : f32
    %76 = vector.broadcast %cst_87 : f32 to vector<1x4xf32>
    %77 = arith.mulf %73, %76 : vector<1x4xf32>
    %78 = arith.mulf %75, %75 : vector<1x4xf32>
    %79 = arith.subf %77, %78 : vector<1x4xf32>
    %cst_88 = arith.constant 0.000000e+00 : f32
    %80 = vector.broadcast %cst_88 : f32 to vector<1x4xf32>
    %81 = arith.maximumf %79, %80 : vector<1x4xf32>
    %c0_89 = arith.constant 0 : index
    %c0_90 = arith.constant 0 : index
    %82 = vector.load %arg5[%c0_89, %c0_90] : memref<1x4xf32, #tpu.memory_space<vmem>>, vector<1x4xf32>
    %cst_91 = arith.constant 9.99999974E-6 : f32
    %83 = vector.broadcast %cst_91 : f32 to vector<1x4xf32>
    %84 = arith.addf %81, %83 : vector<1x4xf32>
    %85 = math.rsqrt %84 : vector<1x4xf32>
    %86 = arith.mulf %82, %85 : vector<1x4xf32>
    %c0_92 = arith.constant 0 : index
    %c0_93 = arith.constant 0 : index
    %87 = vector.load %arg6[%c0_92, %c0_93] : memref<1x4xf32, #tpu.memory_space<vmem>>, vector<1x4xf32>
    %88 = arith.mulf %75, %86 : vector<1x4xf32>
    %89 = arith.subf %87, %88 : vector<1x4xf32>
    %90 = vector.broadcast %86 : vector<1x4xf32> to vector<512x4xf32>
    %91 = arith.mulf %68, %90 : vector<512x4xf32>
    %92 = vector.broadcast %89 : vector<1x4xf32> to vector<512x4xf32>
    %93 = arith.addf %91, %92 : vector<512x4xf32>
    %c0_94 = arith.constant 0 : index
    %c0_95 = arith.constant 0 : index
    %94 = vector.load %arg7[%c0_94, %c0_95] : memref<512x4xf32, #tpu.memory_space<vmem>>, vector<512x4xf32>
    %95 = arith.addf %93, %94 : vector<512x4xf32>
    %cst_96 = arith.constant 0.000000e+00 : f32
    %96 = vector.broadcast %cst_96 : f32 to vector<512x4xf32>
    %97 = arith.maximumf %95, %96 : vector<512x4xf32>
    %c0_97 = arith.constant 0 : index
    %c0_98 = arith.constant 0 : index
    %98 = vector.load %arg8[%c0_97, %c0_98] : memref<512x4xf32, #tpu.memory_space<vmem>>, vector<512x4xf32>
    tpu.vector_store %arg8[%c0_97, %c0_98], %97 {strides = array<i32>} : memref<512x4xf32, #tpu.memory_space<vmem>>, vector<512x4xf32>,
    return
  }
}

</mosaic_0001>

<bundles_post_ra>
// kernel: tpu_custom_call.1
= control target key start
LH: loop header
LB: loop body
LE: loop exit
PB: predicated region body
PF: predicated region fallthrough
CT: control target
= control target key end

     0   :  { %vm371_vm0 = vcmask 1041408   ;;  %vm274_vm1 = vcmask 293888   ;;  %vm664_vm2 = vcmask 31744   ;;  %vm1213_vm3 = vcmask 25600   ;;  %s6177_s28 = smov 8   ;;  %s6180_s11 = smov 20   ;;  %s10873_s1 = inlined_call_operand.vmem [shape: bf16[36,4], index: 1, kind: input, shape index: {}]   ;;  %s10874_s0 = inlined_call_operand.vmem [shape: bf16[512,36], index: 0, kind: input, shape index: {}]   ;;  %s10875_s2 = inlined_call_operand.vmem [shape: f32[1,4], index: 2, kind: input, shape index: {}]   ;;  %s10876_s3 = inlined_call_operand.vmem [shape: f32[1,4], index: 3, kind: input, shape index: {}]   ;;  %s10877_s4 = inlined_call_operand.vmem [shape: bf16[36,4], index: 4, kind: input, shape index: {}]   ;;  %s10878_s5 = inlined_call_operand.vmem [shape: f32[1,4], index: 5, kind: input, shape index: {}]   ;;  %s10879_s6 = inlined_call_operand.vmem [shape: f32[1,4], index: 6, kind: input, shape index: {}]   ;;  %s10880_s7 = inlined_call_operand.vmem [shape: f32[512,4], index: 7, kind: input, shape index: {}]   ;;  %s10881_s8 = inlined_call_operand.vmem [shape: f32[512,4], index: 8, kind: output, shape index: {}]  }
   0x1   :  { %v6133_v0 = vld [vmem:[%s10873_s1 + $0x10] ss:$0 sps:$4 sm:$0x33]   ;;  %v6134_v1 = vld [vmem:[%s10873_s1 + $0x8] sm:$0xff]   ;;  %v6136_v3 = vld [vmem:[%s10874_s0] sm:$0xff]   ;;  %vm1226_vm4 = vcmask 24576  }
   0x2   :  { %6122 = vmatprep.subr.msk.bf16.mxu0 %vm371_vm0, %v6133_v0  ;;  %v373_v2 = vsel %vm371_vm0, %v6133_v0, 0  ;;  %v6135_v4 = vld [vmem:[%s10873_s1] sm:$0xff]   ;;  %5988 = vmatprep.mubr.msk.bf16.mxu0 %vm274_vm1, %v6136_v3  ;;  %v6137_v5 = vld [vmem:[%s10874_s0 + $0x8] sm:$0xff]   ;;  %v6138_v6 = vld [vmem:[%s10874_s0 + $0x10] sm:$0xff]   ;;  %vm1803_vm5 = vcmask 64544   ;;  %vm2188_vm6 = vcmask 97344  }
   0x3   :  { %5983 = vmatpush3.bf16.msra.mxu0 %v373_v2  ;;  %v6139_v7 = vld [vmem:[%s10874_s0 + $0x18] sm:$0xff]   ;;  %v6140_v8 = vld [vmem:[%s10874_s0 + $0x20] sm:$0xff]   ;;  %v6141_v9 = vld [vmem:[%s10874_s0 + $0x28] sm:$0xff]   ;;  %vm2573_vm7 = vcmask 130144   ;;  %vm2958_vm8 = vcmask 162944   ;;  %s6181_s12 = smov 24  }
   0x4   :  { %5984 = vmatprep.subr.bf16.mxu0 %v6134_v1  ;;  %v6142_v10 = vld [vmem:[%s10874_s0 + $0x30] sm:$0xff]   ;;  %v6143_v11 = vld [vmem:[%s10874_s0 + $0x38] sm:$0xff]   ;;  %v6144_v12 = vld [vmem:[%s10874_s0 + $0x40] sm:$0xff]   ;;  %s6182_s13 = smov 28   ;;  %s6183_s18 = smov 32   ;;  %vm3343_vm9 = vcmask 195744  }
   0x5   :  { %v6145_v13 = vld [vmem:[%s10874_s0 + $0x48] sm:$0xff]   ;;  %v6146_v14 = vld [vmem:[%s10874_s0 + $0x50] sm:$0xff]   ;;  %v6147_v15 = vld [vmem:[%s10874_s0 + $0x58] sm:$0xff]   ;;  %vm3729_vm10 = vcmask 228544   ;;  %vm4114_vm11 = vcmask 261344   ;;  %vm4499_vm12 = vcmask 294144  }
   0x6   :  { %v6148_v16 = vld [vmem:[%s10874_s0 + $0x60] sm:$0xff]   ;;  %v6149_v17 = vld [vmem:[%s10874_s0 + $0x68] sm:$0xff]   ;;  %v6150_v18 = vld [vmem:[%s10874_s0 + $0x70] sm:$0xff]  }
   0x7   :  { %5985 = vmatpush3.bf16.msra.mxu0 %v6134_v1  ;;  %v6151_v19 = vld [vmem:[%s10874_s0 + $0x78] sm:$0xff]   ;;  %v6152_v20 = vld [vmem:[%s10874_s0 + $0x80] sm:$0xff]   ;;  %v6153_v21 = vld [vmem:[%s10874_s0 + $0x88] sm:$0xff]  }
   0x8   :  { %5986 = vmatprep.subr.bf16.mxu0 %v6135_v4  ;;  %v6154_v22 = vld [vmem:[%s10874_s0 + $0x90] sm:$0xff]   ;;  %v6155_v23 = vld [vmem:[%s10874_s0 + $0x98] sm:$0xff]   ;;  %v6156_v24 = vld [vmem:[%s10874_s0 + $0xa0] sm:$0xff]  }
   0x9   :  { %v6157_v25 = vld [vmem:[%s10874_s0 + $0xa8] sm:$0xff]   ;;  %v6158_v26 = vld [vmem:[%s10874_s0 + $0xb0] sm:$0xff]   ;;  %v6159_v27 = vld [vmem:[%s10874_s0 + $0xb8] sm:$0xff]  }
   0xa   :  { %v6160_v28 = vld [vmem:[%s10874_s0 + $0xc0] sm:$0xff]   ;;  %v6161_v29 = vld [vmem:[%s10874_s0 + $0xc8] sm:$0xff]   ;;  %v6162_v30 = vld [vmem:[%s10874_s0 + $0xd0] sm:$0xff]  }
   0xb   :  { %5987 = vmatpush3.bf16.msra.mxu0 %v6135_v4  ;;  %v6163_v31 = vld [vmem:[%s10874_s0 + $0xd8] sm:$0xff]   ;;  %v6164_v32 = vld [vmem:[%s10874_s0 + $0xe0] sm:$0xff]   ;;  %v6165_v33 = vld [vmem:[%s10874_s0 + $0xe8] sm:$0xff]  }
   0xc   :  { %v6166_v34 = vld [vmem:[%s10874_s0 + $0xf0] sm:$0xff]   ;;  %v6167_v35 = vld [vmem:[%s10874_s0 + $0xf8] sm:$0xff]   ;;  %s6176_s0 = smov 4  }
   0xe   :  { %5989 = vmatmul.mubr.msk.bf16.vlgmr.msra.gmra.mxu0 %vm274_vm1, %v6137_v5 }
   0xf   :  { %5992 = vmatprep.mubr.msk.bf16.mxu0 %vm274_vm1, %v6138_v6 }
  0x16   :  { %5993 = vmatmul.mubr.msk.bf16.gmra.mxu0 %vm274_vm1, %v6139_v7 }
  0x17   :  { %5996 = vmatprep.mubr.msk.bf16.mxu0 %vm274_vm1, %v6140_v8 }
  0x1e   :  { %5997 = vmatmul.mubr.msk.bf16.gmra.mxu0 %vm274_vm1, %v6141_v9 }
  0x1f   :  { %6000 = vmatprep.mubr.msk.bf16.mxu0 %vm274_vm1, %v6142_v10 }
  0x26   :  { %6001 = vmatmul.mubr.msk.bf16.gmra.mxu0 %vm274_vm1, %v6143_v11 }
  0x27   :  { %6004 = vmatprep.mubr.msk.bf16.mxu0 %vm274_vm1, %v6144_v12 }
  0x2e   :  { %6005 = vmatmul.mubr.msk.bf16.gmra.mxu0 %vm274_vm1, %v6145_v13 }
  0x2f   :  { %6008 = vmatprep.mubr.msk.bf16.mxu0 %vm274_vm1, %v6146_v14 }
  0x36   :  { %6009 = vmatmul.mubr.msk.bf16.gmra.mxu0 %vm274_vm1, %v6147_v15 }
  0x37   :  { %6012 = vmatprep.mubr.msk.bf16.mxu0 %vm274_vm1, %v6148_v16 }
  0x3e   :  { %6013 = vmatmul.mubr.msk.bf16.gmra.mxu0 %vm274_vm1, %v6149_v17 }
  0x3f   :  { %6016 = vmatprep.mubr.msk.bf16.mxu0 %vm274_vm1, %v6150_v18 }
  0x46   :  { %6017 = vmatmul.mubr.msk.bf16.gmra.mxu0 %vm274_vm1, %v6151_v19 }
  0x47   :  { %6020 = vmatprep.mubr.msk.bf16.mxu0 %vm274_vm1, %v6152_v20 }
  0x4e   :  { %6021 = vmatmul.mubr.msk.bf16.gmra.mxu0 %vm274_vm1, %v6153_v21 }
  0x4f   :  { %6024 = vmatprep.mubr.msk.bf16.mxu0 %vm274_vm1, %v6154_v22 }
  0x56   :  { %6025 = vmatmul.mubr.msk.bf16.gmra.mxu0 %vm274_vm1, %v6155_v23 }
  0x57   :  { %6028 = vmatprep.mubr.msk.bf16.mxu0 %vm274_vm1, %v6156_v24 }
  0x5e   :  { %6029 = vmatmul.mubr.msk.bf16.gmra.mxu0 %vm274_vm1, %v6157_v25 }
  0x5f   :  { %6032 = vmatprep.mubr.msk.bf16.mxu0 %vm274_vm1, %v6158_v26 }
  0x66   :  { %6033 = vmatmul.mubr.msk.bf16.gmra.mxu0 %vm274_vm1, %v6159_v27 }
  0x67   :  { %6036 = vmatprep.mubr.msk.bf16.mxu0 %vm274_vm1, %v6160_v28 }
  0x6e   :  { %6037 = vmatmul.mubr.msk.bf16.gmra.mxu0 %vm274_vm1, %v6161_v29 }
  0x6f   :  { %6040 = vmatprep.mubr.msk.bf16.mxu0 %vm274_vm1, %v6162_v30 }
  0x76   :  { %6041 = vmatmul.mubr.msk.bf16.gmra.mxu0 %vm274_vm1, %v6163_v31 }
  0x77   :  { %6044 = vmatprep.mubr.msk.bf16.mxu0 %vm274_vm1, %v6164_v32 }
  0x7e   :  { %6045 = vmatmul.mubr.msk.bf16.gmra.mxu0 %vm274_vm1, %v6165_v33 }
  0x7f   :  { %6048 = vmatprep.mubr.msk.bf16.mxu0 %vm274_vm1, %v6166_v34 }
  0x86   :  { %6049 = vmatmul.mubr.msk.bf16.gmra.mxu0 %vm274_vm1, %v6167_v35 }
  0xce   :  { %v6368_v36 = vpop.f32.mrf.mxu0 }
  0xcf   :  { %v800_v41 = vmul.f32 %v6368_v36, %v6368_v36  ;;  %v668_v47 = vsel %vm664_vm2, %v6368_v36, 0.0 }
  0xd0   :  { %v6370_v37 = vpop.f32.mrf.mxu0 }
  0xd1   :  { %v798_v39 = vmul.f32 %v6370_v37, %v6370_v37  ;;  %v665_v42 = vsel %vm664_vm2, %v6370_v37, 0.0  ;;  %v865_v54 = vsel %vm664_vm2, %v800_v41, 0.0 }
  0xd2   :  { %v6372_v38 = vpop.f32.mrf.mxu0 }
  0xd3   :  { %v862_v48 = vsel %vm664_vm2, %v798_v39, 0.0  ;;  %v801_v49 = vmul.f32 %v6372_v38, %v6372_v38  ;;  %v670_v55 = vsel %vm664_vm2, %v6372_v38, 0.0 }
  0xd4   :  { %v6376_v40 = vpop.f32.mrf.mxu0 }
  0xd5   :  { %v666_v43 = vsel %vm664_vm2, %v6376_v40, 0.0  ;;  %v799_v44 = vmul.f32 %v6376_v40, %v6376_v40  ;;  %v867_v60 = vsel %vm664_vm2, %v801_v49, 0.0 }
  0xd6   :  { %v667_v45 = vadd.f32 %v666_v43, %v665_v42  ;;  %v6386_v46 = vpop.f32.mrf.mxu0 }
  0xd7   :  { %v863_v50 = vsel %vm664_vm2, %v799_v44, 0.0  ;;  %v804_v1 = vmul.f32 %v6386_v46, %v6386_v46  ;;  %v676_v8 = vsel %vm664_vm2, %v6386_v46, 0.0 }
  0xd8   :  { %v669_v51 = vadd.f32 %v668_v47, %v667_v45  ;;  %v864_v52 = vadd.f32 %v863_v50, %v862_v48  ;;  %v6394_v53 = vpop.f32.mrf.mxu0 }
  0xd9   :  { %v802_v56 = vmul.f32 %v6394_v53, %v6394_v53  ;;  %v672_v61 = vsel %vm664_vm2, %v6394_v53, 0.0  ;;  %v873_v14 = vsel %vm664_vm2, %v804_v1, 0.0 }
  0xda   :  { %v866_v57 = vadd.f32 %v865_v54, %v864_v52  ;;  %v671_v58 = vadd.f32 %v670_v55, %v669_v51  ;;  %v6401_v59 = vpop.f32.mrf.mxu0 }
  0xdb   :  { %v869_v2 = vsel %vm664_vm2, %v802_v56, 0.0  ;;  %v805_v9 = vmul.f32 %v6401_v59, %v6401_v59  ;;  %v678_v15 = vsel %vm664_vm2, %v6401_v59, 0.0 }
  0xdc   :  { %v673_v62 = vadd.f32 %v672_v61, %v671_v58  ;;  %v868_v63 = vadd.f32 %v867_v60, %v866_v57  ;;  %v6406_v0 = vpop.f32.mrf.mxu0 }
  0xdd   :  { %v674_v3 = vsel %vm664_vm2, %v6406_v0, 0.0  ;;  %v803_v4 = vmul.f32 %v6406_v0, %v6406_v0  ;;  %v875_v20 = vsel %vm664_vm2, %v805_v9, 0.0 }
  0xde   :  { %v870_v5 = vadd.f32 %v869_v2, %v868_v63  ;;  %v675_v6 = vadd.f32 %v674_v3, %v673_v62  ;;  %v6415_v7 = vpop.f32.mrf.mxu0 }
  0xdf   :  { %v871_v10 = vsel %vm664_vm2, %v803_v4, 0.0  ;;  %v808_v25 = vmul.f32 %v6415_v7, %v6415_v7  ;;  %v684_v32 = vsel %vm664_vm2, %v6415_v7, 0.0 }
  0xe0   :  { %v677_v11 = vadd.f32 %v676_v8, %v675_v6  ;;  %v872_v12 = vadd.f32 %v871_v10, %v870_v5  ;;  %v6422_v13 = vpop.f32.mrf.mxu0 }
  0xe1   :  { %v806_v16 = vmul.f32 %v6422_v13, %v6422_v13  ;;  %v680_v21 = vsel %vm664_vm2, %v6422_v13, 0.0  ;;  %v881_v42 = vsel %vm664_vm2, %v808_v25, 0.0 }
  0xe2   :  { %v874_v17 = vadd.f32 %v873_v14, %v872_v12  ;;  %v679_v18 = vadd.f32 %v678_v15, %v677_v11  ;;  %v6429_v19 = vpop.f32.mrf.mxu0 }
  0xe3   :  { %v877_v26 = vsel %vm664_vm2, %v806_v16, 0.0  ;;  %v809_v33 = vmul.f32 %v6429_v19, %v6429_v19  ;;  %v686_v43 = vsel %vm664_vm2, %v6429_v19, 0.0 }
  0xe4   :  { %v681_v22 = vadd.f32 %v680_v21, %v679_v18  ;;  %v876_v23 = vadd.f32 %v875_v20, %v874_v17  ;;  %v6434_v24 = vpop.f32.mrf.mxu0 }
  0xe5   :  { %v682_v27 = vsel %vm664_vm2, %v6434_v24, 0.0  ;;  %v807_v28 = vmul.f32 %v6434_v24, %v6434_v24  ;;  %v883_v49 = vsel %vm664_vm2, %v809_v33, 0.0 }
  0xe6   :  { %v878_v29 = vadd.f32 %v877_v26, %v876_v23  ;;  %v683_v30 = vadd.f32 %v682_v27, %v681_v22  ;;  %v6443_v31 = vpop.f32.mrf.mxu0 }
  0xe7   :  { %v879_v34 = vsel %vm664_vm2, %v807_v28, 0.0  ;;  %v812_v55 = vmul.f32 %v6443_v31, %v6443_v31  ;;  %v692_v63 = vsel %vm664_vm2, %v6443_v31, 0.0 }
  0xe8   :  { %v685_v35 = vadd.f32 %v684_v32, %v683_v30  ;;  %v880_v39 = vadd.f32 %v879_v34, %v878_v29  ;;  %v6450_v41 = vpop.f32.mrf.mxu0 }
  0xe9   :  { %v810_v44 = vmul.f32 %v6450_v41, %v6450_v41  ;;  %v688_v50 = vsel %vm664_vm2, %v6450_v41, 0.0  ;;  %v889_v6 = vsel %vm664_vm2, %v812_v55, 0.0 }
  0xea   :  { %v882_v45 = vadd.f32 %v881_v42, %v880_v39  ;;  %v687_v47 = vadd.f32 %v686_v43, %v685_v35  ;;  %v6457_v48 = vpop.f32.mrf.mxu0 }
  0xeb   :  { %v885_v56 = vsel %vm664_vm2, %v810_v44, 0.0  ;;  %v813_v1 = vmul.f32 %v6457_v48, %v6457_v48  ;;  %v694_v8 = vsel %vm664_vm2, %v6457_v48, 0.0 }
  0xec   :  { %v689_v51 = vadd.f32 %v688_v50, %v687_v47  ;;  %v884_v52 = vadd.f32 %v883_v49, %v882_v45  ;;  %v6462_v54 = vpop.f32.mrf.mxu0 }
  0xed   :  { %v690_v57 = vsel %vm664_vm2, %v6462_v54, 0.0  ;;  %v811_v58 = vmul.f32 %v6462_v54, %v6462_v54  ;;  %v891_v14 = vsel %vm664_vm2, %v813_v1, 0.0 }
  0xee   :  { %v886_v60 = vadd.f32 %v885_v56, %v884_v52  ;;  %v691_v61 = vadd.f32 %v690_v57, %v689_v51  ;;  %v6471_v62 = vpop.f32.mrf.mxu0 }
  0xef   :  { %v887_v2 = vsel %vm664_vm2, %v811_v58, 0.0  ;;  %v816_v20 = vmul.f32 %v6471_v62, %v6471_v62  ;;  %v700_v28 = vsel %vm664_vm2, %v6471_v62, 0.0 }
  0xf0   :  { %v693_v3 = vadd.f32 %v692_v63, %v691_v61  ;;  %v888_v4 = vadd.f32 %v887_v2, %v886_v60  ;;  %v6478_v5 = vpop.f32.mrf.mxu0 }
  0xf1   :  { %v814_v9 = vmul.f32 %v6478_v5, %v6478_v5  ;;  %v696_v15 = vsel %vm664_vm2, %v6478_v5, 0.0  ;;  %v897_v35 = vsel %vm664_vm2, %v816_v20, 0.0 }
  0xf2   :  { %v890_v10 = vadd.f32 %v889_v6, %v888_v4  ;;  %v695_v11 = vadd.f32 %v694_v8, %v693_v3  ;;  %v6485_v12 = vpop.f32.mrf.mxu0 }
  0xf3   :  { %v893_v21 = vsel %vm664_vm2, %v814_v9, 0.0  ;;  %v817_v29 = vmul.f32 %v6485_v12, %v6485_v12  ;;  %v702_v39 = vsel %vm664_vm2, %v6485_v12, 0.0  ;;  %v10882_v9 = vmov 0.0  }
  0xf4   :  { %v697_v16 = vadd.f32 %v696_v15, %v695_v11  ;;  %v892_v17 = vadd.f32 %v891_v14, %v890_v10  ;;  %v6490_v18 = vpop.f32.mrf.mxu0  ;;  %1211 = vst.msk [vmem:[#allocation2] sm:$0xff] %vm664_vm2, %v10882_v9  ;;  %1212 = vst.msk [vmem:[#allocation2 + $0x8] sm:$0xff] %vm664_vm2, %v10882_v9 }
  0xf5   :  { %v698_v22 = vsel %vm664_vm2, %v6490_v18, 0.0  ;;  %v815_v23 = vmul.f32 %v6490_v18, %v6490_v18  ;;  %v899_v47 = vsel %vm664_vm2, %v817_v29, 0.0  ;;  %1215 = vst.msk [vmem:[#allocation2 + $0x1b0] sm:$0xff] %vm664_vm2, %v10882_v9  ;;  %1216 = vst.msk [vmem:[#allocation2 + $0x1b8] sm:$0xff] %vm664_vm2, %v10882_v9 }
  0xf6   :  { %v894_v25 = vadd.f32 %v893_v21, %v892_v17  ;;  %v699_v26 = vadd.f32 %v698_v22, %v697_v16  ;;  %v6499_v27 = vpop.f32.mrf.mxu0  ;;  %1219 = vst.msk [vmem:[#allocation2 + $0x198] sm:$0xff] %vm664_vm2, %v10882_v9  ;;  %1220 = vst.msk [vmem:[#allocation2 + $0x1a0] sm:$0xff] %vm664_vm2, %v10882_v9 }
  0xf7   :  { %v895_v30 = vsel %vm664_vm2, %v815_v23, 0.0  ;;  %v820_v55 = vmul.f32 %v6499_v27, %v6499_v27  ;;  %v708_v1 = vsel %vm664_vm2, %v6499_v27, 0.0  ;;  %1222 = vst.msk [vmem:[#allocation2 + $0x348] sm:$0xff] %vm664_vm2, %v10882_v9  ;;  %1223 = vst.msk [vmem:[#allocation2 + $0x350] sm:$0xff] %vm664_vm2, %v10882_v9 }
  0xf8   :  { %v701_v32 = vadd.f32 %v700_v28, %v699_v26  ;;  %v896_v33 = vadd.f32 %v895_v30, %v894_v25  ;;  %v6506_v34 = vpop.f32.mrf.mxu0  ;;  %1214 = vst.msk [vmem:[#allocation2 + $0x10] sm:$0x3] %vm1213_vm3, %v10882_v9  ;;  %1217 = vst.msk [vmem:[#allocation2 + $0x1c0] sm:$0x3] %vm1213_vm3, %v10882_v9 }
  0xf9   :  { %v818_v42 = vmul.f32 %v6506_v34, %v6506_v34  ;;  %v704_v49 = vsel %vm664_vm2, %v6506_v34, 0.0  ;;  %v905_v10 = vsel %vm664_vm2, %v820_v55, 0.0  ;;  %1221 = vst.msk [vmem:[#allocation2 + $0x1a8] sm:$0x3] %vm1213_vm3, %v10882_v9  ;;  %1224 = vst.msk [vmem:[#allocation2 + $0x358] sm:$0x3] %vm1213_vm3, %v10882_v9 }
  0xfa   :  { %v898_v43 = vadd.f32 %v897_v35, %v896_v33  ;;  %v703_v44 = vadd.f32 %v702_v39, %v701_v32  ;;  %v6513_v45 = vpop.f32.mrf.mxu0 }
  0xfb   :  { %v901_v56 = vsel %vm664_vm2, %v818_v42, 0.0  ;;  %v821_v2 = vmul.f32 %v6513_v45, %v6513_v45  ;;  %v710_v11 = vsel %vm664_vm2, %v6513_v45, 0.0 }
  0xfc   :  { %v705_v50 = vadd.f32 %v704_v49, %v703_v44  ;;  %v900_v51 = vadd.f32 %v899_v47, %v898_v43  ;;  %v6518_v52 = vpop.f32.mrf.mxu0  ;;  %v1483_v44 = vld [vmem:[#allocation2 + $0x1] sm:$0xff] }
  0xfd   :  { %v706_v57 = vsel %vm664_vm2, %v6518_v52, 0.0  ;;  %v819_v58 = vmul.f32 %v6518_v52, %v6518_v52  ;;  %v907_v20 = vsel %vm664_vm2, %v821_v2, 0.0  ;;  %1611 = vrot.lane.b32.xlu0 %v1483_v44, %s6176_s0 }
  0xfe   :  { %v902_v60 = vadd.f32 %v901_v56, %v900_v51  ;;  %v707_v61 = vadd.f32 %v706_v57, %v705_v50  ;;  %v6527_v63 = vpop.f32.mrf.mxu0 }
  0xff   :  { %v903_v3 = vsel %vm664_vm2, %v819_v58, 0.0  ;;  %v824_v26 = vmul.f32 %v6527_v63, %v6527_v63  ;;  %v716_v39 = vsel %vm664_vm2, %v6527_v63, 0.0 }
 0x100   :  { %v709_v4 = vadd.f32 %v708_v1, %v707_v61  ;;  %v904_v6 = vadd.f32 %v903_v3, %v902_v60  ;;  %v6534_v8 = vpop.f32.mrf.mxu0 }
 0x101   :  { %v822_v14 = vmul.f32 %v6534_v8, %v6534_v8  ;;  %v712_v21 = vsel %vm664_vm2, %v6534_v8, 0.0  ;;  %v913_v51 = vsel %vm664_vm2, %v824_v26, 0.0 }
 0x102   :  { %v906_v15 = vadd.f32 %v905_v10, %v904_v6  ;;  %v711_v16 = vadd.f32 %v710_v11, %v709_v4  ;;  %v6557_v17 = vpop.f32.mrf.mxu0 }
 0x103   :  { %v909_v28 = vsel %vm664_vm2, %v822_v14, 0.0  ;;  %v825_v42 = vmul.f32 %v6557_v17, %v6557_v17  ;;  %v718_v55 = vsel %vm664_vm2, %v6557_v17, 0.0 }
 0x104   :  { %v713_v22 = vadd.f32 %v712_v21, %v711_v16  ;;  %v908_v23 = vadd.f32 %v907_v20, %v906_v15  ;;  %v6562_v25 = vpop.f32.mrf.mxu0 }
 0x105   :  { %v714_v29 = vsel %vm664_vm2, %v6562_v25, 0.0  ;;  %v823_v30 = vmul.f32 %v6562_v25, %v6562_v25  ;;  %v915_v61 = vsel %vm664_vm2, %v825_v42, 0.0 }
 0x106   :  { %v910_v32 = vadd.f32 %v909_v28, %v908_v23  ;;  %v715_v33 = vadd.f32 %v714_v29, %v713_v22  ;;  %v6571_v35 = vpop.f32.mrf.mxu0 }
 0x107   :  { %v911_v43 = vsel %vm664_vm2, %v823_v30, 0.0  ;;  %v828_v6 = vmul.f32 %v6571_v35, %v6571_v35  ;;  %v724_v21 = vsel %vm664_vm2, %v6571_v35, 0.0 }
 0x108   :  { %v717_v47 = vadd.f32 %v716_v39, %v715_v33  ;;  %v912_v49 = vadd.f32 %v911_v43, %v910_v32  ;;  %v6578_v50 = vpop.f32.mrf.mxu0 }
 0x109   :  { %v826_v56 = vmul.f32 %v6578_v50, %v6578_v50  ;;  %v720_v1 = vsel %vm664_vm2, %v6578_v50, 0.0  ;;  %v921_v30 = vsel %vm664_vm2, %v828_v6, 0.0 }
 0x10a   :  { %v914_v57 = vadd.f32 %v913_v51, %v912_v49  ;;  %v719_v58 = vadd.f32 %v718_v55, %v717_v47  ;;  %v6586_v60 = vpop.f32.mrf.mxu0 }
 0x10b   :  { %v917_v10 = vsel %vm664_vm2, %v826_v56, 0.0  ;;  %v829_v22 = vmul.f32 %v6586_v60, %v6586_v60  ;;  %v726_v32 = vsel %vm664_vm2, %v6586_v60, 0.0 }
 0x10c   :  { %v721_v2 = vadd.f32 %v720_v1, %v719_v58  ;;  %v916_v3 = vadd.f32 %v915_v61, %v914_v57  ;;  %v6591_v4 = vpop.f32.mrf.mxu0 }
 0x10d   :  { %v722_v11 = vsel %vm664_vm2, %v6591_v4, 0.0  ;;  %v827_v14 = vmul.f32 %v6591_v4, %v6591_v4  ;;  %v923_v44 = vsel %vm664_vm2, %v829_v22, 0.0 }
 0x10e   :  { %v918_v15 = vadd.f32 %v917_v10, %v916_v3  ;;  %v723_v16 = vadd.f32 %v722_v11, %v721_v2  ;;  %v6600_v20 = vpop.f32.mrf.mxu0 }
 0x10f   :  { %v919_v23 = vsel %vm664_vm2, %v827_v14, 0.0  ;;  %v832_v56 = vmul.f32 %v6600_v20, %v6600_v20  ;;  %v732_v6 = vsel %vm664_vm2, %v6600_v20, 0.0  ;;  %v1484_v14 = vld [vmem:[#allocation2 + $0x9] sm:$0xff] }
 0x110   :  { %v725_v26 = vadd.f32 %v724_v21, %v723_v16  ;;  %v920_v28 = vadd.f32 %v919_v23, %v918_v15  ;;  %v6607_v29 = vpop.f32.mrf.mxu0  ;;  %1613 = vrot.lane.b32.xlu0 %v1484_v14, %s6176_s0 }
 0x111   :  { %v830_v33 = vmul.f32 %v6607_v29, %v6607_v29  ;;  %v728_v47 = vsel %vm664_vm2, %v6607_v29, 0.0  ;;  %v929_v22 = vsel %vm664_vm2, %v832_v56, 0.0 }
 0x112   :  { %v922_v39 = vadd.f32 %v921_v30, %v920_v28  ;;  %v727_v42 = vadd.f32 %v726_v32, %v725_v26  ;;  %v6618_v43 = vpop.f32.mrf.mxu0 }
 0x113   :  { %v925_v57 = vsel %vm664_vm2, %v830_v33, 0.0  ;;  %v833_v10 = vmul.f32 %v6618_v43, %v6618_v43  ;;  %v734_v23 = vsel %vm664_vm2, %v6618_v43, 0.0 }
 0x114   :  { %v729_v49 = vadd.f32 %v728_v47, %v727_v42  ;;  %v924_v51 = vadd.f32 %v923_v44, %v922_v39  ;;  %v6623_v55 = vpop.f32.mrf.mxu0 }
 0x115   :  { %v730_v58 = vsel %vm664_vm2, %v6623_v55, 0.0  ;;  %v831_v61 = vmul.f32 %v6623_v55, %v6623_v55  ;;  %v931_v33 = vsel %vm664_vm2, %v833_v10, 0.0 }
 0x116   :  { %v926_v1 = vadd.f32 %v925_v57, %v924_v51  ;;  %v731_v2 = vadd.f32 %v730_v58, %v729_v49  ;;  %v6632_v3 = vpop.f32.mrf.mxu0 }
 0x117   :  { %v927_v11 = vsel %vm664_vm2, %v831_v61, 0.0  ;;  %v836_v49 = vmul.f32 %v6632_v3, %v6632_v3 }
 0x118   :  { %v733_v15 = vadd.f32 %v732_v6, %v731_v2  ;;  %v928_v16 = vadd.f32 %v927_v11, %v926_v1  ;;  %v6639_v21 = vpop.f32.mrf.mxu0  ;;  %v740_v2 = vsel %vm664_vm2, %v6632_v3, 0.0 }
 0x119   :  { %v834_v26 = vmul.f32 %v6639_v21, %v6639_v21  ;;  %v736_v39 = vsel %vm664_vm2, %v6639_v21, 0.0 }
 0x11a   :  { %v930_v28 = vadd.f32 %v929_v22, %v928_v16  ;;  %v735_v30 = vadd.f32 %v734_v23, %v733_v15  ;;  %v6647_v32 = vpop.f32.mrf.mxu0  ;;  %v937_v16 = vsel %vm664_vm2, %v836_v49, 0.0 }
 0x11b   :  { %10939 = vst [vmem:[#allocation4_spill] sm:$0xff] %v6647_v32  ;;  %v933_v51 = vsel %vm664_vm2, %v834_v26, 0.0  ;;  %v837_v6 = vmul.f32 %v6647_v32, %v6647_v32  ;;  %v742_v22 = vsel %vm664_vm2, %v6647_v32, 0.0 }
 0x11c   :  { %v737_v42 = vadd.f32 %v736_v39, %v735_v30  ;;  %v932_v44 = vadd.f32 %v931_v33, %v930_v28  ;;  %v6652_v47 = vpop.f32.mrf.mxu0 }
 0x11d   :  { %v738_v56 = vsel %vm664_vm2, %v6652_v47, 0.0  ;;  %v835_v57 = vmul.f32 %v6652_v47, %v6652_v47  ;;  %v939_v33 = vsel %vm664_vm2, %v837_v6, 0.0 }
 0x11e   :  { %v934_v58 = vadd.f32 %v933_v51, %v932_v44  ;;  %v739_v61 = vadd.f32 %v738_v56, %v737_v42  ;;  %v6661_v1 = vpop.f32.mrf.mxu0 }
 0x11f   :  { %10940 = vst [vmem:[#allocation5_spill] sm:$0xff] %v6661_v1  ;;  %v935_v10 = vsel %vm664_vm2, %v835_v57, 0.0  ;;  %v840_v49 = vmul.f32 %v6661_v1, %v6661_v1 }
 0x120   :  { %v741_v11 = vadd.f32 %v740_v2, %v739_v61  ;;  %v936_v14 = vadd.f32 %v935_v10, %v934_v58  ;;  %v6668_v15 = vpop.f32.mrf.mxu0  ;;  %v748_v10 = vsel %vm664_vm2, %v6661_v1, 0.0 }
 0x121   :  { %10941 = vst [vmem:[#allocation6_spill] sm:$0xff] %v6668_v15  ;;  %v838_v23 = vmul.f32 %v6668_v15, %v6668_v15  ;;  %v744_v39 = vsel %vm664_vm2, %v6668_v15, 0.0 }
 0x122   :  { %v938_v26 = vadd.f32 %v937_v16, %v936_v14  ;;  %v743_v28 = vadd.f32 %v742_v22, %v741_v11  ;;  %v6675_v30 = vpop.f32.mrf.mxu0 }
 0x123   :  { %10942 = vst [vmem:[#allocation7_spill] sm:$0xff] %v6675_v30  ;;  %v941_v56 = vsel %vm664_vm2, %v838_v23, 0.0  ;;  %v841_v11 = vmul.f32 %v6675_v30, %v6675_v30 }
 0x124   :  { %v745_v42 = vadd.f32 %v744_v39, %v743_v28  ;;  %v940_v44 = vadd.f32 %v939_v33, %v938_v26  ;;  %v6680_v51 = vpop.f32.mrf.mxu0  ;;  %v945_v26 = vsel %vm664_vm2, %v840_v49, 0.0  ;;  %v750_v28 = vsel %vm664_vm2, %v6675_v30, 0.0  ;;  %v1516_v39 = vld [vmem:[#allocation2 + $0x1b9] sm:$0xff] }
 0x125   :  { %10943 = vst [vmem:[#allocation8_spill] sm:$0xff] %v6680_v51  ;;  %v746_v57 = vsel %vm664_vm2, %v6680_v51, 0.0  ;;  %v839_v58 = vmul.f32 %v6680_v51, %v6680_v51  ;;  %1677 = vrot.lane.b32.xlu1 %v1516_v39, %s6176_s0 }
 0x126   :  { %v942_v61 = vadd.f32 %v941_v56, %v940_v44  ;;  %v747_v2 = vadd.f32 %v746_v57, %v745_v42  ;;  %v6689_v6 = vpop.f32.mrf.mxu0  ;;  %v1515_v42 = vld [vmem:[#allocation2 + $0x1b1] sm:$0xff] }
 0x127   :  { %10944 = vst [vmem:[#allocation9_spill] sm:$0xff] %v6689_v6  ;;  %v943_v14 = vsel %vm664_vm2, %v839_v58, 0.0  ;;  %1675 = vrot.lane.b32.xlu0 %v1515_v42, %s6176_s0  ;;  %v947_v58 = vsel %vm664_vm2, %v841_v11, 0.0  ;;  %v1868_v11 = vld [vmem:[#allocation2 + $0x2] sm:$0xff] }
 0x128   :  { %v749_v16 = vadd.f32 %v748_v10, %v747_v2  ;;  %v944_v22 = vadd.f32 %v943_v14, %v942_v61  ;;  %v6696_v23 = vpop.f32.mrf.mxu0  ;;  %v844_v14 = vmul.f32 %v6689_v6, %v6689_v6 }
 0x129   :  { %10945 = vst [vmem:[#allocation10_spill] sm:$0xff] %v6696_v23  ;;  %v842_v33 = vmul.f32 %v6696_v23, %v6696_v23  ;;  %v752_v49 = vsel %vm664_vm2, %v6696_v23, 0.0 }
 0x12a   :  { %v946_v44 = vadd.f32 %v945_v26, %v944_v22  ;;  %v751_v56 = vadd.f32 %v750_v28, %v749_v16  ;;  %v6703_v57 = vpop.f32.mrf.mxu0  ;;  %v1869_v28 = vld [vmem:[#allocation2 + $0xa] sm:$0xff] }
 0x12b   :  { %10946 = vst [vmem:[#allocation11_spill] sm:$0xff] %v6703_v57  ;;  %v949_v16 = vsel %vm664_vm2, %v842_v33, 0.0  ;;  %1998 = vrot.lane.b32.xlu1 %v1869_v28, %s6177_s28  ;;  %1996 = vrot.lane.b32.xlu0 %v1868_v11, %s6177_s28  ;;  %v756_v33 = vsel %vm664_vm2, %v6689_v6, 0.0 }
 0x12c   :  { %v753_v61 = vadd.f32 %v752_v49, %v751_v56  ;;  %v948_v2 = vadd.f32 %v947_v58, %v946_v44  ;;  %v6710_v10 = vpop.f32.mrf.mxu0  ;;  %v845_v44 = vmul.f32 %v6703_v57, %v6703_v57  ;;  %v1901_v58 = vld [vmem:[#allocation2 + $0x1ba] sm:$0xff]  ;;  %v1900_v49 = vld [vmem:[#allocation2 + $0x1b2] sm:$0xff] }
 0x12d   :  { %10947 = vst [vmem:[#allocation12_spill] sm:$0xff] %v6710_v10  ;;  %v754_v22 = vsel %vm664_vm2, %v6710_v10, 0.0  ;;  %v843_v26 = vmul.f32 %v6710_v10, %v6710_v10 }
 0x12e   :  { %v950_v39 = vadd.f32 %v949_v16, %v948_v2  ;;  %v755_v42 = vadd.f32 %v754_v22, %v753_v61  ;;  %v6719_v9 = vpop.f32.mrf.mxu0  ;;  %v953_v16 = vsel %vm664_vm2, %v844_v14, 0.0  ;;  %v758_v22 = vsel %vm664_vm2, %v6703_v57, 0.0 }
 0x12f   :  { %10948 = vst [vmem:[#allocation13_spill] sm:$0xff] %v6719_v9  ;;  %v951_v56 = vsel %vm664_vm2, %v843_v26, 0.0  ;;  %2062 = vrot.lane.b32.xlu1 %v1901_v58, %s6177_s28  ;;  %2060 = vrot.lane.b32.xlu0 %v1900_v49, %s6177_s28  ;;  %v6746_v14 = vsel %vm664_vm2, %v845_v44, 0.0 }
 0x130   :  { %v757_v10 = vadd.f32 %v756_v33, %v755_v42  ;;  %v952_v2 = vadd.f32 %v951_v56, %v950_v39  ;;  %v6728_v61 = vpop.f32.mrf.mxu0  ;;  %v10951_v42 = vmov 0.0   ;;  %v848_v56 = vmul.f32 %v6719_v9, %v6719_v9 }
 0x131   :  { %10949 = vst [vmem:[#allocation14_spill] sm:$0xff] %v6728_v61  ;;  %v6735_v28 = vmul.f32 %v6728_v61, %v6728_v61  ;;  %v6750_v39 = vsel %vm664_vm2, %v6728_v61, 0.0  ;;  %1228 = vst.msk [vmem:[#allocation2 + $0x30] sm:$0x1] %vm1226_vm4, %v10951_v42 }
 0x132   :  { %v6737_v11 = vadd.f32 %v953_v16, %v952_v2  ;;  %v6739_v6 = vadd.f32 %v758_v22, %v757_v10  ;;  %v6741_v26 = vpop.f32.mrf.mxu0  ;;  %1227 = vst.msk [vmem:[#allocation2 + $0x18] sm:$0x1] %vm1226_vm4, %v10951_v42  ;;  %1229 = vst.msk [vmem:[#allocation2 + $0x48] sm:$0x1] %vm1226_vm4, %v10951_v42  ;;  %v961_v57 = vsel %vm664_vm2, %v848_v56, 0.0 }
 0x133   :  { %10950 = vst [vmem:[#allocation15_spill] sm:$0xff] %v6741_v26  ;;  %1230 = vst.msk [vmem:[#allocation2 + $0x60] sm:$0x1] %vm1226_vm4, %v10951_v42  ;;  %v957_v58 = vsel %vm664_vm2, %v6735_v28, 0.0 }
 0x134   :  { %1231 = vst.msk [vmem:[#allocation2 + $0x78] sm:$0x1] %vm1226_vm4, %v10951_v42  ;;  %1232 = vst.msk [vmem:[#allocation2 + $0x90] sm:$0x1] %vm1226_vm4, %v10951_v42  ;;  %v761_v10 = vadd.f32 %v6750_v39, %v6739_v6  ;;  %v956_v33 = vadd.f32 %v6746_v14, %v6737_v11  ;;  %v6884_v44 = vpop.f32.mrf.mxu0  ;;  %v764_v11 = vsel %vm664_vm2, %v6719_v9, 0.0  ;;  %v849_v14 = vmul.f32 %v6741_v26, %v6741_v26 }
 0x135   :  { %1233 = vst.msk [vmem:[#allocation2 + $0xa8] sm:$0x1] %vm1226_vm4, %v10951_v42  ;;  %1234 = vst.msk [vmem:[#allocation2 + $0xc0] sm:$0x1] %vm1226_vm4, %v10951_v42  ;;  %v762_v49 = vsel %vm664_vm2, %v6884_v44, 0.0  ;;  %v847_v2 = vmul.f32 %v6884_v44, %v6884_v44 }
 0x136   :  { %1235 = vst.msk [vmem:[#allocation2 + $0xd8] sm:$0x1] %vm1226_vm4, %v10951_v42  ;;  %1236 = vst.msk [vmem:[#allocation2 + $0xf0] sm:$0x1] %vm1226_vm4, %v10951_v42  ;;  %v958_v16 = vadd.f32 %v957_v58, %v956_v33  ;;  %v763_v22 = vadd.f32 %v762_v49, %v761_v10  ;;  %v6894_v6 = vpop.f32.mrf.mxu0  ;;  %v766_v33 = vsel %vm664_vm2, %v6741_v26, 0.0 }
 0x137   :  { %1237 = vst.msk [vmem:[#allocation2 + $0x108] sm:$0x1] %vm1226_vm4, %v10951_v42  ;;  %1238 = vst.msk [vmem:[#allocation2 + $0x120] sm:$0x1] %vm1226_vm4, %v10951_v42  ;;  %v959_v39 = vsel %vm664_vm2, %v847_v2, 0.0  ;;  %v852_v56 = vmul.f32 %v6894_v6, %v6894_v6 }
 0x138   :  { %1239 = vst.msk [vmem:[#allocation2 + $0x138] sm:$0x1] %vm1226_vm4, %v10951_v42  ;;  %1240 = vst.msk [vmem:[#allocation2 + $0x150] sm:$0x1] %vm1226_vm4, %v10951_v42  ;;  %v960_v28 = vadd.f32 %v959_v39, %v958_v16  ;;  %v6901_v61 = vpop.f32.mrf.mxu0 }
 0x139   :  { %1241 = vst.msk [vmem:[#allocation2 + $0x168] sm:$0x1] %vm1226_vm4, %v10951_v42  ;;  %1242 = vst.msk [vmem:[#allocation2 + $0x180] sm:$0x1] %vm1226_vm4, %v10951_v42  ;;  %v850_v10 = vmul.f32 %v6901_v61, %v6901_v61  ;;  %v768_v2 = vsel %vm664_vm2, %v6901_v61, 0.0  ;;  %v969_v26 = vsel %vm664_vm2, %v852_v56, 0.0 }
 0x13a   :  { %1243 = vst.msk [vmem:[#allocation2 + $0x1c8] sm:$0x1] %vm1226_vm4, %v10951_v42  ;;  %1244 = vst.msk [vmem:[#allocation2 + $0x1e0] sm:$0x1] %vm1226_vm4, %v10951_v42  ;;  %v962_v58 = vadd.f32 %v961_v57, %v960_v28  ;;  %v6908_v9 = vpop.f32.mrf.mxu0 }
 0x13b   :  { %1245 = vst.msk [vmem:[#allocation2 + $0x1f8] sm:$0x1] %vm1226_vm4, %v10951_v42  ;;  %1246 = vst.msk [vmem:[#allocation2 + $0x210] sm:$0x1] %vm1226_vm4, %v10951_v42  ;;  %v965_v39 = vsel %vm664_vm2, %v850_v10, 0.0 }
 0x13c   :  { %1247 = vst.msk [vmem:[#allocation2 + $0x228] sm:$0x1] %vm1226_vm4, %v10951_v42  ;;  %1248 = vst.msk [vmem:[#allocation2 + $0x240] sm:$0x1] %vm1226_vm4, %v10951_v42 }
 0x13d   :  { %1249 = vst.msk [vmem:[#allocation2 + $0x258] sm:$0x1] %vm1226_vm4, %v10951_v42  ;;  %1250 = vst.msk [vmem:[#allocation2 + $0x270] sm:$0x1] %vm1226_vm4, %v10951_v42 }
 0x13e   :  { %1251 = vst.msk [vmem:[#allocation2 + $0x288] sm:$0x1] %vm1226_vm4, %v10951_v42  ;;  %1252 = vst.msk [vmem:[#allocation2 + $0x2a0] sm:$0x1] %vm1226_vm4, %v10951_v42 }
 0x13f   :  { %1253 = vst.msk [vmem:[#allocation2 + $0x2b8] sm:$0x1] %vm1226_vm4, %v10951_v42  ;;  %1254 = vst.msk [vmem:[#allocation2 + $0x2d0] sm:$0x1] %vm1226_vm4, %v10951_v42 }
 0x140   :  { %1255 = vst.msk [vmem:[#allocation2 + $0x2e8] sm:$0x1] %vm1226_vm4, %v10951_v42  ;;  %1256 = vst.msk [vmem:[#allocation2 + $0x300] sm:$0x1] %vm1226_vm4, %v10951_v42 }
 0x141   :  { %1257 = vst.msk [vmem:[#allocation2 + $0x318] sm:$0x1] %vm1226_vm4, %v10951_v42  ;;  %1258 = vst.msk [vmem:[#allocation2 + $0x330] sm:$0x1] %vm1226_vm4, %v10951_v42 }
 0x142   :  { %1259 = vst.msk [vmem:[#allocation2 + $0x29] sm:$0x1] %vm1226_vm4, %v10951_v42  ;;  %1260 = vst.msk [vmem:[#allocation2 + $0x41] sm:$0x1] %vm1226_vm4, %v10951_v42 }
 0x143   :  { %1261 = vst.msk [vmem:[#allocation2 + $0x59] sm:$0x1] %vm1226_vm4, %v10951_v42  ;;  %1262 = vst.msk [vmem:[#allocation2 + $0x71] sm:$0x1] %vm1226_vm4, %v10951_v42 }
 0x144   :  { %1263 = vst.msk [vmem:[#allocation2 + $0x89] sm:$0x1] %vm1226_vm4, %v10951_v42  ;;  %1264 = vst.msk [vmem:[#allocation2 + $0xa1] sm:$0x1] %vm1226_vm4, %v10951_v42 }
 0x145   :  { %1265 = vst.msk [vmem:[#allocation2 + $0xb9] sm:$0x1] %vm1226_vm4, %v10951_v42  ;;  %1266 = vst.msk [vmem:[#allocation2 + $0xd1] sm:$0x1] %vm1226_vm4, %v10951_v42 }
 0x146   :  { %1267 = vst.msk [vmem:[#allocation2 + $0xe9] sm:$0x1] %vm1226_vm4, %v10951_v42  ;;  %1268 = vst.msk [vmem:[#allocation2 + $0x101] sm:$0x1] %vm1226_vm4, %v10951_v42 }
 0x147   :  { %1269 = vst.msk [vmem:[#allocation2 + $0x119] sm:$0x1] %vm1226_vm4, %v10951_v42  ;;  %1270 = vst.msk [vmem:[#allocation2 + $0x131] sm:$0x1] %vm1226_vm4, %v10951_v42 }
 0x148   :  { %1271 = vst.msk [vmem:[#allocation2 + $0x149] sm:$0x1] %vm1226_vm4, %v10951_v42  ;;  %1272 = vst.msk [vmem:[#allocation2 + $0x161] sm:$0x1] %vm1226_vm4, %v10951_v42 }
 0x149   :  { %1273 = vst.msk [vmem:[#allocation2 + $0x179] sm:$0x1] %vm1226_vm4, %v10951_v42  ;;  %1274 = vst.msk [vmem:[#allocation2 + $0x191] sm:$0x1] %vm1226_vm4, %v10951_v42 }
 0x14a   :  { %1275 = vst.msk [vmem:[#allocation2 + $0x1d9] sm:$0x1] %vm1226_vm4, %v10951_v42  ;;  %1276 = vst.msk [vmem:[#allocation2 + $0x1f1] sm:$0x1] %vm1226_vm4, %v10951_v42 }
 0x14b   :  { %1277 = vst.msk [vmem:[#allocation2 + $0x209] sm:$0x1] %vm1226_vm4, %v10951_v42  ;;  %1278 = vst.msk [vmem:[#allocation2 + $0x221] sm:$0x1] %vm1226_vm4, %v10951_v42 }
 0x14c   :  { %1279 = vst.msk [vmem:[#allocation2 + $0x239] sm:$0x1] %vm1226_vm4, %v10951_v42  ;;  %1280 = vst.msk [vmem:[#allocation2 + $0x251] sm:$0x1] %vm1226_vm4, %v10951_v42 }
 0x14d   :  { %1281 = vst.msk [vmem:[#allocation2 + $0x269] sm:$0x1] %vm1226_vm4, %v10951_v42  ;;  %1282 = vst.msk [vmem:[#allocation2 + $0x281] sm:$0x1] %vm1226_vm4, %v10951_v42 }
 0x14e   :  { %1283 = vst.msk [vmem:[#allocation2 + $0x299] sm:$0x1] %vm1226_vm4, %v10951_v42  ;;  %1284 = vst.msk [vmem:[#allocation2 + $0x2b1] sm:$0x1] %vm1226_vm4, %v10951_v42 }
 0x14f   :  { %1285 = vst.msk [vmem:[#allocation2 + $0x2c9] sm:$0x1] %vm1226_vm4, %v10951_v42  ;;  %1286 = vst.msk [vmem:[#allocation2 + $0x2e1] sm:$0x1] %vm1226_vm4, %v10951_v42 }
 0x150   :  { %1287 = vst.msk [vmem:[#allocation2 + $0x2f9] sm:$0x1] %vm1226_vm4, %v10951_v42  ;;  %1288 = vst.msk [vmem:[#allocation2 + $0x311] sm:$0x1] %vm1226_vm4, %v10951_v42 }
 0x151   :  { %1289 = vst.msk [vmem:[#allocation2 + $0x329] sm:$0x1] %vm1226_vm4, %v10951_v42  ;;  %1290 = vst.msk [vmem:[#allocation2 + $0x341] sm:$0x1] %vm1226_vm4, %v10951_v42  ;;  %v765_v42 = vadd.f32 %v764_v11, %v763_v22  ;;  %v6913_v11 = vpop.f32.mrf.mxu0 }
 0x152   :  { %10952 = vst [vmem:[#allocation16_spill] sm:$0xff] %v6884_v44  ;;  %10953 = vst [vmem:[#allocation17_spill] sm:$0xff] %v6894_v6  ;;  %v963_v44 = vsel %vm664_vm2, %v849_v14, 0.0  ;;  %v770_v57 = vsel %vm664_vm2, %v6913_v11, 0.0 }
 0x153   :  { %10954 = vst [vmem:[#allocation18_spill] sm:$0xff] %v6901_v61  ;;  %v767_v49 = vadd.f32 %v766_v33, %v765_v42  ;;  %10955 = vst [vmem:[#allocation19_spill] sm:$0xff] %v6908_v9  ;;  %v964_v22 = vadd.f32 %v963_v44, %v962_v58  ;;  %v851_v42 = vmul.f32 %v6913_v11, %v6913_v11  ;;  %v6922_v33 = vpop.f32.mrf.mxu0  ;;  %v772_v44 = vsel %vm664_vm2, %v6894_v6, 0.0 }
 0x154   :  { %10956 = vst [vmem:[#allocation20_spill] sm:$0xff] %v6913_v11  ;;  %10957 = vst [vmem:[#allocation21_spill] sm:$0xff] %v6922_v33  ;;  %v853_v58 = vmul.f32 %v6908_v9, %v6908_v9  ;;  %v856_v56 = vmul.f32 %v6922_v33, %v6922_v33 }
 0x155   :  { %v769_v16 = vadd.f32 %v768_v2, %v767_v49  ;;  %v966_v28 = vadd.f32 %v965_v39, %v964_v22  ;;  %v967_v49 = vsel %vm664_vm2, %v851_v42, 0.0  ;;  %v6929_v61 = vpop.f32.mrf.mxu0  ;;  %v774_v22 = vsel %vm664_vm2, %v6908_v9, 0.0 }
 0x156   :  { %10958 = vst [vmem:[#allocation22_spill] sm:$0xff] %v6929_v61  ;;  %v971_v11 = vsel %vm664_vm2, %v853_v58, 0.0  ;;  %v776_v42 = vsel %vm664_vm2, %v6929_v61, 0.0  ;;  %v977_v9 = vsel %vm664_vm2, %v856_v56, 0.0 }
 0x157   :  { %v771_v14 = vadd.f32 %v770_v57, %v769_v16  ;;  %v968_v10 = vadd.f32 %v967_v49, %v966_v28  ;;  %v854_v16 = vmul.f32 %v6929_v61, %v6929_v61  ;;  %v6936_v6 = vpop.f32.mrf.mxu0 }
 0x158   :  { %10959 = vst [vmem:[#allocation23_spill] sm:$0xff] %v6936_v6 }
 0x159   :  { %v773_v2 = vadd.f32 %v772_v44, %v771_v14  ;;  %v970_v39 = vadd.f32 %v969_v26, %v968_v10  ;;  %v6941_v44 = vpop.f32.mrf.mxu0  ;;  %v973_v49 = vsel %vm664_vm2, %v854_v16, 0.0 }
 0x15a   :  { %10960 = vst [vmem:[#allocation24_spill] sm:$0xff] %v6941_v44  ;;  %v778_v26 = vsel %vm664_vm2, %v6941_v44, 0.0 }
 0x15b   :  { %v775_v57 = vadd.f32 %v774_v22, %v773_v2  ;;  %v972_v14 = vadd.f32 %v971_v11, %v970_v39  ;;  %v855_v2 = vmul.f32 %v6941_v44, %v6941_v44  ;;  %v6950_v22 = vpop.f32.mrf.mxu0  ;;  %v780_v11 = vsel %vm664_vm2, %v6922_v33, 0.0 }
 0x15c   :  { %10961 = vst [vmem:[#allocation25_spill] sm:$0xff] %v6950_v22  ;;  %v857_v39 = vmul.f32 %v6936_v6, %v6936_v6  ;;  %v860_v56 = vmul.f32 %v6950_v22, %v6950_v22 }
 0x15d   :  { %v777_v28 = vadd.f32 %v776_v42, %v775_v57  ;;  %v974_v10 = vadd.f32 %v973_v49, %v972_v14  ;;  %v975_v57 = vsel %vm664_vm2, %v855_v2, 0.0  ;;  %v6957_v61 = vpop.f32.mrf.mxu0  ;;  %v782_v14 = vsel %vm664_vm2, %v6936_v6, 0.0 }
 0x15e   :  { %10962 = vst [vmem:[#allocation26_spill] sm:$0xff] %v6957_v61  ;;  %v979_v44 = vsel %vm664_vm2, %v857_v39, 0.0  ;;  %v784_v2 = vsel %vm664_vm2, %v6957_v61, 0.0 }
 0x15f   :  { %v779_v58 = vadd.f32 %v778_v26, %v777_v28  ;;  %v976_v16 = vadd.f32 %v975_v57, %v974_v10  ;;  %v858_v28 = vmul.f32 %v6957_v61, %v6957_v61  ;;  %v6964_v33 = vpop.f32.mrf.mxu0 }
 0x160   :  { %10963 = vst [vmem:[#allocation27_spill] sm:$0xff] %v6964_v33  ;;  %v861_v39 = vmul.f32 %v6964_v33, %v6964_v33 }
 0x161   :  { %v781_v42 = vadd.f32 %v780_v11, %v779_v58  ;;  %v978_v49 = vadd.f32 %v977_v9, %v976_v16  ;;  %v652_v11 = vpop.f32.mrf.mxu0  ;;  %v981_v57 = vsel %vm664_vm2, %v858_v28, 0.0  ;;  %v788_v16 = vsel %vm664_vm2, %v6950_v22, 0.0 }
 0x162   :  { %v786_v6 = vsel %vm664_vm2, %v652_v11, 0.0  ;;  %v859_v23 = vmul.f32 %v652_v11, %v652_v11  ;;  %v790_v28 = vsel %vm664_vm2, %v6964_v33, 0.0 }
 0x163   :  { %v783_v26 = vadd.f32 %v782_v14, %v781_v42  ;;  %v980_v58 = vadd.f32 %v979_v44, %v978_v49 }
 0x164   :  { %v983_v14 = vsel %vm664_vm2, %v859_v23, 0.0 }
 0x165   :  { %v785_v10 = vadd.f32 %v784_v2, %v783_v26  ;;  %v982_v9 = vadd.f32 %v981_v57, %v980_v58  ;;  %v985_v26 = vsel %vm664_vm2, %v860_v56, 0.0  ;;  %v987_v58 = vsel %vm664_vm2, %v861_v39, 0.0 }
 0x166   :  { %v1008_v39 = vlaneseq }
 0x167   :  { %v787_v42 = vadd.f32 %v786_v6, %v785_v10  ;;  %v984_v49 = vadd.f32 %v983_v14, %v982_v9 }
 0x169   :  { %v789_v44 = vadd.f32 %v788_v16, %v787_v42  ;;  %v986_v61 = vadd.f32 %v985_v26, %v984_v49 }
 0x16b   :  { %v791_v2 = vadd.f32 %v790_v28, %v789_v44  ;;  %v988_v10 = vadd.f32 %v987_v58, %v986_v61  ;;  %v1009_v61 = vshrl.u32 %v1008_v39, 7 }
 0x16d   :  { %v792_v6 = vrot.slane %v791_v2, 4  ;;  %v989_v22 = vrot.slane %v988_v10, 4 }
 0x16f   :  { %v793_v57 = vadd.f32 %v792_v6, %v791_v2  ;;  %v990_v1 = vadd.f32 %v989_v22, %v988_v10  ;;  %v1000_v22 = vld [vmem:[%s10875_s2] sm:$0x1]  ;;  %s6178_s2 = smov 12  }
 0x171   :  { %v794_v30 = vrot.slane %v793_v57, 2  ;;  %v991_v15 = vrot.slane %v990_v1, 2 }
 0x173   :  { %v795_v51 = vadd.f32 %v794_v30, %v793_v57  ;;  %v992_v42 = vadd.f32 %v991_v15, %v990_v1  ;;  %v6985_v30 = vsub.s32 0, %v1009_v61  ;;  %v1004_v15 = vld [vmem:[%s10876_s3] sm:$0x1]  ;;  %v10970_v61 = vld [vmem:[#allocation10_spill] sm:$0xff]  ;;  %s6179_s3 = smov 16  }
 0x175   :  { %v796_v23 = vrot.slane %v795_v51, 1  ;;  %v993_v16 = vrot.slane %v992_v42, 1  ;;  %10964 = vst [vmem:[#allocation28_spill] sm:$0xff] %v6985_v30 }
 0x177   :  { %v797_v9 = vadd.f32 %v796_v23, %v795_v51  ;;  %v994_v56 = vadd.f32 %v993_v16, %v992_v42  ;;  %v1355_v16 = vld [vmem:[#allocation2] sm:$0xff] }
 0x178   :  { %1419 = vst.msk [vmem:[#allocation3] sm:$0xff] %vm664_vm2, %v1355_v16  ;;  %v10975_v16 = vld [vmem:[#allocation16_spill] sm:$0xff] }
 0x179   :  { %v995_v14 = vmul.f32 0.001953125, %v797_v9  ;;  %v996_v32 = vmul.f32 0.001953125, %v994_v56  ;;  %v10965_v56 = vld [vmem:[#allocation4_spill] sm:$0xff] }
 0x17b   :  { %v997_v33 = vmul.f32 %v995_v14, %v995_v14 }
 0x17d   :  { %v998_v44 = vsub.f32 %v996_v32, %v997_v33 }
 0x17f   :  { %v999_v49 = vmax.f32 %v998_v44, 0.0  ;;  %v10967_v44 = vld [vmem:[#allocation8_spill] sm:$0xff] }
 0x181   :  { %v1001_v26 = vadd.f32 1e-05, %v999_v49  ;;  %v10968_v49 = vld [vmem:[#allocation5_spill] sm:$0xff] }
 0x183   :  { %6171 = vrsqrt.f32 %v1001_v26  ;;  %v1356_v26 = vld [vmem:[#allocation2 + $0x8] sm:$0xff] }
 0x184   :  { %1420 = vst.msk [vmem:[#allocation3 + $0x8] sm:$0xff] %vm664_vm2, %v1356_v26  ;;  %v10980_v26 = vld [vmem:[#allocation18_spill] sm:$0xff] }
 0x190   :  { %v6172_v28 = vpop.eup %6171 }
 0x191   :  { %v1003_v1 = vmul.f32 %v6172_v28, %v1000_v22  ;;  %v10971_v28 = vld [vmem:[#allocation12_spill] sm:$0xff] }
 0x193   :  { %v1005_v51 = vmul.f32 %v1003_v1, %v995_v14  ;;  %v6991_v32 = vrot.slane %v1003_v1, %v6985_v30  ;;  %v10966_v14 = vld [vmem:[#allocation6_spill] sm:$0xff] }
 0x195   :  { %v1006_v33 = vsub.f32 %v1004_v15, %v1005_v51  ;;  %v1074_v2 = vmul.f32 %v6991_v32, %v652_v11  ;;  %v6996_v58 = vmul.f32 %v6991_v32, %v6370_v37  ;;  %v7000_v6 = vmul.f32 %v6991_v32, %v6376_v40  ;;  %v10972_v15 = vld [vmem:[#allocation9_spill] sm:$0xff] }
 0x196   :  { %v7004_v10 = vmul.f32 %v6368_v36, %v6991_v32  ;;  %v7008_v57 = vmul.f32 %v6372_v38, %v6991_v32  ;;  %v7012_v23 = vmul.f32 %v6991_v32, %v6394_v53  ;;  %v7016_v37 = vmul.f32 %v6991_v32, %v6406_v0 }
 0x197   :  { %v7019_v11 = vrot.slane %v1006_v33, %v6985_v30  ;;  %v7023_v40 = vmul.f32 %v6386_v46, %v6991_v32  ;;  %v7027_v36 = vmul.f32 %v6401_v59, %v6991_v32  ;;  %v7031_v38 = vmul.f32 %v6991_v32, %v6422_v13  ;;  %v10973_v33 = vld [vmem:[#allocation11_spill] sm:$0xff]  ;;  %v10988_v30 = vld [vmem:[#allocation22_spill] sm:$0xff] }
 0x198   :  { %v7035_v53 = vmul.f32 %v6991_v32, %v6434_v24  ;;  %v7039_v0 = vmul.f32 %v6415_v7, %v6991_v32  ;;  %v7043_v46 = vmul.f32 %v6429_v19, %v6991_v32  ;;  %v7047_v59 = vmul.f32 %v6991_v32, %v6450_v41 }
 0x199   :  { %v1144_v42 = vadd.f32 %v7019_v11, %v1074_v2  ;;  %v7052_v13 = vmul.f32 %v6991_v32, %v6462_v54  ;;  %v7056_v24 = vmul.f32 %v6443_v31, %v6991_v32  ;;  %v7060_v7 = vmul.f32 %v6457_v48, %v6991_v32 }
 0x19a   :  { %v7064_v19 = vmul.f32 %v6991_v32, %v6478_v5  ;;  %v7068_v41 = vmul.f32 %v6991_v32, %v6490_v18  ;;  %v7072_v54 = vmul.f32 %v6471_v62, %v6991_v32  ;;  %v7076_v31 = vmul.f32 %v6485_v12, %v6991_v32 }
 0x19b   :  { %v1208_v9 = vmax.f32 %v1144_v42, 0.0  ;;  %v7080_v48 = vmul.f32 %v6991_v32, %v6506_v34  ;;  %v7084_v5 = vmul.f32 %v6991_v32, %v6518_v52  ;;  %v7088_v18 = vmul.f32 %v6499_v27, %v6991_v32  ;;  %v10974_v42 = vld [vmem:[#allocation14_spill] sm:$0xff] }
 0x19c   :  { %v7092_v62 = vmul.f32 %v6513_v45, %v6991_v32  ;;  %v7096_v12 = vmul.f32 %v6991_v32, %v6534_v8  ;;  %v7100_v34 = vmul.f32 %v6991_v32, %v6562_v25  ;;  %v7104_v52 = vmul.f32 %v6527_v63, %v6991_v32 }
 0x19d   :  { %1352 = vst.msk [vmem:[#allocation2 + $0x321] sm:$0xff] %vm664_vm2, %v1208_v9  ;;  %v7109_v27 = vmul.f32 %v6557_v17, %v6991_v32  ;;  %v7113_v45 = vmul.f32 %v6991_v32, %v6578_v50  ;;  %v7117_v8 = vmul.f32 %v6991_v32, %v6591_v4  ;;  %v7121_v25 = vmul.f32 %v6571_v35, %v6991_v32 }
 0x19e   :  { %v7126_v63 = vmul.f32 %v6586_v60, %v6991_v32  ;;  %v7130_v17 = vmul.f32 %v6991_v32, %v6607_v29  ;;  %v7134_v50 = vmul.f32 %v6991_v32, %v6623_v55  ;;  %v7138_v4 = vmul.f32 %v6600_v20, %v6991_v32 }
 0x19f   :  { %v7142_v35 = vmul.f32 %v6618_v43, %v6991_v32  ;;  %v7146_v60 = vmul.f32 %v6991_v32, %v6639_v21  ;;  %v7150_v29 = vmul.f32 %v6991_v32, %v6652_v47  ;;  %v7154_v55 = vmul.f32 %v6632_v3, %v6991_v32  ;;  %v10969_v3 = vld [vmem:[#allocation7_spill] sm:$0xff] }
 0x1a0   :  { %v7158_v20 = vmul.f32 %v10965_v56, %v6991_v32  ;;  %v7162_v43 = vmul.f32 %v6991_v32, %v10966_v14  ;;  %v7166_v21 = vmul.f32 %v6991_v32, %v10967_v44  ;;  %v7170_v47 = vmul.f32 %v10968_v49, %v6991_v32  ;;  %v10976_v14 = vld [vmem:[#allocation13_spill] sm:$0xff]  ;;  %v10978_v49 = vld [vmem:[#allocation15_spill] sm:$0xff] }
 0x1a1   :  { %v7174_v39 = vmul.f32 %v10969_v3, %v6991_v32  ;;  %v7178_v22 = vmul.f32 %v6991_v32, %v10970_v61  ;;  %v7182_v1 = vmul.f32 %v6991_v32, %v10971_v28  ;;  %v7186_v51 = vmul.f32 %v10972_v15, %v6991_v32  ;;  %v10982_v28 = vld [vmem:[#allocation20_spill] sm:$0xff] }
 0x1a2   :  { %v7191_v2 = vmul.f32 %v10973_v33, %v6991_v32  ;;  %v7195_v9 = vmul.f32 %v6991_v32, %v10974_v42  ;;  %v7199_v56 = vmul.f32 %v6991_v32, %v10975_v16  ;;  %v7203_v44 = vmul.f32 %v10976_v14, %v6991_v32  ;;  %v10984_v33 = vld [vmem:[#allocation17_spill] sm:$0xff]  ;;  %v10986_v16 = vld [vmem:[#allocation19_spill] sm:$0xff] }
 0x1a3   :  { %v7207_v3 = vmul.f32 %v10978_v49, %v6991_v32  ;;  %v7211_v61 = vmul.f32 %v6991_v32, %v10980_v26  ;;  %v7215_v15 = vmul.f32 %v6991_v32, %v10982_v28  ;;  %v7219_v42 = vmul.f32 %v10984_v33, %v6991_v32  ;;  %v10993_v33 = vld [vmem:[#allocation23_spill] sm:$0xff] }
 0x1a4   :  { %10977 = vst [vmem:[#allocation4_spill] sm:$0xff] %v7203_v44  ;;  %v7223_v14 = vmul.f32 %v10986_v16, %v6991_v32  ;;  %v7227_v49 = vmul.f32 %v6991_v32, %v10988_v30  ;;  %v1387_v44 = vld [vmem:[#allocation2 + $0x1b0] sm:$0xff]  ;;  %v10995_v30 = vld [vmem:[#allocation25_spill] sm:$0xff] }
 0x1a5   :  { %10979 = vst [vmem:[#allocation6_spill] sm:$0xff] %v7207_v3  ;;  %10981 = vst [vmem:[#allocation8_spill] sm:$0xff] %v7211_v61  ;;  %v10990_v3 = vld [vmem:[#allocation24_spill] sm:$0xff]  ;;  %v10992_v61 = vld [vmem:[#allocation21_spill] sm:$0xff] }
 0x1a6   :  { %10983 = vst [vmem:[#allocation5_spill] sm:$0xff] %v7215_v15  ;;  %10985 = vst [vmem:[#allocation7_spill] sm:$0xff] %v7219_v42  ;;  %v7231_v26 = vmul.f32 %v6991_v32, %v10990_v3  ;;  %v7235_v28 = vmul.f32 %v10992_v61, %v6991_v32  ;;  %v1388_v15 = vld [vmem:[#allocation2 + $0x1b8] sm:$0xff]  ;;  %v7239_v42 = vmul.f32 %v10993_v33, %v6991_v32  ;;  %v10994_v16 = vld [vmem:[#allocation26_spill] sm:$0xff] }
 0x1a7   :  { %10987 = vst [vmem:[#allocation10_spill] sm:$0xff] %v7223_v14  ;;  %10989 = vst [vmem:[#allocation12_spill] sm:$0xff] %v7227_v49  ;;  %v7243_v14 = vmul.f32 %v6991_v32, %v10994_v16  ;;  %v7247_v49 = vmul.f32 %v10995_v30, %v6991_v32  ;;  %v10996_v3 = vld [vmem:[#allocation27_spill] sm:$0xff]  ;;  %v7257_v61 = vadd.f32 %v7019_v11, %v6996_v58 }
 0x1a8   :  { %10991 = vst [vmem:[#allocation9_spill] sm:$0xff] %v7231_v26  ;;  %v7251_v26 = vmul.f32 %v10996_v3, %v6991_v32  ;;  %1452 = vst.msk [vmem:[#allocation3 + $0x108] sm:$0xff] %vm664_vm2, %v1388_v15  ;;  %v7261_v33 = vadd.f32 %v7019_v11, %v7000_v6  ;;  %v7265_v16 = vadd.f32 %v7019_v11, %v7004_v10 }
 0x1a9   :  { %1451 = vst.msk [vmem:[#allocation3 + $0x100] sm:$0xff] %vm664_vm2, %v1387_v44  ;;  %v7269_v32 = vadd.f32 %v7019_v11, %v7008_v57  ;;  %v7273_v15 = vadd.f32 %v7019_v11, %v7012_v23  ;;  %v7277_v58 = vadd.f32 %v7019_v11, %v7016_v37  ;;  %v7281_v6 = vadd.f32 %v7019_v11, %v7023_v40  ;;  %v7399_v44 = vpop.permute.xlu0 %1611 }
 0x1aa   :  { %v7285_v10 = vadd.f32 %v7019_v11, %v7027_v36  ;;  %v7289_v57 = vadd.f32 %v7019_v11, %v7031_v38  ;;  %v7293_v23 = vadd.f32 %v7019_v11, %v7035_v53  ;;  %v7297_v37 = vadd.f32 %v7019_v11, %v7039_v0  ;;  %10997 = vst [vmem:[#allocation11_spill] sm:$0xff] %v7399_v44 }
 0x1ab   :  { %v7301_v40 = vadd.f32 %v7019_v11, %v7043_v46  ;;  %v7305_v36 = vadd.f32 %v7019_v11, %v7047_v59  ;;  %v7309_v38 = vadd.f32 %v7019_v11, %v7052_v13  ;;  %v7313_v53 = vadd.f32 %v7019_v11, %v7056_v24  ;;  %v11001_v30 = vld [vmem:[#allocation4_spill] sm:$0xff] }
 0x1ac   :  { %v7317_v0 = vadd.f32 %v7019_v11, %v7060_v7  ;;  %v7321_v46 = vadd.f32 %v7019_v11, %v7064_v19  ;;  %v7325_v59 = vadd.f32 %v7019_v11, %v7068_v41  ;;  %v7329_v13 = vadd.f32 %v7019_v11, %v7072_v54  ;;  %v11003_v3 = vld [vmem:[#allocation6_spill] sm:$0xff]  ;;  %v11005_v44 = vld [vmem:[#allocation8_spill] sm:$0xff] }
 0x1ad   :  { %v7333_v24 = vadd.f32 %v7019_v11, %v7076_v31  ;;  %v7337_v7 = vadd.f32 %v7019_v11, %v7080_v48  ;;  %v7341_v19 = vadd.f32 %v7019_v11, %v7084_v5  ;;  %v7345_v41 = vadd.f32 %v7019_v11, %v7088_v18 }
 0x1ae   :  { %v7349_v54 = vadd.f32 %v7019_v11, %v7092_v62  ;;  %v7353_v31 = vadd.f32 %v7019_v11, %v7096_v12  ;;  %v7357_v48 = vadd.f32 %v7019_v11, %v7100_v34  ;;  %v7361_v5 = vadd.f32 %v7019_v11, %v7104_v52 }
 0x1af   :  { %v7365_v18 = vadd.f32 %v7019_v11, %v7109_v27  ;;  %v7369_v62 = vadd.f32 %v7019_v11, %v7113_v45  ;;  %v7373_v12 = vadd.f32 %v7019_v11, %v7117_v8  ;;  %v7377_v34 = vadd.f32 %v7019_v11, %v7121_v25 }
 0x1b0   :  { %v7381_v52 = vadd.f32 %v7019_v11, %v7126_v63  ;;  %v7385_v27 = vadd.f32 %v7019_v11, %v7130_v17  ;;  %v7389_v45 = vadd.f32 %v7019_v11, %v7134_v50  ;;  %v7393_v8 = vadd.f32 %v7019_v11, %v7138_v4 }
 0x1b1   :  { %v7397_v25 = vadd.f32 %v7019_v11, %v7142_v35  ;;  %v7403_v63 = vadd.f32 %v7019_v11, %v7146_v60  ;;  %v7407_v17 = vadd.f32 %v7019_v11, %v7150_v29  ;;  %v7411_v50 = vadd.f32 %v7019_v11, %v7154_v55 }
 0x1b2   :  { %v7415_v4 = vadd.f32 %v7019_v11, %v7158_v20  ;;  %v7419_v35 = vadd.f32 %v7019_v11, %v7162_v43  ;;  %v7423_v60 = vadd.f32 %v7019_v11, %v7166_v21  ;;  %v7427_v29 = vadd.f32 %v7019_v11, %v7170_v47 }
 0x1b3   :  { %v7431_v55 = vadd.f32 %v7019_v11, %v7174_v39  ;;  %v7435_v20 = vadd.f32 %v7019_v11, %v7178_v22  ;;  %v7439_v43 = vadd.f32 %v7019_v11, %v7182_v1  ;;  %v7443_v21 = vadd.f32 %v7019_v11, %v7186_v51 }
 0x1b4   :  { %v7447_v47 = vadd.f32 %v7019_v11, %v7191_v2  ;;  %v7451_v39 = vadd.f32 %v7019_v11, %v7195_v9  ;;  %v7455_v22 = vadd.f32 %v7019_v11, %v7199_v56  ;;  %v7459_v1 = vadd.f32 %v7019_v11, %v11001_v30 }
 0x1b5   :  { %v7463_v51 = vadd.f32 %v7019_v11, %v11003_v3  ;;  %v7467_v2 = vadd.f32 %v7019_v11, %v11005_v44 }
 0x1b6   :  { %10998 = vst [vmem:[#allocation14_spill] sm:$0xff] %v7447_v47  ;;  %10999 = vst [vmem:[#allocation16_spill] sm:$0xff] %v7451_v39  ;;  %v11006_v47 = vld [vmem:[#allocation5_spill] sm:$0xff]  ;;  %v11007_v39 = vld [vmem:[#allocation7_spill] sm:$0xff] }
 0x1b7   :  { %11000 = vst [vmem:[#allocation13_spill] sm:$0xff] %v7455_v22  ;;  %11002 = vst [vmem:[#allocation15_spill] sm:$0xff] %v7459_v1  ;;  %v7471_v9 = vadd.f32 %v7019_v11, %v11006_v47  ;;  %v7475_v56 = vadd.f32 %v7019_v11, %v11007_v39  ;;  %v11009_v22 = vld [vmem:[#allocation10_spill] sm:$0xff]  ;;  %v11010_v1 = vld [vmem:[#allocation12_spill] sm:$0xff]  ;;  %v7491_v47 = vadd.f32 %v7019_v11, %v7235_v28  ;;  %v1147_v28 = vmax.f32 %v7257_v61, 0.0 }
 0x1b8   :  { %11004 = vst [vmem:[#allocation18_spill] sm:$0xff] %v7463_v51  ;;  %v7479_v30 = vadd.f32 %v7019_v11, %v11009_v22  ;;  %v7483_v3 = vadd.f32 %v7019_v11, %v11010_v1  ;;  %v11011_v51 = vld [vmem:[#allocation9_spill] sm:$0xff]  ;;  %v7495_v39 = vadd.f32 %v7019_v11, %v7239_v42  ;;  %v7501_v22 = vadd.f32 %v7019_v11, %v7243_v14 }
 0x1b9   :  { %11008 = vst [vmem:[#allocation20_spill] sm:$0xff] %v7475_v56  ;;  %v7487_v44 = vadd.f32 %v7019_v11, %v11011_v51  ;;  %11012 = vst [vmem:[#allocation17_spill] sm:$0xff] %v7491_v47  ;;  %v7497_v56 = vpop.permute.xlu0 %1613  ;;  %v7505_v1 = vadd.f32 %v7019_v11, %v7247_v49  ;;  %v7509_v51 = vadd.f32 %v7019_v11, %v7251_v26  ;;  %v1148_v47 = vmax.f32 %v7261_v33, 0.0 }
 0x1ba   :  { %11013 = vst [vmem:[#allocation19_spill] sm:$0xff] %v7495_v39  ;;  %11014 = vst [vmem:[#allocation22_spill] sm:$0xff] %v7497_v56  ;;  %v1149_v42 = vmax.f32 %v7265_v16, 0.0  ;;  %v1150_v56 = vmax.f32 %v7269_v32, 0.0  ;;  %v1151_v39 = vmax.f32 %v7273_v15, 0.0  ;;  %v1152_v14 = vmax.f32 %v7277_v58, 0.0  ;;  %v7529_v16 = vpop.permute.xlu1 %1677 }
 0x1bb   :  { %11015 = vst [vmem:[#allocation24_spill] sm:$0xff] %v7501_v22  ;;  %11016 = vst [vmem:[#allocation21_spill] sm:$0xff] %v7505_v1  ;;  %v1153_v22 = vmax.f32 %v7281_v6, 0.0  ;;  %v1154_v49 = vmax.f32 %v7285_v10, 0.0  ;;  %v1155_v1 = vmax.f32 %v7289_v57, 0.0  ;;  %v1156_v11 = vmax.f32 %v7293_v23, 0.0 }
 0x1bc   :  { %1291 = vst.msk [vmem:[#allocation2 + $0x19] sm:$0xff] %vm664_vm2, %v1147_v28  ;;  %v1157_v26 = vmax.f32 %v7297_v37, 0.0  ;;  %v1158_v61 = vmax.f32 %v7301_v40, 0.0  ;;  %v1159_v33 = vmax.f32 %v7305_v36, 0.0  ;;  %1292 = vst.msk [vmem:[#allocation2 + $0x21] sm:$0xff] %vm664_vm2, %v1148_v47  ;;  %v1160_v32 = vmax.f32 %v7309_v38, 0.0 }
 0x1bd   :  { %1293 = vst.msk [vmem:[#allocation2 + $0x31] sm:$0xff] %vm664_vm2, %v1149_v42  ;;  %1294 = vst.msk [vmem:[#allocation2 + $0x39] sm:$0xff] %vm664_vm2, %v1150_v56  ;;  %v1161_v15 = vmax.f32 %v7313_v53, 0.0  ;;  %v1162_v58 = vmax.f32 %v7317_v0, 0.0  ;;  %v1163_v6 = vmax.f32 %v7321_v46, 0.0  ;;  %v1164_v10 = vmax.f32 %v7325_v59, 0.0  ;;  %v7547_v40 = vpop.permute.xlu0 %1675 }
 0x1be   :  { %1295 = vst.msk [vmem:[#allocation2 + $0x49] sm:$0xff] %vm664_vm2, %v1151_v39  ;;  %1296 = vst.msk [vmem:[#allocation2 + $0x51] sm:$0xff] %vm664_vm2, %v1152_v14  ;;  %v1165_v57 = vmax.f32 %v7329_v13, 0.0  ;;  %v1166_v23 = vmax.f32 %v7333_v24, 0.0  ;;  %v1167_v37 = vmax.f32 %v7337_v7, 0.0  ;;  %v1168_v36 = vmax.f32 %v7341_v19, 0.0 }
 0x1bf   :  { %1297 = vst.msk [vmem:[#allocation2 + $0x61] sm:$0xff] %vm664_vm2, %v1153_v22  ;;  %1298 = vst.msk [vmem:[#allocation2 + $0x69] sm:$0xff] %vm664_vm2, %v1154_v49  ;;  %v1169_v38 = vmax.f32 %v7345_v41, 0.0  ;;  %v1170_v53 = vmax.f32 %v7349_v54, 0.0  ;;  %v1171_v0 = vmax.f32 %v7353_v31, 0.0  ;;  %v1172_v46 = vmax.f32 %v7357_v48, 0.0 }
 0x1c0   :  { %1299 = vst.msk [vmem:[#allocation2 + $0x79] sm:$0xff] %vm664_vm2, %v1155_v1  ;;  %1300 = vst.msk [vmem:[#allocation2 + $0x81] sm:$0xff] %vm664_vm2, %v1156_v11  ;;  %v1173_v59 = vmax.f32 %v7361_v5, 0.0  ;;  %v1174_v13 = vmax.f32 %v7365_v18, 0.0  ;;  %v1175_v24 = vmax.f32 %v7369_v62, 0.0  ;;  %v1176_v7 = vmax.f32 %v7373_v12, 0.0  ;;  %v7581_v12 = vpop.permute.xlu1 %1998 }
 0x1c1   :  { %1301 = vst.msk [vmem:[#allocation2 + $0x91] sm:$0xff] %vm664_vm2, %v1157_v26  ;;  %1302 = vst.msk [vmem:[#allocation2 + $0x99] sm:$0xff] %vm664_vm2, %v1158_v61  ;;  %v1177_v19 = vmax.f32 %v7377_v34, 0.0  ;;  %v1178_v41 = vmax.f32 %v7381_v52, 0.0  ;;  %v1179_v54 = vmax.f32 %v7385_v27, 0.0  ;;  %v1180_v31 = vmax.f32 %v7389_v45, 0.0 }
 0x1c2   :  { %1303 = vst.msk [vmem:[#allocation2 + $0xa9] sm:$0xff] %vm664_vm2, %v1159_v33  ;;  %1304 = vst.msk [vmem:[#allocation2 + $0xb1] sm:$0xff] %vm664_vm2, %v1160_v32  ;;  %v1181_v48 = vmax.f32 %v7393_v8, 0.0  ;;  %v1182_v5 = vmax.f32 %v7397_v25, 0.0  ;;  %v1183_v18 = vmax.f32 %v7403_v63, 0.0  ;;  %v1184_v52 = vmax.f32 %v7407_v17, 0.0 }
 0x1c3   :  { %1305 = vst.msk [vmem:[#allocation2 + $0xc1] sm:$0xff] %vm664_vm2, %v1161_v15  ;;  %1306 = vst.msk [vmem:[#allocation2 + $0xc9] sm:$0xff] %vm664_vm2, %v1162_v58  ;;  %v1485_v62 = vld [vmem:[#allocation2 + $0x19] sm:$0xff]  ;;  %v1185_v27 = vmax.f32 %v7411_v50, 0.0  ;;  %v1186_v45 = vmax.f32 %v7415_v4, 0.0  ;;  %v1187_v8 = vmax.f32 %v7419_v35, 0.0  ;;  %v1997_v35 = vpop.permute.xlu0 %1996 }
 0x1c4   :  { %1307 = vst.msk [vmem:[#allocation2 + $0xd9] sm:$0xff] %vm664_vm2, %v1163_v6  ;;  %1308 = vst.msk [vmem:[#allocation2 + $0xe1] sm:$0xff] %vm664_vm2, %v1164_v10  ;;  %v7583_v34 = vld [vmem:[#allocation2 + $0x18] sm:$0xff]  ;;  %1615 = vrot.lane.b32.xlu1 %v1485_v62, %s6176_s0  ;;  %v1188_v63 = vmax.f32 %v7423_v60, 0.0  ;;  %v1189_v17 = vmax.f32 %v7427_v29, 0.0  ;;  %v1190_v50 = vmax.f32 %v7431_v55, 0.0 }
 0x1c5   :  { %1309 = vst.msk [vmem:[#allocation2 + $0xf1] sm:$0xff] %vm664_vm2, %v1165_v57  ;;  %1310 = vst.msk [vmem:[#allocation2 + $0xf9] sm:$0xff] %vm664_vm2, %v1166_v23  ;;  %v1487_v25 = vld [vmem:[#allocation2 + $0x31] sm:$0xff]  ;;  %v1191_v4 = vmax.f32 %v7435_v20, 0.0  ;;  %v1192_v56 = vmax.f32 %v7439_v43, 0.0  ;;  %v1193_v60 = vmax.f32 %v7443_v21, 0.0 }
 0x1c6   :  { %1311 = vst.msk [vmem:[#allocation2 + $0x109] sm:$0xff] %vm664_vm2, %v1167_v37  ;;  %1312 = vst.msk [vmem:[#allocation2 + $0x111] sm:$0xff] %vm664_vm2, %v1168_v36  ;;  %1619 = vrot.lane.b32.xlu0 %v1487_v25, %s6176_s0  ;;  %v11017_v29 = vld [vmem:[#allocation14_spill] sm:$0xff]  ;;  %v11018_v55 = vld [vmem:[#allocation16_spill] sm:$0xff]  ;;  %v1199_v21 = vmax.f32 %v7467_v2, 0.0  ;;  %v1200_v49 = vmax.f32 %v7471_v9, 0.0 }
 0x1c7   :  { %1313 = vst.msk [vmem:[#allocation2 + $0x121] sm:$0xff] %vm664_vm2, %v1169_v38  ;;  %1314 = vst.msk [vmem:[#allocation2 + $0x129] sm:$0xff] %vm664_vm2, %v1170_v53  ;;  %v1194_v47 = vmax.f32 %v11017_v29, 0.0  ;;  %v1195_v39 = vmax.f32 %v11018_v55, 0.0  ;;  %v11019_v20 = vld [vmem:[#allocation13_spill] sm:$0xff]  ;;  %v11020_v1 = vld [vmem:[#allocation15_spill] sm:$0xff]  ;;  %v2061_v38 = vpop.permute.xlu0 %2060 }
 0x1c8   :  { %1315 = vst.msk [vmem:[#allocation2 + $0x139] sm:$0xff] %vm664_vm2, %v1171_v0  ;;  %1316 = vst.msk [vmem:[#allocation2 + $0x141] sm:$0xff] %vm664_vm2, %v1172_v46  ;;  %v1196_v22 = vmax.f32 %v11019_v20, 0.0  ;;  %v1197_v28 = vmax.f32 %v11020_v1, 0.0  ;;  %v11021_v42 = vld [vmem:[#allocation18_spill] sm:$0xff]  ;;  %v1486_v14 = vld [vmem:[#allocation2 + $0x21] sm:$0xff] }
 0x1c9   :  { %1317 = vst.msk [vmem:[#allocation2 + $0x151] sm:$0xff] %vm664_vm2, %v1173_v59  ;;  %1318 = vst.msk [vmem:[#allocation2 + $0x159] sm:$0xff] %vm664_vm2, %v1174_v13  ;;  %v1198_v43 = vmax.f32 %v11021_v42, 0.0  ;;  %v11022_v11 = vld [vmem:[#allocation20_spill] sm:$0xff]  ;;  %v1202_v61 = vmax.f32 %v7479_v30, 0.0  ;;  %v1203_v33 = vmax.f32 %v7483_v3, 0.0  ;;  %1617 = vrot.lane.b32.xlu1 %v1486_v14, %s6176_s0  ;;  %v2063_v3 = vpop.permute.xlu1 %2062 }
 0x1ca   :  { %1319 = vst.msk [vmem:[#allocation2 + $0x169] sm:$0xff] %vm664_vm2, %v1175_v24  ;;  %1320 = vst.msk [vmem:[#allocation2 + $0x171] sm:$0xff] %vm664_vm2, %v1176_v7  ;;  %v1201_v26 = vmax.f32 %v11022_v11, 0.0  ;;  %v1489_v2 = vld [vmem:[#allocation2 + $0x49] sm:$0xff]  ;;  %v1204_v32 = vmax.f32 %v7487_v44, 0.0  ;;  %v11024_v58 = vld [vmem:[#allocation19_spill] sm:$0xff] }
 0x1cb   :  { %1321 = vst.msk [vmem:[#allocation2 + $0x181] sm:$0xff] %vm664_vm2, %v1177_v19  ;;  %1322 = vst.msk [vmem:[#allocation2 + $0x189] sm:$0xff] %vm664_vm2, %v1178_v41  ;;  %v11023_v9 = vld [vmem:[#allocation17_spill] sm:$0xff]  ;;  %v1206_v6 = vmax.f32 %v11024_v58, 0.0  ;;  %v11025_v30 = vld [vmem:[#allocation24_spill] sm:$0xff]  ;;  %1623 = vrot.lane.b32.xlu0 %v1489_v2, %s6176_s0  ;;  %v1210_v44 = vmax.f32 %v7509_v51, 0.0 }
 0x1cc   :  { %1323 = vst.msk [vmem:[#allocation2 + $0x1c9] sm:$0xff] %vm664_vm2, %v1179_v54  ;;  %1421 = vst.msk [vmem:[#allocation3 + $0x10] sm:$0xff] %vm664_vm2, %v7583_v34  ;;  %v1205_v15 = vmax.f32 %v11023_v9, 0.0  ;;  %v1207_v10 = vmax.f32 %v11025_v30, 0.0  ;;  %v11026_v57 = vld [vmem:[#allocation21_spill] sm:$0xff]  ;;  %v1488_v37 = vld [vmem:[#allocation2 + $0x39] sm:$0xff] }
 0x1cd   :  { %1324 = vst.msk [vmem:[#allocation2 + $0x1d1] sm:$0xff] %vm664_vm2, %v1180_v31  ;;  %1325 = vst.msk [vmem:[#allocation2 + $0x1e1] sm:$0xff] %vm664_vm2, %v1181_v48  ;;  %v1209_v23 = vmax.f32 %v11026_v57, 0.0  ;;  %v11027_v36 = vld [vmem:[#allocation11_spill] sm:$0xff]  ;;  %v11028_v51 = vld [vmem:[#allocation22_spill] sm:$0xff]  ;;  %1621 = vrot.lane.b32.xlu1 %v1488_v37, %s6176_s0 }
 0x1ce   :  { %1326 = vst.msk [vmem:[#allocation2 + $0x1e9] sm:$0xff] %vm664_vm2, %v1182_v5  ;;  %1327 = vst.msk [vmem:[#allocation2 + $0x1f9] sm:$0xff] %vm664_vm2, %v1183_v18  ;;  %v1491_v53 = vld [vmem:[#allocation2 + $0x61] sm:$0xff]  ;;  %v1492_v0 = vld [vmem:[#allocation2 + $0x69] sm:$0xff] }
 0x1cf   :  { %1328 = vst.msk [vmem:[#allocation2 + $0x201] sm:$0xff] %vm664_vm2, %v1184_v52  ;;  %1329 = vst.msk [vmem:[#allocation2 + $0x211] sm:$0xff] %vm664_vm2, %v1185_v27  ;;  %1627 = vrot.lane.b32.xlu0 %v1491_v53, %s6176_s0  ;;  %v1495_v46 = vld [vmem:[#allocation2 + $0x91] sm:$0xff]  ;;  %v1494_v59 = vld [vmem:[#allocation2 + $0x81] sm:$0xff] }
 0x1d0   :  { %1330 = vst.msk [vmem:[#allocation2 + $0x219] sm:$0xff] %vm664_vm2, %v1186_v45  ;;  %1331 = vst.msk [vmem:[#allocation2 + $0x229] sm:$0xff] %vm664_vm2, %v1187_v8  ;;  %v1497_v13 = vld [vmem:[#allocation2 + $0xa9] sm:$0xff]  ;;  %v7678_v19 = vld [vmem:[#allocation2 + $0x20] sm:$0xff] }
 0x1d1   :  { %1332 = vst.msk [vmem:[#allocation2 + $0x231] sm:$0xff] %vm664_vm2, %v1188_v63  ;;  %1333 = vst.msk [vmem:[#allocation2 + $0x241] sm:$0xff] %vm664_vm2, %v1189_v17  ;;  %v7672_v24 = vld [vmem:[#allocation2 + $0x30] sm:$0xff]  ;;  %v7676_v7 = vld [vmem:[#allocation2 + $0x48] sm:$0xff] }
 0x1d2   :  { %1334 = vst.msk [vmem:[#allocation2 + $0x249] sm:$0xff] %vm664_vm2, %v1190_v50  ;;  %1335 = vst.msk [vmem:[#allocation2 + $0x259] sm:$0xff] %vm664_vm2, %v1191_v4  ;;  %v1496_v41 = vld [vmem:[#allocation2 + $0x99] sm:$0xff]  ;;  %v1499_v48 = vld [vmem:[#allocation2 + $0xc1] sm:$0xff] }
 0x1d3   :  { %1336 = vst.msk [vmem:[#allocation2 + $0x261] sm:$0xff] %vm664_vm2, %v1192_v56  ;;  %1337 = vst.msk [vmem:[#allocation2 + $0x271] sm:$0xff] %vm664_vm2, %v1193_v60  ;;  %v7684_v54 = vld [vmem:[#allocation2 + $0x60] sm:$0xff]  ;;  %v7686_v31 = vld [vmem:[#allocation2 + $0x38] sm:$0xff] }
 0x1d4   :  { %1338 = vst.msk [vmem:[#allocation2 + $0x279] sm:$0xff] %vm664_vm2, %v1194_v47  ;;  %1339 = vst.msk [vmem:[#allocation2 + $0x289] sm:$0xff] %vm664_vm2, %v1195_v39  ;;  %v7693_v5 = vld [vmem:[#allocation2 + $0x78] sm:$0xff]  ;;  %v7695_v18 = vld [vmem:[#allocation2 + $0x50] sm:$0xff] }
 0x1d5   :  { %1340 = vst.msk [vmem:[#allocation2 + $0x291] sm:$0xff] %vm664_vm2, %v1196_v22  ;;  %1341 = vst.msk [vmem:[#allocation2 + $0x2a1] sm:$0xff] %vm664_vm2, %v1197_v28  ;;  %v7702_v62 = vld [vmem:[#allocation2 + $0x90] sm:$0xff]  ;;  %v7710_v27 = vld [vmem:[#allocation2 + $0xa8] sm:$0xff] }
 0x1d6   :  { %1342 = vst.msk [vmem:[#allocation2 + $0x2a9] sm:$0xff] %vm664_vm2, %v1198_v43  ;;  %1343 = vst.msk [vmem:[#allocation2 + $0x2b9] sm:$0xff] %vm664_vm2, %v1199_v21  ;;  %v1498_v52 = vld [vmem:[#allocation2 + $0xb1] sm:$0xff]  ;;  %v7712_v45 = vld [vmem:[#allocation2 + $0x80] sm:$0xff] }
 0x1d7   :  { %1344 = vst.msk [vmem:[#allocation2 + $0x2c1] sm:$0xff] %vm664_vm2, %v1200_v49  ;;  %1345 = vst.msk [vmem:[#allocation2 + $0x2d1] sm:$0xff] %vm664_vm2, %v1201_v26  ;;  %v1501_v8 = vld [vmem:[#allocation2 + $0xd9] sm:$0xff]  ;;  %v7732_v50 = vld [vmem:[#allocation2 + $0xb0] sm:$0xff] }
 0x1d8   :  { %1346 = vst.msk [vmem:[#allocation2 + $0x2d9] sm:$0xff] %vm664_vm2, %v1202_v61  ;;  %1347 = vst.msk [vmem:[#allocation2 + $0x2e9] sm:$0xff] %vm664_vm2, %v1203_v33  ;;  %v7719_v25 = vld [vmem:[#allocation2 + $0xc0] sm:$0xff]  ;;  %v7721_v63 = vld [vmem:[#allocation2 + $0x98] sm:$0xff] }
 0x1d9   :  { %1348 = vst.msk [vmem:[#allocation2 + $0x2f1] sm:$0xff] %vm664_vm2, %v1204_v32  ;;  %1349 = vst.msk [vmem:[#allocation2 + $0x301] sm:$0xff] %vm664_vm2, %v1205_v15  ;;  %v7728_v17 = vld [vmem:[#allocation2 + $0xd8] sm:$0xff]  ;;  %v1500_v4 = vld [vmem:[#allocation2 + $0xc9] sm:$0xff] }
 0x1da   :  { %1350 = vst.msk [vmem:[#allocation2 + $0x309] sm:$0xff] %vm664_vm2, %v1206_v6  ;;  %1351 = vst.msk [vmem:[#allocation2 + $0x319] sm:$0xff] %vm664_vm2, %v1207_v10  ;;  %v7738_v56 = vld [vmem:[#allocation2 + $0xc8] sm:$0xff]  ;;  %v1503_v60 = vld [vmem:[#allocation2 + $0xf1] sm:$0xff] }
 0x1db   :  { %1804 = vst.msk [vmem:[#allocation3] sm:$0xff] %vm1803_vm5, %v11027_v36  ;;  %1805 = vst.msk [vmem:[#allocation3 + $0x8] sm:$0xff] %vm1803_vm5, %v11028_v51  ;;  %v7745_v29 = vld [vmem:[#allocation2 + $0x108] sm:$0xff]  ;;  %v7747_v47 = vld [vmem:[#allocation2 + $0xe0] sm:$0xff] }
 0x1dc   :  { %1837 = vst.msk [vmem:[#allocation3 + $0x108] sm:$0xff] %vm1803_vm5, %v7529_v16  ;;  %1836 = vst.msk [vmem:[#allocation3 + $0x100] sm:$0xff] %vm1803_vm5, %v7547_v40  ;;  %v1490_v16 = vld [vmem:[#allocation2 + $0x51] sm:$0xff]  ;;  %v1493_v40 = vld [vmem:[#allocation2 + $0x79] sm:$0xff] }
 0x1dd   :  { %1353 = vst.msk [vmem:[#allocation2 + $0x331] sm:$0xff] %vm664_vm2, %v1209_v23  ;;  %1354 = vst.msk [vmem:[#allocation2 + $0x339] sm:$0xff] %vm664_vm2, %v1210_v44  ;;  %1625 = vrot.lane.b32.xlu1 %v1490_v16, %s6176_s0  ;;  %1631 = vrot.lane.b32.xlu0 %v1493_v40, %s6176_s0  ;;  %v7754_v55 = vld [vmem:[#allocation2 + $0x120] sm:$0xff]  ;;  %v7758_v39 = vld [vmem:[#allocation2 + $0xf8] sm:$0xff] }
 0x1de   :  { %2190 = vst.msk [vmem:[#allocation3 + $0x8] sm:$0xff] %vm2188_vm6, %v7581_v12  ;;  %2189 = vst.msk [vmem:[#allocation3] sm:$0xff] %vm2188_vm6, %v1997_v35  ;;  %v7706_v12 = vld [vmem:[#allocation2 + $0x68] sm:$0xff]  ;;  %v7736_v35 = vld [vmem:[#allocation2 + $0xf0] sm:$0xff] }
 0x1df   :  { %2222 = vst.msk [vmem:[#allocation3 + $0x108] sm:$0xff] %vm2188_vm6, %v2063_v3  ;;  %2221 = vst.msk [vmem:[#allocation3 + $0x100] sm:$0xff] %vm2188_vm6, %v2061_v38  ;;  %v1502_v20 = vld [vmem:[#allocation2 + $0xe1] sm:$0xff]  ;;  %v7762_v22 = vld [vmem:[#allocation2 + $0x138] sm:$0xff] }
 0x1e0   :  { %1423 = vst.msk [vmem:[#allocation3 + $0x20] sm:$0xff] %vm664_vm2, %v7672_v24  ;;  %1425 = vst.msk [vmem:[#allocation3 + $0x30] sm:$0xff] %vm664_vm2, %v7676_v7  ;;  %v7764_v1 = vld [vmem:[#allocation2 + $0x110] sm:$0xff]  ;;  %v7773_v43 = vld [vmem:[#allocation2 + $0x128] sm:$0xff] }
 0x1e1   :  { %1629 = vrot.lane.b32.xlu1 %v1492_v0, %s6176_s0  ;;  %1635 = vrot.lane.b32.xlu0 %v1495_v46, %s6176_s0  ;;  %1422 = vst.msk [vmem:[#allocation3 + $0x18] sm:$0xff] %vm664_vm2, %v7678_v19  ;;  %1427 = vst.msk [vmem:[#allocation3 + $0x40] sm:$0xff] %vm664_vm2, %v7684_v54  ;;  %v1505_v28 = vld [vmem:[#allocation2 + $0x109] sm:$0xff]  ;;  %v7784_v14 = vld [vmem:[#allocation2 + $0x140] sm:$0xff] }
 0x1e2   :  { %1424 = vst.msk [vmem:[#allocation3 + $0x28] sm:$0xff] %vm664_vm2, %v7686_v31  ;;  %1429 = vst.msk [vmem:[#allocation3 + $0x50] sm:$0xff] %vm664_vm2, %v7693_v5  ;;  %v7771_v42 = vld [vmem:[#allocation2 + $0x150] sm:$0xff]  ;;  %v7780_v21 = vld [vmem:[#allocation2 + $0x168] sm:$0xff] }
 0x1e3   :  { %1426 = vst.msk [vmem:[#allocation3 + $0x38] sm:$0xff] %vm664_vm2, %v7695_v18  ;;  %1431 = vst.msk [vmem:[#allocation3 + $0x60] sm:$0xff] %vm664_vm2, %v7702_v62  ;;  %v1504_v49 = vld [vmem:[#allocation2 + $0xf9] sm:$0xff]  ;;  %v7788_v11 = vld [vmem:[#allocation2 + $0x1c8] sm:$0xff] }
 0x1e4   :  { %1428 = vst.msk [vmem:[#allocation3 + $0x48] sm:$0xff] %vm664_vm2, %v7706_v12  ;;  %1433 = vst.msk [vmem:[#allocation3 + $0x70] sm:$0xff] %vm664_vm2, %v7710_v27  ;;  %v7790_v26 = vld [vmem:[#allocation2 + $0x158] sm:$0xff]  ;;  %v1507_v61 = vld [vmem:[#allocation2 + $0x121] sm:$0xff] }
 0x1e5   :  { %1633 = vrot.lane.b32.xlu1 %v1494_v59, %s6176_s0  ;;  %1639 = vrot.lane.b32.xlu0 %v1497_v13, %s6176_s0  ;;  %1430 = vst.msk [vmem:[#allocation3 + $0x58] sm:$0xff] %vm664_vm2, %v7712_v45  ;;  %1435 = vst.msk [vmem:[#allocation3 + $0x80] sm:$0xff] %vm664_vm2, %v7719_v25  ;;  %v7797_v33 = vld [vmem:[#allocation2 + $0x1e0] sm:$0xff]  ;;  %v7799_v2 = vld [vmem:[#allocation2 + $0x170] sm:$0xff] }
 0x1e6   :  { %1432 = vst.msk [vmem:[#allocation3 + $0x68] sm:$0xff] %vm664_vm2, %v7721_v63  ;;  %1437 = vst.msk [vmem:[#allocation3 + $0x90] sm:$0xff] %vm664_vm2, %v7728_v17  ;;  %v7806_v32 = vld [vmem:[#allocation2 + $0x1f8] sm:$0xff]  ;;  %v7810_v9 = vld [vmem:[#allocation2 + $0x1d0] sm:$0xff] }
 0x1e7   :  { %1434 = vst.msk [vmem:[#allocation3 + $0x78] sm:$0xff] %vm664_vm2, %v7732_v50  ;;  %1439 = vst.msk [vmem:[#allocation3 + $0xa0] sm:$0xff] %vm664_vm2, %v7736_v35  ;;  %v1506_v15 = vld [vmem:[#allocation2 + $0x111] sm:$0xff]  ;;  %v7816_v6 = vld [vmem:[#allocation2 + $0x1e8] sm:$0xff] }
 0x1e8   :  { %1436 = vst.msk [vmem:[#allocation3 + $0x88] sm:$0xff] %vm664_vm2, %v7738_v56  ;;  %1441 = vst.msk [vmem:[#allocation3 + $0xb0] sm:$0xff] %vm664_vm2, %v7745_v29  ;;  %v7814_v58 = vld [vmem:[#allocation2 + $0x210] sm:$0xff]  ;;  %v1509_v30 = vld [vmem:[#allocation2 + $0x139] sm:$0xff] }
 0x1e9   :  { %1637 = vrot.lane.b32.xlu1 %v1496_v41, %s6176_s0  ;;  %1643 = vrot.lane.b32.xlu0 %v1499_v48, %s6176_s0  ;;  %1438 = vst.msk [vmem:[#allocation3 + $0x98] sm:$0xff] %vm664_vm2, %v7747_v47  ;;  %1443 = vst.msk [vmem:[#allocation3 + $0xc0] sm:$0xff] %vm664_vm2, %v7754_v55  ;;  %v7823_v10 = vld [vmem:[#allocation2 + $0x228] sm:$0xff]  ;;  %v7825_v3 = vld [vmem:[#allocation2 + $0x200] sm:$0xff] }
 0x1ea   :  { %1440 = vst.msk [vmem:[#allocation3 + $0xa8] sm:$0xff] %vm664_vm2, %v7758_v39  ;;  %1445 = vst.msk [vmem:[#allocation3 + $0xd0] sm:$0xff] %vm664_vm2, %v7762_v22  ;;  %v7832_v57 = vld [vmem:[#allocation2 + $0x240] sm:$0xff]  ;;  %v7836_v23 = vld [vmem:[#allocation2 + $0x218] sm:$0xff] }
 0x1eb   :  { %1442 = vst.msk [vmem:[#allocation3 + $0xb8] sm:$0xff] %vm664_vm2, %v7764_v1  ;;  %1447 = vst.msk [vmem:[#allocation3 + $0xe0] sm:$0xff] %vm664_vm2, %v7771_v42  ;;  %v1508_v44 = vld [vmem:[#allocation2 + $0x129] sm:$0xff]  ;;  %v7840_v37 = vld [vmem:[#allocation2 + $0x258] sm:$0xff] }
 0x1ec   :  { %1444 = vst.msk [vmem:[#allocation3 + $0xc8] sm:$0xff] %vm664_vm2, %v7773_v43  ;;  %1449 = vst.msk [vmem:[#allocation3 + $0xf0] sm:$0xff] %vm664_vm2, %v7780_v21  ;;  %v7842_v36 = vld [vmem:[#allocation2 + $0x230] sm:$0xff]  ;;  %v7851_v53 = vld [vmem:[#allocation2 + $0x248] sm:$0xff] }
 0x1ed   :  { %1641 = vrot.lane.b32.xlu1 %v1498_v52, %s6176_s0  ;;  %1647 = vrot.lane.b32.xlu0 %v1501_v8, %s6176_s0  ;;  %1446 = vst.msk [vmem:[#allocation3 + $0xd8] sm:$0xff] %vm664_vm2, %v7784_v14  ;;  %1453 = vst.msk [vmem:[#allocation3 + $0x110] sm:$0xff] %vm664_vm2, %v7788_v11  ;;  %v1511_v51 = vld [vmem:[#allocation2 + $0x151] sm:$0xff]  ;;  %v7858_v16 = vld [vmem:[#allocation2 + $0x288] sm:$0xff] }
 0x1ee   :  { %1448 = vst.msk [vmem:[#allocation3 + $0xe8] sm:$0xff] %vm664_vm2, %v7790_v26  ;;  %1455 = vst.msk [vmem:[#allocation3 + $0x120] sm:$0xff] %vm664_vm2, %v7797_v33  ;;  %v7849_v38 = vld [vmem:[#allocation2 + $0x270] sm:$0xff]  ;;  %v7862_v40 = vld [vmem:[#allocation2 + $0x260] sm:$0xff] }
 0x1ef   :  { %1450 = vst.msk [vmem:[#allocation3 + $0xf8] sm:$0xff] %vm664_vm2, %v7799_v2  ;;  %1457 = vst.msk [vmem:[#allocation3 + $0x130] sm:$0xff] %vm664_vm2, %v7806_v32  ;;  %v1510_v0 = vld [vmem:[#allocation2 + $0x141] sm:$0xff]  ;;  %v7868_v59 = vld [vmem:[#allocation2 + $0x278] sm:$0xff] }
 0x1f0   :  { %1454 = vst.msk [vmem:[#allocation3 + $0x118] sm:$0xff] %vm664_vm2, %v7810_v9  ;;  %1459 = vst.msk [vmem:[#allocation3 + $0x140] sm:$0xff] %vm664_vm2, %v7814_v58  ;;  %v7866_v46 = vld [vmem:[#allocation2 + $0x2a0] sm:$0xff]  ;;  %v1513_v13 = vld [vmem:[#allocation2 + $0x169] sm:$0xff] }
 0x1f1   :  { %1645 = vrot.lane.b32.xlu1 %v1500_v4, %s6176_s0  ;;  %1651 = vrot.lane.b32.xlu0 %v1503_v60, %s6176_s0  ;;  %1456 = vst.msk [vmem:[#allocation3 + $0x128] sm:$0xff] %vm664_vm2, %v7816_v6  ;;  %1461 = vst.msk [vmem:[#allocation3 + $0x150] sm:$0xff] %vm664_vm2, %v7823_v10  ;;  %v7875_v41 = vld [vmem:[#allocation2 + $0x2b8] sm:$0xff]  ;;  %v7877_v48 = vld [vmem:[#allocation2 + $0x290] sm:$0xff] }
 0x1f2   :  { %1458 = vst.msk [vmem:[#allocation3 + $0x138] sm:$0xff] %vm664_vm2, %v7825_v3  ;;  %1463 = vst.msk [vmem:[#allocation3 + $0x160] sm:$0xff] %vm664_vm2, %v7832_v57  ;;  %v7884_v52 = vld [vmem:[#allocation2 + $0x2d0] sm:$0xff]  ;;  %v7888_v8 = vld [vmem:[#allocation2 + $0x2a8] sm:$0xff] }
 0x1f3   :  { %1460 = vst.msk [vmem:[#allocation3 + $0x148] sm:$0xff] %vm664_vm2, %v7836_v23  ;;  %1465 = vst.msk [vmem:[#allocation3 + $0x170] sm:$0xff] %vm664_vm2, %v7840_v37  ;;  %v1512_v4 = vld [vmem:[#allocation2 + $0x159] sm:$0xff]  ;;  %v7892_v60 = vld [vmem:[#allocation2 + $0x2e8] sm:$0xff] }
 0x1f4   :  { %1462 = vst.msk [vmem:[#allocation3 + $0x158] sm:$0xff] %vm664_vm2, %v7842_v36  ;;  %1467 = vst.msk [vmem:[#allocation3 + $0x180] sm:$0xff] %vm664_vm2, %v7849_v38 }
 0x1f5   :  { %1649 = vrot.lane.b32.xlu1 %v1502_v20, %s6176_s0  ;;  %1655 = vrot.lane.b32.xlu0 %v1505_v28, %s6176_s0  ;;  %1464 = vst.msk [vmem:[#allocation3 + $0x168] sm:$0xff] %vm664_vm2, %v7851_v53  ;;  %1469 = vst.msk [vmem:[#allocation3 + $0x190] sm:$0xff] %vm664_vm2, %v7858_v16  ;;  %v7894_v20 = vld [vmem:[#allocation2 + $0x2c0] sm:$0xff]  ;;  %v1517_v28 = vld [vmem:[#allocation2 + $0x1c9] sm:$0xff] }
 0x1f6   :  { %1466 = vst.msk [vmem:[#allocation3 + $0x178] sm:$0xff] %vm664_vm2, %v7862_v40  ;;  %1471 = vst.msk [vmem:[#allocation3 + $0x1a0] sm:$0xff] %vm664_vm2, %v7866_v46 }
 0x1f7   :  { %1468 = vst.msk [vmem:[#allocation3 + $0x188] sm:$0xff] %vm664_vm2, %v7868_v59  ;;  %1473 = vst.msk [vmem:[#allocation3 + $0x1b0] sm:$0xff] %vm664_vm2, %v7875_v41 }
 0x1f8   :  { %1470 = vst.msk [vmem:[#allocation3 + $0x198] sm:$0xff] %vm664_vm2, %v7877_v48  ;;  %1475 = vst.msk [vmem:[#allocation3 + $0x1c0] sm:$0xff] %vm664_vm2, %v7884_v52 }
 0x1f9   :  { %1653 = vrot.lane.b32.xlu1 %v1504_v49, %s6176_s0  ;;  %1659 = vrot.lane.b32.xlu0 %v1507_v61, %s6176_s0  ;;  %1472 = vst.msk [vmem:[#allocation3 + $0x1a8] sm:$0xff] %vm664_vm2, %v7888_v8  ;;  %1477 = vst.msk [vmem:[#allocation3 + $0x1d0] sm:$0xff] %vm664_vm2, %v7892_v60  ;;  %v7901_v49 = vld [vmem:[#allocation2 + $0x300] sm:$0xff]  ;;  %v7903_v61 = vld [vmem:[#allocation2 + $0x2d8] sm:$0xff] }
 0x1fa   :  { %1474 = vst.msk [vmem:[#allocation3 + $0x1b8] sm:$0xff] %vm664_vm2, %v7894_v20  ;;  %11029 = vst [vmem:[#allocation23_spill] sm:$0xff] %v7901_v49 }
 0x1fb   :  { %1479 = vst.msk [vmem:[#allocation3 + $0x1e0] sm:$0xff] %vm664_vm2, %v7901_v49  ;;  %1476 = vst.msk [vmem:[#allocation3 + $0x1c8] sm:$0xff] %vm664_vm2, %v7903_v61  ;;  %v1544_v49 = vld [vmem:[#allocation2 + $0x309] sm:$0xff] }
 0x1fd   :  { %1657 = vrot.lane.b32.xlu1 %v1506_v15, %s6176_s0  ;;  %1663 = vrot.lane.b32.xlu0 %v1509_v30, %s6176_s0  ;;  %v7910_v15 = vld [vmem:[#allocation2 + $0x318] sm:$0xff]  ;;  %v7914_v30 = vld [vmem:[#allocation2 + $0x2f0] sm:$0xff] }
 0x1fe   :  { %11030 = vst [vmem:[#allocation26_spill] sm:$0xff] %v7910_v15  ;;  %1481 = vst.msk [vmem:[#allocation3 + $0x1f0] sm:$0xff] %vm664_vm2, %v7910_v15  ;;  %v1520_v15 = vld [vmem:[#allocation2 + $0x1e9] sm:$0xff] }
 0x1ff   :  { %11031 = vst [vmem:[#allocation25_spill] sm:$0xff] %v7914_v30  ;;  %1478 = vst.msk [vmem:[#allocation3 + $0x1d8] sm:$0xff] %vm664_vm2, %v7914_v30  ;;  %v1523_v30 = vld [vmem:[#allocation2 + $0x211] sm:$0xff] }
 0x201   :  { %1661 = vrot.lane.b32.xlu1 %v1508_v44, %s6176_s0  ;;  %1667 = vrot.lane.b32.xlu0 %v1511_v51, %s6176_s0  ;;  %v1514_v44 = vld [vmem:[#allocation2 + $0x171] sm:$0xff]  ;;  %v7918_v51 = vld [vmem:[#allocation2 + $0x308] sm:$0xff] }
 0x202   :  { %11032 = vst [vmem:[#allocation27_spill] sm:$0xff] %v7918_v51  ;;  %1480 = vst.msk [vmem:[#allocation3 + $0x1e8] sm:$0xff] %vm664_vm2, %v7918_v51  ;;  %v1525_v51 = vld [vmem:[#allocation2 + $0x229] sm:$0xff] }
 0x205   :  { %1665 = vrot.lane.b32.xlu1 %v1510_v0, %s6176_s0  ;;  %1671 = vrot.lane.b32.xlu0 %v1513_v13, %s6176_s0  ;;  %v1519_v0 = vld [vmem:[#allocation2 + $0x1e1] sm:$0xff] }
 0x206   :  { %v7923_v13 = vld [vmem:[#allocation2 + $0x320] sm:$0xff] }
 0x207   :  { %11033 = vst [vmem:[#allocation4_spill] sm:$0xff] %v7923_v13  ;;  %1482 = vst.msk [vmem:[#allocation3 + $0x1f8] sm:$0xff] %vm664_vm2, %v7923_v13  ;;  %v1527_v13 = vld [vmem:[#allocation2 + $0x241] sm:$0xff] }
 0x209   :  { %1669 = vrot.lane.b32.xlu1 %v1512_v4, %s6176_s0  ;;  %1679 = vrot.lane.b32.xlu0 %v1517_v28, %s6176_s0  ;;  %v1518_v4 = vld [vmem:[#allocation2 + $0x1d1] sm:$0xff]  ;;  %v1521_v28 = vld [vmem:[#allocation2 + $0x1f9] sm:$0xff] }
 0x20d   :  { %1673 = vrot.lane.b32.xlu1 %v1514_v44, %s6176_s0  ;;  %1683 = vrot.lane.b32.xlu0 %v1519_v0, %s6176_s0  ;;  %v1522_v44 = vld [vmem:[#allocation2 + $0x201] sm:$0xff]  ;;  %v1524_v0 = vld [vmem:[#allocation2 + $0x219] sm:$0xff] }
 0x211   :  { %1681 = vrot.lane.b32.xlu1 %v1518_v4, %s6176_s0  ;;  %1687 = vrot.lane.b32.xlu0 %v1521_v28, %s6176_s0  ;;  %v1526_v4 = vld [vmem:[#allocation2 + $0x231] sm:$0xff]  ;;  %v1529_v28 = vld [vmem:[#allocation2 + $0x259] sm:$0xff] }
 0x215   :  { %1685 = vrot.lane.b32.xlu1 %v1520_v15, %s6176_s0  ;;  %1691 = vrot.lane.b32.xlu0 %v1523_v30, %s6176_s0  ;;  %v1528_v15 = vld [vmem:[#allocation2 + $0x249] sm:$0xff]  ;;  %v1531_v30 = vld [vmem:[#allocation2 + $0x271] sm:$0xff] }
 0x219   :  { %1689 = vrot.lane.b32.xlu1 %v1522_v44, %s6176_s0  ;;  %1695 = vrot.lane.b32.xlu0 %v1525_v51, %s6176_s0  ;;  %v1530_v44 = vld [vmem:[#allocation2 + $0x261] sm:$0xff]  ;;  %v1533_v51 = vld [vmem:[#allocation2 + $0x289] sm:$0xff] }
 0x21d   :  { %1693 = vrot.lane.b32.xlu1 %v1524_v0, %s6176_s0  ;;  %1699 = vrot.lane.b32.xlu0 %v1527_v13, %s6176_s0  ;;  %v1532_v0 = vld [vmem:[#allocation2 + $0x279] sm:$0xff]  ;;  %v1535_v13 = vld [vmem:[#allocation2 + $0x2a1] sm:$0xff] }
 0x221   :  { %1697 = vrot.lane.b32.xlu1 %v1526_v4, %s6176_s0  ;;  %1703 = vrot.lane.b32.xlu0 %v1529_v28, %s6176_s0  ;;  %v1534_v4 = vld [vmem:[#allocation2 + $0x291] sm:$0xff]  ;;  %v1537_v28 = vld [vmem:[#allocation2 + $0x2b9] sm:$0xff] }
 0x225   :  { %1701 = vrot.lane.b32.xlu1 %v1528_v15, %s6176_s0  ;;  %1707 = vrot.lane.b32.xlu0 %v1531_v30, %s6176_s0  ;;  %v1536_v15 = vld [vmem:[#allocation2 + $0x2a9] sm:$0xff]  ;;  %v1539_v30 = vld [vmem:[#allocation2 + $0x2d1] sm:$0xff] }
 0x229   :  { %1705 = vrot.lane.b32.xlu1 %v1530_v44, %s6176_s0  ;;  %1711 = vrot.lane.b32.xlu0 %v1533_v51, %s6176_s0  ;;  %v1538_v44 = vld [vmem:[#allocation2 + $0x2c1] sm:$0xff]  ;;  %v1541_v51 = vld [vmem:[#allocation2 + $0x2e9] sm:$0xff] }
 0x22d   :  { %1709 = vrot.lane.b32.xlu1 %v1532_v0, %s6176_s0  ;;  %1715 = vrot.lane.b32.xlu0 %v1535_v13, %s6176_s0  ;;  %v1540_v0 = vld [vmem:[#allocation2 + $0x2d9] sm:$0xff]  ;;  %v1543_v13 = vld [vmem:[#allocation2 + $0x301] sm:$0xff] }
 0x231   :  { %1713 = vrot.lane.b32.xlu1 %v1534_v4, %s6176_s0  ;;  %1719 = vrot.lane.b32.xlu0 %v1537_v28, %s6176_s0  ;;  %v1542_v4 = vld [vmem:[#allocation2 + $0x2f1] sm:$0xff]  ;;  %v1545_v28 = vld [vmem:[#allocation2 + $0x319] sm:$0xff] }
 0x235   :  { %1717 = vrot.lane.b32.xlu1 %v1536_v15, %s6176_s0  ;;  %1723 = vrot.lane.b32.xlu0 %v1539_v30, %s6176_s0 }
 0x236   :  { %v1616_v15 = vpop.permute.xlu1 %1615 }
 0x237   :  { %1806 = vst.msk [vmem:[#allocation3 + $0x10] sm:$0xff] %vm1803_vm5, %v1616_v15 }
 0x238   :  { %v1620_v30 = vpop.permute.xlu0 %1619 }
 0x239   :  { %1721 = vrot.lane.b32.xlu1 %v1538_v44, %s6176_s0  ;;  %1727 = vrot.lane.b32.xlu0 %v1541_v51, %s6176_s0  ;;  %1808 = vst.msk [vmem:[#allocation3 + $0x20] sm:$0xff] %vm1803_vm5, %v1620_v30  ;;  %v1870_v44 = vld [vmem:[#allocation2 + $0x1a] sm:$0xff]  ;;  %v1871_v30 = vld [vmem:[#allocation2 + $0x22] sm:$0xff] }
 0x23b   :  { %v1618_v51 = vpop.permute.xlu1 %1617 }
 0x23c   :  { %1807 = vst.msk [vmem:[#allocation3 + $0x18] sm:$0xff] %vm1803_vm5, %v1618_v51 }
 0x23d   :  { %1725 = vrot.lane.b32.xlu1 %v1540_v0, %s6176_s0  ;;  %1731 = vrot.lane.b32.xlu0 %v1543_v13, %s6176_s0  ;;  %v1624_v0 = vpop.permute.xlu0 %1623  ;;  %v1546_v13 = vld [vmem:[#allocation2 + $0x321] sm:$0xff] }
 0x23e   :  { %1810 = vst.msk [vmem:[#allocation3 + $0x30] sm:$0xff] %vm1803_vm5, %v1624_v0  ;;  %v1873_v0 = vld [vmem:[#allocation2 + $0x3a] sm:$0xff] }
 0x241   :  { %1729 = vrot.lane.b32.xlu1 %v1542_v4, %s6176_s0  ;;  %1735 = vrot.lane.b32.xlu0 %v1545_v28, %s6176_s0  ;;  %v1872_v4 = vld [vmem:[#allocation2 + $0x32] sm:$0xff]  ;;  %v1622_v28 = vpop.permute.xlu1 %1621  ;;  %v1628_v15 = vpop.permute.xlu0 %1627 }
 0x242   :  { %1809 = vst.msk [vmem:[#allocation3 + $0x28] sm:$0xff] %vm1803_vm5, %v1622_v28  ;;  %1812 = vst.msk [vmem:[#allocation3 + $0x40] sm:$0xff] %vm1803_vm5, %v1628_v15  ;;  %v1875_v15 = vld [vmem:[#allocation2 + $0x52] sm:$0xff] }
 0x245   :  { %1733 = vrot.lane.b32.xlu1 %v1544_v49, %s6176_s0  ;;  %2000 = vrot.lane.b32.xlu0 %v1870_v44, %s6177_s28  ;;  %v1874_v49 = vld [vmem:[#allocation2 + $0x4a] sm:$0xff] }
 0x249   :  { %1737 = vrot.lane.b32.xlu1 %v1546_v13, %s6176_s0  ;;  %2004 = vrot.lane.b32.xlu0 %v1872_v4, %s6177_s28  ;;  %v1876_v13 = vld [vmem:[#allocation2 + $0x62] sm:$0xff] }
 0x24d   :  { %2002 = vrot.lane.b32.xlu1 %v1871_v30, %s6177_s28  ;;  %2008 = vrot.lane.b32.xlu0 %v1874_v49, %s6177_s28  ;;  %v1878_v30 = vld [vmem:[#allocation2 + $0x7a] sm:$0xff] }
 0x24f   :  { %v1626_v44 = vpop.permute.xlu1 %1625  ;;  %v1632_v51 = vpop.permute.xlu0 %1631 }
 0x250   :  { %1811 = vst.msk [vmem:[#allocation3 + $0x38] sm:$0xff] %vm1803_vm5, %v1626_v44  ;;  %1814 = vst.msk [vmem:[#allocation3 + $0x50] sm:$0xff] %vm1803_vm5, %v1632_v51  ;;  %v1877_v51 = vld [vmem:[#allocation2 + $0x6a] sm:$0xff] }
 0x251   :  { %2006 = vrot.lane.b32.xlu1 %v1873_v0, %s6177_s28  ;;  %2012 = vrot.lane.b32.xlu0 %v1876_v13, %s6177_s28  ;;  %v1880_v0 = vld [vmem:[#allocation2 + $0x92] sm:$0xff] }
 0x253   :  { %v1630_v4 = vpop.permute.xlu1 %1629  ;;  %v1636_v28 = vpop.permute.xlu0 %1635 }
 0x254   :  { %1813 = vst.msk [vmem:[#allocation3 + $0x48] sm:$0xff] %vm1803_vm5, %v1630_v4  ;;  %1816 = vst.msk [vmem:[#allocation3 + $0x60] sm:$0xff] %vm1803_vm5, %v1636_v28  ;;  %v1879_v28 = vld [vmem:[#allocation2 + $0x82] sm:$0xff] }
 0x255   :  { %2010 = vrot.lane.b32.xlu1 %v1875_v15, %s6177_s28  ;;  %2016 = vrot.lane.b32.xlu0 %v1878_v30, %s6177_s28  ;;  %v1882_v15 = vld [vmem:[#allocation2 + $0xaa] sm:$0xff] }
 0x257   :  { %v1634_v49 = vpop.permute.xlu1 %1633  ;;  %v1640_v44 = vpop.permute.xlu0 %1639 }
 0x258   :  { %1815 = vst.msk [vmem:[#allocation3 + $0x58] sm:$0xff] %vm1803_vm5, %v1634_v49  ;;  %1818 = vst.msk [vmem:[#allocation3 + $0x70] sm:$0xff] %vm1803_vm5, %v1640_v44  ;;  %v1881_v44 = vld [vmem:[#allocation2 + $0x9a] sm:$0xff] }
 0x259   :  { %2014 = vrot.lane.b32.xlu1 %v1877_v51, %s6177_s28  ;;  %2020 = vrot.lane.b32.xlu0 %v1880_v0, %s6177_s28  ;;  %v1884_v51 = vld [vmem:[#allocation2 + $0xc2] sm:$0xff] }
 0x25b   :  { %v1638_v13 = vpop.permute.xlu1 %1637  ;;  %v1644_v4 = vpop.permute.xlu0 %1643 }
 0x25c   :  { %1817 = vst.msk [vmem:[#allocation3 + $0x68] sm:$0xff] %vm1803_vm5, %v1638_v13  ;;  %1820 = vst.msk [vmem:[#allocation3 + $0x80] sm:$0xff] %vm1803_vm5, %v1644_v4  ;;  %v1883_v4 = vld [vmem:[#allocation2 + $0xb2] sm:$0xff] }
 0x25d   :  { %2018 = vrot.lane.b32.xlu1 %v1879_v28, %s6177_s28  ;;  %2024 = vrot.lane.b32.xlu0 %v1882_v15, %s6177_s28  ;;  %v1886_v28 = vld [vmem:[#allocation2 + $0xda] sm:$0xff] }
 0x25f   :  { %v1642_v30 = vpop.permute.xlu1 %1641  ;;  %v1648_v49 = vpop.permute.xlu0 %1647 }
 0x260   :  { %1819 = vst.msk [vmem:[#allocation3 + $0x78] sm:$0xff] %vm1803_vm5, %v1642_v30  ;;  %1822 = vst.msk [vmem:[#allocation3 + $0x90] sm:$0xff] %vm1803_vm5, %v1648_v49  ;;  %v1885_v49 = vld [vmem:[#allocation2 + $0xca] sm:$0xff] }
 0x261   :  { %2022 = vrot.lane.b32.xlu1 %v1881_v44, %s6177_s28  ;;  %2028 = vrot.lane.b32.xlu0 %v1884_v51, %s6177_s28  ;;  %v1888_v44 = vld [vmem:[#allocation2 + $0xf2] sm:$0xff] }
 0x263   :  { %v1646_v0 = vpop.permute.xlu1 %1645  ;;  %v1652_v13 = vpop.permute.xlu0 %1651 }
 0x264   :  { %1821 = vst.msk [vmem:[#allocation3 + $0x88] sm:$0xff] %vm1803_vm5, %v1646_v0  ;;  %1824 = vst.msk [vmem:[#allocation3 + $0xa0] sm:$0xff] %vm1803_vm5, %v1652_v13  ;;  %v1887_v13 = vld [vmem:[#allocation2 + $0xe2] sm:$0xff] }
 0x265   :  { %2026 = vrot.lane.b32.xlu1 %v1883_v4, %s6177_s28  ;;  %2032 = vrot.lane.b32.xlu0 %v1886_v28, %s6177_s28  ;;  %v1890_v4 = vld [vmem:[#allocation2 + $0x10a] sm:$0xff] }
 0x267   :  { %v1650_v15 = vpop.permute.xlu1 %1649  ;;  %v1656_v30 = vpop.permute.xlu0 %1655 }
 0x268   :  { %1823 = vst.msk [vmem:[#allocation3 + $0x98] sm:$0xff] %vm1803_vm5, %v1650_v15  ;;  %1826 = vst.msk [vmem:[#allocation3 + $0xb0] sm:$0xff] %vm1803_vm5, %v1656_v30  ;;  %v1889_v30 = vld [vmem:[#allocation2 + $0xfa] sm:$0xff] }
 0x269   :  { %2030 = vrot.lane.b32.xlu1 %v1885_v49, %s6177_s28  ;;  %2036 = vrot.lane.b32.xlu0 %v1888_v44, %s6177_s28  ;;  %v1892_v49 = vld [vmem:[#allocation2 + $0x122] sm:$0xff] }
 0x26b   :  { %v1654_v51 = vpop.permute.xlu1 %1653  ;;  %v1660_v0 = vpop.permute.xlu0 %1659 }
 0x26c   :  { %1825 = vst.msk [vmem:[#allocation3 + $0xa8] sm:$0xff] %vm1803_vm5, %v1654_v51  ;;  %1828 = vst.msk [vmem:[#allocation3 + $0xc0] sm:$0xff] %vm1803_vm5, %v1660_v0  ;;  %v1891_v0 = vld [vmem:[#allocation2 + $0x112] sm:$0xff] }
 0x26d   :  { %2034 = vrot.lane.b32.xlu1 %v1887_v13, %s6177_s28  ;;  %2040 = vrot.lane.b32.xlu0 %v1890_v4, %s6177_s28  ;;  %v1894_v13 = vld [vmem:[#allocation2 + $0x13a] sm:$0xff] }
 0x26f   :  { %v1658_v28 = vpop.permute.xlu1 %1657  ;;  %v1664_v15 = vpop.permute.xlu0 %1663 }
 0x270   :  { %1827 = vst.msk [vmem:[#allocation3 + $0xb8] sm:$0xff] %vm1803_vm5, %v1658_v28  ;;  %1830 = vst.msk [vmem:[#allocation3 + $0xd0] sm:$0xff] %vm1803_vm5, %v1664_v15  ;;  %v1893_v15 = vld [vmem:[#allocation2 + $0x12a] sm:$0xff] }
 0x271   :  { %2038 = vrot.lane.b32.xlu1 %v1889_v30, %s6177_s28  ;;  %2044 = vrot.lane.b32.xlu0 %v1892_v49, %s6177_s28  ;;  %v1896_v30 = vld [vmem:[#allocation2 + $0x152] sm:$0xff] }
 0x273   :  { %v1662_v44 = vpop.permute.xlu1 %1661  ;;  %v1668_v51 = vpop.permute.xlu0 %1667 }
 0x274   :  { %1829 = vst.msk [vmem:[#allocation3 + $0xc8] sm:$0xff] %vm1803_vm5, %v1662_v44  ;;  %1832 = vst.msk [vmem:[#allocation3 + $0xe0] sm:$0xff] %vm1803_vm5, %v1668_v51  ;;  %v1895_v51 = vld [vmem:[#allocation2 + $0x142] sm:$0xff] }
 0x275   :  { %2042 = vrot.lane.b32.xlu1 %v1891_v0, %s6177_s28  ;;  %2048 = vrot.lane.b32.xlu0 %v1894_v13, %s6177_s28  ;;  %v1898_v0 = vld [vmem:[#allocation2 + $0x16a] sm:$0xff] }
 0x277   :  { %v1666_v4 = vpop.permute.xlu1 %1665  ;;  %v1672_v28 = vpop.permute.xlu0 %1671 }
 0x278   :  { %1831 = vst.msk [vmem:[#allocation3 + $0xd8] sm:$0xff] %vm1803_vm5, %v1666_v4  ;;  %1834 = vst.msk [vmem:[#allocation3 + $0xf0] sm:$0xff] %vm1803_vm5, %v1672_v28  ;;  %v1897_v28 = vld [vmem:[#allocation2 + $0x15a] sm:$0xff] }
 0x279   :  { %2046 = vrot.lane.b32.xlu1 %v1893_v15, %s6177_s28  ;;  %2052 = vrot.lane.b32.xlu0 %v1896_v30, %s6177_s28  ;;  %v1902_v15 = vld [vmem:[#allocation2 + $0x1ca] sm:$0xff] }
 0x27b   :  { %v1670_v49 = vpop.permute.xlu1 %1669  ;;  %v1680_v44 = vpop.permute.xlu0 %1679 }
 0x27c   :  { %1833 = vst.msk [vmem:[#allocation3 + $0xe8] sm:$0xff] %vm1803_vm5, %v1670_v49  ;;  %1838 = vst.msk [vmem:[#allocation3 + $0x110] sm:$0xff] %vm1803_vm5, %v1680_v44  ;;  %v1899_v44 = vld [vmem:[#allocation2 + $0x172] sm:$0xff] }
 0x27d   :  { %2050 = vrot.lane.b32.xlu1 %v1895_v51, %s6177_s28  ;;  %2056 = vrot.lane.b32.xlu0 %v1898_v0, %s6177_s28  ;;  %v1904_v51 = vld [vmem:[#allocation2 + $0x1e2] sm:$0xff] }
 0x27f   :  { %v1674_v13 = vpop.permute.xlu1 %1673  ;;  %v1684_v4 = vpop.permute.xlu0 %1683 }
 0x280   :  { %1835 = vst.msk [vmem:[#allocation3 + $0xf8] sm:$0xff] %vm1803_vm5, %v1674_v13  ;;  %1840 = vst.msk [vmem:[#allocation3 + $0x120] sm:$0xff] %vm1803_vm5, %v1684_v4  ;;  %v1903_v4 = vld [vmem:[#allocation2 + $0x1d2] sm:$0xff] }
 0x281   :  { %2054 = vrot.lane.b32.xlu1 %v1897_v28, %s6177_s28  ;;  %2064 = vrot.lane.b32.xlu0 %v1902_v15, %s6177_s28  ;;  %v1906_v28 = vld [vmem:[#allocation2 + $0x1fa] sm:$0xff] }
 0x283   :  { %v1682_v30 = vpop.permute.xlu1 %1681  ;;  %v1688_v49 = vpop.permute.xlu0 %1687 }
 0x284   :  { %1839 = vst.msk [vmem:[#allocation3 + $0x118] sm:$0xff] %vm1803_vm5, %v1682_v30  ;;  %1842 = vst.msk [vmem:[#allocation3 + $0x130] sm:$0xff] %vm1803_vm5, %v1688_v49  ;;  %v1905_v49 = vld [vmem:[#allocation2 + $0x1ea] sm:$0xff] }
 0x285   :  { %2058 = vrot.lane.b32.xlu1 %v1899_v44, %s6177_s28  ;;  %2068 = vrot.lane.b32.xlu0 %v1904_v51, %s6177_s28  ;;  %v1908_v44 = vld [vmem:[#allocation2 + $0x212] sm:$0xff] }
 0x287   :  { %v1686_v0 = vpop.permute.xlu1 %1685  ;;  %v1692_v13 = vpop.permute.xlu0 %1691 }
 0x288   :  { %1841 = vst.msk [vmem:[#allocation3 + $0x128] sm:$0xff] %vm1803_vm5, %v1686_v0  ;;  %1844 = vst.msk [vmem:[#allocation3 + $0x140] sm:$0xff] %vm1803_vm5, %v1692_v13  ;;  %v1907_v13 = vld [vmem:[#allocation2 + $0x202] sm:$0xff] }
 0x289   :  { %2066 = vrot.lane.b32.xlu1 %v1903_v4, %s6177_s28  ;;  %2072 = vrot.lane.b32.xlu0 %v1906_v28, %s6177_s28  ;;  %v1910_v4 = vld [vmem:[#allocation2 + $0x22a] sm:$0xff] }
 0x28b   :  { %v1690_v15 = vpop.permute.xlu1 %1689  ;;  %v1696_v30 = vpop.permute.xlu0 %1695 }
 0x28c   :  { %1843 = vst.msk [vmem:[#allocation3 + $0x138] sm:$0xff] %vm1803_vm5, %v1690_v15  ;;  %1846 = vst.msk [vmem:[#allocation3 + $0x150] sm:$0xff] %vm1803_vm5, %v1696_v30  ;;  %v1909_v30 = vld [vmem:[#allocation2 + $0x21a] sm:$0xff] }
 0x28d   :  { %2070 = vrot.lane.b32.xlu1 %v1905_v49, %s6177_s28  ;;  %2076 = vrot.lane.b32.xlu0 %v1908_v44, %s6177_s28  ;;  %v1912_v49 = vld [vmem:[#allocation2 + $0x242] sm:$0xff] }
 0x28f   :  { %v1694_v51 = vpop.permute.xlu1 %1693  ;;  %v1700_v0 = vpop.permute.xlu0 %1699 }
 0x290   :  { %1845 = vst.msk [vmem:[#allocation3 + $0x148] sm:$0xff] %vm1803_vm5, %v1694_v51  ;;  %1848 = vst.msk [vmem:[#allocation3 + $0x160] sm:$0xff] %vm1803_vm5, %v1700_v0  ;;  %v1911_v0 = vld [vmem:[#allocation2 + $0x232] sm:$0xff] }
 0x291   :  { %2074 = vrot.lane.b32.xlu1 %v1907_v13, %s6177_s28  ;;  %2080 = vrot.lane.b32.xlu0 %v1910_v4, %s6177_s28  ;;  %v1914_v13 = vld [vmem:[#allocation2 + $0x25a] sm:$0xff] }
 0x293   :  { %v1698_v28 = vpop.permute.xlu1 %1697  ;;  %v1704_v15 = vpop.permute.xlu0 %1703 }
 0x294   :  { %1847 = vst.msk [vmem:[#allocation3 + $0x158] sm:$0xff] %vm1803_vm5, %v1698_v28  ;;  %1850 = vst.msk [vmem:[#allocation3 + $0x170] sm:$0xff] %vm1803_vm5, %v1704_v15  ;;  %v1913_v15 = vld [vmem:[#allocation2 + $0x24a] sm:$0xff] }
 0x295   :  { %2078 = vrot.lane.b32.xlu1 %v1909_v30, %s6177_s28  ;;  %2084 = vrot.lane.b32.xlu0 %v1912_v49, %s6177_s28  ;;  %v1916_v30 = vld [vmem:[#allocation2 + $0x272] sm:$0xff] }
 0x297   :  { %v1702_v44 = vpop.permute.xlu1 %1701  ;;  %v1708_v51 = vpop.permute.xlu0 %1707 }
 0x298   :  { %1849 = vst.msk [vmem:[#allocation3 + $0x168] sm:$0xff] %vm1803_vm5, %v1702_v44  ;;  %1852 = vst.msk [vmem:[#allocation3 + $0x180] sm:$0xff] %vm1803_vm5, %v1708_v51  ;;  %v1915_v51 = vld [vmem:[#allocation2 + $0x262] sm:$0xff] }
 0x299   :  { %2082 = vrot.lane.b32.xlu1 %v1911_v0, %s6177_s28  ;;  %2088 = vrot.lane.b32.xlu0 %v1914_v13, %s6177_s28  ;;  %v1918_v0 = vld [vmem:[#allocation2 + $0x28a] sm:$0xff] }
 0x29b   :  { %v1706_v4 = vpop.permute.xlu1 %1705  ;;  %v1712_v28 = vpop.permute.xlu0 %1711 }
 0x29c   :  { %1851 = vst.msk [vmem:[#allocation3 + $0x178] sm:$0xff] %vm1803_vm5, %v1706_v4  ;;  %1854 = vst.msk [vmem:[#allocation3 + $0x190] sm:$0xff] %vm1803_vm5, %v1712_v28  ;;  %v1917_v28 = vld [vmem:[#allocation2 + $0x27a] sm:$0xff] }
 0x29d   :  { %2086 = vrot.lane.b32.xlu1 %v1913_v15, %s6177_s28  ;;  %2092 = vrot.lane.b32.xlu0 %v1916_v30, %s6177_s28  ;;  %v1920_v15 = vld [vmem:[#allocation2 + $0x2a2] sm:$0xff] }
 0x29f   :  { %v1710_v49 = vpop.permute.xlu1 %1709  ;;  %v1716_v44 = vpop.permute.xlu0 %1715 }
 0x2a0   :  { %1853 = vst.msk [vmem:[#allocation3 + $0x188] sm:$0xff] %vm1803_vm5, %v1710_v49  ;;  %1856 = vst.msk [vmem:[#allocation3 + $0x1a0] sm:$0xff] %vm1803_vm5, %v1716_v44  ;;  %v1919_v44 = vld [vmem:[#allocation2 + $0x292] sm:$0xff] }
 0x2a1   :  { %2090 = vrot.lane.b32.xlu1 %v1915_v51, %s6177_s28  ;;  %2096 = vrot.lane.b32.xlu0 %v1918_v0, %s6177_s28  ;;  %v1922_v51 = vld [vmem:[#allocation2 + $0x2ba] sm:$0xff] }
 0x2a3   :  { %v1714_v13 = vpop.permute.xlu1 %1713  ;;  %v1720_v4 = vpop.permute.xlu0 %1719 }
 0x2a4   :  { %1855 = vst.msk [vmem:[#allocation3 + $0x198] sm:$0xff] %vm1803_vm5, %v1714_v13  ;;  %1858 = vst.msk [vmem:[#allocation3 + $0x1b0] sm:$0xff] %vm1803_vm5, %v1720_v4  ;;  %v1921_v4 = vld [vmem:[#allocation2 + $0x2aa] sm:$0xff] }
 0x2a5   :  { %2094 = vrot.lane.b32.xlu1 %v1917_v28, %s6177_s28  ;;  %2100 = vrot.lane.b32.xlu0 %v1920_v15, %s6177_s28  ;;  %v1924_v28 = vld [vmem:[#allocation2 + $0x2d2] sm:$0xff] }
 0x2a7   :  { %v1718_v30 = vpop.permute.xlu1 %1717  ;;  %v1724_v49 = vpop.permute.xlu0 %1723 }
 0x2a8   :  { %1857 = vst.msk [vmem:[#allocation3 + $0x1a8] sm:$0xff] %vm1803_vm5, %v1718_v30  ;;  %1860 = vst.msk [vmem:[#allocation3 + $0x1c0] sm:$0xff] %vm1803_vm5, %v1724_v49  ;;  %v1923_v49 = vld [vmem:[#allocation2 + $0x2c2] sm:$0xff] }
 0x2a9   :  { %2098 = vrot.lane.b32.xlu1 %v1919_v44, %s6177_s28  ;;  %2104 = vrot.lane.b32.xlu0 %v1922_v51, %s6177_s28  ;;  %v1926_v44 = vld [vmem:[#allocation2 + $0x2ea] sm:$0xff] }
 0x2ab   :  { %v1722_v0 = vpop.permute.xlu1 %1721  ;;  %v1728_v13 = vpop.permute.xlu0 %1727 }
 0x2ac   :  { %1859 = vst.msk [vmem:[#allocation3 + $0x1b8] sm:$0xff] %vm1803_vm5, %v1722_v0  ;;  %1862 = vst.msk [vmem:[#allocation3 + $0x1d0] sm:$0xff] %vm1803_vm5, %v1728_v13  ;;  %v1925_v13 = vld [vmem:[#allocation2 + $0x2da] sm:$0xff] }
 0x2ad   :  { %2102 = vrot.lane.b32.xlu1 %v1921_v4, %s6177_s28  ;;  %2108 = vrot.lane.b32.xlu0 %v1924_v28, %s6177_s28  ;;  %v1928_v4 = vld [vmem:[#allocation2 + $0x302] sm:$0xff] }
 0x2af   :  { %v1726_v15 = vpop.permute.xlu1 %1725  ;;  %v1732_v30 = vpop.permute.xlu0 %1731 }
 0x2b0   :  { %1861 = vst.msk [vmem:[#allocation3 + $0x1c8] sm:$0xff] %vm1803_vm5, %v1726_v15  ;;  %1864 = vst.msk [vmem:[#allocation3 + $0x1e0] sm:$0xff] %vm1803_vm5, %v1732_v30  ;;  %v1927_v30 = vld [vmem:[#allocation2 + $0x2f2] sm:$0xff] }
 0x2b1   :  { %2106 = vrot.lane.b32.xlu1 %v1923_v49, %s6177_s28  ;;  %2112 = vrot.lane.b32.xlu0 %v1926_v44, %s6177_s28  ;;  %v1930_v49 = vld [vmem:[#allocation2 + $0x31a] sm:$0xff] }
 0x2b3   :  { %v1730_v51 = vpop.permute.xlu1 %1729  ;;  %v1736_v0 = vpop.permute.xlu0 %1735 }
 0x2b4   :  { %1863 = vst.msk [vmem:[#allocation3 + $0x1d8] sm:$0xff] %vm1803_vm5, %v1730_v51  ;;  %1866 = vst.msk [vmem:[#allocation3 + $0x1f0] sm:$0xff] %vm1803_vm5, %v1736_v0  ;;  %v1929_v0 = vld [vmem:[#allocation2 + $0x30a] sm:$0xff] }
 0x2b5   :  { %2110 = vrot.lane.b32.xlu1 %v1925_v13, %s6177_s28  ;;  %2116 = vrot.lane.b32.xlu0 %v1928_v4, %s6177_s28 }
 0x2b7   :  { %v1734_v28 = vpop.permute.xlu1 %1733  ;;  %v2001_v15 = vpop.permute.xlu0 %2000 }
 0x2b8   :  { %1865 = vst.msk [vmem:[#allocation3 + $0x1e8] sm:$0xff] %vm1803_vm5, %v1734_v28  ;;  %v1931_v28 = vld [vmem:[#allocation2 + $0x322] sm:$0xff] }
 0x2b9   :  { %2191 = vst.msk [vmem:[#allocation3 + $0x10] sm:$0xff] %vm2188_vm6, %v2001_v15  ;;  %2114 = vrot.lane.b32.xlu1 %v1927_v30, %s6177_s28  ;;  %2120 = vrot.lane.b32.xlu0 %v1930_v49, %s6177_s28 }
 0x2bb   :  { %v1738_v44 = vpop.permute.xlu1 %1737  ;;  %v2005_v51 = vpop.permute.xlu0 %2004 }
 0x2bc   :  { %1867 = vst.msk [vmem:[#allocation3 + $0x1f8] sm:$0xff] %vm1803_vm5, %v1738_v44 }
 0x2bd   :  { %2193 = vst.msk [vmem:[#allocation3 + $0x20] sm:$0xff] %vm2188_vm6, %v2005_v51  ;;  %2118 = vrot.lane.b32.xlu1 %v1929_v0, %s6177_s28  ;;  %2381 = vrot.lane.b32.xlu0 %v7583_v34, %s6178_s2  ;;  %v2284_v0 = vld [vmem:[#allocation2 + $0x188] sm:$0xff] }
 0x2bf   :  { %v2003_v13 = vpop.permute.xlu1 %2002  ;;  %v2009_v4 = vpop.permute.xlu0 %2008 }
 0x2c0   :  { %2192 = vst.msk [vmem:[#allocation3 + $0x18] sm:$0xff] %vm2188_vm6, %v2003_v13  ;;  %2195 = vst.msk [vmem:[#allocation3 + $0x30] sm:$0xff] %vm2188_vm6, %v2009_v4 }
 0x2c1   :  { %2122 = vrot.lane.b32.xlu1 %v1931_v28, %s6177_s28  ;;  %2385 = vrot.lane.b32.xlu0 %v7672_v24, %s6178_s2 }
 0x2c3   :  { %v2007_v15 = vpop.permute.xlu1 %2006  ;;  %v2013_v30 = vpop.permute.xlu0 %2012 }
 0x2c4   :  { %2194 = vst.msk [vmem:[#allocation3 + $0x28] sm:$0xff] %vm2188_vm6, %v2007_v15  ;;  %2197 = vst.msk [vmem:[#allocation3 + $0x40] sm:$0xff] %vm2188_vm6, %v2013_v30 }
 0x2c5   :  { %2383 = vrot.lane.b32.xlu1 %v7678_v19, %s6178_s2  ;;  %2389 = vrot.lane.b32.xlu0 %v7676_v7, %s6178_s2 }
 0x2c7   :  { %v2011_v34 = vpop.permute.xlu1 %2010  ;;  %v2017_v49 = vpop.permute.xlu0 %2016 }
 0x2c8   :  { %2196 = vst.msk [vmem:[#allocation3 + $0x38] sm:$0xff] %vm2188_vm6, %v2011_v34  ;;  %2199 = vst.msk [vmem:[#allocation3 + $0x50] sm:$0xff] %vm2188_vm6, %v2017_v49  ;;  %v11037_v34 = vld [vmem:[#allocation27_spill] sm:$0xff] }
 0x2c9   :  { %2387 = vrot.lane.b32.xlu1 %v7686_v31, %s6178_s2  ;;  %2393 = vrot.lane.b32.xlu0 %v7684_v54, %s6178_s2 }
 0x2cb   :  { %v2015_v24 = vpop.permute.xlu1 %2014  ;;  %v2021_v44 = vpop.permute.xlu0 %2020 }
 0x2cc   :  { %2198 = vst.msk [vmem:[#allocation3 + $0x48] sm:$0xff] %vm2188_vm6, %v2015_v24  ;;  %2201 = vst.msk [vmem:[#allocation3 + $0x60] sm:$0xff] %vm2188_vm6, %v2021_v44  ;;  %v2638_v44 = vld [vmem:[#allocation2 + $0x19] sm:$0xff] }
 0x2cd   :  { %2391 = vrot.lane.b32.xlu1 %v7695_v18, %s6178_s2  ;;  %2397 = vrot.lane.b32.xlu0 %v7693_v5, %s6178_s2 }
 0x2cf   :  { %v2019_v7 = vpop.permute.xlu1 %2018  ;;  %v2025_v19 = vpop.permute.xlu0 %2024 }
 0x2d0   :  { %2200 = vst.msk [vmem:[#allocation3 + $0x58] sm:$0xff] %vm2188_vm6, %v2019_v7  ;;  %2203 = vst.msk [vmem:[#allocation3 + $0x70] sm:$0xff] %vm2188_vm6, %v2025_v19  ;;  %v11038_v7 = vld [vmem:[#allocation4_spill] sm:$0xff] }
 0x2d1   :  { %2395 = vrot.lane.b32.xlu1 %v7706_v12, %s6178_s2  ;;  %2401 = vrot.lane.b32.xlu0 %v7702_v62, %s6178_s2 }
 0x2d3   :  { %v2023_v54 = vpop.permute.xlu1 %2022  ;;  %v2029_v31 = vpop.permute.xlu0 %2028 }
 0x2d4   :  { %2202 = vst.msk [vmem:[#allocation3 + $0x68] sm:$0xff] %vm2188_vm6, %v2023_v54  ;;  %2205 = vst.msk [vmem:[#allocation3 + $0x80] sm:$0xff] %vm2188_vm6, %v2029_v31  ;;  %v2316_v31 = vld [vmem:[#allocation2 + $0x338] sm:$0xff] }
 0x2d5   :  { %2399 = vrot.lane.b32.xlu1 %v7712_v45, %s6178_s2  ;;  %2405 = vrot.lane.b32.xlu0 %v7710_v27, %s6178_s2 }
 0x2d7   :  { %v2027_v5 = vpop.permute.xlu1 %2026  ;;  %v2033_v18 = vpop.permute.xlu0 %2032 }
 0x2d8   :  { %2204 = vst.msk [vmem:[#allocation3 + $0x78] sm:$0xff] %vm2188_vm6, %v2027_v5  ;;  %2207 = vst.msk [vmem:[#allocation3 + $0x90] sm:$0xff] %vm2188_vm6, %v2033_v18  ;;  %v8268_v5 = vld [vmem:[#allocation2 + $0x31] sm:$0xff] }
 0x2d9   :  { %2403 = vrot.lane.b32.xlu1 %v7721_v63, %s6178_s2  ;;  %2409 = vrot.lane.b32.xlu0 %v7719_v25, %s6178_s2 }
 0x2db   :  { %v2031_v62 = vpop.permute.xlu1 %2030  ;;  %v2037_v12 = vpop.permute.xlu0 %2036 }
 0x2dc   :  { %2206 = vst.msk [vmem:[#allocation3 + $0x88] sm:$0xff] %vm2188_vm6, %v2031_v62  ;;  %2209 = vst.msk [vmem:[#allocation3 + $0xa0] sm:$0xff] %vm2188_vm6, %v2037_v12  ;;  %v2639_v12 = vld [vmem:[#allocation2 + $0x21] sm:$0xff] }
 0x2dd   :  { %2407 = vrot.lane.b32.xlu1 %v7732_v50, %s6178_s2  ;;  %2413 = vrot.lane.b32.xlu0 %v7728_v17, %s6178_s2 }
 0x2df   :  { %v2035_v27 = vpop.permute.xlu1 %2034  ;;  %v2041_v45 = vpop.permute.xlu0 %2040 }
 0x2e0   :  { %2208 = vst.msk [vmem:[#allocation3 + $0x98] sm:$0xff] %vm2188_vm6, %v2035_v27  ;;  %2211 = vst.msk [vmem:[#allocation3 + $0xb0] sm:$0xff] %vm2188_vm6, %v2041_v45  ;;  %v8275_v27 = vld [vmem:[#allocation2 + $0x49] sm:$0xff] }
 0x2e1   :  { %2411 = vrot.lane.b32.xlu1 %v7738_v56, %s6178_s2  ;;  %2417 = vrot.lane.b32.xlu0 %v7736_v35, %s6178_s2 }
 0x2e3   :  { %v2039_v25 = vpop.permute.xlu1 %2038  ;;  %v2045_v63 = vpop.permute.xlu0 %2044 }
 0x2e4   :  { %2210 = vst.msk [vmem:[#allocation3 + $0xa8] sm:$0xff] %vm2188_vm6, %v2039_v25  ;;  %2213 = vst.msk [vmem:[#allocation3 + $0xc0] sm:$0xff] %vm2188_vm6, %v2045_v63  ;;  %v8281_v63 = vld [vmem:[#allocation2 + $0x39] sm:$0xff] }
 0x2e5   :  { %2415 = vrot.lane.b32.xlu1 %v7747_v47, %s6178_s2  ;;  %2421 = vrot.lane.b32.xlu0 %v7745_v29, %s6178_s2 }
 0x2e7   :  { %v2043_v17 = vpop.permute.xlu1 %2042  ;;  %v2049_v50 = vpop.permute.xlu0 %2048 }
 0x2e8   :  { %2212 = vst.msk [vmem:[#allocation3 + $0xb8] sm:$0xff] %vm2188_vm6, %v2043_v17  ;;  %2215 = vst.msk [vmem:[#allocation3 + $0xd0] sm:$0xff] %vm2188_vm6, %v2049_v50  ;;  %v8284_v17 = vld [vmem:[#allocation2 + $0x61] sm:$0xff] }
 0x2e9   :  { %2419 = vrot.lane.b32.xlu1 %v7758_v39, %s6178_s2  ;;  %2425 = vrot.lane.b32.xlu0 %v7754_v55, %s6178_s2 }
 0x2eb   :  { %v2047_v35 = vpop.permute.xlu1 %2046  ;;  %v2053_v56 = vpop.permute.xlu0 %2052 }
 0x2ec   :  { %2214 = vst.msk [vmem:[#allocation3 + $0xc8] sm:$0xff] %vm2188_vm6, %v2047_v35  ;;  %2217 = vst.msk [vmem:[#allocation3 + $0xe0] sm:$0xff] %vm2188_vm6, %v2053_v56  ;;  %v8291_v56 = vld [vmem:[#allocation2 + $0x51] sm:$0xff] }
 0x2ed   :  { %2423 = vrot.lane.b32.xlu1 %v7764_v1, %s6178_s2  ;;  %2429 = vrot.lane.b32.xlu0 %v7762_v22, %s6178_s2 }
 0x2ef   :  { %v2051_v29 = vpop.permute.xlu1 %2050  ;;  %v2057_v47 = vpop.permute.xlu0 %2056 }
 0x2f0   :  { %2216 = vst.msk [vmem:[#allocation3 + $0xd8] sm:$0xff] %vm2188_vm6, %v2051_v29  ;;  %2219 = vst.msk [vmem:[#allocation3 + $0xf0] sm:$0xff] %vm2188_vm6, %v2057_v47  ;;  %v8294_v29 = vld [vmem:[#allocation2 + $0x79] sm:$0xff] }
 0x2f1   :  { %2427 = vrot.lane.b32.xlu1 %v7773_v43, %s6178_s2  ;;  %2433 = vrot.lane.b32.xlu0 %v7771_v42, %s6178_s2  ;;  %v2283_v43 = vld [vmem:[#allocation2 + $0x180] sm:$0xff] }
 0x2f3   :  { %v2055_v55 = vpop.permute.xlu1 %2054  ;;  %v2065_v39 = vpop.permute.xlu0 %2064 }
 0x2f4   :  { %2218 = vst.msk [vmem:[#allocation3 + $0xe8] sm:$0xff] %vm2188_vm6, %v2055_v55  ;;  %2223 = vst.msk [vmem:[#allocation3 + $0x110] sm:$0xff] %vm2188_vm6, %v2065_v39  ;;  %v8301_v39 = vld [vmem:[#allocation2 + $0x69] sm:$0xff] }
 0x2f5   :  { %2431 = vrot.lane.b32.xlu1 %v7784_v14, %s6178_s2  ;;  %2437 = vrot.lane.b32.xlu0 %v7780_v21, %s6178_s2 }
 0x2f7   :  { %v2059_v22 = vpop.permute.xlu1 %2058  ;;  %v2069_v1 = vpop.permute.xlu0 %2068 }
 0x2f8   :  { %2220 = vst.msk [vmem:[#allocation3 + $0xf8] sm:$0xff] %vm2188_vm6, %v2059_v22  ;;  %2225 = vst.msk [vmem:[#allocation3 + $0x120] sm:$0xff] %vm2188_vm6, %v2069_v1  ;;  %v8304_v22 = vld [vmem:[#allocation2 + $0x91] sm:$0xff] }
 0x2f9   :  { %2435 = vrot.lane.b32.xlu1 %v7790_v26, %s6178_s2  ;;  %2441 = vrot.lane.b32.xlu0 %v2283_v43, %s6178_s2 }
 0x2fb   :  { %v2067_v42 = vpop.permute.xlu1 %2066  ;;  %v2073_v51 = vpop.permute.xlu0 %2072 }
 0x2fc   :  { %2224 = vst.msk [vmem:[#allocation3 + $0x118] sm:$0xff] %vm2188_vm6, %v2067_v42  ;;  %2227 = vst.msk [vmem:[#allocation3 + $0x130] sm:$0xff] %vm2188_vm6, %v2073_v51  ;;  %v8311_v42 = vld [vmem:[#allocation2 + $0x81] sm:$0xff]  ;;  %v8314_v51 = vld [vmem:[#allocation2 + $0xa9] sm:$0xff] }
 0x2fd   :  { %2439 = vrot.lane.b32.xlu1 %v7799_v2, %s6178_s2  ;;  %2445 = vrot.lane.b32.xlu0 %v7788_v11, %s6178_s2 }
 0x2ff   :  { %v2071_v21 = vpop.permute.xlu1 %2070  ;;  %v2077_v14 = vpop.permute.xlu0 %2076 }
 0x300   :  { %2226 = vst.msk [vmem:[#allocation3 + $0x128] sm:$0xff] %vm2188_vm6, %v2071_v21  ;;  %2229 = vst.msk [vmem:[#allocation3 + $0x140] sm:$0xff] %vm2188_vm6, %v2077_v14 }
 0x301   :  { %2443 = vrot.lane.b32.xlu1 %v2284_v0, %s6178_s2  ;;  %2449 = vrot.lane.b32.xlu0 %v7797_v33, %s6178_s2  ;;  %v8321_v0 = vld [vmem:[#allocation2 + $0x99] sm:$0xff] }
 0x303   :  { %v2075_v26 = vpop.permute.xlu1 %2074  ;;  %v2081_v13 = vpop.permute.xlu0 %2080 }
 0x304   :  { %2228 = vst.msk [vmem:[#allocation3 + $0x138] sm:$0xff] %vm2188_vm6, %v2075_v26  ;;  %2231 = vst.msk [vmem:[#allocation3 + $0x150] sm:$0xff] %vm2188_vm6, %v2081_v13  ;;  %v8324_v26 = vld [vmem:[#allocation2 + $0xc1] sm:$0xff] }
 0x305   :  { %2447 = vrot.lane.b32.xlu1 %v7810_v9, %s6178_s2  ;;  %2453 = vrot.lane.b32.xlu0 %v7806_v32, %s6178_s2 }
 0x307   :  { %v2079_v11 = vpop.permute.xlu1 %2078  ;;  %v2085_v2 = vpop.permute.xlu0 %2084 }
 0x308   :  { %2230 = vst.msk [vmem:[#allocation3 + $0x148] sm:$0xff] %vm2188_vm6, %v2079_v11  ;;  %2233 = vst.msk [vmem:[#allocation3 + $0x160] sm:$0xff] %vm2188_vm6, %v2085_v2  ;;  %v8331_v2 = vld [vmem:[#allocation2 + $0xb1] sm:$0xff] }
 0x309   :  { %2451 = vrot.lane.b32.xlu1 %v7816_v6, %s6178_s2  ;;  %2457 = vrot.lane.b32.xlu0 %v7814_v58, %s6178_s2 }
 0x30b   :  { %v2083_v33 = vpop.permute.xlu1 %2082  ;;  %v2089_v4 = vpop.permute.xlu0 %2088 }
 0x30c   :  { %2232 = vst.msk [vmem:[#allocation3 + $0x158] sm:$0xff] %vm2188_vm6, %v2083_v33  ;;  %2235 = vst.msk [vmem:[#allocation3 + $0x170] sm:$0xff] %vm2188_vm6, %v2089_v4  ;;  %v8334_v33 = vld [vmem:[#allocation2 + $0xd9] sm:$0xff] }
 0x30d   :  { %2455 = vrot.lane.b32.xlu1 %v7825_v3, %s6178_s2  ;;  %2461 = vrot.lane.b32.xlu0 %v7823_v10, %s6178_s2 }
 0x30f   :  { %v2087_v32 = vpop.permute.xlu1 %2086  ;;  %v2093_v9 = vpop.permute.xlu0 %2092 }
 0x310   :  { %2234 = vst.msk [vmem:[#allocation3 + $0x168] sm:$0xff] %vm2188_vm6, %v2087_v32  ;;  %2237 = vst.msk [vmem:[#allocation3 + $0x180] sm:$0xff] %vm2188_vm6, %v2093_v9  ;;  %v8341_v9 = vld [vmem:[#allocation2 + $0xc9] sm:$0xff] }
 0x311   :  { %2459 = vrot.lane.b32.xlu1 %v7836_v23, %s6178_s2  ;;  %2465 = vrot.lane.b32.xlu0 %v7832_v57, %s6178_s2 }
 0x313   :  { %v2091_v58 = vpop.permute.xlu1 %2090  ;;  %v2097_v6 = vpop.permute.xlu0 %2096 }
 0x314   :  { %2236 = vst.msk [vmem:[#allocation3 + $0x178] sm:$0xff] %vm2188_vm6, %v2091_v58  ;;  %2239 = vst.msk [vmem:[#allocation3 + $0x190] sm:$0xff] %vm2188_vm6, %v2097_v6  ;;  %v2656_v58 = vld [vmem:[#allocation2 + $0xf1] sm:$0xff] }
 0x315   :  { %2463 = vrot.lane.b32.xlu1 %v7842_v36, %s6178_s2  ;;  %2469 = vrot.lane.b32.xlu0 %v7840_v37, %s6178_s2 }
 0x317   :  { %v2095_v10 = vpop.permute.xlu1 %2094  ;;  %v2101_v3 = vpop.permute.xlu0 %2100 }
 0x318   :  { %2238 = vst.msk [vmem:[#allocation3 + $0x188] sm:$0xff] %vm2188_vm6, %v2095_v10  ;;  %2241 = vst.msk [vmem:[#allocation3 + $0x1a0] sm:$0xff] %vm2188_vm6, %v2101_v3  ;;  %v8348_v3 = vld [vmem:[#allocation2 + $0xe1] sm:$0xff] }
 0x319   :  { %2467 = vrot.lane.b32.xlu1 %v7851_v53, %s6178_s2  ;;  %2473 = vrot.lane.b32.xlu0 %v7849_v38, %s6178_s2 }
 0x31b   :  { %v2099_v57 = vpop.permute.xlu1 %2098  ;;  %v2105_v23 = vpop.permute.xlu0 %2104 }
 0x31c   :  { %2240 = vst.msk [vmem:[#allocation3 + $0x198] sm:$0xff] %vm2188_vm6, %v2099_v57  ;;  %2243 = vst.msk [vmem:[#allocation3 + $0x1b0] sm:$0xff] %vm2188_vm6, %v2105_v23  ;;  %v2658_v57 = vld [vmem:[#allocation2 + $0x109] sm:$0xff] }
 0x31d   :  { %2471 = vrot.lane.b32.xlu1 %v7862_v40, %s6178_s2  ;;  %2477 = vrot.lane.b32.xlu0 %v7858_v16, %s6178_s2 }
 0x31f   :  { %v2103_v37 = vpop.permute.xlu1 %2102  ;;  %v2109_v36 = vpop.permute.xlu0 %2108 }
 0x320   :  { %2242 = vst.msk [vmem:[#allocation3 + $0x1a8] sm:$0xff] %vm2188_vm6, %v2103_v37  ;;  %2245 = vst.msk [vmem:[#allocation3 + $0x1c0] sm:$0xff] %vm2188_vm6, %v2109_v36  ;;  %v2657_v36 = vld [vmem:[#allocation2 + $0xf9] sm:$0xff] }
 0x321   :  { %2475 = vrot.lane.b32.xlu1 %v7868_v59, %s6178_s2  ;;  %2481 = vrot.lane.b32.xlu0 %v7866_v46, %s6178_s2 }
 0x323   :  { %v2107_v38 = vpop.permute.xlu1 %2106  ;;  %v2113_v53 = vpop.permute.xlu0 %2112 }
 0x324   :  { %2244 = vst.msk [vmem:[#allocation3 + $0x1b8] sm:$0xff] %vm2188_vm6, %v2107_v38  ;;  %2247 = vst.msk [vmem:[#allocation3 + $0x1d0] sm:$0xff] %vm2188_vm6, %v2113_v53  ;;  %v2660_v38 = vld [vmem:[#allocation2 + $0x121] sm:$0xff] }
 0x325   :  { %2479 = vrot.lane.b32.xlu1 %v7877_v48, %s6178_s2  ;;  %2485 = vrot.lane.b32.xlu0 %v7875_v41, %s6178_s2 }
 0x327   :  { %v2111_v16 = vpop.permute.xlu1 %2110  ;;  %v2117_v40 = vpop.permute.xlu0 %2116 }
 0x328   :  { %2246 = vst.msk [vmem:[#allocation3 + $0x1c8] sm:$0xff] %vm2188_vm6, %v2111_v16  ;;  %2249 = vst.msk [vmem:[#allocation3 + $0x1e0] sm:$0xff] %vm2188_vm6, %v2117_v40  ;;  %v2659_v40 = vld [vmem:[#allocation2 + $0x111] sm:$0xff] }
 0x329   :  { %2483 = vrot.lane.b32.xlu1 %v7888_v8, %s6178_s2  ;;  %2489 = vrot.lane.b32.xlu0 %v7884_v52, %s6178_s2  ;;  %v11034_v52 = vld [vmem:[#allocation23_spill] sm:$0xff] }
 0x32b   :  { %v2115_v46 = vpop.permute.xlu1 %2114  ;;  %v2121_v59 = vpop.permute.xlu0 %2120 }
 0x32c   :  { %2248 = vst.msk [vmem:[#allocation3 + $0x1d8] sm:$0xff] %vm2188_vm6, %v2115_v46  ;;  %2251 = vst.msk [vmem:[#allocation3 + $0x1f0] sm:$0xff] %vm2188_vm6, %v2121_v59  ;;  %v2662_v46 = vld [vmem:[#allocation2 + $0x139] sm:$0xff] }
 0x32d   :  { %2487 = vrot.lane.b32.xlu1 %v7894_v20, %s6178_s2  ;;  %2493 = vrot.lane.b32.xlu0 %v7892_v60, %s6178_s2  ;;  %v11035_v60 = vld [vmem:[#allocation25_spill] sm:$0xff]  ;;  %v11036_v20 = vld [vmem:[#allocation26_spill] sm:$0xff] }
 0x32f   :  { %v2119_v41 = vpop.permute.xlu1 %2118  ;;  %v2382_v48 = vpop.permute.xlu0 %2381 }
 0x330   :  { %2250 = vst.msk [vmem:[#allocation3 + $0x1e8] sm:$0xff] %vm2188_vm6, %v2119_v41 }
 0x331   :  { %2574 = vst.msk [vmem:[#allocation3] sm:$0xff] %vm2573_vm7, %v2382_v48  ;;  %2491 = vrot.lane.b32.xlu1 %v7903_v61, %s6178_s2  ;;  %2497 = vrot.lane.b32.xlu0 %v11034_v52, %s6178_s2  ;;  %v2315_v61 = vld [vmem:[#allocation2 + $0x330] sm:$0xff] }
 0x332   :  { %v2661_v48 = vld [vmem:[#allocation2 + $0x129] sm:$0xff]  ;;  %v2664_v52 = vld [vmem:[#allocation2 + $0x151] sm:$0xff] }
 0x333   :  { %v2123_v8 = vpop.permute.xlu1 %2122  ;;  %v2386_v28 = vpop.permute.xlu0 %2385 }
 0x334   :  { %2252 = vst.msk [vmem:[#allocation3 + $0x1f8] sm:$0xff] %vm2188_vm6, %v2123_v8 }
 0x335   :  { %2576 = vst.msk [vmem:[#allocation3 + $0x10] sm:$0xff] %vm2573_vm7, %v2386_v28  ;;  %2495 = vrot.lane.b32.xlu1 %v11035_v60, %s6178_s2  ;;  %2501 = vrot.lane.b32.xlu0 %v11036_v20, %s6178_s2  ;;  %v2663_v60 = vld [vmem:[#allocation2 + $0x141] sm:$0xff]  ;;  %v2666_v20 = vld [vmem:[#allocation2 + $0x169] sm:$0xff] }
 0x337   :  { %v2384_v15 = vpop.permute.xlu1 %2383  ;;  %v2390_v30 = vpop.permute.xlu0 %2389 }
 0x338   :  { %2575 = vst.msk [vmem:[#allocation3 + $0x8] sm:$0xff] %vm2573_vm7, %v2384_v15  ;;  %2578 = vst.msk [vmem:[#allocation3 + $0x20] sm:$0xff] %vm2573_vm7, %v2390_v30 }
 0x339   :  { %2499 = vrot.lane.b32.xlu1 %v11037_v34, %s6178_s2  ;;  %2505 = vrot.lane.b32.xlu0 %v2315_v61, %s6178_s2  ;;  %v2665_v61 = vld [vmem:[#allocation2 + $0x159] sm:$0xff]  ;;  %v2668_v34 = vld [vmem:[#allocation2 + $0x181] sm:$0xff] }
 0x33b   :  { %v2388_v49 = vpop.permute.xlu1 %2387  ;;  %v2394_v24 = vpop.permute.xlu0 %2393 }
 0x33c   :  { %2577 = vst.msk [vmem:[#allocation3 + $0x18] sm:$0xff] %vm2573_vm7, %v2388_v49  ;;  %2580 = vst.msk [vmem:[#allocation3 + $0x30] sm:$0xff] %vm2573_vm7, %v2394_v24 }
 0x33d   :  { %2503 = vrot.lane.b32.xlu1 %v11038_v7, %s6178_s2  ;;  %2766 = vrot.lane.b32.xlu0 %v2638_v44, %s6179_s3  ;;  %v2667_v44 = vld [vmem:[#allocation2 + $0x171] sm:$0xff]  ;;  %v2670_v7 = vld [vmem:[#allocation2 + $0x1c9] sm:$0xff] }
 0x33f   :  { %v2392_v19 = vpop.permute.xlu1 %2391  ;;  %v2398_v54 = vpop.permute.xlu0 %2397 }
 0x340   :  { %2579 = vst.msk [vmem:[#allocation3 + $0x28] sm:$0xff] %vm2573_vm7, %v2392_v19  ;;  %2582 = vst.msk [vmem:[#allocation3 + $0x40] sm:$0xff] %vm2573_vm7, %v2398_v54 }
 0x341   :  { %2507 = vrot.lane.b32.xlu1 %v2316_v31, %s6178_s2  ;;  %2770 = vrot.lane.b32.xlu0 %v8268_v5, %s6179_s3  ;;  %v2669_v31 = vld [vmem:[#allocation2 + $0x189] sm:$0xff] }
 0x343   :  { %v2396_v18 = vpop.permute.xlu1 %2395  ;;  %v2402_v62 = vpop.permute.xlu0 %2401 }
 0x344   :  { %2581 = vst.msk [vmem:[#allocation3 + $0x38] sm:$0xff] %vm2573_vm7, %v2396_v18  ;;  %2584 = vst.msk [vmem:[#allocation3 + $0x50] sm:$0xff] %vm2573_vm7, %v2402_v62  ;;  %v2672_v18 = vld [vmem:[#allocation2 + $0x1e1] sm:$0xff] }
 0x345   :  { %2768 = vrot.lane.b32.xlu1 %v2639_v12, %s6179_s3  ;;  %2774 = vrot.lane.b32.xlu0 %v8275_v27, %s6179_s3 }
 0x347   :  { %v2400_v45 = vpop.permute.xlu1 %2399  ;;  %v2406_v25 = vpop.permute.xlu0 %2405 }
 0x348   :  { %2583 = vst.msk [vmem:[#allocation3 + $0x48] sm:$0xff] %vm2573_vm7, %v2400_v45  ;;  %2586 = vst.msk [vmem:[#allocation3 + $0x60] sm:$0xff] %vm2573_vm7, %v2406_v25  ;;  %v2671_v45 = vld [vmem:[#allocation2 + $0x1d1] sm:$0xff]  ;;  %v2674_v25 = vld [vmem:[#allocation2 + $0x1f9] sm:$0xff] }
 0x349   :  { %2772 = vrot.lane.b32.xlu1 %v8281_v63, %s6179_s3  ;;  %2778 = vrot.lane.b32.xlu0 %v8284_v17, %s6179_s3 }
 0x34b   :  { %v2404_v50 = vpop.permute.xlu1 %2403  ;;  %v2410_v35 = vpop.permute.xlu0 %2409 }
 0x34c   :  { %2585 = vst.msk [vmem:[#allocation3 + $0x58] sm:$0xff] %vm2573_vm7, %v2404_v50  ;;  %2588 = vst.msk [vmem:[#allocation3 + $0x70] sm:$0xff] %vm2573_vm7, %v2410_v35 }
 0x34d   :  { %2776 = vrot.lane.b32.xlu1 %v8291_v56, %s6179_s3  ;;  %2782 = vrot.lane.b32.xlu0 %v8294_v29, %s6179_s3 }
 0x34f   :  { %v2408_v47 = vpop.permute.xlu1 %2407  ;;  %v2414_v55 = vpop.permute.xlu0 %2413 }
 0x350   :  { %2587 = vst.msk [vmem:[#allocation3 + $0x68] sm:$0xff] %vm2573_vm7, %v2408_v47  ;;  %2590 = vst.msk [vmem:[#allocation3 + $0x80] sm:$0xff] %vm2573_vm7, %v2414_v55  ;;  %v2673_v47 = vld [vmem:[#allocation2 + $0x1e9] sm:$0xff]  ;;  %v2676_v55 = vld [vmem:[#allocation2 + $0x211] sm:$0xff] }
 0x351   :  { %2780 = vrot.lane.b32.xlu1 %v8301_v39, %s6179_s3  ;;  %2786 = vrot.lane.b32.xlu0 %v8304_v22, %s6179_s3 }
 0x353   :  { %v2412_v1 = vpop.permute.xlu1 %2411  ;;  %v2418_v43 = vpop.permute.xlu0 %2417 }
 0x354   :  { %2589 = vst.msk [vmem:[#allocation3 + $0x78] sm:$0xff] %vm2573_vm7, %v2412_v1  ;;  %2592 = vst.msk [vmem:[#allocation3 + $0x90] sm:$0xff] %vm2573_vm7, %v2418_v43 }
 0x355   :  { %2784 = vrot.lane.b32.xlu1 %v8311_v42, %s6179_s3  ;;  %2790 = vrot.lane.b32.xlu0 %v8314_v51, %s6179_s3 }
 0x357   :  { %v2416_v21 = vpop.permute.xlu1 %2415  ;;  %v2422_v14 = vpop.permute.xlu0 %2421 }
 0x358   :  { %2591 = vst.msk [vmem:[#allocation3 + $0x88] sm:$0xff] %vm2573_vm7, %v2416_v21  ;;  %2594 = vst.msk [vmem:[#allocation3 + $0xa0] sm:$0xff] %vm2573_vm7, %v2422_v14  ;;  %v2675_v21 = vld [vmem:[#allocation2 + $0x201] sm:$0xff]  ;;  %v2678_v14 = vld [vmem:[#allocation2 + $0x229] sm:$0xff] }
 0x359   :  { %2788 = vrot.lane.b32.xlu1 %v8321_v0, %s6179_s3  ;;  %2794 = vrot.lane.b32.xlu0 %v8324_v26, %s6179_s3 }
 0x35b   :  { %v2420_v13 = vpop.permute.xlu1 %2419  ;;  %v2426_v11 = vpop.permute.xlu0 %2425 }
 0x35c   :  { %2593 = vst.msk [vmem:[#allocation3 + $0x98] sm:$0xff] %vm2573_vm7, %v2420_v13  ;;  %2596 = vst.msk [vmem:[#allocation3 + $0xb0] sm:$0xff] %vm2573_vm7, %v2426_v11 }
 0x35d   :  { %2792 = vrot.lane.b32.xlu1 %v8331_v2, %s6179_s3  ;;  %2798 = vrot.lane.b32.xlu0 %v8334_v33, %s6179_s3 }
 0x35f   :  { %v2424_v4 = vpop.permute.xlu1 %2423  ;;  %v2430_v32 = vpop.permute.xlu0 %2429 }
 0x360   :  { %2595 = vst.msk [vmem:[#allocation3 + $0xa8] sm:$0xff] %vm2573_vm7, %v2424_v4  ;;  %2598 = vst.msk [vmem:[#allocation3 + $0xc0] sm:$0xff] %vm2573_vm7, %v2430_v32  ;;  %v2677_v4 = vld [vmem:[#allocation2 + $0x219] sm:$0xff]  ;;  %v2680_v32 = vld [vmem:[#allocation2 + $0x241] sm:$0xff] }
 0x361   :  { %2796 = vrot.lane.b32.xlu1 %v8341_v9, %s6179_s3  ;;  %2802 = vrot.lane.b32.xlu0 %v2656_v58, %s6179_s3 }
 0x363   :  { %v2428_v6 = vpop.permute.xlu1 %2427  ;;  %v2434_v10 = vpop.permute.xlu0 %2433 }
 0x364   :  { %2597 = vst.msk [vmem:[#allocation3 + $0xb8] sm:$0xff] %vm2573_vm7, %v2428_v6  ;;  %2600 = vst.msk [vmem:[#allocation3 + $0xd0] sm:$0xff] %vm2573_vm7, %v2434_v10  ;;  %v2679_v10 = vld [vmem:[#allocation2 + $0x231] sm:$0xff] }
 0x365   :  { %2800 = vrot.lane.b32.xlu1 %v8348_v3, %s6179_s3  ;;  %2806 = vrot.lane.b32.xlu0 %v2658_v57, %s6179_s3  ;;  %v2682_v57 = vld [vmem:[#allocation2 + $0x259] sm:$0xff] }
 0x367   :  { %v2432_v23 = vpop.permute.xlu1 %2431  ;;  %v2438_v37 = vpop.permute.xlu0 %2437 }
 0x368   :  { %2599 = vst.msk [vmem:[#allocation3 + $0xc8] sm:$0xff] %vm2573_vm7, %v2432_v23  ;;  %2602 = vst.msk [vmem:[#allocation3 + $0xe0] sm:$0xff] %vm2573_vm7, %v2438_v37 }
 0x369   :  { %2804 = vrot.lane.b32.xlu1 %v2657_v36, %s6179_s3  ;;  %2810 = vrot.lane.b32.xlu0 %v2660_v38, %s6179_s3  ;;  %v2681_v36 = vld [vmem:[#allocation2 + $0x249] sm:$0xff]  ;;  %v2684_v38 = vld [vmem:[#allocation2 + $0x271] sm:$0xff] }
 0x36b   :  { %v2436_v53 = vpop.permute.xlu1 %2435  ;;  %v2442_v16 = vpop.permute.xlu0 %2441 }
 0x36c   :  { %2601 = vst.msk [vmem:[#allocation3 + $0xd8] sm:$0xff] %vm2573_vm7, %v2436_v53  ;;  %2604 = vst.msk [vmem:[#allocation3 + $0xf0] sm:$0xff] %vm2573_vm7, %v2442_v16 }
 0x36d   :  { %2808 = vrot.lane.b32.xlu1 %v2659_v40, %s6179_s3  ;;  %2814 = vrot.lane.b32.xlu0 %v2662_v46, %s6179_s3  ;;  %v2683_v40 = vld [vmem:[#allocation2 + $0x261] sm:$0xff]  ;;  %v2686_v46 = vld [vmem:[#allocation2 + $0x289] sm:$0xff] }
 0x36f   :  { %v2440_v59 = vpop.permute.xlu1 %2439  ;;  %v2446_v41 = vpop.permute.xlu0 %2445 }
 0x370   :  { %2603 = vst.msk [vmem:[#allocation3 + $0xe8] sm:$0xff] %vm2573_vm7, %v2440_v59  ;;  %2606 = vst.msk [vmem:[#allocation3 + $0x100] sm:$0xff] %vm2573_vm7, %v2446_v41 }
 0x371   :  { %2812 = vrot.lane.b32.xlu1 %v2661_v48, %s6179_s3  ;;  %2818 = vrot.lane.b32.xlu0 %v2664_v52, %s6179_s3  ;;  %v2685_v48 = vld [vmem:[#allocation2 + $0x279] sm:$0xff]  ;;  %v2688_v52 = vld [vmem:[#allocation2 + $0x2a1] sm:$0xff] }
 0x373   :  { %v2444_v8 = vpop.permute.xlu1 %2443  ;;  %v2450_v28 = vpop.permute.xlu0 %2449 }
 0x374   :  { %2605 = vst.msk [vmem:[#allocation3 + $0xf8] sm:$0xff] %vm2573_vm7, %v2444_v8  ;;  %2608 = vst.msk [vmem:[#allocation3 + $0x110] sm:$0xff] %vm2573_vm7, %v2450_v28 }
 0x375   :  { %2816 = vrot.lane.b32.xlu1 %v2663_v60, %s6179_s3  ;;  %2822 = vrot.lane.b32.xlu0 %v2666_v20, %s6179_s3  ;;  %v2687_v60 = vld [vmem:[#allocation2 + $0x291] sm:$0xff]  ;;  %v2690_v20 = vld [vmem:[#allocation2 + $0x2b9] sm:$0xff] }
 0x377   :  { %v2448_v15 = vpop.permute.xlu1 %2447  ;;  %v2454_v30 = vpop.permute.xlu0 %2453 }
 0x378   :  { %2607 = vst.msk [vmem:[#allocation3 + $0x108] sm:$0xff] %vm2573_vm7, %v2448_v15  ;;  %2610 = vst.msk [vmem:[#allocation3 + $0x120] sm:$0xff] %vm2573_vm7, %v2454_v30 }
 0x379   :  { %2820 = vrot.lane.b32.xlu1 %v2665_v61, %s6179_s3  ;;  %2826 = vrot.lane.b32.xlu0 %v2668_v34, %s6179_s3  ;;  %v2689_v61 = vld [vmem:[#allocation2 + $0x2a9] sm:$0xff]  ;;  %v2692_v34 = vld [vmem:[#allocation2 + $0x2d1] sm:$0xff] }
 0x37b   :  { %v2452_v49 = vpop.permute.xlu1 %2451  ;;  %v2458_v24 = vpop.permute.xlu0 %2457 }
 0x37c   :  { %2609 = vst.msk [vmem:[#allocation3 + $0x118] sm:$0xff] %vm2573_vm7, %v2452_v49  ;;  %2612 = vst.msk [vmem:[#allocation3 + $0x130] sm:$0xff] %vm2573_vm7, %v2458_v24 }
 0x37d   :  { %2824 = vrot.lane.b32.xlu1 %v2667_v44, %s6179_s3  ;;  %2830 = vrot.lane.b32.xlu0 %v2670_v7, %s6179_s3  ;;  %v2691_v44 = vld [vmem:[#allocation2 + $0x2c1] sm:$0xff]  ;;  %v2694_v7 = vld [vmem:[#allocation2 + $0x2e9] sm:$0xff] }
 0x37f   :  { %v2456_v19 = vpop.permute.xlu1 %2455  ;;  %v2462_v54 = vpop.permute.xlu0 %2461 }
 0x380   :  { %2611 = vst.msk [vmem:[#allocation3 + $0x128] sm:$0xff] %vm2573_vm7, %v2456_v19  ;;  %2614 = vst.msk [vmem:[#allocation3 + $0x140] sm:$0xff] %vm2573_vm7, %v2462_v54 }
 0x381   :  { %2828 = vrot.lane.b32.xlu1 %v2669_v31, %s6179_s3  ;;  %2834 = vrot.lane.b32.xlu0 %v2672_v18, %s6179_s3  ;;  %v2693_v31 = vld [vmem:[#allocation2 + $0x2d9] sm:$0xff]  ;;  %v2696_v18 = vld [vmem:[#allocation2 + $0x301] sm:$0xff] }
 0x383   :  { %v2460_v62 = vpop.permute.xlu1 %2459  ;;  %v2466_v12 = vpop.permute.xlu0 %2465 }
 0x384   :  { %2613 = vst.msk [vmem:[#allocation3 + $0x138] sm:$0xff] %vm2573_vm7, %v2460_v62  ;;  %2616 = vst.msk [vmem:[#allocation3 + $0x150] sm:$0xff] %vm2573_vm7, %v2466_v12 }
 0x385   :  { %2832 = vrot.lane.b32.xlu1 %v2671_v45, %s6179_s3  ;;  %2838 = vrot.lane.b32.xlu0 %v2674_v25, %s6179_s3  ;;  %v2695_v45 = vld [vmem:[#allocation2 + $0x2f1] sm:$0xff]  ;;  %v2698_v25 = vld [vmem:[#allocation2 + $0x319] sm:$0xff] }
 0x387   :  { %v2464_v50 = vpop.permute.xlu1 %2463  ;;  %v2470_v35 = vpop.permute.xlu0 %2469 }
 0x388   :  { %2615 = vst.msk [vmem:[#allocation3 + $0x148] sm:$0xff] %vm2573_vm7, %v2464_v50  ;;  %2618 = vst.msk [vmem:[#allocation3 + $0x160] sm:$0xff] %vm2573_vm7, %v2470_v35 }
 0x389   :  { %2836 = vrot.lane.b32.xlu1 %v2673_v47, %s6179_s3  ;;  %2842 = vrot.lane.b32.xlu0 %v2676_v55, %s6179_s3  ;;  %v2697_v47 = vld [vmem:[#allocation2 + $0x309] sm:$0xff]  ;;  %v2700_v55 = vld [vmem:[#allocation2 + $0x331] sm:$0xff] }
 0x38b   :  { %v2468_v1 = vpop.permute.xlu1 %2467  ;;  %v2474_v43 = vpop.permute.xlu0 %2473 }
 0x38c   :  { %2617 = vst.msk [vmem:[#allocation3 + $0x158] sm:$0xff] %vm2573_vm7, %v2468_v1  ;;  %2620 = vst.msk [vmem:[#allocation3 + $0x170] sm:$0xff] %vm2573_vm7, %v2474_v43 }
 0x38d   :  { %2840 = vrot.lane.b32.xlu1 %v2675_v21, %s6179_s3  ;;  %2846 = vrot.lane.b32.xlu0 %v2678_v14, %s6179_s3  ;;  %v2699_v21 = vld [vmem:[#allocation2 + $0x321] sm:$0xff] }
 0x38e   :  { %v3023_v14 = vld [vmem:[#allocation2 + $0x1a] sm:$0xff] }
 0x38f   :  { %v2472_v13 = vpop.permute.xlu1 %2471  ;;  %v2478_v11 = vpop.permute.xlu0 %2477 }
 0x390   :  { %2619 = vst.msk [vmem:[#allocation3 + $0x168] sm:$0xff] %vm2573_vm7, %v2472_v13  ;;  %2622 = vst.msk [vmem:[#allocation3 + $0x180] sm:$0xff] %vm2573_vm7, %v2478_v11 }
 0x391   :  { %2844 = vrot.lane.b32.xlu1 %v2677_v4, %s6179_s3  ;;  %2850 = vrot.lane.b32.xlu0 %v2680_v32, %s6179_s3  ;;  %v2701_v4 = vld [vmem:[#allocation2 + $0x339] sm:$0xff] }
 0x392   :  { %v8444_v32 = vld [vmem:[#allocation2 + $0x32] sm:$0xff] }
 0x393   :  { %v2476_v58 = vpop.permute.xlu1 %2475  ;;  %v2482_v6 = vpop.permute.xlu0 %2481 }
 0x394   :  { %2621 = vst.msk [vmem:[#allocation3 + $0x178] sm:$0xff] %vm2573_vm7, %v2476_v58  ;;  %2624 = vst.msk [vmem:[#allocation3 + $0x190] sm:$0xff] %vm2573_vm7, %v2482_v6 }
 0x395   :  { %2848 = vrot.lane.b32.xlu1 %v2679_v10, %s6179_s3  ;;  %2854 = vrot.lane.b32.xlu0 %v2682_v57, %s6179_s3  ;;  %v3024_v10 = vld [vmem:[#allocation2 + $0x22] sm:$0xff]  ;;  %v8451_v57 = vld [vmem:[#allocation2 + $0x4a] sm:$0xff] }
 0x397   :  { %v2480_v23 = vpop.permute.xlu1 %2479  ;;  %v2486_v37 = vpop.permute.xlu0 %2485 }
 0x398   :  { %2623 = vst.msk [vmem:[#allocation3 + $0x188] sm:$0xff] %vm2573_vm7, %v2480_v23  ;;  %2626 = vst.msk [vmem:[#allocation3 + $0x1a0] sm:$0xff] %vm2573_vm7, %v2486_v37 }
 0x399   :  { %2852 = vrot.lane.b32.xlu1 %v2681_v36, %s6179_s3  ;;  %2858 = vrot.lane.b32.xlu0 %v2684_v38, %s6179_s3  ;;  %v8457_v36 = vld [vmem:[#allocation2 + $0x3a] sm:$0xff]  ;;  %v8460_v38 = vld [vmem:[#allocation2 + $0x62] sm:$0xff] }
 0x39b   :  { %v2484_v53 = vpop.permute.xlu1 %2483  ;;  %v2490_v16 = vpop.permute.xlu0 %2489 }
 0x39c   :  { %2625 = vst.msk [vmem:[#allocation3 + $0x198] sm:$0xff] %vm2573_vm7, %v2484_v53  ;;  %2628 = vst.msk [vmem:[#allocation3 + $0x1b0] sm:$0xff] %vm2573_vm7, %v2490_v16 }
 0x39d   :  { %2856 = vrot.lane.b32.xlu1 %v2683_v40, %s6179_s3  ;;  %2862 = vrot.lane.b32.xlu0 %v2686_v46, %s6179_s3  ;;  %v8467_v40 = vld [vmem:[#allocation2 + $0x52] sm:$0xff]  ;;  %v8470_v46 = vld [vmem:[#allocation2 + $0x7a] sm:$0xff] }
 0x39f   :  { %v2488_v59 = vpop.permute.xlu1 %2487  ;;  %v2494_v41 = vpop.permute.xlu0 %2493 }
 0x3a0   :  { %2627 = vst.msk [vmem:[#allocation3 + $0x1a8] sm:$0xff] %vm2573_vm7, %v2488_v59  ;;  %2630 = vst.msk [vmem:[#allocation3 + $0x1c0] sm:$0xff] %vm2573_vm7, %v2494_v41 }
 0x3a1   :  { %2860 = vrot.lane.b32.xlu1 %v2685_v48, %s6179_s3  ;;  %2866 = vrot.lane.b32.xlu0 %v2688_v52, %s6179_s3  ;;  %v8477_v48 = vld [vmem:[#allocation2 + $0x6a] sm:$0xff]  ;;  %v8480_v52 = vld [vmem:[#allocation2 + $0x92] sm:$0xff] }
 0x3a3   :  { %v2492_v8 = vpop.permute.xlu1 %2491  ;;  %v2498_v28 = vpop.permute.xlu0 %2497 }
 0x3a4   :  { %2629 = vst.msk [vmem:[#allocation3 + $0x1b8] sm:$0xff] %vm2573_vm7, %v2492_v8  ;;  %2632 = vst.msk [vmem:[#allocation3 + $0x1d0] sm:$0xff] %vm2573_vm7, %v2498_v28 }
 0x3a5   :  { %2864 = vrot.lane.b32.xlu1 %v2687_v60, %s6179_s3  ;;  %2870 = vrot.lane.b32.xlu0 %v2690_v20, %s6179_s3  ;;  %v8487_v60 = vld [vmem:[#allocation2 + $0x82] sm:$0xff]  ;;  %v8490_v20 = vld [vmem:[#allocation2 + $0xaa] sm:$0xff] }
 0x3a7   :  { %v2496_v15 = vpop.permute.xlu1 %2495  ;;  %v2502_v30 = vpop.permute.xlu0 %2501 }
 0x3a8   :  { %2631 = vst.msk [vmem:[#allocation3 + $0x1c8] sm:$0xff] %vm2573_vm7, %v2496_v15  ;;  %2634 = vst.msk [vmem:[#allocation3 + $0x1e0] sm:$0xff] %vm2573_vm7, %v2502_v30 }
 0x3a9   :  { %2868 = vrot.lane.b32.xlu1 %v2689_v61, %s6179_s3  ;;  %2874 = vrot.lane.b32.xlu0 %v2692_v34, %s6179_s3  ;;  %v8497_v61 = vld [vmem:[#allocation2 + $0x9a] sm:$0xff]  ;;  %v8500_v34 = vld [vmem:[#allocation2 + $0xc2] sm:$0xff] }
 0x3ab   :  { %v2500_v49 = vpop.permute.xlu1 %2499  ;;  %v2506_v24 = vpop.permute.xlu0 %2505 }
 0x3ac   :  { %2633 = vst.msk [vmem:[#allocation3 + $0x1d8] sm:$0xff] %vm2573_vm7, %v2500_v49  ;;  %2636 = vst.msk [vmem:[#allocation3 + $0x1f0] sm:$0xff] %vm2573_vm7, %v2506_v24 }
 0x3ad   :  { %2872 = vrot.lane.b32.xlu1 %v2691_v44, %s6179_s3  ;;  %2878 = vrot.lane.b32.xlu0 %v2694_v7, %s6179_s3  ;;  %v8507_v44 = vld [vmem:[#allocation2 + $0xb2] sm:$0xff]  ;;  %v8510_v7 = vld [vmem:[#allocation2 + $0xda] sm:$0xff] }
 0x3af   :  { %v2504_v19 = vpop.permute.xlu1 %2503  ;;  %v2767_v54 = vpop.permute.xlu0 %2766 }
 0x3b0   :  { %2635 = vst.msk [vmem:[#allocation3 + $0x1e8] sm:$0xff] %vm2573_vm7, %v2504_v19 }
 0x3b1   :  { %2959 = vst.msk [vmem:[#allocation3] sm:$0xff] %vm2958_vm8, %v2767_v54  ;;  %2876 = vrot.lane.b32.xlu1 %v2693_v31, %s6179_s3  ;;  %2882 = vrot.lane.b32.xlu0 %v2696_v18, %s6179_s3  ;;  %v8517_v31 = vld [vmem:[#allocation2 + $0xca] sm:$0xff]  ;;  %v8520_v18 = vld [vmem:[#allocation2 + $0xf2] sm:$0xff] }
 0x3b3   :  { %v2508_v62 = vpop.permute.xlu1 %2507  ;;  %v2771_v12 = vpop.permute.xlu0 %2770 }
 0x3b4   :  { %2637 = vst.msk [vmem:[#allocation3 + $0x1f8] sm:$0xff] %vm2573_vm7, %v2508_v62 }
 0x3b5   :  { %2961 = vst.msk [vmem:[#allocation3 + $0x10] sm:$0xff] %vm2958_vm8, %v2771_v12  ;;  %2880 = vrot.lane.b32.xlu1 %v2695_v45, %s6179_s3  ;;  %2886 = vrot.lane.b32.xlu0 %v2698_v25, %s6179_s3  ;;  %v8527_v45 = vld [vmem:[#allocation2 + $0xe2] sm:$0xff]  ;;  %v8530_v25 = vld [vmem:[#allocation2 + $0x10a] sm:$0xff] }
 0x3b7   :  { %v2769_v50 = vpop.permute.xlu1 %2768  ;;  %v2775_v35 = vpop.permute.xlu0 %2774 }
 0x3b8   :  { %2960 = vst.msk [vmem:[#allocation3 + $0x8] sm:$0xff] %vm2958_vm8, %v2769_v50  ;;  %2963 = vst.msk [vmem:[#allocation3 + $0x20] sm:$0xff] %vm2958_vm8, %v2775_v35 }
 0x3b9   :  { %2884 = vrot.lane.b32.xlu1 %v2697_v47, %s6179_s3  ;;  %2890 = vrot.lane.b32.xlu0 %v2700_v55, %s6179_s3  ;;  %v8537_v47 = vld [vmem:[#allocation2 + $0xfa] sm:$0xff]  ;;  %v8540_v55 = vld [vmem:[#allocation2 + $0x122] sm:$0xff] }
 0x3bb   :  { %v2773_v1 = vpop.permute.xlu1 %2772  ;;  %v2779_v43 = vpop.permute.xlu0 %2778 }
 0x3bc   :  { %2962 = vst.msk [vmem:[#allocation3 + $0x18] sm:$0xff] %vm2958_vm8, %v2773_v1  ;;  %2965 = vst.msk [vmem:[#allocation3 + $0x30] sm:$0xff] %vm2958_vm8, %v2779_v43 }
 0x3bd   :  { %2888 = vrot.lane.b32.xlu1 %v2699_v21, %s6179_s3  ;;  %3151 = vrot.lane.b32.xlu0 %v3023_v14, %s6180_s11  ;;  %v8547_v21 = vld [vmem:[#allocation2 + $0x112] sm:$0xff]  ;;  %v8550_v14 = vld [vmem:[#allocation2 + $0x13a] sm:$0xff] }
 0x3bf   :  { %v2777_v13 = vpop.permute.xlu1 %2776  ;;  %v2783_v11 = vpop.permute.xlu0 %2782 }
 0x3c0   :  { %2964 = vst.msk [vmem:[#allocation3 + $0x28] sm:$0xff] %vm2958_vm8, %v2777_v13  ;;  %2967 = vst.msk [vmem:[#allocation3 + $0x40] sm:$0xff] %vm2958_vm8, %v2783_v11 }
 0x3c1   :  { %2892 = vrot.lane.b32.xlu1 %v2701_v4, %s6179_s3  ;;  %3155 = vrot.lane.b32.xlu0 %v8444_v32, %s6180_s11  ;;  %v8557_v4 = vld [vmem:[#allocation2 + $0x12a] sm:$0xff] }
 0x3c3   :  { %v2781_v58 = vpop.permute.xlu1 %2780  ;;  %v2787_v6 = vpop.permute.xlu0 %2786 }
 0x3c4   :  { %2966 = vst.msk [vmem:[#allocation3 + $0x38] sm:$0xff] %vm2958_vm8, %v2781_v58  ;;  %2969 = vst.msk [vmem:[#allocation3 + $0x50] sm:$0xff] %vm2958_vm8, %v2787_v6  ;;  %v8560_v58 = vld [vmem:[#allocation2 + $0x152] sm:$0xff] }
 0x3c5   :  { %3153 = vrot.lane.b32.xlu1 %v3024_v10, %s6180_s11  ;;  %3159 = vrot.lane.b32.xlu0 %v8451_v57, %s6180_s11 }
 0x3c7   :  { %v2785_v23 = vpop.permute.xlu1 %2784  ;;  %v2791_v37 = vpop.permute.xlu0 %2790 }
 0x3c8   :  { %2968 = vst.msk [vmem:[#allocation3 + $0x48] sm:$0xff] %vm2958_vm8, %v2785_v23  ;;  %2971 = vst.msk [vmem:[#allocation3 + $0x60] sm:$0xff] %vm2958_vm8, %v2791_v37  ;;  %v8567_v23 = vld [vmem:[#allocation2 + $0x142] sm:$0xff]  ;;  %v8570_v37 = vld [vmem:[#allocation2 + $0x16a] sm:$0xff] }
 0x3c9   :  { %3157 = vrot.lane.b32.xlu1 %v8457_v36, %s6180_s11  ;;  %3163 = vrot.lane.b32.xlu0 %v8460_v38, %s6180_s11 }
 0x3cb   :  { %v2789_v53 = vpop.permute.xlu1 %2788  ;;  %v2795_v16 = vpop.permute.xlu0 %2794 }
 0x3cc   :  { %2970 = vst.msk [vmem:[#allocation3 + $0x58] sm:$0xff] %vm2958_vm8, %v2789_v53  ;;  %2973 = vst.msk [vmem:[#allocation3 + $0x70] sm:$0xff] %vm2958_vm8, %v2795_v16 }
 0x3cd   :  { %3161 = vrot.lane.b32.xlu1 %v8467_v40, %s6180_s11  ;;  %3167 = vrot.lane.b32.xlu0 %v8470_v46, %s6180_s11 }
 0x3cf   :  { %v2793_v59 = vpop.permute.xlu1 %2792  ;;  %v2799_v41 = vpop.permute.xlu0 %2798 }
 0x3d0   :  { %2972 = vst.msk [vmem:[#allocation3 + $0x68] sm:$0xff] %vm2958_vm8, %v2793_v59  ;;  %2975 = vst.msk [vmem:[#allocation3 + $0x80] sm:$0xff] %vm2958_vm8, %v2799_v41  ;;  %v8577_v59 = vld [vmem:[#allocation2 + $0x15a] sm:$0xff]  ;;  %v8580_v41 = vld [vmem:[#allocation2 + $0x182] sm:$0xff] }
 0x3d1   :  { %3165 = vrot.lane.b32.xlu1 %v8477_v48, %s6180_s11  ;;  %3171 = vrot.lane.b32.xlu0 %v8480_v52, %s6180_s11 }
 0x3d3   :  { %v2797_v8 = vpop.permute.xlu1 %2796  ;;  %v2803_v28 = vpop.permute.xlu0 %2802 }
 0x3d4   :  { %2974 = vst.msk [vmem:[#allocation3 + $0x78] sm:$0xff] %vm2958_vm8, %v2797_v8  ;;  %2977 = vst.msk [vmem:[#allocation3 + $0x90] sm:$0xff] %vm2958_vm8, %v2803_v28 }
 0x3d5   :  { %3169 = vrot.lane.b32.xlu1 %v8487_v60, %s6180_s11  ;;  %3175 = vrot.lane.b32.xlu0 %v8490_v20, %s6180_s11 }
 0x3d7   :  { %v2801_v15 = vpop.permute.xlu1 %2800  ;;  %v2807_v30 = vpop.permute.xlu0 %2806 }
 0x3d8   :  { %2976 = vst.msk [vmem:[#allocation3 + $0x88] sm:$0xff] %vm2958_vm8, %v2801_v15  ;;  %2979 = vst.msk [vmem:[#allocation3 + $0xa0] sm:$0xff] %vm2958_vm8, %v2807_v30  ;;  %v8587_v15 = vld [vmem:[#allocation2 + $0x172] sm:$0xff]  ;;  %v3055_v30 = vld [vmem:[#allocation2 + $0x1ca] sm:$0xff] }
 0x3d9   :  { %3173 = vrot.lane.b32.xlu1 %v8497_v61, %s6180_s11  ;;  %3179 = vrot.lane.b32.xlu0 %v8500_v34, %s6180_s11 }
 0x3db   :  { %v2805_v49 = vpop.permute.xlu1 %2804  ;;  %v2811_v24 = vpop.permute.xlu0 %2810 }
 0x3dc   :  { %2978 = vst.msk [vmem:[#allocation3 + $0x98] sm:$0xff] %vm2958_vm8, %v2805_v49  ;;  %2981 = vst.msk [vmem:[#allocation3 + $0xb0] sm:$0xff] %vm2958_vm8, %v2811_v24 }
 0x3dd   :  { %3177 = vrot.lane.b32.xlu1 %v8507_v44, %s6180_s11  ;;  %3183 = vrot.lane.b32.xlu0 %v8510_v7, %s6180_s11 }
 0x3df   :  { %v2809_v19 = vpop.permute.xlu1 %2808  ;;  %v2815_v54 = vpop.permute.xlu0 %2814 }
 0x3e0   :  { %2980 = vst.msk [vmem:[#allocation3 + $0xa8] sm:$0xff] %vm2958_vm8, %v2809_v19  ;;  %2983 = vst.msk [vmem:[#allocation3 + $0xc0] sm:$0xff] %vm2958_vm8, %v2815_v54  ;;  %v8594_v19 = vld [vmem:[#allocation2 + $0x18a] sm:$0xff]  ;;  %v3410_v54 = vld [vmem:[#allocation2 + $0x38] sm:$0xff] }
 0x3e1   :  { %3181 = vrot.lane.b32.xlu1 %v8517_v31, %s6180_s11  ;;  %3187 = vrot.lane.b32.xlu0 %v8520_v18, %s6180_s11 }
 0x3e3   :  { %v2813_v62 = vpop.permute.xlu1 %2812  ;;  %v2819_v12 = vpop.permute.xlu0 %2818 }
 0x3e4   :  { %2982 = vst.msk [vmem:[#allocation3 + $0xb8] sm:$0xff] %vm2958_vm8, %v2813_v62  ;;  %2985 = vst.msk [vmem:[#allocation3 + $0xd0] sm:$0xff] %vm2958_vm8, %v2819_v12 }
 0x3e5   :  { %3185 = vrot.lane.b32.xlu1 %v8527_v45, %s6180_s11  ;;  %3191 = vrot.lane.b32.xlu0 %v8530_v25, %s6180_s11 }
 0x3e7   :  { %v2817_v50 = vpop.permute.xlu1 %2816  ;;  %v2823_v35 = vpop.permute.xlu0 %2822 }
 0x3e8   :  { %2984 = vst.msk [vmem:[#allocation3 + $0xc8] sm:$0xff] %vm2958_vm8, %v2817_v50  ;;  %2987 = vst.msk [vmem:[#allocation3 + $0xe0] sm:$0xff] %vm2958_vm8, %v2823_v35  ;;  %v3409_v50 = vld [vmem:[#allocation2 + $0x30] sm:$0xff] }
 0x3e9   :  { %3189 = vrot.lane.b32.xlu1 %v8537_v47, %s6180_s11  ;;  %3195 = vrot.lane.b32.xlu0 %v8540_v55, %s6180_s11  ;;  %v3412_v35 = vld [vmem:[#allocation2 + $0x50] sm:$0xff] }
 0x3eb   :  { %v2821_v1 = vpop.permute.xlu1 %2820  ;;  %v2827_v43 = vpop.permute.xlu0 %2826 }
 0x3ec   :  { %2986 = vst.msk [vmem:[#allocation3 + $0xd8] sm:$0xff] %vm2958_vm8, %v2821_v1  ;;  %2989 = vst.msk [vmem:[#allocation3 + $0xf0] sm:$0xff] %vm2958_vm8, %v2827_v43 }
 0x3ed   :  { %3193 = vrot.lane.b32.xlu1 %v8547_v21, %s6180_s11  ;;  %3199 = vrot.lane.b32.xlu0 %v8550_v14, %s6180_s11 }
 0x3ef   :  { %v2825_v13 = vpop.permute.xlu1 %2824  ;;  %v2831_v11 = vpop.permute.xlu0 %2830 }
 0x3f0   :  { %2988 = vst.msk [vmem:[#allocation3 + $0xe8] sm:$0xff] %vm2958_vm8, %v2825_v13  ;;  %2991 = vst.msk [vmem:[#allocation3 + $0x100] sm:$0xff] %vm2958_vm8, %v2831_v11  ;;  %v3411_v13 = vld [vmem:[#allocation2 + $0x48] sm:$0xff] }
 0x3f1   :  { %3197 = vrot.lane.b32.xlu1 %v8557_v4, %s6180_s11  ;;  %3203 = vrot.lane.b32.xlu0 %v8560_v58, %s6180_s11 }
 0x3f3   :  { %v2829_v6 = vpop.permute.xlu1 %2828  ;;  %v2835_v10 = vpop.permute.xlu0 %2834 }
 0x3f4   :  { %2990 = vst.msk [vmem:[#allocation3 + $0xf8] sm:$0xff] %vm2958_vm8, %v2829_v6  ;;  %2993 = vst.msk [vmem:[#allocation3 + $0x110] sm:$0xff] %vm2958_vm8, %v2835_v10  ;;  %v6168_v6 = vld [vmem:[%s10877_s4 + $0x10] ss:$0 sps:$4 sm:$0x33]  }
 0x3f5   :  { %3201 = vrot.lane.b32.xlu1 %v8567_v23, %s6180_s11  ;;  %3207 = vrot.lane.b32.xlu0 %v8570_v37, %s6180_s11 }
 0x3f6   :  { %6123 = vmatprep.subr.msk.bf16.mxu1 %vm371_vm0, %v6168_v6 }
 0x3f7   :  { %v2833_v53 = vpop.permute.xlu1 %2832  ;;  %v2839_v16 = vpop.permute.xlu0 %2838 }
 0x3f8   :  { %2992 = vst.msk [vmem:[#allocation3 + $0x108] sm:$0xff] %vm2958_vm8, %v2833_v53  ;;  %2995 = vst.msk [vmem:[#allocation3 + $0x120] sm:$0xff] %vm2958_vm8, %v2839_v16  ;;  %v4777_v53 = vsel %vm371_vm0, %v6168_v6, 0 }
 0x3f9   :  { %3205 = vrot.lane.b32.xlu1 %v8577_v59, %s6180_s11  ;;  %3211 = vrot.lane.b32.xlu0 %v8580_v41, %s6180_s11 }
 0x3fa   :  { %6053 = vmatpush3.bf16.msra.mxu1 %v4777_v53 }
 0x3fb   :  { %v2837_v8 = vpop.permute.xlu1 %2836  ;;  %v2843_v28 = vpop.permute.xlu0 %2842 }
 0x3fc   :  { %2994 = vst.msk [vmem:[#allocation3 + $0x118] sm:$0xff] %vm2958_vm8, %v2837_v8  ;;  %2997 = vst.msk [vmem:[#allocation3 + $0x130] sm:$0xff] %vm2958_vm8, %v2843_v28 }
 0x3fd   :  { %3209 = vrot.lane.b32.xlu1 %v8587_v15, %s6180_s11  ;;  %3215 = vrot.lane.b32.xlu0 %v3055_v30, %s6180_s11  ;;  %v3414_v30 = vld [vmem:[#allocation2 + $0x68] sm:$0xff] }
 0x3ff   :  { %v2841_v49 = vpop.permute.xlu1 %2840  ;;  %v2847_v24 = vpop.permute.xlu0 %2846 }
 0x400   :  { %2996 = vst.msk [vmem:[#allocation3 + $0x128] sm:$0xff] %vm2958_vm8, %v2841_v49  ;;  %2999 = vst.msk [vmem:[#allocation3 + $0x140] sm:$0xff] %vm2958_vm8, %v2847_v24 }
 0x401   :  { %3213 = vrot.lane.b32.xlu1 %v8594_v19, %s6180_s11  ;;  %3539 = vrot.lane.b32.xlu0 %v3410_v54, %s6181_s12 }
 0x403   :  { %v2845_v62 = vpop.permute.xlu1 %2844  ;;  %v2851_v12 = vpop.permute.xlu0 %2850 }
 0x404   :  { %2998 = vst.msk [vmem:[#allocation3 + $0x138] sm:$0xff] %vm2958_vm8, %v2845_v62  ;;  %3001 = vst.msk [vmem:[#allocation3 + $0x150] sm:$0xff] %vm2958_vm8, %v2851_v12  ;;  %v3415_v12 = vld [vmem:[#allocation2 + $0x78] sm:$0xff] }
 0x405   :  { %3537 = vrot.lane.b32.xlu1 %v3409_v50, %s6181_s12  ;;  %3543 = vrot.lane.b32.xlu0 %v3412_v35, %s6181_s12 }
 0x407   :  { %v2849_v1 = vpop.permute.xlu1 %2848  ;;  %v2855_v43 = vpop.permute.xlu0 %2854 }
 0x408   :  { %3000 = vst.msk [vmem:[#allocation3 + $0x148] sm:$0xff] %vm2958_vm8, %v2849_v1  ;;  %3003 = vst.msk [vmem:[#allocation3 + $0x160] sm:$0xff] %vm2958_vm8, %v2855_v43 }
 0x409   :  { %3541 = vrot.lane.b32.xlu1 %v3411_v13, %s6181_s12  ;;  %3924 = vrot.lane.b32.xlu0 %v8281_v63, %s6182_s13  ;;  %v6169_v63 = vld [vmem:[%s10877_s4 + $0x8] sm:$0xff]  }
 0x40a   :  { %6054 = vmatprep.subr.bf16.mxu1 %v6169_v63 }
 0x40b   :  { %v2853_v11 = vpop.permute.xlu1 %2852  ;;  %v2859_v10 = vpop.permute.xlu0 %2858  ;;  %6055 = vmatpush3.bf16.msra.mxu1 %v6169_v63 }
 0x40c   :  { %3002 = vst.msk [vmem:[#allocation3 + $0x158] sm:$0xff] %vm2958_vm8, %v2853_v11  ;;  %3005 = vst.msk [vmem:[#allocation3 + $0x170] sm:$0xff] %vm2958_vm8, %v2859_v10  ;;  %v3419_v10 = vld [vmem:[#allocation2 + $0xa8] sm:$0xff] }
 0x40d   :  { %3922 = vrot.lane.b32.xlu1 %v8268_v5, %s6182_s13  ;;  %3928 = vrot.lane.b32.xlu0 %v8291_v56, %s6182_s13  ;;  %v6170_v5 = vld [vmem:[%s10877_s4] sm:$0xff]  }
 0x40e   :  { %6056 = vmatprep.subr.bf16.mxu1 %v6170_v5 }
 0x40f   :  { %v2857_v16 = vpop.permute.xlu1 %2856  ;;  %v2863_v8 = vpop.permute.xlu0 %2862  ;;  %6057 = vmatpush3.bf16.msra.mxu1 %v6170_v5 }
 0x410   :  { %3004 = vst.msk [vmem:[#allocation3 + $0x168] sm:$0xff] %vm2958_vm8, %v2857_v16  ;;  %3007 = vst.msk [vmem:[#allocation3 + $0x180] sm:$0xff] %vm2958_vm8, %v2863_v8 }
 0x411   :  { %3926 = vrot.lane.b32.xlu1 %v8275_v27, %s6182_s13  ;;  %4309 = vrot.lane.b32.xlu0 %v8457_v36, %s6183_s18 }
 0x413   :  { %v2861_v56 = vpop.permute.xlu1 %2860  ;;  %v2867_v28 = vpop.permute.xlu0 %2866 }
 0x414   :  { %3006 = vst.msk [vmem:[#allocation3 + $0x178] sm:$0xff] %vm2958_vm8, %v2861_v56  ;;  %3009 = vst.msk [vmem:[#allocation3 + $0x190] sm:$0xff] %vm2958_vm8, %v2867_v28 }
 0x415   :  { %4307 = vrot.lane.b32.xlu1 %v8444_v32, %s6183_s18  ;;  %4313 = vrot.lane.b32.xlu0 %v8467_v40, %s6183_s18  ;;  %v3413_v32 = vld [vmem:[#allocation2 + $0x60] sm:$0xff] }
 0x416   :  { %v3416_v40 = vld [vmem:[#allocation2 + $0x80] sm:$0xff] }
 0x417   :  { %v2865_v27 = vpop.permute.xlu1 %2864  ;;  %v2871_v36 = vpop.permute.xlu0 %2870 }
 0x418   :  { %3008 = vst.msk [vmem:[#allocation3 + $0x188] sm:$0xff] %vm2958_vm8, %v2865_v27  ;;  %3011 = vst.msk [vmem:[#allocation3 + $0x1a0] sm:$0xff] %vm2958_vm8, %v2871_v36  ;;  %v3423_v27 = vld [vmem:[#allocation2 + $0xd8] sm:$0xff] }
 0x419   :  { %4311 = vrot.lane.b32.xlu1 %v8451_v57, %s6183_s18  ;;  %3547 = vrot.lane.b32.xlu0 %v3414_v30, %s6181_s12 }
 0x41b   :  { %v2869_v49 = vpop.permute.xlu1 %2868  ;;  %v2875_v24 = vpop.permute.xlu0 %2874 }
 0x41c   :  { %3010 = vst.msk [vmem:[#allocation3 + $0x198] sm:$0xff] %vm2958_vm8, %v2869_v49  ;;  %3013 = vst.msk [vmem:[#allocation3 + $0x1b0] sm:$0xff] %vm2958_vm8, %v2875_v24 }
 0x41d   :  { %3545 = vrot.lane.b32.xlu1 %v3413_v32, %s6181_s12  ;;  %3551 = vrot.lane.b32.xlu0 %v3416_v40, %s6181_s12 }
 0x41f   :  { %v2873_v54 = vpop.permute.xlu1 %2872  ;;  %v2879_v62 = vpop.permute.xlu0 %2878 }
 0x420   :  { %3012 = vst.msk [vmem:[#allocation3 + $0x1a8] sm:$0xff] %vm2958_vm8, %v2873_v54  ;;  %3015 = vst.msk [vmem:[#allocation3 + $0x1c0] sm:$0xff] %vm2958_vm8, %v2879_v62  ;;  %v3427_v62 = vld [vmem:[#allocation2 + $0x108] sm:$0xff] }
 0x421   :  { %3549 = vrot.lane.b32.xlu1 %v3415_v12, %s6181_s12  ;;  %3932 = vrot.lane.b32.xlu0 %v8301_v39, %s6182_s13 }
 0x423   :  { %v2877_v57 = vpop.permute.xlu1 %2876  ;;  %v2883_v50 = vpop.permute.xlu0 %2882 }
 0x424   :  { %3014 = vst.msk [vmem:[#allocation3 + $0x1b8] sm:$0xff] %vm2958_vm8, %v2877_v57  ;;  %3017 = vst.msk [vmem:[#allocation3 + $0x1d0] sm:$0xff] %vm2958_vm8, %v2883_v50  ;;  %v3810_v50 = vld [vmem:[#allocation2 + $0xf1] sm:$0xff] }
 0x425   :  { %3930 = vrot.lane.b32.xlu1 %v8284_v17, %s6182_s13  ;;  %3936 = vrot.lane.b32.xlu0 %v8311_v42, %s6182_s13 }
 0x427   :  { %v2881_v35 = vpop.permute.xlu1 %2880  ;;  %v2887_v1 = vpop.permute.xlu0 %2886 }
 0x428   :  { %3016 = vst.msk [vmem:[#allocation3 + $0x1c8] sm:$0xff] %vm2958_vm8, %v2881_v35  ;;  %3019 = vst.msk [vmem:[#allocation3 + $0x1e0] sm:$0xff] %vm2958_vm8, %v2887_v1  ;;  %v3813_v35 = vld [vmem:[#allocation2 + $0x111] sm:$0xff] }
 0x429   :  { %3934 = vrot.lane.b32.xlu1 %v8294_v29, %s6182_s13  ;;  %4317 = vrot.lane.b32.xlu0 %v8477_v48, %s6183_s18  ;;  %v3418_v29 = vld [vmem:[#allocation2 + $0x98] sm:$0xff] }
 0x42b   :  { %v2885_v39 = vpop.permute.xlu1 %2884  ;;  %v2891_v43 = vpop.permute.xlu0 %2890 }
 0x42c   :  { %3018 = vst.msk [vmem:[#allocation3 + $0x1d8] sm:$0xff] %vm2958_vm8, %v2885_v39  ;;  %3021 = vst.msk [vmem:[#allocation3 + $0x1f0] sm:$0xff] %vm2958_vm8, %v2891_v43  ;;  %v3812_v43 = vld [vmem:[#allocation2 + $0x109] sm:$0xff] }
 0x42d   :  { %4315 = vrot.lane.b32.xlu1 %v8460_v38, %s6183_s18  ;;  %4321 = vrot.lane.b32.xlu0 %v8487_v60, %s6183_s18  ;;  %v3417_v38 = vld [vmem:[#allocation2 + $0x90] sm:$0xff] }
 0x42e   :  { %v3420_v60 = vld [vmem:[#allocation2 + $0xb0] sm:$0xff] }
 0x42f   :  { %v2889_v17 = vpop.permute.xlu1 %2888  ;;  %v3152_v42 = vpop.permute.xlu0 %3151 }
 0x430   :  { %3020 = vst.msk [vmem:[#allocation3 + $0x1e8] sm:$0xff] %vm2958_vm8, %v2889_v17 }
 0x431   :  { %3344 = vst.msk [vmem:[#allocation3] sm:$0xff] %vm3343_vm9, %v3152_v42  ;;  %4319 = vrot.lane.b32.xlu1 %v8470_v46, %s6183_s18  ;;  %3555 = vrot.lane.b32.xlu0 %v3418_v29, %s6181_s12 }
 0x433   :  { %v2893_v48 = vpop.permute.xlu1 %2892  ;;  %v3156_v13 = vpop.permute.xlu0 %3155 }
 0x434   :  { %3022 = vst.msk [vmem:[#allocation3 + $0x1f8] sm:$0xff] %vm2958_vm8, %v2893_v48 }
 0x435   :  { %3346 = vst.msk [vmem:[#allocation3 + $0x10] sm:$0xff] %vm3343_vm9, %v3156_v13  ;;  %3553 = vrot.lane.b32.xlu1 %v3417_v38, %s6181_s12  ;;  %3559 = vrot.lane.b32.xlu0 %v3420_v60, %s6181_s12 }
 0x437   :  { %v3154_v11 = vpop.permute.xlu1 %3153  ;;  %v3160_v6 = vpop.permute.xlu0 %3159 }
 0x438   :  { %3345 = vst.msk [vmem:[#allocation3 + $0x8] sm:$0xff] %vm3343_vm9, %v3154_v11  ;;  %3348 = vst.msk [vmem:[#allocation3 + $0x20] sm:$0xff] %vm3343_vm9, %v3160_v6  ;;  %v3815_v6 = vld [vmem:[#allocation2 + $0x129] sm:$0xff] }
 0x439   :  { %3557 = vrot.lane.b32.xlu1 %v3419_v10, %s6181_s12  ;;  %3940 = vrot.lane.b32.xlu0 %v8321_v0, %s6182_s13 }
 0x43b   :  { %v3158_v46 = vpop.permute.xlu1 %3157  ;;  %v3164_v53 = vpop.permute.xlu0 %3163 }
 0x43c   :  { %3347 = vst.msk [vmem:[#allocation3 + $0x18] sm:$0xff] %vm3343_vm9, %v3158_v46  ;;  %3350 = vst.msk [vmem:[#allocation3 + $0x30] sm:$0xff] %vm3343_vm9, %v3164_v53  ;;  %v3814_v53 = vld [vmem:[#allocation2 + $0x121] sm:$0xff] }
 0x43d   :  { %3938 = vrot.lane.b32.xlu1 %v8304_v22, %s6182_s13  ;;  %3944 = vrot.lane.b32.xlu0 %v8331_v2, %s6182_s13 }
 0x43f   :  { %v3162_v63 = vpop.permute.xlu1 %3161  ;;  %v3168_v16 = vpop.permute.xlu0 %3167 }
 0x440   :  { %3349 = vst.msk [vmem:[#allocation3 + $0x28] sm:$0xff] %vm3343_vm9, %v3162_v63  ;;  %3352 = vst.msk [vmem:[#allocation3 + $0x40] sm:$0xff] %vm3343_vm9, %v3168_v16  ;;  %v3817_v63 = vld [vmem:[#allocation2 + $0x141] sm:$0xff] }
 0x441   :  { %3942 = vrot.lane.b32.xlu1 %v8314_v51, %s6182_s13  ;;  %4325 = vrot.lane.b32.xlu0 %v8497_v61, %s6183_s18  ;;  %v3422_v51 = vld [vmem:[#allocation2 + $0xc8] sm:$0xff] }
 0x443   :  { %v3166_v0 = vpop.permute.xlu1 %3165  ;;  %v3172_v8 = vpop.permute.xlu0 %3171 }
 0x444   :  { %3351 = vst.msk [vmem:[#allocation3 + $0x38] sm:$0xff] %vm3343_vm9, %v3166_v0  ;;  %3354 = vst.msk [vmem:[#allocation3 + $0x50] sm:$0xff] %vm3343_vm9, %v3172_v8  ;;  %v3816_v8 = vld [vmem:[#allocation2 + $0x139] sm:$0xff] }
 0x445   :  { %4323 = vrot.lane.b32.xlu1 %v8480_v52, %s6183_s18  ;;  %4329 = vrot.lane.b32.xlu0 %v8507_v44, %s6183_s18  ;;  %v3421_v52 = vld [vmem:[#allocation2 + $0xc0] sm:$0xff] }
 0x446   :  { %v3424_v44 = vld [vmem:[#allocation2 + $0xe0] sm:$0xff] }
 0x447   :  { %v3170_v22 = vpop.permute.xlu1 %3169  ;;  %v3176_v2 = vpop.permute.xlu0 %3175 }
 0x448   :  { %3353 = vst.msk [vmem:[#allocation3 + $0x48] sm:$0xff] %vm3343_vm9, %v3170_v22  ;;  %3356 = vst.msk [vmem:[#allocation3 + $0x60] sm:$0xff] %vm3343_vm9, %v3176_v2 }
 0x449   :  { %4327 = vrot.lane.b32.xlu1 %v8490_v20, %s6183_s18  ;;  %3563 = vrot.lane.b32.xlu0 %v3422_v51, %s6181_s12 }
 0x44b   :  { %v3174_v61 = vpop.permute.xlu1 %3173  ;;  %v3180_v5 = vpop.permute.xlu0 %3179 }
 0x44c   :  { %3355 = vst.msk [vmem:[#allocation3 + $0x58] sm:$0xff] %vm3343_vm9, %v3174_v61  ;;  %3358 = vst.msk [vmem:[#allocation3 + $0x70] sm:$0xff] %vm3343_vm9, %v3180_v5 }
 0x44d   :  { %3561 = vrot.lane.b32.xlu1 %v3421_v52, %s6181_s12  ;;  %3567 = vrot.lane.b32.xlu0 %v3424_v44, %s6181_s12 }
 0x44f   :  { %v3178_v56 = vpop.permute.xlu1 %3177  ;;  %v3184_v28 = vpop.permute.xlu0 %3183 }
 0x450   :  { %3357 = vst.msk [vmem:[#allocation3 + $0x68] sm:$0xff] %vm3343_vm9, %v3178_v56  ;;  %3360 = vst.msk [vmem:[#allocation3 + $0x80] sm:$0xff] %vm3343_vm9, %v3184_v28 }
 0x451   :  { %3565 = vrot.lane.b32.xlu1 %v3423_v27, %s6181_s12  ;;  %3948 = vrot.lane.b32.xlu0 %v8341_v9, %s6182_s13  ;;  %v3433_v27 = vld [vmem:[#allocation2 + $0x150] sm:$0xff] }
 0x453   :  { %v3182_v20 = vpop.permute.xlu1 %3181  ;;  %v3188_v36 = vpop.permute.xlu0 %3187 }
 0x454   :  { %3359 = vst.msk [vmem:[#allocation3 + $0x78] sm:$0xff] %vm3343_vm9, %v3182_v20  ;;  %3362 = vst.msk [vmem:[#allocation3 + $0x90] sm:$0xff] %vm3343_vm9, %v3188_v36  ;;  %v3436_v36 = vld [vmem:[#allocation2 + $0x170] sm:$0xff] }
 0x455   :  { %3946 = vrot.lane.b32.xlu1 %v8324_v26, %s6182_s13  ;;  %3952 = vrot.lane.b32.xlu0 %v8348_v3, %s6182_s13 }
 0x457   :  { %v3186_v30 = vpop.permute.xlu1 %3185  ;;  %v3192_v49 = vpop.permute.xlu0 %3191 }
 0x458   :  { %3361 = vst.msk [vmem:[#allocation3 + $0x88] sm:$0xff] %vm3343_vm9, %v3186_v30  ;;  %3364 = vst.msk [vmem:[#allocation3 + $0xa0] sm:$0xff] %vm3343_vm9, %v3192_v49  ;;  %v3435_v49 = vld [vmem:[#allocation2 + $0x168] sm:$0xff] }
 0x459   :  { %3950 = vrot.lane.b32.xlu1 %v8334_v33, %s6182_s13  ;;  %4333 = vrot.lane.b32.xlu0 %v8517_v31, %s6183_s18  ;;  %v3426_v33 = vld [vmem:[#allocation2 + $0xf8] sm:$0xff] }
 0x45b   :  { %v3190_v9 = vpop.permute.xlu1 %3189  ;;  %v3196_v24 = vpop.permute.xlu0 %3195 }
 0x45c   :  { %3363 = vst.msk [vmem:[#allocation3 + $0x98] sm:$0xff] %vm3343_vm9, %v3190_v9  ;;  %3366 = vst.msk [vmem:[#allocation3 + $0xb0] sm:$0xff] %vm3343_vm9, %v3196_v24  ;;  %v3819_v9 = vld [vmem:[#allocation2 + $0x159] sm:$0xff] }
 0x45d   :  { %4331 = vrot.lane.b32.xlu1 %v8500_v34, %s6183_s18  ;;  %4337 = vrot.lane.b32.xlu0 %v8527_v45, %s6183_s18  ;;  %v3425_v34 = vld [vmem:[#allocation2 + $0xf0] sm:$0xff] }
 0x45e   :  { %v3428_v45 = vld [vmem:[#allocation2 + $0x110] sm:$0xff] }
 0x45f   :  { %v3194_v26 = vpop.permute.xlu1 %3193  ;;  %v3200_v3 = vpop.permute.xlu0 %3199 }
 0x460   :  { %3365 = vst.msk [vmem:[#allocation3 + $0xa8] sm:$0xff] %vm3343_vm9, %v3194_v26  ;;  %3368 = vst.msk [vmem:[#allocation3 + $0xc0] sm:$0xff] %vm3343_vm9, %v3200_v3  ;;  %v3818_v3 = vld [vmem:[#allocation2 + $0x151] sm:$0xff] }
 0x461   :  { %4335 = vrot.lane.b32.xlu1 %v8510_v7, %s6183_s18  ;;  %3571 = vrot.lane.b32.xlu0 %v3426_v33, %s6181_s12  ;;  %v3811_v7 = vld [vmem:[#allocation2 + $0xf9] sm:$0xff]  ;;  %v3821_v33 = vld [vmem:[#allocation2 + $0x171] sm:$0xff] }
 0x463   :  { %v3198_v31 = vpop.permute.xlu1 %3197  ;;  %v3204_v32 = vpop.permute.xlu0 %3203 }
 0x464   :  { %3367 = vst.msk [vmem:[#allocation3 + $0xb8] sm:$0xff] %vm3343_vm9, %v3198_v31  ;;  %3370 = vst.msk [vmem:[#allocation3 + $0xd0] sm:$0xff] %vm3343_vm9, %v3204_v32 }
 0x465   :  { %3569 = vrot.lane.b32.xlu1 %v3425_v34, %s6181_s12  ;;  %3575 = vrot.lane.b32.xlu0 %v3428_v45, %s6181_s12  ;;  %v3820_v34 = vld [vmem:[#allocation2 + $0x169] sm:$0xff] }
 0x467   :  { %v3202_v40 = vpop.permute.xlu1 %3201  ;;  %v3208_v54 = vpop.permute.xlu0 %3207 }
 0x468   :  { %3369 = vst.msk [vmem:[#allocation3 + $0xc8] sm:$0xff] %vm3343_vm9, %v3202_v40  ;;  %3372 = vst.msk [vmem:[#allocation3 + $0xe0] sm:$0xff] %vm3343_vm9, %v3208_v54 }
 0x469   :  { %3573 = vrot.lane.b32.xlu1 %v3427_v62, %s6181_s12  ;;  %3956 = vrot.lane.b32.xlu0 %v3811_v7, %s6182_s13 }
 0x46b   :  { %v3206_v12 = vpop.permute.xlu1 %3205  ;;  %v3212_v57 = vpop.permute.xlu0 %3211 }
 0x46c   :  { %3371 = vst.msk [vmem:[#allocation3 + $0xd8] sm:$0xff] %vm3343_vm9, %v3206_v12  ;;  %3374 = vst.msk [vmem:[#allocation3 + $0xf0] sm:$0xff] %vm3343_vm9, %v3212_v57 }
 0x46d   :  { %3954 = vrot.lane.b32.xlu1 %v3810_v50, %s6182_s13  ;;  %3960 = vrot.lane.b32.xlu0 %v3813_v35, %s6182_s13  ;;  %v3440_v50 = vld [vmem:[#allocation2 + $0x1a0] sm:$0xff] }
 0x46f   :  { %v3210_v1 = vpop.permute.xlu1 %3209  ;;  %v3216_v39 = vpop.permute.xlu0 %3215 }
 0x470   :  { %3373 = vst.msk [vmem:[#allocation3 + $0xe8] sm:$0xff] %vm3343_vm9, %v3210_v1  ;;  %3376 = vst.msk [vmem:[#allocation3 + $0x100] sm:$0xff] %vm3343_vm9, %v3216_v39  ;;  %v3437_v39 = vld [vmem:[#allocation2 + $0x180] sm:$0xff] }
 0x471   :  { %3958 = vrot.lane.b32.xlu1 %v3812_v43, %s6182_s13  ;;  %4341 = vrot.lane.b32.xlu0 %v8537_v47, %s6183_s18  ;;  %v3430_v47 = vld [vmem:[#allocation2 + $0x128] sm:$0xff] }
 0x473   :  { %v3214_v17 = vpop.permute.xlu1 %3213  ;;  %v3540_v42 = vpop.permute.xlu0 %3539 }
 0x474   :  { %3375 = vst.msk [vmem:[#allocation3 + $0xf8] sm:$0xff] %vm3343_vm9, %v3214_v17 }
 0x475   :  { %3731 = vst.msk [vmem:[#allocation3 + $0x8] sm:$0xff] %vm3729_vm10, %v3540_v42  ;;  %4339 = vrot.lane.b32.xlu1 %v8520_v18, %s6183_s18  ;;  %4345 = vrot.lane.b32.xlu0 %v8547_v21, %s6183_s18  ;;  %v3429_v18 = vld [vmem:[#allocation2 + $0x120] sm:$0xff] }
 0x476   :  { %v3432_v21 = vld [vmem:[#allocation2 + $0x140] sm:$0xff] }
 0x477   :  { %v3538_v29 = vpop.permute.xlu1 %3537  ;;  %v3544_v48 = vpop.permute.xlu0 %3543 }
 0x478   :  { %3730 = vst.msk [vmem:[#allocation3] sm:$0xff] %vm3729_vm10, %v3538_v29  ;;  %3733 = vst.msk [vmem:[#allocation3 + $0x18] sm:$0xff] %vm3729_vm10, %v3544_v48  ;;  %v3823_v29 = vld [vmem:[#allocation2 + $0x189] sm:$0xff] }
 0x479   :  { %4343 = vrot.lane.b32.xlu1 %v8530_v25, %s6183_s18  ;;  %3579 = vrot.lane.b32.xlu0 %v3430_v47, %s6181_s12  ;;  %v3431_v25 = vld [vmem:[#allocation2 + $0x138] sm:$0xff]  ;;  %v3825_v47 = vld [vmem:[#allocation2 + $0x1a1] sm:$0xff] }
 0x47b   :  { %v3542_v13 = vpop.permute.xlu1 %3541  ;;  %v3925_v38 = vpop.permute.xlu0 %3924 }
 0x47c   :  { %3732 = vst.msk [vmem:[#allocation3 + $0x10] sm:$0xff] %vm3729_vm10, %v3542_v13 }
 0x47d   :  { %4116 = vst.msk [vmem:[#allocation3 + $0x8] sm:$0xff] %vm4114_vm11, %v3925_v38  ;;  %3577 = vrot.lane.b32.xlu1 %v3429_v18, %s6181_s12  ;;  %3583 = vrot.lane.b32.xlu0 %v3432_v21, %s6181_s12  ;;  %v3822_v38 = vld [vmem:[#allocation2 + $0x181] sm:$0xff]  ;;  %v3824_v18 = vld [vmem:[#allocation2 + $0x199] sm:$0xff] }
 0x47f   :  { %v3923_v60 = vpop.permute.xlu1 %3922  ;;  %v3929_v11 = vpop.permute.xlu0 %3928 }
 0x480   :  { %4115 = vst.msk [vmem:[#allocation3] sm:$0xff] %vm4114_vm11, %v3923_v60  ;;  %4118 = vst.msk [vmem:[#allocation3 + $0x18] sm:$0xff] %vm4114_vm11, %v3929_v11 }
 0x481   :  { %3581 = vrot.lane.b32.xlu1 %v3431_v25, %s6181_s12  ;;  %3964 = vrot.lane.b32.xlu0 %v3815_v6, %s6182_s13  ;;  %v4210_v25 = vld [vmem:[#allocation2 + $0x1a2] sm:$0xff] }
 0x483   :  { %v3927_v10 = vpop.permute.xlu1 %3926  ;;  %v4310_v46 = vpop.permute.xlu0 %4309 }
 0x484   :  { %4117 = vst.msk [vmem:[#allocation3 + $0x10] sm:$0xff] %vm4114_vm11, %v3927_v10  ;;  %v4209_v10 = vld [vmem:[#allocation2 + $0x19a] sm:$0xff] }
 0x485   :  { %4501 = vst.msk [vmem:[#allocation3 + $0x8] sm:$0xff] %vm4499_vm12, %v4310_v46  ;;  %3962 = vrot.lane.b32.xlu1 %v3814_v53, %s6182_s13  ;;  %3968 = vrot.lane.b32.xlu0 %v3817_v63, %s6182_s13 }
 0x487   :  { %v4308_v16 = vpop.permute.xlu1 %4307  ;;  %v4314_v0 = vpop.permute.xlu0 %4313 }
 0x488   :  { %4500 = vst.msk [vmem:[#allocation3] sm:$0xff] %vm4499_vm12, %v4308_v16  ;;  %4503 = vst.msk [vmem:[#allocation3 + $0x18] sm:$0xff] %vm4499_vm12, %v4314_v0  ;;  %v3057_v0 = vld [vmem:[#allocation2 + $0x1e2] sm:$0xff] }
 0x489   :  { %3966 = vrot.lane.b32.xlu1 %v3816_v8, %s6182_s13  ;;  %4349 = vrot.lane.b32.xlu0 %v8557_v4, %s6183_s18  ;;  %v3434_v4 = vld [vmem:[#allocation2 + $0x158] sm:$0xff] }
 0x48b   :  { %v4312_v22 = vpop.permute.xlu1 %4311  ;;  %v3548_v2 = vpop.permute.xlu0 %3547 }
 0x48c   :  { %4502 = vst.msk [vmem:[#allocation3 + $0x10] sm:$0xff] %vm4499_vm12, %v4312_v22  ;;  %v4565_v5 = vld [vmem:[#allocation3 + $0x8] sm:$0xff] }
 0x48d   :  { %3735 = vst.msk [vmem:[#allocation3 + $0x28] sm:$0xff] %vm3729_vm10, %v3548_v2  ;;  %4347 = vrot.lane.b32.xlu1 %v8540_v55, %s6183_s18  ;;  %4353 = vrot.lane.b32.xlu0 %v8567_v23, %s6183_s18 }
 0x48f   :  { %v3546_v51 = vpop.permute.xlu1 %3545  ;;  %v4564_v61 = vld [vmem:[#allocation3] sm:$0xff]  ;;  %v3552_v52 = vpop.permute.xlu0 %3551  ;;  %v4567_v23 = vld [vmem:[#allocation3 + $0x18] sm:$0xff] }
 0x490   :  { %3734 = vst.msk [vmem:[#allocation3 + $0x20] sm:$0xff] %vm3729_vm10, %v3546_v51  ;;  %v4628_v44 = vpack.c.bf16 %v4565_v5, %v4564_v61  ;;  %3737 = vst.msk [vmem:[#allocation3 + $0x38] sm:$0xff] %vm3729_vm10, %v3552_v52  ;;  %v3056_v51 = vld [vmem:[#allocation2 + $0x1d2] sm:$0xff]  ;;  %v3441_v5 = vld [vmem:[#allocation2 + $0x1e0] sm:$0xff] }
 0x491   :  { %4351 = vrot.lane.b32.xlu1 %v8550_v14, %s6183_s18  ;;  %3587 = vrot.lane.b32.xlu0 %v3434_v4, %s6181_s12  ;;  %v3058_v4 = vld [vmem:[#allocation2 + $0x1ea] sm:$0xff] }
 0x492   :  { %6058 = vmatprep.mubr.msk.bf16.mxu1 %vm274_vm1, %v4628_v44 }
 0x493   :  { %v3550_v55 = vpop.permute.xlu1 %3549  ;;  %v4566_v56 = vld [vmem:[#allocation3 + $0x10] sm:$0xff]  ;;  %v3933_v28 = vpop.permute.xlu0 %3932 }
 0x494   :  { %3736 = vst.msk [vmem:[#allocation3 + $0x30] sm:$0xff] %vm3729_vm10, %v3550_v55  ;;  %v4629_v20 = vpack.c.bf16 %v4567_v23, %v4566_v56  ;;  %v3443_v55 = vld [vmem:[#allocation2 + $0x1f8] sm:$0xff] }
 0x495   :  { %4120 = vst.msk [vmem:[#allocation3 + $0x28] sm:$0xff] %vm4114_vm11, %v3933_v28  ;;  %3585 = vrot.lane.b32.xlu1 %v3433_v27, %s6181_s12  ;;  %3591 = vrot.lane.b32.xlu0 %v3436_v36, %s6181_s12  ;;  %v3442_v28 = vld [vmem:[#allocation2 + $0x1e8] sm:$0xff] }
 0x496   :  { %6059 = vmatmul.mubr.msk.bf16.vlgmr.msra.gmra.mxu1 %vm274_vm1, %v4629_v20  ;;  %v3826_v27 = vld [vmem:[#allocation2 + $0x1e1] sm:$0xff] }
 0x497   :  { %v3931_v14 = vpop.permute.xlu1 %3930  ;;  %v3937_v30 = vpop.permute.xlu0 %3936 }
 0x498   :  { %4119 = vst.msk [vmem:[#allocation3 + $0x20] sm:$0xff] %vm4114_vm11, %v3931_v14  ;;  %4122 = vst.msk [vmem:[#allocation3 + $0x38] sm:$0xff] %vm4114_vm11, %v3937_v30  ;;  %v3444_v14 = vld [vmem:[#allocation2 + $0x200] sm:$0xff] }
 0x499   :  { %3589 = vrot.lane.b32.xlu1 %v3435_v49, %s6181_s12  ;;  %3972 = vrot.lane.b32.xlu0 %v3819_v9, %s6182_s13  ;;  %v3828_v30 = vld [vmem:[#allocation2 + $0x1f9] sm:$0xff] }
 0x49b   :  { %v3935_v24 = vpop.permute.xlu1 %3934  ;;  %v4318_v26 = vpop.permute.xlu0 %4317 }
 0x49c   :  { %4121 = vst.msk [vmem:[#allocation3 + $0x30] sm:$0xff] %vm4114_vm11, %v3935_v24  ;;  %v3827_v24 = vld [vmem:[#allocation2 + $0x1e9] sm:$0xff] }
 0x49d   :  { %4505 = vst.msk [vmem:[#allocation3 + $0x28] sm:$0xff] %vm4499_vm12, %v4318_v26  ;;  %3970 = vrot.lane.b32.xlu1 %v3818_v3, %s6182_s13  ;;  %3976 = vrot.lane.b32.xlu0 %v3821_v33, %s6182_s13 }
 0x49f   :  { %v4316_v31 = vpop.permute.xlu1 %4315  ;;  %v4322_v32 = vpop.permute.xlu0 %4321 }
 0x4a0   :  { %4504 = vst.msk [vmem:[#allocation3 + $0x20] sm:$0xff] %vm4499_vm12, %v4316_v31  ;;  %4507 = vst.msk [vmem:[#allocation3 + $0x38] sm:$0xff] %vm4499_vm12, %v4322_v32  ;;  %v3829_v32 = vld [vmem:[#allocation2 + $0x201] sm:$0xff] }
 0x4a1   :  { %3974 = vrot.lane.b32.xlu1 %v3820_v34, %s6182_s13  ;;  %4357 = vrot.lane.b32.xlu0 %v8577_v59, %s6183_s18  ;;  %v3438_v59 = vld [vmem:[#allocation2 + $0x188] sm:$0xff] }
 0x4a3   :  { %v4320_v45 = vpop.permute.xlu1 %4319  ;;  %v3556_v40 = vpop.permute.xlu0 %3555 }
 0x4a4   :  { %4506 = vst.msk [vmem:[#allocation3 + $0x30] sm:$0xff] %vm4499_vm12, %v4320_v45  ;;  %v4569_v7 = vld [vmem:[#allocation3 + $0x28] sm:$0xff]  ;;  %v4213_v45 = vld [vmem:[#allocation2 + $0x1fa] sm:$0xff] }
 0x4a5   :  { %3739 = vst.msk [vmem:[#allocation3 + $0x48] sm:$0xff] %vm3729_vm10, %v3556_v40  ;;  %4355 = vrot.lane.b32.xlu1 %v8560_v58, %s6183_s18  ;;  %4361 = vrot.lane.b32.xlu0 %v8587_v15, %s6183_s18 }
 0x4a7   :  { %v3554_v54 = vpop.permute.xlu1 %3553  ;;  %v4568_v62 = vld [vmem:[#allocation3 + $0x20] sm:$0xff]  ;;  %v3560_v12 = vpop.permute.xlu0 %3559  ;;  %v4571_v35 = vld [vmem:[#allocation3 + $0x38] sm:$0xff] }
 0x4a8   :  { %3738 = vst.msk [vmem:[#allocation3 + $0x40] sm:$0xff] %vm3729_vm10, %v3554_v54  ;;  %v4630_v57 = vpack.c.bf16 %v4569_v7, %v4568_v62  ;;  %3741 = vst.msk [vmem:[#allocation3 + $0x58] sm:$0xff] %vm3729_vm10, %v3560_v12 }
 0x4a9   :  { %4359 = vrot.lane.b32.xlu1 %v8570_v37, %s6183_s18  ;;  %3595 = vrot.lane.b32.xlu0 %v3438_v59, %s6181_s12  ;;  %v3439_v37 = vld [vmem:[#allocation2 + $0x198] sm:$0xff] }
 0x4aa   :  { %6062 = vmatprep.mubr.msk.bf16.mxu1 %vm274_vm1, %v4630_v57 }
 0x4ab   :  { %v3558_v58 = vpop.permute.xlu1 %3557  ;;  %v4570_v15 = vld [vmem:[#allocation3 + $0x30] sm:$0xff]  ;;  %v3941_v1 = vpop.permute.xlu0 %3940 }
 0x4ac   :  { %3740 = vst.msk [vmem:[#allocation3 + $0x50] sm:$0xff] %vm3729_vm10, %v3558_v58  ;;  %v4631_v43 = vpack.c.bf16 %v4571_v35, %v4570_v15  ;;  %v4214_v58 = vld [vmem:[#allocation2 + $0x202] sm:$0xff] }
 0x4ad   :  { %4124 = vst.msk [vmem:[#allocation3 + $0x48] sm:$0xff] %vm4114_vm11, %v3941_v1  ;;  %3593 = vrot.lane.b32.xlu1 %v3437_v39, %s6181_s12  ;;  %3599 = vrot.lane.b32.xlu0 %v3440_v50, %s6181_s12  ;;  %v3061_v50 = vld [vmem:[#allocation2 + $0x212] sm:$0xff] }
 0x4ae   :  { %6063 = vmatmul.mubr.msk.bf16.gmra.mxu1 %vm274_vm1, %v4631_v43  ;;  %v3445_v1 = vld [vmem:[#allocation2 + $0x210] sm:$0xff] }
 0x4af   :  { %v3939_v17 = vpop.permute.xlu1 %3938  ;;  %v3945_v42 = vpop.permute.xlu0 %3944 }
 0x4b0   :  { %4123 = vst.msk [vmem:[#allocation3 + $0x40] sm:$0xff] %vm4114_vm11, %v3939_v17  ;;  %4126 = vst.msk [vmem:[#allocation3 + $0x58] sm:$0xff] %vm4114_vm11, %v3945_v42  ;;  %v3447_v17 = vld [vmem:[#allocation2 + $0x228] sm:$0xff] }
 0x4b1   :  { %3597 = vrot.lane.b32.xlu1 %v3439_v37, %s6181_s12  ;;  %3980 = vrot.lane.b32.xlu0 %v3823_v29, %s6182_s13  ;;  %v3062_v37 = vld [vmem:[#allocation2 + $0x21a] sm:$0xff] }
 0x4b3   :  { %v3943_v48 = vpop.permute.xlu1 %3942  ;;  %v4326_v13 = vpop.permute.xlu0 %4325 }
 0x4b4   :  { %4125 = vst.msk [vmem:[#allocation3 + $0x50] sm:$0xff] %vm4114_vm11, %v3943_v48  ;;  %v3446_v48 = vld [vmem:[#allocation2 + $0x218] sm:$0xff] }
 0x4b5   :  { %4509 = vst.msk [vmem:[#allocation3 + $0x48] sm:$0xff] %vm4499_vm12, %v4326_v13  ;;  %3978 = vrot.lane.b32.xlu1 %v3822_v38, %s6182_s13  ;;  %3984 = vrot.lane.b32.xlu0 %v3825_v47, %s6182_s13  ;;  %v3830_v47 = vld [vmem:[#allocation2 + $0x211] sm:$0xff] }
 0x4b7   :  { %v4324_v21 = vpop.permute.xlu1 %4323  ;;  %v4330_v60 = vpop.permute.xlu0 %4329 }
 0x4b8   :  { %4508 = vst.msk [vmem:[#allocation3 + $0x40] sm:$0xff] %vm4499_vm12, %v4324_v21  ;;  %4511 = vst.msk [vmem:[#allocation3 + $0x58] sm:$0xff] %vm4499_vm12, %v4330_v60  ;;  %v3448_v60 = vld [vmem:[#allocation2 + $0x230] sm:$0xff] }
 0x4b9   :  { %3982 = vrot.lane.b32.xlu1 %v3824_v18, %s6182_s13  ;;  %4365 = vrot.lane.b32.xlu0 %v8594_v19, %s6183_s18 }
 0x4bb   :  { %v4328_v11 = vpop.permute.xlu1 %4327  ;;  %v3564_v6 = vpop.permute.xlu0 %3563 }
 0x4bc   :  { %4510 = vst.msk [vmem:[#allocation3 + $0x50] sm:$0xff] %vm4499_vm12, %v4328_v11  ;;  %v4573_v63 = vld [vmem:[#allocation3 + $0x48] sm:$0xff] }
 0x4bd   :  { %3743 = vst.msk [vmem:[#allocation3 + $0x68] sm:$0xff] %vm3729_vm10, %v3564_v6  ;;  %4363 = vrot.lane.b32.xlu1 %v8580_v41, %s6183_s18  ;;  %4369 = vrot.lane.b32.xlu0 %v4210_v25, %s6183_s18  ;;  %v3832_v25 = vld [vmem:[#allocation2 + $0x229] sm:$0xff] }
 0x4bf   :  { %v3562_v46 = vpop.permute.xlu1 %3561  ;;  %v4572_v53 = vld [vmem:[#allocation3 + $0x40] sm:$0xff]  ;;  %v3568_v16 = vpop.permute.xlu0 %3567  ;;  %v4575_v22 = vld [vmem:[#allocation3 + $0x58] sm:$0xff] }
 0x4c0   :  { %3742 = vst.msk [vmem:[#allocation3 + $0x60] sm:$0xff] %vm3729_vm10, %v3562_v46  ;;  %v4632_v19 = vpack.c.bf16 %v4573_v63, %v4572_v53  ;;  %3745 = vst.msk [vmem:[#allocation3 + $0x78] sm:$0xff] %vm3729_vm10, %v3568_v16  ;;  %v3831_v63 = vld [vmem:[#allocation2 + $0x219] sm:$0xff] }
 0x4c1   :  { %4367 = vrot.lane.b32.xlu1 %v4209_v10, %s6183_s18  ;;  %3219 = vrot.lane.b32.xlu0 %v3057_v0, %s6180_s11 }
 0x4c2   :  { %6066 = vmatprep.mubr.msk.bf16.mxu1 %vm274_vm1, %v4632_v19 }
 0x4c3   :  { %v3566_v41 = vpop.permute.xlu1 %3565  ;;  %v4574_v8 = vld [vmem:[#allocation3 + $0x50] sm:$0xff]  ;;  %v3949_v2 = vpop.permute.xlu0 %3948 }
 0x4c4   :  { %3744 = vst.msk [vmem:[#allocation3 + $0x70] sm:$0xff] %vm3729_vm10, %v3566_v41  ;;  %v4633_v61 = vpack.c.bf16 %v4575_v22, %v4574_v8  ;;  %v3833_v41 = vld [vmem:[#allocation2 + $0x231] sm:$0xff] }
 0x4c5   :  { %4128 = vst.msk [vmem:[#allocation3 + $0x68] sm:$0xff] %vm4114_vm11, %v3949_v2  ;;  %3217 = vrot.lane.b32.xlu1 %v3056_v51, %s6180_s11  ;;  %3601 = vrot.lane.b32.xlu0 %v3441_v5, %s6181_s12  ;;  %v4217_v8 = vld [vmem:[#allocation2 + $0x22a] sm:$0xff]  ;;  %v4218_v5 = vld [vmem:[#allocation2 + $0x232] sm:$0xff] }
 0x4c6   :  { %6067 = vmatmul.mubr.msk.bf16.gmra.mxu1 %vm274_vm1, %v4633_v61 }
 0x4c7   :  { %v3947_v52 = vpop.permute.xlu1 %3946  ;;  %v3953_v44 = vpop.permute.xlu0 %3952 }
 0x4c8   :  { %4127 = vst.msk [vmem:[#allocation3 + $0x60] sm:$0xff] %vm4114_vm11, %v3947_v52  ;;  %4130 = vst.msk [vmem:[#allocation3 + $0x78] sm:$0xff] %vm4114_vm11, %v3953_v44  ;;  %v3065_v52 = vld [vmem:[#allocation2 + $0x242] sm:$0xff] }
 0x4c9   :  { %3221 = vrot.lane.b32.xlu1 %v3058_v4, %s6180_s11  ;;  %3605 = vrot.lane.b32.xlu0 %v3443_v55, %s6181_s12  ;;  %v3449_v55 = vld [vmem:[#allocation2 + $0x240] sm:$0xff] }
 0x4cb   :  { %v3951_v56 = vpop.permute.xlu1 %3950  ;;  %v4334_v23 = vpop.permute.xlu0 %4333 }
 0x4cc   :  { %4129 = vst.msk [vmem:[#allocation3 + $0x70] sm:$0xff] %vm4114_vm11, %v3951_v56 }
 0x4cd   :  { %4513 = vst.msk [vmem:[#allocation3 + $0x68] sm:$0xff] %vm4499_vm12, %v4334_v23  ;;  %3603 = vrot.lane.b32.xlu1 %v3442_v28, %s6181_s12  ;;  %3986 = vrot.lane.b32.xlu0 %v3826_v27, %s6182_s13 }
 0x4cf   :  { %v4332_v20 = vpop.permute.xlu1 %4331  ;;  %v4338_v36 = vpop.permute.xlu0 %4337 }
 0x4d0   :  { %4512 = vst.msk [vmem:[#allocation3 + $0x60] sm:$0xff] %vm4499_vm12, %v4332_v20  ;;  %4515 = vst.msk [vmem:[#allocation3 + $0x78] sm:$0xff] %vm4499_vm12, %v4338_v36  ;;  %v3066_v20 = vld [vmem:[#allocation2 + $0x24a] sm:$0xff] }
 0x4d1   :  { %3607 = vrot.lane.b32.xlu1 %v3444_v14, %s6181_s12  ;;  %3990 = vrot.lane.b32.xlu0 %v3828_v30, %s6182_s13  ;;  %v3451_v14 = vld [vmem:[#allocation2 + $0x258] sm:$0xff] }
 0x4d3   :  { %v4336_v49 = vpop.permute.xlu1 %4335  ;;  %v3572_v9 = vpop.permute.xlu0 %3571 }
 0x4d4   :  { %4514 = vst.msk [vmem:[#allocation3 + $0x70] sm:$0xff] %vm4499_vm12, %v4336_v49  ;;  %v4577_v33 = vld [vmem:[#allocation3 + $0x68] sm:$0xff] }
 0x4d5   :  { %3747 = vst.msk [vmem:[#allocation3 + $0x88] sm:$0xff] %vm3729_vm10, %v3572_v9  ;;  %3988 = vrot.lane.b32.xlu1 %v3827_v24, %s6182_s13  ;;  %4371 = vrot.lane.b32.xlu0 %v3057_v0, %s6183_s18 }
 0x4d7   :  { %v3570_v26 = vpop.permute.xlu1 %3569  ;;  %v4576_v3 = vld [vmem:[#allocation3 + $0x60] sm:$0xff]  ;;  %v3576_v31 = vpop.permute.xlu0 %3575  ;;  %v4579_v62 = vld [vmem:[#allocation3 + $0x78] sm:$0xff] }
 0x4d8   :  { %3746 = vst.msk [vmem:[#allocation3 + $0x80] sm:$0xff] %vm3729_vm10, %v3570_v26  ;;  %v4634_v34 = vpack.c.bf16 %v4577_v33, %v4576_v3  ;;  %3749 = vst.msk [vmem:[#allocation3 + $0x98] sm:$0xff] %vm3729_vm10, %v3576_v31  ;;  %v3450_v26 = vld [vmem:[#allocation2 + $0x248] sm:$0xff] }
 0x4d9   :  { %3992 = vrot.lane.b32.xlu1 %v3829_v32, %s6182_s13  ;;  %4375 = vrot.lane.b32.xlu0 %v4213_v45, %s6183_s18  ;;  %v3834_v33 = vld [vmem:[#allocation2 + $0x241] sm:$0xff] }
 0x4da   :  { %6070 = vmatprep.mubr.msk.bf16.mxu1 %vm274_vm1, %v4634_v34  ;;  %v3452_v34 = vld [vmem:[#allocation2 + $0x260] sm:$0xff] }
 0x4db   :  { %v3574_v40 = vpop.permute.xlu1 %3573  ;;  %v4578_v54 = vld [vmem:[#allocation3 + $0x70] sm:$0xff]  ;;  %v3957_v7 = vpop.permute.xlu0 %3956 }
 0x4dc   :  { %3748 = vst.msk [vmem:[#allocation3 + $0x90] sm:$0xff] %vm3729_vm10, %v3574_v40  ;;  %v4635_v12 = vpack.c.bf16 %v4579_v62, %v4578_v54  ;;  %v3835_v62 = vld [vmem:[#allocation2 + $0x249] sm:$0xff] }
 0x4dd   :  { %4132 = vst.msk [vmem:[#allocation3 + $0x88] sm:$0xff] %vm4114_vm11, %v3957_v7  ;;  %4373 = vrot.lane.b32.xlu1 %v3058_v4, %s6183_s18  ;;  %3223 = vrot.lane.b32.xlu0 %v4213_v45, %s6180_s11  ;;  %v3836_v45 = vld [vmem:[#allocation2 + $0x259] sm:$0xff] }
 0x4de   :  { %6071 = vmatmul.mubr.msk.bf16.gmra.mxu1 %vm274_vm1, %v4635_v12 }
 0x4df   :  { %v3955_v57 = vpop.permute.xlu1 %3954  ;;  %v3961_v59 = vpop.permute.xlu0 %3960 }
 0x4e0   :  { %4131 = vst.msk [vmem:[#allocation3 + $0x80] sm:$0xff] %vm4114_vm11, %v3955_v57  ;;  %4134 = vst.msk [vmem:[#allocation3 + $0x98] sm:$0xff] %vm4114_vm11, %v3961_v59  ;;  %v3837_v57 = vld [vmem:[#allocation2 + $0x261] sm:$0xff] }
 0x4e1   :  { %4377 = vrot.lane.b32.xlu1 %v4214_v58, %s6183_s18  ;;  %3227 = vrot.lane.b32.xlu0 %v3061_v50, %s6180_s11  ;;  %v4221_v59 = vld [vmem:[#allocation2 + $0x25a] sm:$0xff] }
 0x4e3   :  { %v3959_v15 = vpop.permute.xlu1 %3958  ;;  %v4342_v35 = vpop.permute.xlu0 %4341 }
 0x4e4   :  { %4133 = vst.msk [vmem:[#allocation3 + $0x90] sm:$0xff] %vm4114_vm11, %v3959_v15 }
 0x4e5   :  { %4517 = vst.msk [vmem:[#allocation3 + $0x88] sm:$0xff] %vm4499_vm12, %v4342_v35  ;;  %3225 = vrot.lane.b32.xlu1 %v4214_v58, %s6180_s11  ;;  %3609 = vrot.lane.b32.xlu0 %v3445_v1, %s6181_s12 }
 0x4e7   :  { %v4340_v39 = vpop.permute.xlu1 %4339  ;;  %v4346_v43 = vpop.permute.xlu0 %4345 }
 0x4e8   :  { %4516 = vst.msk [vmem:[#allocation3 + $0x80] sm:$0xff] %vm4499_vm12, %v4340_v39  ;;  %4519 = vst.msk [vmem:[#allocation3 + $0x98] sm:$0xff] %vm4499_vm12, %v4346_v43  ;;  %v4222_v43 = vld [vmem:[#allocation2 + $0x262] sm:$0xff] }
 0x4e9   :  { %3229 = vrot.lane.b32.xlu1 %v3062_v37, %s6180_s11  ;;  %3613 = vrot.lane.b32.xlu0 %v3447_v17, %s6181_s12  ;;  %v3069_v17 = vld [vmem:[#allocation2 + $0x272] sm:$0xff] }
 0x4eb   :  { %v4344_v42 = vpop.permute.xlu1 %4343  ;;  %v3580_v29 = vpop.permute.xlu0 %3579 }
 0x4ec   :  { %4518 = vst.msk [vmem:[#allocation3 + $0x90] sm:$0xff] %vm4499_vm12, %v4344_v42  ;;  %v4581_v18 = vld [vmem:[#allocation3 + $0x88] sm:$0xff] }
 0x4ed   :  { %3751 = vst.msk [vmem:[#allocation3 + $0xa8] sm:$0xff] %vm3729_vm10, %v3580_v29  ;;  %3611 = vrot.lane.b32.xlu1 %v3446_v48, %s6181_s12  ;;  %3994 = vrot.lane.b32.xlu0 %v3830_v47, %s6182_s13 }
 0x4ef   :  { %v3578_v13 = vpop.permute.xlu1 %3577  ;;  %v4580_v38 = vld [vmem:[#allocation3 + $0x80] sm:$0xff]  ;;  %v3584_v21 = vpop.permute.xlu0 %3583  ;;  %v4583_v46 = vld [vmem:[#allocation3 + $0x98] sm:$0xff] }
 0x4f0   :  { %3750 = vst.msk [vmem:[#allocation3 + $0xa0] sm:$0xff] %vm3729_vm10, %v3578_v13  ;;  %v4636_v11 = vpack.c.bf16 %v4581_v18, %v4580_v38  ;;  %3753 = vst.msk [vmem:[#allocation3 + $0xb8] sm:$0xff] %vm3729_vm10, %v3584_v21  ;;  %v3453_v38 = vld [vmem:[#allocation2 + $0x270] sm:$0xff] }
 0x4f1   :  { %3615 = vrot.lane.b32.xlu1 %v3448_v60, %s6181_s12  ;;  %3998 = vrot.lane.b32.xlu0 %v3832_v25, %s6182_s13  ;;  %v3070_v60 = vld [vmem:[#allocation2 + $0x27a] sm:$0xff] }
 0x4f2   :  { %6074 = vmatprep.mubr.msk.bf16.mxu1 %vm274_vm1, %v4636_v11  ;;  %v3455_v11 = vld [vmem:[#allocation2 + $0x288] sm:$0xff] }
 0x4f3   :  { %v3582_v6 = vpop.permute.xlu1 %3581  ;;  %v4582_v10 = vld [vmem:[#allocation3 + $0x90] sm:$0xff]  ;;  %v3965_v53 = vpop.permute.xlu0 %3964 }
 0x4f4   :  { %3752 = vst.msk [vmem:[#allocation3 + $0xb0] sm:$0xff] %vm3729_vm10, %v3582_v6  ;;  %v4637_v16 = vpack.c.bf16 %v4583_v46, %v4582_v10  ;;  %v3454_v10 = vld [vmem:[#allocation2 + $0x278] sm:$0xff] }
 0x4f5   :  { %4136 = vst.msk [vmem:[#allocation3 + $0xa8] sm:$0xff] %vm4114_vm11, %v3965_v53  ;;  %3996 = vrot.lane.b32.xlu1 %v3831_v63, %s6182_s13  ;;  %4379 = vrot.lane.b32.xlu0 %v3061_v50, %s6183_s18  ;;  %v3838_v46 = vld [vmem:[#allocation2 + $0x271] sm:$0xff] }
 0x4f6   :  { %6075 = vmatmul.mubr.msk.bf16.gmra.mxu1 %vm274_vm1, %v4637_v16  ;;  %v3456_v16 = vld [vmem:[#allocation2 + $0x290] sm:$0xff] }
 0x4f7   :  { %v3963_v19 = vpop.permute.xlu1 %3962  ;;  %v3969_v0 = vpop.permute.xlu0 %3968 }
 0x4f8   :  { %4135 = vst.msk [vmem:[#allocation3 + $0xa0] sm:$0xff] %vm4114_vm11, %v3963_v19  ;;  %4138 = vst.msk [vmem:[#allocation3 + $0xb8] sm:$0xff] %vm4114_vm11, %v3969_v0  ;;  %v3840_v19 = vld [vmem:[#allocation2 + $0x289] sm:$0xff] }
 0x4f9   :  { %4000 = vrot.lane.b32.xlu1 %v3833_v41, %s6182_s13  ;;  %4383 = vrot.lane.b32.xlu0 %v4217_v8, %s6183_s18 }
 0x4fb   :  { %v3967_v22 = vpop.permute.xlu1 %3966  ;;  %v4350_v2 = vpop.permute.xlu0 %4349 }
 0x4fc   :  { %4137 = vst.msk [vmem:[#allocation3 + $0xb0] sm:$0xff] %vm4114_vm11, %v3967_v22 }
 0x4fd   :  { %4521 = vst.msk [vmem:[#allocation3 + $0xa8] sm:$0xff] %vm4499_vm12, %v4350_v2  ;;  %4381 = vrot.lane.b32.xlu1 %v3062_v37, %s6183_s18  ;;  %3231 = vrot.lane.b32.xlu0 %v4217_v8, %s6180_s11  ;;  %v3839_v8 = vld [vmem:[#allocation2 + $0x279] sm:$0xff] }
 0x4ff   :  { %v4348_v51 = vpop.permute.xlu1 %4347  ;;  %v4354_v61 = vpop.permute.xlu0 %4353 }
 0x500   :  { %4520 = vst.msk [vmem:[#allocation3 + $0xa0] sm:$0xff] %vm4499_vm12, %v4348_v51  ;;  %4523 = vst.msk [vmem:[#allocation3 + $0xb8] sm:$0xff] %vm4499_vm12, %v4354_v61 }
 0x501   :  { %4385 = vrot.lane.b32.xlu1 %v4218_v5, %s6183_s18  ;;  %3235 = vrot.lane.b32.xlu0 %v3065_v52, %s6180_s11 }
 0x503   :  { %v4352_v44 = vpop.permute.xlu1 %4351  ;;  %v3588_v4 = vpop.permute.xlu0 %3587 }
 0x504   :  { %4522 = vst.msk [vmem:[#allocation3 + $0xb0] sm:$0xff] %vm4499_vm12, %v4352_v44  ;;  %v4585_v28 = vld [vmem:[#allocation3 + $0xa8] sm:$0xff] }
 0x505   :  { %3755 = vst.msk [vmem:[#allocation3 + $0xc8] sm:$0xff] %vm3729_vm10, %v3588_v4  ;;  %3233 = vrot.lane.b32.xlu1 %v4218_v5, %s6180_s11  ;;  %3617 = vrot.lane.b32.xlu0 %v3449_v55, %s6181_s12  ;;  %v3841_v5 = vld [vmem:[#allocation2 + $0x291] sm:$0xff] }
 0x506   :  { %v4225_v44 = vld [vmem:[#allocation2 + $0x28a] sm:$0xff] }
 0x507   :  { %v3586_v56 = vpop.permute.xlu1 %3585  ;;  %v4584_v23 = vld [vmem:[#allocation3 + $0xa0] sm:$0xff]  ;;  %v3592_v27 = vpop.permute.xlu0 %3591  ;;  %v4587_v9 = vld [vmem:[#allocation3 + $0xb8] sm:$0xff] }
 0x508   :  { %3754 = vst.msk [vmem:[#allocation3 + $0xc0] sm:$0xff] %vm3729_vm10, %v3586_v56  ;;  %v4638_v36 = vpack.c.bf16 %v4585_v28, %v4584_v23  ;;  %3757 = vst.msk [vmem:[#allocation3 + $0xd8] sm:$0xff] %vm3729_vm10, %v3592_v27 }
 0x509   :  { %3237 = vrot.lane.b32.xlu1 %v3066_v20, %s6180_s11  ;;  %3621 = vrot.lane.b32.xlu0 %v3451_v14, %s6181_s12  ;;  %v3073_v14 = vld [vmem:[#allocation2 + $0x2a2] sm:$0xff] }
 0x50a   :  { %6078 = vmatprep.mubr.msk.bf16.mxu1 %vm274_vm1, %v4638_v36  ;;  %v4226_v36 = vld [vmem:[#allocation2 + $0x292] sm:$0xff] }
 0x50b   :  { %v3590_v30 = vpop.permute.xlu1 %3589  ;;  %v4586_v49 = vld [vmem:[#allocation3 + $0xb0] sm:$0xff]  ;;  %v3973_v24 = vpop.permute.xlu0 %3972 }
 0x50c   :  { %3756 = vst.msk [vmem:[#allocation3 + $0xd0] sm:$0xff] %vm3729_vm10, %v3590_v30  ;;  %v4639_v3 = vpack.c.bf16 %v4587_v9, %v4586_v49  ;;  %v3457_v9 = vld [vmem:[#allocation2 + $0x2a0] sm:$0xff] }
 0x50d   :  { %4140 = vst.msk [vmem:[#allocation3 + $0xc8] sm:$0xff] %vm4114_vm11, %v3973_v24  ;;  %3619 = vrot.lane.b32.xlu1 %v3450_v26, %s6181_s12  ;;  %4002 = vrot.lane.b32.xlu0 %v3834_v33, %s6182_s13  ;;  %v3459_v33 = vld [vmem:[#allocation2 + $0x2b8] sm:$0xff] }
 0x50e   :  { %6079 = vmatmul.mubr.msk.bf16.gmra.mxu1 %vm274_vm1, %v4639_v3  ;;  %v3074_v3 = vld [vmem:[#allocation2 + $0x2aa] sm:$0xff] }
 0x50f   :  { %v3971_v31 = vpop.permute.xlu1 %3970  ;;  %v3977_v32 = vpop.permute.xlu0 %3976 }
 0x510   :  { %4139 = vst.msk [vmem:[#allocation3 + $0xc0] sm:$0xff] %vm4114_vm11, %v3971_v31  ;;  %4142 = vst.msk [vmem:[#allocation3 + $0xd8] sm:$0xff] %vm4114_vm11, %v3977_v32 }
 0x511   :  { %3623 = vrot.lane.b32.xlu1 %v3452_v34, %s6181_s12  ;;  %4006 = vrot.lane.b32.xlu0 %v3836_v45, %s6182_s13  ;;  %v3458_v34 = vld [vmem:[#allocation2 + $0x2a8] sm:$0xff] }
 0x512   :  { %v3842_v45 = vld [vmem:[#allocation2 + $0x2a1] sm:$0xff] }
 0x513   :  { %v3975_v40 = vpop.permute.xlu1 %3974  ;;  %v4358_v54 = vpop.permute.xlu0 %4357 }
 0x514   :  { %4141 = vst.msk [vmem:[#allocation3 + $0xd0] sm:$0xff] %vm4114_vm11, %v3975_v40 }
 0x515   :  { %4525 = vst.msk [vmem:[#allocation3 + $0xc8] sm:$0xff] %vm4499_vm12, %v4358_v54  ;;  %4004 = vrot.lane.b32.xlu1 %v3835_v62, %s6182_s13  ;;  %4387 = vrot.lane.b32.xlu0 %v3065_v52, %s6183_s18  ;;  %v3460_v62 = vld [vmem:[#allocation2 + $0x2c0] sm:$0xff] }
 0x517   :  { %v4356_v7 = vpop.permute.xlu1 %4355  ;;  %v4362_v12 = vpop.permute.xlu0 %4361 }
 0x518   :  { %4524 = vst.msk [vmem:[#allocation3 + $0xc0] sm:$0xff] %vm4499_vm12, %v4356_v7  ;;  %4527 = vst.msk [vmem:[#allocation3 + $0xd8] sm:$0xff] %vm4499_vm12, %v4362_v12  ;;  %v3844_v7 = vld [vmem:[#allocation2 + $0x2b9] sm:$0xff] }
 0x519   :  { %4008 = vrot.lane.b32.xlu1 %v3837_v57, %s6182_s13  ;;  %4391 = vrot.lane.b32.xlu0 %v4221_v59, %s6183_s18 }
 0x51b   :  { %v4360_v58 = vpop.permute.xlu1 %4359  ;;  %v3596_v50 = vpop.permute.xlu0 %3595 }
 0x51c   :  { %4526 = vst.msk [vmem:[#allocation3 + $0xd0] sm:$0xff] %vm4499_vm12, %v4360_v58  ;;  %v4589_v1 = vld [vmem:[#allocation3 + $0xc8] sm:$0xff] }
 0x51d   :  { %3759 = vst.msk [vmem:[#allocation3 + $0xe8] sm:$0xff] %vm3729_vm10, %v3596_v50  ;;  %4389 = vrot.lane.b32.xlu1 %v3066_v20, %s6183_s18  ;;  %3239 = vrot.lane.b32.xlu0 %v4221_v59, %s6180_s11  ;;  %v3843_v59 = vld [vmem:[#allocation2 + $0x2a9] sm:$0xff] }
 0x51f   :  { %v3594_v15 = vpop.permute.xlu1 %3593  ;;  %v4588_v35 = vld [vmem:[#allocation3 + $0xc0] sm:$0xff]  ;;  %v3600_v39 = vpop.permute.xlu0 %3599  ;;  %v4591_v48 = vld [vmem:[#allocation3 + $0xd8] sm:$0xff] }
 0x520   :  { %3758 = vst.msk [vmem:[#allocation3 + $0xe0] sm:$0xff] %vm3729_vm10, %v3594_v15  ;;  %v4640_v37 = vpack.c.bf16 %v4589_v1, %v4588_v35  ;;  %3761 = vst.msk [vmem:[#allocation3 + $0xf8] sm:$0xff] %vm3729_vm10, %v3600_v39  ;;  %v3845_v1 = vld [vmem:[#allocation2 + $0x2c1] sm:$0xff] }
 0x521   :  { %4393 = vrot.lane.b32.xlu1 %v4222_v43, %s6183_s18  ;;  %3243 = vrot.lane.b32.xlu0 %v3069_v17, %s6180_s11 }
 0x522   :  { %6082 = vmatprep.mubr.msk.bf16.mxu1 %vm274_vm1, %v4640_v37 }
 0x523   :  { %v3598_v42 = vpop.permute.xlu1 %3597  ;;  %v4590_v29 = vld [vmem:[#allocation3 + $0xd0] sm:$0xff]  ;;  %v3981_v47 = vpop.permute.xlu0 %3980 }
 0x524   :  { %3760 = vst.msk [vmem:[#allocation3 + $0xf0] sm:$0xff] %vm3729_vm10, %v3598_v42  ;;  %v4641_v13 = vpack.c.bf16 %v4591_v48, %v4590_v29 }
 0x525   :  { %4144 = vst.msk [vmem:[#allocation3 + $0xe8] sm:$0xff] %vm4114_vm11, %v3981_v47  ;;  %3241 = vrot.lane.b32.xlu1 %v4222_v43, %s6180_s11  ;;  %3625 = vrot.lane.b32.xlu0 %v3453_v38, %s6181_s12  ;;  %v4229_v43 = vld [vmem:[#allocation2 + $0x2ba] sm:$0xff]  ;;  %v4230_v38 = vld [vmem:[#allocation2 + $0x2c2] sm:$0xff] }
 0x526   :  { %6083 = vmatmul.mubr.msk.bf16.gmra.mxu1 %vm274_vm1, %v4641_v13 }
 0x527   :  { %v3979_v18 = vpop.permute.xlu1 %3978  ;;  %v3985_v21 = vpop.permute.xlu0 %3984 }
 0x528   :  { %4143 = vst.msk [vmem:[#allocation3 + $0xe0] sm:$0xff] %vm4114_vm11, %v3979_v18  ;;  %4146 = vst.msk [vmem:[#allocation3 + $0xf8] sm:$0xff] %vm4114_vm11, %v3985_v21  ;;  %v3077_v18 = vld [vmem:[#allocation2 + $0x2d2] sm:$0xff] }
 0x529   :  { %3245 = vrot.lane.b32.xlu1 %v3070_v60, %s6180_s11  ;;  %3629 = vrot.lane.b32.xlu0 %v3455_v11, %s6181_s12  ;;  %v3461_v11 = vld [vmem:[#allocation2 + $0x2d0] sm:$0xff] }
 0x52b   :  { %v3983_v25 = vpop.permute.xlu1 %3982  ;;  %v4366_v6 = vpop.permute.xlu0 %4365 }
 0x52c   :  { %4145 = vst.msk [vmem:[#allocation3 + $0xf0] sm:$0xff] %vm4114_vm11, %v3983_v25 }
 0x52d   :  { %4529 = vst.msk [vmem:[#allocation3 + $0xe8] sm:$0xff] %vm4499_vm12, %v4366_v6  ;;  %3627 = vrot.lane.b32.xlu1 %v3454_v10, %s6181_s12  ;;  %4010 = vrot.lane.b32.xlu0 %v3838_v46, %s6182_s13  ;;  %v3078_v10 = vld [vmem:[#allocation2 + $0x2da] sm:$0xff]  ;;  %v3463_v46 = vld [vmem:[#allocation2 + $0x2e8] sm:$0xff] }
 0x52f   :  { %v4364_v53 = vpop.permute.xlu1 %4363  ;;  %v4370_v63 = vpop.permute.xlu0 %4369 }
 0x530   :  { %4528 = vst.msk [vmem:[#allocation3 + $0xe0] sm:$0xff] %vm4499_vm12, %v4364_v53  ;;  %4531 = vst.msk [vmem:[#allocation3 + $0xf8] sm:$0xff] %vm4499_vm12, %v4370_v63 }
 0x531   :  { %3631 = vrot.lane.b32.xlu1 %v3456_v16, %s6181_s12  ;;  %4014 = vrot.lane.b32.xlu0 %v3840_v19, %s6182_s13  ;;  %v3462_v16 = vld [vmem:[#allocation2 + $0x2d8] sm:$0xff] }
 0x532   :  { %v3846_v19 = vld [vmem:[#allocation2 + $0x2d1] sm:$0xff] }
 0x533   :  { %v4368_v0 = vpop.permute.xlu1 %4367  ;;  %v3220_v41 = vpop.permute.xlu0 %3219 }
 0x534   :  { %4530 = vst.msk [vmem:[#allocation3 + $0xf0] sm:$0xff] %vm4499_vm12, %v4368_v0  ;;  %v4593_v51 = vld [vmem:[#allocation3 + $0xe8] sm:$0xff] }
 0x535   :  { %3378 = vst.msk [vmem:[#allocation3 + $0x110] sm:$0xff] %vm3343_vm9, %v3220_v41  ;;  %4012 = vrot.lane.b32.xlu1 %v3839_v8, %s6182_s13  ;;  %4395 = vrot.lane.b32.xlu0 %v3069_v17, %s6183_s18  ;;  %v3464_v8 = vld [vmem:[#allocation2 + $0x2f0] sm:$0xff] }
 0x537   :  { %v3218_v22 = vpop.permute.xlu1 %3217  ;;  %v4592_v2 = vld [vmem:[#allocation3 + $0xe0] sm:$0xff]  ;;  %v3602_v61 = vpop.permute.xlu0 %3601  ;;  %v4595_v4 = vld [vmem:[#allocation3 + $0xf8] sm:$0xff] }
 0x538   :  { %3377 = vst.msk [vmem:[#allocation3 + $0x108] sm:$0xff] %vm3343_vm9, %v3218_v22  ;;  %v4642_v52 = vpack.c.bf16 %v4593_v51, %v4592_v2  ;;  %v3848_v22 = vld [vmem:[#allocation2 + $0x2e9] sm:$0xff] }
 0x539   :  { %3762 = vst.msk [vmem:[#allocation3 + $0x100] sm:$0xff] %vm3729_vm10, %v3602_v61  ;;  %4016 = vrot.lane.b32.xlu1 %v3841_v5, %s6182_s13  ;;  %4399 = vrot.lane.b32.xlu0 %v4225_v44, %s6183_s18  ;;  %v3847_v61 = vld [vmem:[#allocation2 + $0x2d9] sm:$0xff] }
 0x53a   :  { %6086 = vmatprep.mubr.msk.bf16.mxu1 %vm274_vm1, %v4642_v52 }
 0x53b   :  { %v3222_v55 = vpop.permute.xlu1 %3221  ;;  %v4594_v56 = vld [vmem:[#allocation3 + $0xf0] sm:$0xff]  ;;  %v3606_v23 = vpop.permute.xlu0 %3605 }
 0x53c   :  { %3379 = vst.msk [vmem:[#allocation3 + $0x118] sm:$0xff] %vm3343_vm9, %v3222_v55  ;;  %v4643_v28 = vpack.c.bf16 %v4595_v4, %v4594_v56  ;;  %v3849_v55 = vld [vmem:[#allocation2 + $0x2f1] sm:$0xff] }
 0x53d   :  { %3764 = vst.msk [vmem:[#allocation3 + $0x110] sm:$0xff] %vm3729_vm10, %v3606_v23  ;;  %4397 = vrot.lane.b32.xlu1 %v3070_v60, %s6183_s18  ;;  %3247 = vrot.lane.b32.xlu0 %v4225_v44, %s6180_s11  ;;  %v4233_v23 = vld [vmem:[#allocation2 + $0x2ea] sm:$0xff] }
 0x53e   :  { %6087 = vmatmul.mubr.msk.bf16.gmra.mxu1 %vm274_vm1, %v4643_v28 }
 0x53f   :  { %v3604_v27 = vpop.permute.xlu1 %3603  ;;  %v3987_v20 = vpop.permute.xlu0 %3986 }
 0x540   :  { %3763 = vst.msk [vmem:[#allocation3 + $0x108] sm:$0xff] %vm3729_vm10, %v3604_v27 }
 0x541   :  { %4147 = vst.msk [vmem:[#allocation3 + $0x100] sm:$0xff] %vm4114_vm11, %v3987_v20  ;;  %4401 = vrot.lane.b32.xlu1 %v4226_v36, %s6183_s18  ;;  %3251 = vrot.lane.b32.xlu0 %v3073_v14, %s6180_s11 }
 0x543   :  { %v3608_v30 = vpop.permute.xlu1 %3607  ;;  %v3991_v49 = vpop.permute.xlu0 %3990 }
 0x544   :  { %3765 = vst.msk [vmem:[#allocation3 + $0x118] sm:$0xff] %vm3729_vm10, %v3608_v30 }
 0x545   :  { %4149 = vst.msk [vmem:[#allocation3 + $0x110] sm:$0xff] %vm4114_vm11, %v3991_v49  ;;  %3249 = vrot.lane.b32.xlu1 %v4226_v36, %s6180_s11  ;;  %3633 = vrot.lane.b32.xlu0 %v3457_v9, %s6181_s12  ;;  %v4234_v9 = vld [vmem:[#allocation2 + $0x2f2] sm:$0xff] }
 0x547   :  { %v3989_v24 = vpop.permute.xlu1 %3988  ;;  %v4372_v26 = vpop.permute.xlu0 %4371 }
 0x548   :  { %4148 = vst.msk [vmem:[#allocation3 + $0x108] sm:$0xff] %vm4114_vm11, %v3989_v24  ;;  %v3081_v24 = vld [vmem:[#allocation2 + $0x302] sm:$0xff] }
 0x549   :  { %4532 = vst.msk [vmem:[#allocation3 + $0x100] sm:$0xff] %vm4499_vm12, %v4372_v26  ;;  %3253 = vrot.lane.b32.xlu1 %v3074_v3, %s6180_s11  ;;  %3637 = vrot.lane.b32.xlu0 %v3459_v33, %s6181_s12  ;;  %v3465_v33 = vld [vmem:[#allocation2 + $0x300] sm:$0xff] }
 0x54b   :  { %v3993_v31 = vpop.permute.xlu1 %3992  ;;  %v4376_v32 = vpop.permute.xlu0 %4375 }
 0x54c   :  { %4150 = vst.msk [vmem:[#allocation3 + $0x118] sm:$0xff] %vm4114_vm11, %v3993_v31 }
 0x54d   :  { %4534 = vst.msk [vmem:[#allocation3 + $0x110] sm:$0xff] %vm4499_vm12, %v4376_v32  ;;  %3635 = vrot.lane.b32.xlu1 %v3458_v34, %s6181_s12  ;;  %4018 = vrot.lane.b32.xlu0 %v3842_v45, %s6182_s13  ;;  %v3082_v34 = vld [vmem:[#allocation2 + $0x30a] sm:$0xff]  ;;  %v3467_v45 = vld [vmem:[#allocation2 + $0x318] sm:$0xff] }
 0x54f   :  { %v4374_v40 = vpop.permute.xlu1 %4373  ;;  %v3224_v54 = vpop.permute.xlu0 %3223 }
 0x550   :  { %4533 = vst.msk [vmem:[#allocation3 + $0x108] sm:$0xff] %vm4499_vm12, %v4374_v40  ;;  %v4596_v50 = vld [vmem:[#allocation3 + $0x100] sm:$0xff] }
 0x551   :  { %3380 = vst.msk [vmem:[#allocation3 + $0x120] sm:$0xff] %vm3343_vm9, %v3224_v54  ;;  %3639 = vrot.lane.b32.xlu1 %v3460_v62, %s6181_s12  ;;  %4022 = vrot.lane.b32.xlu0 %v3844_v7, %s6182_s13  ;;  %v3466_v62 = vld [vmem:[#allocation2 + $0x308] sm:$0xff] }
 0x552   :  { %v3850_v7 = vld [vmem:[#allocation2 + $0x301] sm:$0xff] }
 0x553   :  { %v4378_v12 = vpop.permute.xlu1 %4377  ;;  %v3228_v57 = vpop.permute.xlu0 %3227 }
 0x554   :  { %4535 = vst.msk [vmem:[#allocation3 + $0x118] sm:$0xff] %vm4499_vm12, %v4378_v12  ;;  %v4598_v17 = vld [vmem:[#allocation3 + $0x110] sm:$0xff] }
 0x555   :  { %3382 = vst.msk [vmem:[#allocation3 + $0x130] sm:$0xff] %vm3343_vm9, %v3228_v57  ;;  %4020 = vrot.lane.b32.xlu1 %v3843_v59, %s6182_s13  ;;  %4403 = vrot.lane.b32.xlu0 %v3073_v14, %s6183_s18  ;;  %v3468_v59 = vld [vmem:[#allocation2 + $0x320] sm:$0xff] }
 0x557   :  { %v3226_v58 = vpop.permute.xlu1 %3225  ;;  %v4597_v15 = vld [vmem:[#allocation3 + $0x108] sm:$0xff]  ;;  %v3610_v35 = vpop.permute.xlu0 %3609 }
 0x558   :  { %3381 = vst.msk [vmem:[#allocation3 + $0x128] sm:$0xff] %vm3343_vm9, %v3226_v58  ;;  %v4644_v39 = vpack.c.bf16 %v4597_v15, %v4596_v50  ;;  %v3852_v58 = vld [vmem:[#allocation2 + $0x319] sm:$0xff] }
 0x559   :  { %3766 = vst.msk [vmem:[#allocation3 + $0x120] sm:$0xff] %vm3729_vm10, %v3610_v35  ;;  %4024 = vrot.lane.b32.xlu1 %v3845_v1, %s6182_s13  ;;  %4407 = vrot.lane.b32.xlu0 %v4229_v43, %s6183_s18  ;;  %v3851_v35 = vld [vmem:[#allocation2 + $0x309] sm:$0xff] }
 0x55a   :  { %6090 = vmatprep.mubr.msk.bf16.mxu1 %vm274_vm1, %v4644_v39 }
 0x55b   :  { %v3230_v37 = vpop.permute.xlu1 %3229  ;;  %v4599_v42 = vld [vmem:[#allocation3 + $0x118] sm:$0xff]  ;;  %v3614_v29 = vpop.permute.xlu0 %3613 }
 0x55c   :  { %3383 = vst.msk [vmem:[#allocation3 + $0x138] sm:$0xff] %vm3343_vm9, %v3230_v37  ;;  %v4645_v48 = vpack.c.bf16 %v4599_v42, %v4598_v17  ;;  %v3853_v17 = vld [vmem:[#allocation2 + $0x321] sm:$0xff] }
 0x55d   :  { %3768 = vst.msk [vmem:[#allocation3 + $0x130] sm:$0xff] %vm3729_vm10, %v3614_v29  ;;  %4405 = vrot.lane.b32.xlu1 %v3074_v3, %s6183_s18  ;;  %3255 = vrot.lane.b32.xlu0 %v4229_v43, %s6180_s11  ;;  %v4237_v29 = vld [vmem:[#allocation2 + $0x31a] sm:$0xff] }
 0x55e   :  { %6091 = vmatmul.mubr.msk.bf16.gmra.mxu1 %vm274_vm1, %v4645_v48 }
 0x55f   :  { %v3612_v47 = vpop.permute.xlu1 %3611  ;;  %v3995_v13 = vpop.permute.xlu0 %3994 }
 0x560   :  { %3767 = vst.msk [vmem:[#allocation3 + $0x128] sm:$0xff] %vm3729_vm10, %v3612_v47 }
 0x561   :  { %4151 = vst.msk [vmem:[#allocation3 + $0x120] sm:$0xff] %vm4114_vm11, %v3995_v13  ;;  %4409 = vrot.lane.b32.xlu1 %v4230_v38, %s6183_s18  ;;  %3259 = vrot.lane.b32.xlu0 %v3077_v18, %s6180_s11 }
 0x563   :  { %v3616_v21 = vpop.permute.xlu1 %3615  ;;  %v3999_v60 = vpop.permute.xlu0 %3998 }
 0x564   :  { %3769 = vst.msk [vmem:[#allocation3 + $0x138] sm:$0xff] %vm3729_vm10, %v3616_v21 }
 0x565   :  { %4153 = vst.msk [vmem:[#allocation3 + $0x130] sm:$0xff] %vm4114_vm11, %v3999_v60  ;;  %3257 = vrot.lane.b32.xlu1 %v4230_v38, %s6180_s11  ;;  %3641 = vrot.lane.b32.xlu0 %v3461_v11, %s6181_s12  ;;  %v4238_v11 = vld [vmem:[#allocation2 + $0x322] sm:$0xff] }
 0x567   :  { %v3997_v25 = vpop.permute.xlu1 %3996  ;;  %v4380_v6 = vpop.permute.xlu0 %4379 }
 0x568   :  { %4152 = vst.msk [vmem:[#allocation3 + $0x128] sm:$0xff] %vm4114_vm11, %v3997_v25  ;;  %v3085_v25 = vld [vmem:[#allocation2 + $0x332] sm:$0xff] }
 0x569   :  { %4536 = vst.msk [vmem:[#allocation3 + $0x120] sm:$0xff] %vm4499_vm12, %v4380_v6  ;;  %3261 = vrot.lane.b32.xlu1 %v3078_v10, %s6180_s11  ;;  %3645 = vrot.lane.b32.xlu0 %v3463_v46, %s6181_s12  ;;  %v3469_v46 = vld [vmem:[#allocation2 + $0x330] sm:$0xff] }
 0x56b   :  { %v4001_v53 = vpop.permute.xlu1 %4000  ;;  %v4384_v63 = vpop.permute.xlu0 %4383 }
 0x56c   :  { %4154 = vst.msk [vmem:[#allocation3 + $0x138] sm:$0xff] %vm4114_vm11, %v4001_v53 }
 0x56d   :  { %4538 = vst.msk [vmem:[#allocation3 + $0x130] sm:$0xff] %vm4499_vm12, %v4384_v63  ;;  %3643 = vrot.lane.b32.xlu1 %v3462_v16, %s6181_s12  ;;  %4026 = vrot.lane.b32.xlu0 %v3846_v19, %s6182_s13  ;;  %v3471_v63 = vld [vmem:[#allocation2 + $0x348] sm:$0xff]  ;;  %v3086_v19 = vld [vmem:[#allocation2 + $0x33a] sm:$0xff] }
 0x56f   :  { %v4382_v0 = vpop.permute.xlu1 %4381  ;;  %v3232_v41 = vpop.permute.xlu0 %3231 }
 0x570   :  { %4537 = vst.msk [vmem:[#allocation3 + $0x128] sm:$0xff] %vm4499_vm12, %v4382_v0  ;;  %v4600_v52 = vld [vmem:[#allocation3 + $0x120] sm:$0xff] }
 0x571   :  { %3384 = vst.msk [vmem:[#allocation3 + $0x140] sm:$0xff] %vm3343_vm9, %v3232_v41  ;;  %3647 = vrot.lane.b32.xlu1 %v3464_v8, %s6181_s12  ;;  %4030 = vrot.lane.b32.xlu0 %v3848_v22, %s6182_s13  ;;  %v3470_v8 = vld [vmem:[#allocation2 + $0x338] sm:$0xff] }
 0x572   :  { %v3854_v22 = vld [vmem:[#allocation2 + $0x331] sm:$0xff] }
 0x573   :  { %v4386_v2 = vpop.permute.xlu1 %4385  ;;  %v3236_v51 = vpop.permute.xlu0 %3235 }
 0x574   :  { %4539 = vst.msk [vmem:[#allocation3 + $0x138] sm:$0xff] %vm4499_vm12, %v4386_v2  ;;  %v4602_v27 = vld [vmem:[#allocation3 + $0x130] sm:$0xff] }
 0x575   :  { %3386 = vst.msk [vmem:[#allocation3 + $0x150] sm:$0xff] %vm3343_vm9, %v3236_v51  ;;  %4028 = vrot.lane.b32.xlu1 %v3847_v61, %s6182_s13  ;;  %4411 = vrot.lane.b32.xlu0 %v3077_v18, %s6183_s18  ;;  %v3472_v2 = vld [vmem:[#allocation2 + $0x350] sm:$0xff] }
 0x576   :  { %v3856_v61 = vld [vmem:[#allocation2 + $0x349] sm:$0xff] }
 0x577   :  { %v3234_v5 = vpop.permute.xlu1 %3233  ;;  %v4601_v44 = vld [vmem:[#allocation3 + $0x128] sm:$0xff]  ;;  %v3618_v4 = vpop.permute.xlu0 %3617 }
 0x578   :  { %3385 = vst.msk [vmem:[#allocation3 + $0x148] sm:$0xff] %vm3343_vm9, %v3234_v5  ;;  %v4646_v56 = vpack.c.bf16 %v4601_v44, %v4600_v52 }
 0x579   :  { %3770 = vst.msk [vmem:[#allocation3 + $0x140] sm:$0xff] %vm3729_vm10, %v3618_v4  ;;  %4032 = vrot.lane.b32.xlu1 %v3849_v55, %s6182_s13  ;;  %4415 = vrot.lane.b32.xlu0 %v4233_v23, %s6183_s18  ;;  %v3855_v4 = vld [vmem:[#allocation2 + $0x339] sm:$0xff]  ;;  %v3857_v55 = vld [vmem:[#allocation2 + $0x351] sm:$0xff] }
 0x57a   :  { %6094 = vmatprep.mubr.msk.bf16.mxu1 %vm274_vm1, %v4646_v56 }
 0x57b   :  { %v3238_v28 = vpop.permute.xlu1 %3237  ;;  %v4603_v20 = vld [vmem:[#allocation3 + $0x138] sm:$0xff]  ;;  %v3622_v36 = vpop.permute.xlu0 %3621 }
 0x57c   :  { %3387 = vst.msk [vmem:[#allocation3 + $0x158] sm:$0xff] %vm3343_vm9, %v3238_v28  ;;  %v4647_v14 = vpack.c.bf16 %v4603_v20, %v4602_v27  ;;  %v4241_v27 = vld [vmem:[#allocation2 + $0x34a] sm:$0xff] }
 0x57d   :  { %3772 = vst.msk [vmem:[#allocation3 + $0x150] sm:$0xff] %vm3729_vm10, %v3622_v36  ;;  %4413 = vrot.lane.b32.xlu1 %v3078_v10, %s6183_s18  ;;  %3263 = vrot.lane.b32.xlu0 %v4233_v23, %s6180_s11 }
 0x57e   :  { %6095 = vmatmul.mubr.msk.bf16.gmra.mxu1 %vm274_vm1, %v4647_v14 }
 0x57f   :  { %v3620_v30 = vpop.permute.xlu1 %3619  ;;  %v4003_v49 = vpop.permute.xlu0 %4002 }
 0x580   :  { %3771 = vst.msk [vmem:[#allocation3 + $0x148] sm:$0xff] %vm3729_vm10, %v3620_v30 }
 0x581   :  { %4155 = vst.msk [vmem:[#allocation3 + $0x140] sm:$0xff] %vm4114_vm11, %v4003_v49  ;;  %4417 = vrot.lane.b32.xlu1 %v4234_v9, %s6183_s18  ;;  %3267 = vrot.lane.b32.xlu0 %v3081_v24, %s6180_s11 }
 0x583   :  { %v3624_v26 = vpop.permute.xlu1 %3623  ;;  %v4007_v3 = vpop.permute.xlu0 %4006 }
 0x584   :  { %3773 = vst.msk [vmem:[#allocation3 + $0x158] sm:$0xff] %vm3729_vm10, %v3624_v26  ;;  %v4242_v26 = vld [vmem:[#allocation2 + $0x352] sm:$0xff] }
 0x585   :  { %4157 = vst.msk [vmem:[#allocation3 + $0x150] sm:$0xff] %vm4114_vm11, %v4007_v3  ;;  %3265 = vrot.lane.b32.xlu1 %v4234_v9, %s6180_s11  ;;  %3649 = vrot.lane.b32.xlu0 %v3465_v33, %s6181_s12 }
 0x587   :  { %v4005_v31 = vpop.permute.xlu1 %4004  ;;  %v4388_v32 = vpop.permute.xlu0 %4387 }
 0x588   :  { %4156 = vst.msk [vmem:[#allocation3 + $0x148] sm:$0xff] %vm4114_vm11, %v4005_v31 }
 0x589   :  { %4540 = vst.msk [vmem:[#allocation3 + $0x140] sm:$0xff] %vm4499_vm12, %v4388_v32  ;;  %3269 = vrot.lane.b32.xlu1 %v3082_v34, %s6180_s11  ;;  %3653 = vrot.lane.b32.xlu0 %v3467_v45, %s6181_s12 }
 0x58b   :  { %v4009_v40 = vpop.permute.xlu1 %4008  ;;  %v4392_v54 = vpop.permute.xlu0 %4391 }
 0x58c   :  { %4158 = vst.msk [vmem:[#allocation3 + $0x158] sm:$0xff] %vm4114_vm11, %v4009_v40 }
 0x58d   :  { %4542 = vst.msk [vmem:[#allocation3 + $0x150] sm:$0xff] %vm4499_vm12, %v4392_v54  ;;  %3651 = vrot.lane.b32.xlu1 %v3466_v62, %s6181_s12  ;;  %4034 = vrot.lane.b32.xlu0 %v3850_v7, %s6182_s13 }
 0x58f   :  { %v4390_v12 = vpop.permute.xlu1 %4389  ;;  %v3240_v57 = vpop.permute.xlu0 %3239 }
 0x590   :  { %4541 = vst.msk [vmem:[#allocation3 + $0x148] sm:$0xff] %vm4499_vm12, %v4390_v12  ;;  %v4604_v39 = vld [vmem:[#allocation3 + $0x140] sm:$0xff] }
 0x591   :  { %3388 = vst.msk [vmem:[#allocation3 + $0x160] sm:$0xff] %vm3343_vm9, %v3240_v57  ;;  %3655 = vrot.lane.b32.xlu1 %v3468_v59, %s6181_s12  ;;  %4038 = vrot.lane.b32.xlu0 %v3852_v58, %s6182_s13 }
 0x593   :  { %v4394_v50 = vpop.permute.xlu1 %4393  ;;  %v3244_v15 = vpop.permute.xlu0 %3243 }
 0x594   :  { %4543 = vst.msk [vmem:[#allocation3 + $0x158] sm:$0xff] %vm4499_vm12, %v4394_v50  ;;  %v4606_v47 = vld [vmem:[#allocation3 + $0x150] sm:$0xff] }
 0x595   :  { %3390 = vst.msk [vmem:[#allocation3 + $0x170] sm:$0xff] %vm3343_vm9, %v3244_v15  ;;  %4036 = vrot.lane.b32.xlu1 %v3851_v35, %s6182_s13  ;;  %4419 = vrot.lane.b32.xlu0 %v3081_v24, %s6183_s18 }
 0x597   :  { %v3242_v1 = vpop.permute.xlu1 %3241  ;;  %v4605_v43 = vld [vmem:[#allocation3 + $0x148] sm:$0xff]  ;;  %v3626_v37 = vpop.permute.xlu0 %3625 }
 0x598   :  { %3389 = vst.msk [vmem:[#allocation3 + $0x168] sm:$0xff] %vm3343_vm9, %v3242_v1  ;;  %v4648_v42 = vpack.c.bf16 %v4605_v43, %v4604_v39 }
 0x599   :  { %3774 = vst.msk [vmem:[#allocation3 + $0x160] sm:$0xff] %vm3729_vm10, %v3626_v37  ;;  %4040 = vrot.lane.b32.xlu1 %v3853_v17, %s6182_s13  ;;  %4423 = vrot.lane.b32.xlu0 %v4237_v29, %s6183_s18 }
 0x59a   :  { %6098 = vmatprep.mubr.msk.bf16.mxu1 %vm274_vm1, %v4648_v42 }
 0x59b   :  { %v3246_v48 = vpop.permute.xlu1 %3245  ;;  %v4607_v13 = vld [vmem:[#allocation3 + $0x158] sm:$0xff]  ;;  %v3630_v38 = vpop.permute.xlu0 %3629 }
 0x59c   :  { %3391 = vst.msk [vmem:[#allocation3 + $0x178] sm:$0xff] %vm3343_vm9, %v3246_v48  ;;  %v4649_v18 = vpack.c.bf16 %v4607_v13, %v4606_v47 }
 0x59d   :  { %3776 = vst.msk [vmem:[#allocation3 + $0x170] sm:$0xff] %vm3729_vm10, %v3630_v38  ;;  %4421 = vrot.lane.b32.xlu1 %v3082_v34, %s6183_s18  ;;  %3271 = vrot.lane.b32.xlu0 %v4237_v29, %s6180_s11 }
 0x59e   :  { %6099 = vmatmul.mubr.msk.bf16.gmra.mxu1 %vm274_vm1, %v4649_v18 }
 0x59f   :  { %v3628_v21 = vpop.permute.xlu1 %3627  ;;  %v4011_v60 = vpop.permute.xlu0 %4010 }
 0x5a0   :  { %3775 = vst.msk [vmem:[#allocation3 + $0x168] sm:$0xff] %vm3729_vm10, %v3628_v21 }
 0x5a1   :  { %4159 = vst.msk [vmem:[#allocation3 + $0x160] sm:$0xff] %vm4114_vm11, %v4011_v60  ;;  %4425 = vrot.lane.b32.xlu1 %v4238_v11, %s6183_s18  ;;  %3275 = vrot.lane.b32.xlu0 %v3085_v25, %s6180_s11 }
 0x5a3   :  { %v3632_v6 = vpop.permute.xlu1 %3631  ;;  %v4015_v10 = vpop.permute.xlu0 %4014 }
 0x5a4   :  { %3777 = vst.msk [vmem:[#allocation3 + $0x178] sm:$0xff] %vm3729_vm10, %v3632_v6 }
 0x5a5   :  { %4161 = vst.msk [vmem:[#allocation3 + $0x170] sm:$0xff] %vm4114_vm11, %v4015_v10  ;;  %3273 = vrot.lane.b32.xlu1 %v4238_v11, %s6180_s11  ;;  %3657 = vrot.lane.b32.xlu0 %v3469_v46, %s6181_s12 }
 0x5a7   :  { %v4013_v53 = vpop.permute.xlu1 %4012  ;;  %v4396_v16 = vpop.permute.xlu0 %4395 }
 0x5a8   :  { %4160 = vst.msk [vmem:[#allocation3 + $0x168] sm:$0xff] %vm4114_vm11, %v4013_v53 }
 0x5a9   :  { %4544 = vst.msk [vmem:[#allocation3 + $0x160] sm:$0xff] %vm4499_vm12, %v4396_v16  ;;  %3277 = vrot.lane.b32.xlu1 %v3086_v19, %s6180_s11  ;;  %3661 = vrot.lane.b32.xlu0 %v3471_v63, %s6181_s12 }
 0x5ab   :  { %v4017_v0 = vpop.permute.xlu1 %4016  ;;  %v4400_v41 = vpop.permute.xlu0 %4399 }
 0x5ac   :  { %4162 = vst.msk [vmem:[#allocation3 + $0x178] sm:$0xff] %vm4114_vm11, %v4017_v0 }
 0x5ad   :  { %4546 = vst.msk [vmem:[#allocation3 + $0x170] sm:$0xff] %vm4499_vm12, %v4400_v41  ;;  %3659 = vrot.lane.b32.xlu1 %v3470_v8, %s6181_s12  ;;  %4042 = vrot.lane.b32.xlu0 %v3854_v22, %s6182_s13 }
 0x5af   :  { %v4398_v51 = vpop.permute.xlu1 %4397  ;;  %v3248_v5 = vpop.permute.xlu0 %3247 }
 0x5b0   :  { %4545 = vst.msk [vmem:[#allocation3 + $0x168] sm:$0xff] %vm4499_vm12, %v4398_v51  ;;  %v4608_v23 = vld [vmem:[#allocation3 + $0x160] sm:$0xff] }
 0x5b1   :  { %3392 = vst.msk [vmem:[#allocation3 + $0x180] sm:$0xff] %vm3343_vm9, %v3248_v5  ;;  %3663 = vrot.lane.b32.xlu1 %v3472_v2, %s6181_s12  ;;  %4046 = vrot.lane.b32.xlu0 %v3856_v61, %s6182_s13 }
 0x5b3   :  { %v4402_v52 = vpop.permute.xlu1 %4401  ;;  %v3252_v44 = vpop.permute.xlu0 %3251 }
 0x5b4   :  { %4547 = vst.msk [vmem:[#allocation3 + $0x178] sm:$0xff] %vm4499_vm12, %v4402_v52  ;;  %v4610_v30 = vld [vmem:[#allocation3 + $0x170] sm:$0xff] }
 0x5b5   :  { %3394 = vst.msk [vmem:[#allocation3 + $0x190] sm:$0xff] %vm3343_vm9, %v3252_v44  ;;  %4044 = vrot.lane.b32.xlu1 %v3855_v4, %s6182_s13  ;;  %4427 = vrot.lane.b32.xlu0 %v3085_v25, %s6183_s18 }
 0x5b7   :  { %v3250_v56 = vpop.permute.xlu1 %3249  ;;  %v4609_v28 = vld [vmem:[#allocation3 + $0x168] sm:$0xff]  ;;  %v3634_v20 = vpop.permute.xlu0 %3633 }
 0x5b8   :  { %3393 = vst.msk [vmem:[#allocation3 + $0x188] sm:$0xff] %vm3343_vm9, %v3250_v56  ;;  %v4650_v36 = vpack.c.bf16 %v4609_v28, %v4608_v23 }
 0x5b9   :  { %3778 = vst.msk [vmem:[#allocation3 + $0x180] sm:$0xff] %vm3729_vm10, %v3634_v20  ;;  %4048 = vrot.lane.b32.xlu1 %v3857_v55, %s6182_s13  ;;  %4431 = vrot.lane.b32.xlu0 %v4241_v27, %s6183_s18 }
 0x5ba   :  { %6102 = vmatprep.mubr.msk.bf16.mxu1 %vm274_vm1, %v4650_v36 }
 0x5bb   :  { %v3254_v14 = vpop.permute.xlu1 %3253  ;;  %v4611_v49 = vld [vmem:[#allocation3 + $0x178] sm:$0xff]  ;;  %v3638_v9 = vpop.permute.xlu0 %3637 }
 0x5bc   :  { %3395 = vst.msk [vmem:[#allocation3 + $0x198] sm:$0xff] %vm3343_vm9, %v3254_v14  ;;  %v4651_v24 = vpack.c.bf16 %v4611_v49, %v4610_v30 }
 0x5bd   :  { %3780 = vst.msk [vmem:[#allocation3 + $0x190] sm:$0xff] %vm3729_vm10, %v3638_v9  ;;  %4429 = vrot.lane.b32.xlu1 %v3086_v19, %s6183_s18 }
 0x5be   :  { %6103 = vmatmul.mubr.msk.bf16.gmra.mxu1 %vm274_vm1, %v4651_v24 }
 0x5bf   :  { %v3636_v3 = vpop.permute.xlu1 %3635  ;;  %v4019_v33 = vpop.permute.xlu0 %4018 }
 0x5c0   :  { %3779 = vst.msk [vmem:[#allocation3 + $0x188] sm:$0xff] %vm3729_vm10, %v3636_v3 }
 0x5c1   :  { %4163 = vst.msk [vmem:[#allocation3 + $0x180] sm:$0xff] %vm4114_vm11, %v4019_v33  ;;  %4433 = vrot.lane.b32.xlu1 %v4242_v26, %s6183_s18 }
 0x5c3   :  { %v3640_v31 = vpop.permute.xlu1 %3639  ;;  %v4023_v32 = vpop.permute.xlu0 %4022 }
 0x5c4   :  { %3781 = vst.msk [vmem:[#allocation3 + $0x198] sm:$0xff] %vm3729_vm10, %v3640_v31 }
 0x5c5   :  { %4165 = vst.msk [vmem:[#allocation3 + $0x190] sm:$0xff] %vm4114_vm11, %v4023_v32 }
 0x5c7   :  { %v4021_v34 = vpop.permute.xlu1 %4020  ;;  %v4404_v45 = vpop.permute.xlu0 %4403 }
 0x5c8   :  { %4164 = vst.msk [vmem:[#allocation3 + $0x188] sm:$0xff] %vm4114_vm11, %v4021_v34  ;;  %v9181_v34 = vpop.f32.mrf.mxu1 }
 0x5c9   :  { %4548 = vst.msk [vmem:[#allocation3 + $0x180] sm:$0xff] %vm4499_vm12, %v4404_v45 }
 0x5cb   :  { %v4025_v40 = vpop.permute.xlu1 %4024  ;;  %v4408_v54 = vpop.permute.xlu0 %4407 }
 0x5cc   :  { %4166 = vst.msk [vmem:[#allocation3 + $0x198] sm:$0xff] %vm4114_vm11, %v4025_v40 }
 0x5cd   :  { %4550 = vst.msk [vmem:[#allocation3 + $0x190] sm:$0xff] %vm4499_vm12, %v4408_v54  ;;  %v9185_v54 = vpop.f32.mrf.mxu1 }
 0x5cf   :  { %v4406_v62 = vpop.permute.xlu1 %4405  ;;  %v3256_v7 = vpop.permute.xlu0 %3255 }
 0x5d0   :  { %4549 = vst.msk [vmem:[#allocation3 + $0x188] sm:$0xff] %vm4499_vm12, %v4406_v62  ;;  %v4612_v58 = vld [vmem:[#allocation3 + $0x180] sm:$0xff] }
 0x5d1   :  { %3396 = vst.msk [vmem:[#allocation3 + $0x1a0] sm:$0xff] %vm3343_vm9, %v3256_v7 }
 0x5d3   :  { %v4410_v12 = vpop.permute.xlu1 %4409  ;;  %v3260_v57 = vpop.permute.xlu0 %3259 }
 0x5d4   :  { %4551 = vst.msk [vmem:[#allocation3 + $0x198] sm:$0xff] %vm4499_vm12, %v4410_v12  ;;  %v4614_v39 = vld [vmem:[#allocation3 + $0x190] sm:$0xff]  ;;  %v9189_v12 = vpop.f32.mrf.mxu1 }
 0x5d5   :  { %3398 = vst.msk [vmem:[#allocation3 + $0x1b0] sm:$0xff] %vm3343_vm9, %v3260_v57 }
 0x5d7   :  { %v3258_v59 = vpop.permute.xlu1 %3257  ;;  %v4613_v50 = vld [vmem:[#allocation3 + $0x188] sm:$0xff]  ;;  %v3642_v15 = vpop.permute.xlu0 %3641 }
 0x5d8   :  { %3397 = vst.msk [vmem:[#allocation3 + $0x1a8] sm:$0xff] %vm3343_vm9, %v3258_v59  ;;  %v4652_v35 = vpack.c.bf16 %v4613_v50, %v4612_v58  ;;  %v9193_v58 = vpop.f32.mrf.mxu1 }
 0x5d9   :  { %3782 = vst.msk [vmem:[#allocation3 + $0x1a0] sm:$0xff] %vm3729_vm10, %v3642_v15 }
 0x5da   :  { %6106 = vmatprep.mubr.msk.bf16.mxu1 %vm274_vm1, %v4652_v35  ;;  %v9195_v15 = vpop.f32.mrf.mxu1 }
 0x5db   :  { %v3262_v1 = vpop.permute.xlu1 %3261  ;;  %v4615_v43 = vld [vmem:[#allocation3 + $0x198] sm:$0xff]  ;;  %v3646_v37 = vpop.permute.xlu0 %3645 }
 0x5dc   :  { %3399 = vst.msk [vmem:[#allocation3 + $0x1b8] sm:$0xff] %vm3343_vm9, %v3262_v1  ;;  %v4653_v17 = vpack.c.bf16 %v4615_v43, %v4614_v39  ;;  %v9198_v1 = vpop.f32.mrf.mxu1 }
 0x5dd   :  { %3784 = vst.msk [vmem:[#allocation3 + $0x1b0] sm:$0xff] %vm3729_vm10, %v3646_v37 }
 0x5de   :  { %6107 = vmatmul.mubr.msk.bf16.gmra.mxu1 %vm274_vm1, %v4653_v17  ;;  %v9201_v37 = vpop.f32.mrf.mxu1 }
 0x5df   :  { %v3644_v42 = vpop.permute.xlu1 %3643  ;;  %v4027_v29 = vpop.permute.xlu0 %4026 }
 0x5e0   :  { %3783 = vst.msk [vmem:[#allocation3 + $0x1a8] sm:$0xff] %vm3729_vm10, %v3644_v42 }
 0x5e1   :  { %4167 = vst.msk [vmem:[#allocation3 + $0x1a0] sm:$0xff] %vm4114_vm11, %v4027_v29 }
 0x5e3   :  { %v3648_v48 = vpop.permute.xlu1 %3647  ;;  %v4031_v47 = vpop.permute.xlu0 %4030 }
 0x5e4   :  { %3785 = vst.msk [vmem:[#allocation3 + $0x1b8] sm:$0xff] %vm3729_vm10, %v3648_v48  ;;  %v9204_v48 = vpop.f32.mrf.mxu1 }
 0x5e5   :  { %4169 = vst.msk [vmem:[#allocation3 + $0x1b0] sm:$0xff] %vm4114_vm11, %v4031_v47 }
 0x5e7   :  { %v4029_v13 = vpop.permute.xlu1 %4028  ;;  %v4412_v38 = vpop.permute.xlu0 %4411 }
 0x5e8   :  { %4168 = vst.msk [vmem:[#allocation3 + $0x1a8] sm:$0xff] %vm4114_vm11, %v4029_v13  ;;  %v9206_v13 = vpop.f32.mrf.mxu1 }
 0x5e9   :  { %4552 = vst.msk [vmem:[#allocation3 + $0x1a0] sm:$0xff] %vm4499_vm12, %v4412_v38 }
 0x5ea   :  { %v9209_v38 = vpop.f32.mrf.mxu1 }
 0x5eb   :  { %v4033_v18 = vpop.permute.xlu1 %4032  ;;  %v4416_v21 = vpop.permute.xlu0 %4415 }
 0x5ec   :  { %4170 = vst.msk [vmem:[#allocation3 + $0x1b8] sm:$0xff] %vm4114_vm11, %v4033_v18  ;;  %v9211_v18 = vpop.f32.mrf.mxu1 }
 0x5ed   :  { %4554 = vst.msk [vmem:[#allocation3 + $0x1b0] sm:$0xff] %vm4499_vm12, %v4416_v21 }
 0x5ee   :  { %v9213_v21 = vpop.f32.mrf.mxu1 }
 0x5ef   :  { %v4414_v60 = vpop.permute.xlu1 %4413  ;;  %v3264_v11 = vpop.permute.xlu0 %3263 }
 0x5f0   :  { %4553 = vst.msk [vmem:[#allocation3 + $0x1a8] sm:$0xff] %vm4499_vm12, %v4414_v60  ;;  %v4616_v46 = vld [vmem:[#allocation3 + $0x1a0] sm:$0xff]  ;;  %v9215_v60 = vpop.f32.mrf.mxu1 }
 0x5f1   :  { %3400 = vst.msk [vmem:[#allocation3 + $0x1c0] sm:$0xff] %vm3343_vm9, %v3264_v11  ;;  %v5202_v11 = vmul.f32 %v9193_v58, %v9193_v58 }
 0x5f3   :  { %v4418_v25 = vpop.permute.xlu1 %4417  ;;  %v3268_v6 = vpop.permute.xlu0 %3267 }
 0x5f4   :  { %4555 = vst.msk [vmem:[#allocation3 + $0x1b8] sm:$0xff] %vm4499_vm12, %v4418_v25  ;;  %v4618_v0 = vld [vmem:[#allocation3 + $0x1b0] sm:$0xff]  ;;  %v5201_v25 = vmul.f32 %v9185_v54, %v9185_v54 }
 0x5f5   :  { %3402 = vst.msk [vmem:[#allocation3 + $0x1d0] sm:$0xff] %vm3343_vm9, %v3268_v6  ;;  %v5069_v6 = vsel %vm664_vm2, %v9193_v58, 0.0 }
 0x5f7   :  { %v3266_v10 = vpop.permute.xlu1 %3265  ;;  %v4617_v53 = vld [vmem:[#allocation3 + $0x1a8] sm:$0xff]  ;;  %v3650_v63 = vpop.permute.xlu0 %3649 }
 0x5f8   :  { %3401 = vst.msk [vmem:[#allocation3 + $0x1c8] sm:$0xff] %vm3343_vm9, %v3266_v10  ;;  %v4654_v16 = vpack.c.bf16 %v4617_v53, %v4616_v46  ;;  %v9223_v10 = vpop.f32.mrf.mxu1  ;;  %v5068_v46 = vsel %vm664_vm2, %v9185_v54, 0.0  ;;  %v5266_v53 = vsel %vm664_vm2, %v5202_v11, 0.0 }
 0x5f9   :  { %3786 = vst.msk [vmem:[#allocation3 + $0x1c0] sm:$0xff] %vm3729_vm10, %v3650_v63  ;;  %v5070_v63 = vadd.f32 %v5069_v6, %v5068_v46 }
 0x5fa   :  { %6110 = vmatprep.mubr.msk.bf16.mxu1 %vm274_vm1, %v4654_v16  ;;  %v5203_v16 = vmul.f32 %v9181_v34, %v9181_v34 }
 0x5fb   :  { %v3270_v19 = vpop.permute.xlu1 %3269  ;;  %v4619_v41 = vld [vmem:[#allocation3 + $0x1b8] sm:$0xff]  ;;  %v3654_v8 = vpop.permute.xlu0 %3653 }
 0x5fc   :  { %3403 = vst.msk [vmem:[#allocation3 + $0x1d8] sm:$0xff] %vm3343_vm9, %v3270_v19  ;;  %v4655_v22 = vpack.c.bf16 %v4619_v41, %v4618_v0  ;;  %v5265_v19 = vsel %vm664_vm2, %v5201_v25, 0.0  ;;  %v9231_v41 = vpop.f32.mrf.mxu1 }
 0x5fd   :  { %3788 = vst.msk [vmem:[#allocation3 + $0x1d0] sm:$0xff] %vm3729_vm10, %v3654_v8  ;;  %v5267_v0 = vadd.f32 %v5266_v53, %v5265_v19  ;;  %v5071_v8 = vsel %vm664_vm2, %v9181_v34, 0.0  ;;  %v5211_v53 = vmul.f32 %v9206_v13, %v9206_v13  ;;  %v5087_v19 = vsel %vm664_vm2, %v9206_v13, 0.0 }
 0x5fe   :  { %6111 = vmatmul.mubr.msk.bf16.gmra.mxu1 %vm274_vm1, %v4655_v22  ;;  %v5072_v22 = vadd.f32 %v5071_v8, %v5070_v63 }
 0x5ff   :  { %v3652_v2 = vpop.permute.xlu1 %3651  ;;  %v4035_v51 = vpop.permute.xlu0 %4034  ;;  %v5284_v8 = vsel %vm664_vm2, %v5211_v53, 0.0 }
 0x600   :  { %3787 = vst.msk [vmem:[#allocation3 + $0x1c8] sm:$0xff] %vm3729_vm10, %v3652_v2  ;;  %v5268_v2 = vsel %vm664_vm2, %v5203_v16, 0.0 }
 0x601   :  { %4171 = vst.msk [vmem:[#allocation3 + $0x1c0] sm:$0xff] %vm4114_vm11, %v4035_v51  ;;  %v5204_v51 = vmul.f32 %v9189_v12, %v9189_v12 }
 0x603   :  { %v3656_v61 = vpop.permute.xlu1 %3655  ;;  %v4039_v5 = vpop.permute.xlu0 %4038 }
 0x604   :  { %3789 = vst.msk [vmem:[#allocation3 + $0x1d8] sm:$0xff] %vm3729_vm10, %v3656_v61  ;;  %v5205_v61 = vmul.f32 %v9198_v1, %v9198_v1 }
 0x605   :  { %4173 = vst.msk [vmem:[#allocation3 + $0x1d0] sm:$0xff] %vm4114_vm11, %v4039_v5  ;;  %v5269_v5 = vadd.f32 %v5268_v2, %v5267_v0  ;;  %v5213_v2 = vmul.f32 %v9223_v10, %v9223_v10 }
 0x607   :  { %v4037_v52 = vpop.permute.xlu1 %4036  ;;  %v4420_v44 = vpop.permute.xlu0 %4419 }
 0x608   :  { %4172 = vst.msk [vmem:[#allocation3 + $0x1c8] sm:$0xff] %vm4114_vm11, %v4037_v52  ;;  %v9240_v52 = vpop.f32.mrf.mxu1 }
 0x609   :  { %4556 = vst.msk [vmem:[#allocation3 + $0x1c0] sm:$0xff] %vm4499_vm12, %v4420_v44  ;;  %v5073_v44 = vsel %vm664_vm2, %v9189_v12, 0.0 }
 0x60b   :  { %v4041_v4 = vpop.permute.xlu1 %4040  ;;  %v4424_v55 = vpop.permute.xlu0 %4423 }
 0x60c   :  { %4174 = vst.msk [vmem:[#allocation3 + $0x1d8] sm:$0xff] %vm4114_vm11, %v4041_v4  ;;  %v5075_v4 = vsel %vm664_vm2, %v9198_v1, 0.0 }
 0x60d   :  { %4558 = vst.msk [vmem:[#allocation3 + $0x1d0] sm:$0xff] %vm4499_vm12, %v4424_v55  ;;  %v5206_v55 = vmul.f32 %v9204_v48, %v9204_v48 }
 0x60f   :  { %v4422_v56 = vpop.permute.xlu1 %4421  ;;  %v3272_v23 = vpop.permute.xlu0 %3271 }
 0x610   :  { %4557 = vst.msk [vmem:[#allocation3 + $0x1c8] sm:$0xff] %vm4499_vm12, %v4422_v56  ;;  %v4620_v36 = vld [vmem:[#allocation3 + $0x1c0] sm:$0xff]  ;;  %v5074_v56 = vadd.f32 %v5073_v44, %v5072_v22  ;;  %v5212_v22 = vmul.f32 %v9211_v18, %v9211_v18  ;;  %v5091_v44 = vsel %vm664_vm2, %v9223_v10, 0.0 }
 0x611   :  { %3404 = vst.msk [vmem:[#allocation3 + $0x1e0] sm:$0xff] %vm3343_vm9, %v3272_v23  ;;  %v9248_v23 = vpop.f32.mrf.mxu1 }
 0x613   :  { %v4426_v28 = vpop.permute.xlu1 %4425  ;;  %v3276_v27 = vpop.permute.xlu0 %3275 }
 0x614   :  { %4559 = vst.msk [vmem:[#allocation3 + $0x1d8] sm:$0xff] %vm4499_vm12, %v4426_v28  ;;  %v4622_v24 = vld [vmem:[#allocation3 + $0x1d0] sm:$0xff]  ;;  %v5270_v28 = vsel %vm664_vm2, %v5204_v51, 0.0 }
 0x615   :  { %3406 = vst.msk [vmem:[#allocation3 + $0x1f0] sm:$0xff] %vm3343_vm9, %v3276_v27  ;;  %v5272_v27 = vsel %vm664_vm2, %v5205_v61, 0.0 }
 0x617   :  { %v3274_v20 = vpop.permute.xlu1 %3273  ;;  %v4621_v14 = vld [vmem:[#allocation3 + $0x1c8] sm:$0xff]  ;;  %v3658_v30 = vpop.permute.xlu0 %3657 }
 0x618   :  { %3405 = vst.msk [vmem:[#allocation3 + $0x1e8] sm:$0xff] %vm3343_vm9, %v3274_v20  ;;  %v4656_v49 = vpack.c.bf16 %v4621_v14, %v4620_v36  ;;  %v5077_v20 = vsel %vm664_vm2, %v9204_v48, 0.0  ;;  %v5076_v36 = vadd.f32 %v5075_v4, %v5074_v56  ;;  %v5271_v14 = vadd.f32 %v5270_v28, %v5269_v5 }
 0x619   :  { %3790 = vst.msk [vmem:[#allocation3 + $0x1e0] sm:$0xff] %vm3729_vm10, %v3658_v30  ;;  %v5274_v30 = vsel %vm664_vm2, %v5206_v55, 0.0  ;;  %v5089_v5 = vsel %vm664_vm2, %v9211_v18, 0.0  ;;  %v5214_v4 = vmul.f32 %v9240_v52, %v9240_v52  ;;  %v5286_v56 = vsel %vm664_vm2, %v5212_v22, 0.0 }
 0x61a   :  { %6114 = vmatprep.mubr.msk.bf16.mxu1 %vm274_vm1, %v4656_v49  ;;  %v5273_v49 = vadd.f32 %v5272_v27, %v5271_v14  ;;  %v5288_v28 = vsel %vm664_vm2, %v5213_v2, 0.0  ;;  %v5093_v27 = vsel %vm664_vm2, %v9240_v52, 0.0 }
 0x61b   :  { %v3278_v9 = vpop.permute.xlu1 %3277  ;;  %v4623_v26 = vld [vmem:[#allocation3 + $0x1d8] sm:$0xff]  ;;  %v3662_v3 = vpop.permute.xlu0 %3661 }
 0x61c   :  { %3407 = vst.msk [vmem:[#allocation3 + $0x1f8] sm:$0xff] %vm3343_vm9, %v3278_v9  ;;  %v4657_v33 = vpack.c.bf16 %v4623_v26, %v4622_v24  ;;  %v5078_v9 = vadd.f32 %v5077_v20, %v5076_v36  ;;  %v9255_v24 = vpop.f32.mrf.mxu1  ;;  %v5207_v26 = vmul.f32 %v9195_v15, %v9195_v15 }
 0x61d   :  { %3792 = vst.msk [vmem:[#allocation3 + $0x1f0] sm:$0xff] %vm3729_vm10, %v3662_v3  ;;  %v5275_v3 = vadd.f32 %v5274_v30, %v5273_v49  ;;  %v5290_v30 = vsel %vm664_vm2, %v5214_v4, 0.0 }
 0x61e   :  { %6115 = vmatmul.mubr.msk.bf16.gmra.mxu1 %vm274_vm1, %v4657_v33  ;;  %v5079_v33 = vsel %vm664_vm2, %v9195_v15, 0.0 }
 0x61f   :  { %v3660_v31 = vpop.permute.xlu1 %3659  ;;  %v4043_v32 = vpop.permute.xlu0 %4042 }
 0x620   :  { %3791 = vst.msk [vmem:[#allocation3 + $0x1e8] sm:$0xff] %vm3729_vm10, %v3660_v31  ;;  %v5080_v31 = vadd.f32 %v5079_v33, %v5078_v9 }
 0x621   :  { %4175 = vst.msk [vmem:[#allocation3 + $0x1e0] sm:$0xff] %vm4114_vm11, %v4043_v32  ;;  %v9261_v32 = vpop.f32.mrf.mxu1 }
 0x622   :  { %v5220_v4 = vmul.f32 %v9261_v32, %v9261_v32 }
 0x623   :  { %v3664_v45 = vpop.permute.xlu1 %3663  ;;  %v4047_v40 = vpop.permute.xlu0 %4046 }
 0x624   :  { %3793 = vst.msk [vmem:[#allocation3 + $0x1f8] sm:$0xff] %vm3729_vm10, %v3664_v45  ;;  %v5276_v45 = vsel %vm664_vm2, %v5207_v26, 0.0 }
 0x625   :  { %4177 = vst.msk [vmem:[#allocation3 + $0x1f0] sm:$0xff] %vm4114_vm11, %v4047_v40  ;;  %v5208_v40 = vmul.f32 %v9201_v37, %v9201_v37 }
 0x627   :  { %v4045_v62 = vpop.permute.xlu1 %4044  ;;  %v4428_v7 = vpop.permute.xlu0 %4427 }
 0x628   :  { %4176 = vst.msk [vmem:[#allocation3 + $0x1e8] sm:$0xff] %vm4114_vm11, %v4045_v62  ;;  %v5209_v62 = vmul.f32 %v9209_v38, %v9209_v38 }
 0x629   :  { %4560 = vst.msk [vmem:[#allocation3 + $0x1e0] sm:$0xff] %vm4499_vm12, %v4428_v7  ;;  %v5277_v7 = vadd.f32 %v5276_v45, %v5275_v3  ;;  %v5215_v3 = vmul.f32 %v9215_v60, %v9215_v60 }
 0x62b   :  { %v4049_v57 = vpop.permute.xlu1 %4048  ;;  %v4432_v59 = vpop.permute.xlu0 %4431 }
 0x62c   :  { %4178 = vst.msk [vmem:[#allocation3 + $0x1f8] sm:$0xff] %vm4114_vm11, %v4049_v57  ;;  %v5081_v57 = vsel %vm664_vm2, %v9201_v37, 0.0 }
 0x62d   :  { %4562 = vst.msk [vmem:[#allocation3 + $0x1f0] sm:$0xff] %vm4499_vm12, %v4432_v59  ;;  %v5083_v59 = vsel %vm664_vm2, %v9209_v38, 0.0 }
 0x62f   :  { %v4430_v50 = vpop.permute.xlu1 %4429 }
 0x630   :  { %4561 = vst.msk [vmem:[#allocation3 + $0x1e8] sm:$0xff] %vm4499_vm12, %v4430_v50  ;;  %v4624_v39 = vld [vmem:[#allocation3 + $0x1e0] sm:$0xff]  ;;  %v5210_v50 = vmul.f32 %v9213_v21, %v9213_v21 }
 0x632   :  { %v5282_v25 = vsel %vm664_vm2, %v5210_v50, 0.0  ;;  %v5097_v50 = vsel %vm664_vm2, %v9231_v41, 0.0 }
 0x633   :  { %v4434_v35 = vpop.permute.xlu1 %4433 }
 0x634   :  { %4563 = vst.msk [vmem:[#allocation3 + $0x1f8] sm:$0xff] %vm4499_vm12, %v4434_v35  ;;  %v4626_v42 = vld [vmem:[#allocation3 + $0x1f0] sm:$0xff]  ;;  %v5082_v35 = vadd.f32 %v5081_v57, %v5080_v31  ;;  %v5095_v31 = vsel %vm664_vm2, %v9215_v60, 0.0  ;;  %v5217_v57 = vmul.f32 %v9255_v24, %v9255_v24 }
 0x637   :  { %v4625_v43 = vld [vmem:[#allocation3 + $0x1e8] sm:$0xff] }
 0x638   :  { %v4658_v17 = vpack.c.bf16 %v4625_v43, %v4624_v39  ;;  %v9274_v39 = vpop.f32.mrf.mxu1  ;;  %v5278_v43 = vsel %vm664_vm2, %v5208_v40, 0.0 }
 0x63a   :  { %6118 = vmatprep.mubr.msk.bf16.mxu1 %vm274_vm1, %v4658_v17  ;;  %v5280_v17 = vsel %vm664_vm2, %v5209_v62, 0.0  ;;  %v9280_v11 = vpop.f32.mrf.mxu1  ;;  %v5292_v62 = vsel %vm664_vm2, %v5215_v3, 0.0 }
 0x63b   :  { %v4627_v29 = vld [vmem:[#allocation3 + $0x1f8] sm:$0xff] }
 0x63c   :  { %v4659_v47 = vpack.c.bf16 %v4627_v29, %v4626_v42  ;;  %v5085_v42 = vsel %vm664_vm2, %v9213_v21, 0.0  ;;  %v5084_v29 = vadd.f32 %v5083_v59, %v5082_v35  ;;  %v9285_v16 = vpop.f32.mrf.mxu1  ;;  %v5099_v35 = vsel %vm664_vm2, %v9255_v24, 0.0 }
 0x63e   :  { %6119 = vmatmul.mubr.msk.bf16.gmra.mxu1 %vm274_vm1, %v4659_v47  ;;  %v5279_v47 = vadd.f32 %v5278_v43, %v5277_v7  ;;  %v5086_v46 = vadd.f32 %v5085_v42, %v5084_v29  ;;  %v9294_v61 = vpop.f32.mrf.mxu1  ;;  %v5216_v7 = vmul.f32 %v9231_v41, %v9231_v41  ;;  %v5218_v43 = vmul.f32 %v9274_v39, %v9274_v39 }
 0x640   :  { %v5281_v6 = vadd.f32 %v5280_v17, %v5279_v47  ;;  %v5088_v0 = vadd.f32 %v5087_v19, %v5086_v46  ;;  %v9306_v14 = vpop.f32.mrf.mxu1  ;;  %v5294_v29 = vsel %vm664_vm2, %v5216_v7, 0.0  ;;  %v5296_v47 = vsel %vm664_vm2, %v5217_v57, 0.0 }
 0x641   :  { %v5298_v53 = vsel %vm664_vm2, %v5218_v43, 0.0  ;;  %v5109_v3 = vsel %vm664_vm2, %v9306_v14, 0.0  ;;  %v5111_v43 = vsel %vm664_vm2, %v9280_v11, 0.0 }
 0x642   :  { %v5283_v63 = vadd.f32 %v5282_v25, %v5281_v6  ;;  %v5090_v55 = vadd.f32 %v5089_v5, %v5088_v0  ;;  %v9309_v26 = vpop.f32.mrf.mxu1  ;;  %v5101_v25 = vsel %vm664_vm2, %v9274_v39, 0.0 }
 0x644   :  { %v5285_v51 = vadd.f32 %v5284_v8, %v5283_v63  ;;  %v5092_v20 = vadd.f32 %v5091_v44, %v5090_v55  ;;  %v9315_v40 = vpop.f32.mrf.mxu1  ;;  %v5219_v8 = vmul.f32 %v9248_v23, %v9248_v23  ;;  %v5221_v55 = vmul.f32 %v9285_v16, %v9285_v16 }
 0x646   :  { %v5287_v36 = vadd.f32 %v5286_v56, %v5285_v51  ;;  %v5094_v9 = vadd.f32 %v5093_v27, %v5092_v20  ;;  %v9328_v42 = vpop.f32.mrf.mxu1  ;;  %v5103_v51 = vsel %vm664_vm2, %v9248_v23, 0.0  ;;  %v5300_v44 = vsel %vm664_vm2, %v5219_v8, 0.0 }
 0x647   :  { %v5105_v27 = vsel %vm664_vm2, %v9261_v32, 0.0  ;;  %v5107_v20 = vsel %vm664_vm2, %v9285_v16, 0.0 }
 0x648   :  { %v5289_v49 = vadd.f32 %v5288_v28, %v5287_v36  ;;  %v5096_v45 = vadd.f32 %v5095_v31, %v5094_v9  ;;  %v9335_v0 = vpop.f32.mrf.mxu1  ;;  %v5222_v36 = vmul.f32 %v9306_v14, %v9306_v14  ;;  %v5304_v9 = vsel %vm664_vm2, %v5221_v55, 0.0 }
 0x64a   :  { %v5291_v33 = vadd.f32 %v5290_v30, %v5289_v49  ;;  %v5098_v17 = vadd.f32 %v5097_v50, %v5096_v45  ;;  %v9339_v2 = vpop.f32.mrf.mxu1  ;;  %v5302_v49 = vsel %vm664_vm2, %v5220_v4, 0.0 }
 0x64c   :  { %v5293_v59 = vadd.f32 %v5292_v62, %v5291_v33  ;;  %v5100_v6 = vadd.f32 %v5099_v35, %v5098_v17  ;;  %v9348_v28 = vpop.f32.mrf.mxu1  ;;  %v5306_v62 = vsel %vm664_vm2, %v5222_v36, 0.0 }
 0x64e   :  { %v5295_v46 = vadd.f32 %v5294_v29, %v5293_v59  ;;  %v5102_v19 = vadd.f32 %v5101_v25, %v5100_v6  ;;  %v9360_v45 = vpop.f32.mrf.mxu1  ;;  %v5223_v59 = vmul.f32 %v9280_v11, %v9280_v11  ;;  %v5224_v25 = vmul.f32 %v9294_v61, %v9294_v61 }
 0x64f   :  { %v5225_v6 = vmul.f32 %v9315_v40, %v9315_v40 }
 0x650   :  { %v5297_v63 = vadd.f32 %v5296_v47, %v5295_v46  ;;  %v5104_v5 = vadd.f32 %v5103_v51, %v5102_v19  ;;  %v9365_v35 = vpop.f32.mrf.mxu1  ;;  %v5308_v47 = vsel %vm664_vm2, %v5223_v59, 0.0  ;;  %v5226_v19 = vmul.f32 %v9335_v0, %v9335_v0 }
 0x651   :  { %v5310_v51 = vsel %vm664_vm2, %v5224_v25, 0.0 }
 0x652   :  { %v5299_v22 = vadd.f32 %v5298_v53, %v5297_v63  ;;  %v5106_v30 = vadd.f32 %v5105_v27, %v5104_v5  ;;  %v9369_v29 = vpop.f32.mrf.mxu1  ;;  %v5113_v53 = vsel %vm664_vm2, %v9294_v61, 0.0  ;;  %v5115_v63 = vsel %vm664_vm2, %v9315_v40, 0.0 }
 0x653   :  { %v5312_v5 = vsel %vm664_vm2, %v5225_v6, 0.0 }
 0x654   :  { %v5301_v56 = vadd.f32 %v5300_v44, %v5299_v22  ;;  %v5108_v33 = vadd.f32 %v5107_v20, %v5106_v30  ;;  %v9382_v22 = vpop.f32.mrf.mxu1  ;;  %v5117_v44 = vsel %vm664_vm2, %v9335_v0, 0.0  ;;  %v5227_v30 = vmul.f32 %v9309_v26, %v9309_v26 }
 0x656   :  { %v5303_v31 = vadd.f32 %v5302_v49, %v5301_v56  ;;  %v5110_v57 = vadd.f32 %v5109_v3, %v5108_v33  ;;  %v5314_v56 = vsel %vm664_vm2, %v5226_v19, 0.0  ;;  %v9389_v36 = vpop.f32.mrf.mxu1 }
 0x658   :  { %v5305_v7 = vadd.f32 %v5304_v9, %v5303_v31  ;;  %v5112_v17 = vadd.f32 %v5111_v43, %v5110_v57  ;;  %v5119_v9 = vsel %vm664_vm2, %v9309_v26, 0.0  ;;  %v9395_v33 = vpop.f32.mrf.mxu1  ;;  %v5316_v31 = vsel %vm664_vm2, %v5227_v30, 0.0 }
 0x659   :  { %v5123_v43 = vsel %vm664_vm2, %v9348_v28, 0.0  ;;  %v5232_v30 = vmul.f32 %v9360_v45, %v9360_v45 }
 0x65a   :  { %v5307_v50 = vadd.f32 %v5306_v62, %v5305_v7  ;;  %v5114_v8 = vadd.f32 %v5113_v53, %v5112_v17  ;;  %v5228_v62 = vmul.f32 %v9328_v42, %v9328_v42  ;;  %v5229_v7 = vmul.f32 %v9348_v28, %v9348_v28  ;;  %v9402_v59 = vpop.f32.mrf.mxu1 }
 0x65b   :  { %v5230_v17 = vmul.f32 %v9365_v35, %v9365_v35 }
 0x65c   :  { %v5309_v46 = vadd.f32 %v5308_v47, %v5307_v50  ;;  %v5116_v4 = vadd.f32 %v5115_v63, %v5114_v8  ;;  %v5121_v50 = vsel %vm664_vm2, %v9328_v42, 0.0  ;;  %v5318_v25 = vsel %vm664_vm2, %v5228_v62, 0.0  ;;  %v9414_v19 = vpop.f32.mrf.mxu1 }
 0x65d   :  { %v5320_v6 = vsel %vm664_vm2, %v5229_v7, 0.0  ;;  %v5322_v8 = vsel %vm664_vm2, %v5230_v17, 0.0  ;;  %v5131_v62 = vsel %vm664_vm2, %v9382_v22, 0.0  ;;  %v5234_v7 = vmul.f32 %v9395_v33, %v9395_v33 }
 0x65e   :  { %v5311_v55 = vadd.f32 %v5310_v51, %v5309_v46  ;;  %v5118_v20 = vadd.f32 %v5117_v44, %v5116_v4  ;;  %v5125_v46 = vsel %vm664_vm2, %v9365_v35, 0.0  ;;  %v5231_v44 = vmul.f32 %v9339_v2, %v9339_v2 }
 0x660   :  { %v5313_v27 = vadd.f32 %v5312_v5, %v5311_v55  ;;  %v5120_v3 = vadd.f32 %v5119_v9, %v5118_v20  ;;  %v9419_v55 = vpop.f32.mrf.mxu1  ;;  %v5324_v20 = vsel %vm664_vm2, %v5231_v44, 0.0  ;;  %v5135_v44 = vsel %vm664_vm2, %v9369_v29, 0.0 }
 0x661   :  { %11039 = vst [vmem:[#allocation6_spill] sm:$0xff] %v9419_v55 }
 0x662   :  { %v5315_v49 = vadd.f32 %v5314_v56, %v5313_v27  ;;  %v5122_v47 = vadd.f32 %v5121_v50, %v5120_v3  ;;  %v5127_v56 = vsel %vm664_vm2, %v9339_v2, 0.0  ;;  %v9428_v3 = vpop.f32.mrf.mxu1 }
 0x664   :  { %v5317_v57 = vadd.f32 %v5316_v31, %v5315_v49  ;;  %v5124_v53 = vadd.f32 %v5123_v43, %v5122_v47  ;;  %v5233_v49 = vmul.f32 %v9382_v22, %v9382_v22  ;;  %v5129_v31 = vsel %vm664_vm2, %v9360_v45, 0.0  ;;  %v9436_v50 = vpop.f32.mrf.mxu1 }
 0x665   :  { %11040 = vst [vmem:[#allocation8_spill] sm:$0xff] %v9436_v50  ;;  %v5326_v43 = vsel %vm664_vm2, %v5232_v30, 0.0  ;;  %v5133_v47 = vsel %vm664_vm2, %v9395_v33, 0.0  ;;  %v5237_v30 = vmul.f32 %v9414_v19, %v9414_v19 }
 0x666   :  { %v5319_v63 = vadd.f32 %v5318_v25, %v5317_v57  ;;  %v5126_v5 = vadd.f32 %v5125_v46, %v5124_v53  ;;  %v5328_v17 = vsel %vm664_vm2, %v5233_v49, 0.0  ;;  %v5330_v46 = vsel %vm664_vm2, %v5234_v7, 0.0 }
 0x668   :  { %v5321_v51 = vadd.f32 %v5320_v6, %v5319_v63  ;;  %v5128_v27 = vadd.f32 %v5127_v56, %v5126_v5 }
 0x66a   :  { %v5323_v4 = vadd.f32 %v5322_v8, %v5321_v51  ;;  %v5130_v57 = vadd.f32 %v5129_v31, %v5128_v27  ;;  %v9443_v8 = vpop.f32.mrf.mxu1  ;;  %v5235_v51 = vmul.f32 %v9369_v29, %v9369_v29  ;;  %v5139_v31 = vsel %vm664_vm2, %v9414_v19, 0.0 }
 0x66b   :  { %11041 = vst [vmem:[#allocation5_spill] sm:$0xff] %v9443_v8 }
 0x66c   :  { %v5325_v9 = vadd.f32 %v5324_v20, %v5323_v4  ;;  %v5132_v25 = vadd.f32 %v5131_v62, %v5130_v57  ;;  %v9449_v56 = vpop.f32.mrf.mxu1  ;;  %v5332_v27 = vsel %vm664_vm2, %v5235_v51, 0.0  ;;  %v5236_v20 = vmul.f32 %v9389_v36, %v9389_v36 }
 0x66d   :  { %11042 = vst [vmem:[#allocation7_spill] sm:$0xff] %v9449_v56  ;;  %v5238_v62 = vmul.f32 %v9428_v3, %v9428_v3 }
 0x66e   :  { %v5327_v6 = vadd.f32 %v5326_v43, %v5325_v9  ;;  %v5134_v63 = vadd.f32 %v5133_v47, %v5132_v25  ;;  %v5137_v9 = vsel %vm664_vm2, %v9389_v36, 0.0  ;;  %v9462_v57 = vpop.f32.mrf.mxu1  ;;  %v5334_v43 = vsel %vm664_vm2, %v5236_v20, 0.0 }
 0x66f   :  { %v5141_v47 = vsel %vm664_vm2, %v9428_v3, 0.0 }
 0x670   :  { %v5329_v53 = vadd.f32 %v5328_v17, %v5327_v6  ;;  %v5136_v4 = vadd.f32 %v5135_v44, %v5134_v63  ;;  %v5336_v17 = vsel %vm664_vm2, %v5237_v30, 0.0 }
 0x672   :  { %v5331_v5 = vadd.f32 %v5330_v46, %v5329_v53  ;;  %v5138_v7 = vadd.f32 %v5137_v9, %v5136_v4  ;;  %v5338_v53 = vsel %vm664_vm2, %v5238_v62, 0.0  ;;  %v5241_v9 = vmul.f32 %v9443_v8, %v9443_v8 }
 0x674   :  { %v5333_v49 = vadd.f32 %v5332_v27, %v5331_v5  ;;  %v5140_v25 = vadd.f32 %v5139_v31, %v5138_v7  ;;  %v5239_v5 = vmul.f32 %v9402_v59, %v9402_v59  ;;  %v5143_v27 = vsel %vm664_vm2, %v9402_v59, 0.0 }
 0x675   :  { %v5145_v7 = vsel %vm664_vm2, %v9419_v55, 0.0 }
 0x676   :  { %v5335_v6 = vadd.f32 %v5334_v43, %v5333_v49  ;;  %v5142_v51 = vadd.f32 %v5141_v47, %v5140_v25  ;;  %v5340_v30 = vsel %vm664_vm2, %v5239_v5, 0.0  ;;  %v5240_v49 = vmul.f32 %v9419_v55, %v9419_v55 }
 0x677   :  { %v5147_v43 = vsel %vm664_vm2, %v9443_v8, 0.0 }
 0x678   :  { %v5337_v63 = vadd.f32 %v5336_v17, %v5335_v6  ;;  %v5144_v20 = vadd.f32 %v5143_v27, %v5142_v51  ;;  %v5242_v17 = vmul.f32 %v9462_v57, %v9462_v57  ;;  %v5342_v25 = vsel %vm664_vm2, %v5240_v49, 0.0 }
 0x679   :  { %v5344_v6 = vsel %vm664_vm2, %v5241_v9, 0.0  ;;  %v5151_v49 = vsel %vm664_vm2, %v9436_v50, 0.0 }
 0x67a   :  { %v5339_v44 = vadd.f32 %v5338_v53, %v5337_v63  ;;  %v5146_v47 = vadd.f32 %v5145_v7, %v5144_v20  ;;  %v5149_v53 = vsel %vm664_vm2, %v9462_v57, 0.0  ;;  %v5243_v20 = vmul.f32 %v9436_v50, %v9436_v50 }
 0x67c   :  { %v5341_v31 = vadd.f32 %v5340_v30, %v5339_v44  ;;  %v5148_v63 = vadd.f32 %v5147_v43, %v5146_v47  ;;  %v5346_v44 = vsel %vm664_vm2, %v5242_v17, 0.0  ;;  %v5244_v43 = vmul.f32 %v9449_v56, %v9449_v56 }
 0x67e   :  { %v9468_v46 = vpop.f32.mrf.mxu1  ;;  %v5343_v51 = vadd.f32 %v5342_v25, %v5341_v31  ;;  %v5150_v30 = vadd.f32 %v5149_v53, %v5148_v63  ;;  %v5348_v31 = vsel %vm664_vm2, %v5243_v20, 0.0  ;;  %v5153_v25 = vsel %vm664_vm2, %v9449_v56, 0.0 }
 0x67f   :  { %11043 = vst [vmem:[#allocation10_spill] sm:$0xff] %v9468_v46 }
 0x680   :  { %v9473_v4 = vpop.f32.mrf.mxu1  ;;  %v5345_v27 = vadd.f32 %v5344_v6, %v5343_v51  ;;  %v5152_v9 = vadd.f32 %v5151_v49, %v5150_v30 }
 0x681   :  { %11044 = vst [vmem:[#allocation12_spill] sm:$0xff] %v9473_v4  ;;  %v5245_v17 = vmul.f32 %v9473_v4, %v9473_v4  ;;  %v5155_v6 = vsel %vm664_vm2, %v9473_v4, 0.0 }
 0x682   :  { %v9482_v62 = vpop.f32.mrf.mxu1  ;;  %v5347_v7 = vadd.f32 %v5346_v44, %v5345_v27  ;;  %v5154_v63 = vadd.f32 %v5153_v25, %v5152_v9  ;;  %v5350_v44 = vsel %vm664_vm2, %v5244_v43, 0.0  ;;  %v5247_v9 = vmul.f32 %v9468_v46, %v9468_v46 }
 0x683   :  { %11045 = vst [vmem:[#allocation9_spill] sm:$0xff] %v9482_v62  ;;  %v5352_v27 = vsel %vm664_vm2, %v5245_v17, 0.0  ;;  %v5159_v43 = vsel %vm664_vm2, %v9468_v46, 0.0 }
 0x684   :  { %v9494_v5 = vpop.f32.mrf.mxu1  ;;  %v5349_v47 = vadd.f32 %v5348_v31, %v5347_v7  ;;  %v5156_v20 = vadd.f32 %v5155_v6, %v5154_v63 }
 0x685   :  { %11046 = vst [vmem:[#allocation14_spill] sm:$0xff] %v9494_v5  ;;  %v5246_v53 = vmul.f32 %v9494_v5, %v9494_v5  ;;  %v5157_v30 = vsel %vm664_vm2, %v9494_v5, 0.0  ;;  %v5356_v5 = vsel %vm664_vm2, %v5247_v9, 0.0 }
 0x686   :  { %v5351_v7 = vadd.f32 %v5350_v44, %v5349_v47  ;;  %v5158_v56 = vadd.f32 %v5157_v30, %v5156_v20  ;;  %v5248_v47 = vmul.f32 %v9482_v62, %v9482_v62  ;;  %v5161_v44 = vsel %vm664_vm2, %v9482_v62, 0.0 }
 0x687   :  { %v5354_v49 = vsel %vm664_vm2, %v5246_v53, 0.0 }
 0x688   :  { %v5353_v31 = vadd.f32 %v5352_v27, %v5351_v7  ;;  %v5160_v17 = vadd.f32 %v5159_v43, %v5158_v56  ;;  %v5358_v20 = vsel %vm664_vm2, %v5248_v47, 0.0 }
 0x68a   :  { %v5355_v25 = vadd.f32 %v5354_v49, %v5353_v31  ;;  %v5162_v30 = vadd.f32 %v5161_v44, %v5160_v17 }
 0x68c   :  { %v5357_v53 = vadd.f32 %v5356_v5, %v5355_v25 }
 0x68e   :  { %v5359_v31 = vadd.f32 %v5358_v20, %v5357_v53 }
 0x69e   :  { %v9497_v8 = vpop.f32.mrf.mxu1 }
 0x69f   :  { %11047 = vst [vmem:[#allocation16_spill] sm:$0xff] %v9497_v8  ;;  %v5167_v47 = vsel %vm664_vm2, %v9497_v8, 0.0 }
 0x6a0   :  { %v9503_v55 = vpop.f32.mrf.mxu1 }
 0x6a1   :  { %11048 = vst [vmem:[#allocation13_spill] sm:$0xff] %v9503_v55  ;;  %v5249_v6 = vmul.f32 %v9503_v55, %v9503_v55  ;;  %v5163_v27 = vsel %vm664_vm2, %v9503_v55, 0.0  ;;  %v5251_v55 = vmul.f32 %v9497_v8, %v9497_v8 }
 0x6a2   :  { %v9516_v51 = vpop.f32.mrf.mxu1  ;;  %v5164_v5 = vadd.f32 %v5163_v27, %v5162_v30 }
 0x6a3   :  { %11049 = vst [vmem:[#allocation15_spill] sm:$0xff] %v9516_v51  ;;  %v5360_v7 = vsel %vm664_vm2, %v5249_v6, 0.0  ;;  %v5364_v53 = vsel %vm664_vm2, %v5251_v55, 0.0  ;;  %v5252_v27 = vmul.f32 %v9516_v51, %v9516_v51  ;;  %v5169_v20 = vsel %vm664_vm2, %v9516_v51, 0.0 }
 0x6a4   :  { %v9523_v4 = vpop.f32.mrf.mxu1  ;;  %v5361_v43 = vadd.f32 %v5360_v7, %v5359_v31 }
 0x6a5   :  { %11050 = vst [vmem:[#allocation18_spill] sm:$0xff] %v9523_v4  ;;  %v5250_v56 = vmul.f32 %v9523_v4, %v9523_v4  ;;  %v5165_v49 = vsel %vm664_vm2, %v9523_v4, 0.0  ;;  %v5366_v55 = vsel %vm664_vm2, %v5252_v27, 0.0 }
 0x6a6   :  { %v5166_v62 = vadd.f32 %v5165_v49, %v5164_v5 }
 0x6a7   :  { %v5362_v25 = vsel %vm664_vm2, %v5250_v56, 0.0 }
 0x6a8   :  { %v5363_v46 = vadd.f32 %v5362_v25, %v5361_v43  ;;  %v5168_v6 = vadd.f32 %v5167_v47, %v5166_v62 }
 0x6aa   :  { %v5365_v30 = vadd.f32 %v5364_v53, %v5363_v46  ;;  %v5170_v49 = vadd.f32 %v5169_v20, %v5168_v6 }
 0x6ac   :  { %v5367_v43 = vadd.f32 %v5366_v55, %v5365_v30 }
 0x6be   :  { %v9527_v50 = vpop.f32.mrf.mxu1 }
 0x6bf   :  { %11051 = vst [vmem:[#allocation20_spill] sm:$0xff] %v9527_v50  ;;  %v5255_v6 = vmul.f32 %v9527_v50, %v9527_v50  ;;  %v5175_v27 = vsel %vm664_vm2, %v9527_v50, 0.0 }
 0x6c0   :  { %v9536_v63 = vpop.f32.mrf.mxu1 }
 0x6c1   :  { %11052 = vst [vmem:[#allocation17_spill] sm:$0xff] %v9536_v63  ;;  %v5253_v56 = vmul.f32 %v9536_v63, %v9536_v63  ;;  %v5171_v7 = vsel %vm664_vm2, %v9536_v63, 0.0 }
 0x6c2   :  { %v9548_v9 = vpop.f32.mrf.mxu1  ;;  %v5172_v46 = vadd.f32 %v5171_v7, %v5170_v49 }
 0x6c3   :  { %11053 = vst [vmem:[#allocation19_spill] sm:$0xff] %v9548_v9  ;;  %v5368_v31 = vsel %vm664_vm2, %v5253_v56, 0.0  ;;  %v5256_v30 = vmul.f32 %v9548_v9, %v9548_v9  ;;  %v5177_v49 = vsel %vm664_vm2, %v9548_v9, 0.0 }
 0x6c4   :  { %v9553_v17 = vpop.f32.mrf.mxu1  ;;  %v5369_v53 = vadd.f32 %v5368_v31, %v5367_v43 }
 0x6c5   :  { %11054 = vst [vmem:[#allocation24_spill] sm:$0xff] %v9553_v17  ;;  %v5254_v62 = vmul.f32 %v9553_v17, %v9553_v17  ;;  %v5173_v25 = vsel %vm664_vm2, %v9553_v17, 0.0  ;;  %v5372_v17 = vsel %vm664_vm2, %v5255_v6, 0.0 }
 0x6c6   :  { %v5174_v51 = vadd.f32 %v5173_v25, %v5172_v46  ;;  %v5374_v25 = vsel %vm664_vm2, %v5256_v30, 0.0 }
 0x6c7   :  { %v5370_v47 = vsel %vm664_vm2, %v5254_v62, 0.0 }
 0x6c8   :  { %v5371_v20 = vadd.f32 %v5370_v47, %v5369_v53  ;;  %v5176_v8 = vadd.f32 %v5175_v27, %v5174_v51 }
 0x6ca   :  { %v5373_v62 = vadd.f32 %v5372_v17, %v5371_v20  ;;  %v5178_v31 = vadd.f32 %v5177_v49, %v5176_v8 }
 0x6cc   :  { %v5375_v53 = vadd.f32 %v5374_v25, %v5373_v62 }
 0x6de   :  { %v9557_v44 = vpop.f32.mrf.mxu1 }
 0x6df   :  { %11055 = vst [vmem:[#allocation21_spill] sm:$0xff] %v9557_v44  ;;  %v5259_v27 = vmul.f32 %v9557_v44, %v9557_v44  ;;  %v5183_v8 = vsel %vm664_vm2, %v9557_v44, 0.0 }
 0x6e0   :  { %v9570_v5 = vpop.f32.mrf.mxu1 }
 0x6e1   :  { %11056 = vst [vmem:[#allocation11_spill] sm:$0xff] %v9570_v5  ;;  %v5257_v7 = vmul.f32 %v9570_v5, %v9570_v5  ;;  %v5179_v55 = vsel %vm664_vm2, %v9570_v5, 0.0 }
 0x6e2   :  { %v9577_v63 = vpop.f32.mrf.mxu1  ;;  %v5180_v47 = vadd.f32 %v5179_v55, %v5178_v31 }
 0x6e3   :  { %11057 = vst [vmem:[#allocation22_spill] sm:$0xff] %v9577_v63  ;;  %v5376_v46 = vsel %vm664_vm2, %v5257_v7, 0.0  ;;  %v5380_v7 = vsel %vm664_vm2, %v5259_v27, 0.0  ;;  %v5260_v55 = vmul.f32 %v9577_v63, %v9577_v63 }
 0x6e4   :  { %v9583_v56 = vpop.f32.mrf.mxu1  ;;  %v5377_v6 = vadd.f32 %v5376_v46, %v5375_v53 }
 0x6e5   :  { %11058 = vst [vmem:[#allocation23_spill] sm:$0xff] %v9583_v56  ;;  %v5258_v51 = vmul.f32 %v9583_v56, %v9583_v56  ;;  %v5181_v43 = vsel %vm664_vm2, %v9583_v56, 0.0  ;;  %v5382_v53 = vsel %vm664_vm2, %v5260_v55, 0.0 }
 0x6e6   :  { %v5182_v20 = vadd.f32 %v5181_v43, %v5180_v47 }
 0x6e7   :  { %v5378_v17 = vsel %vm664_vm2, %v5258_v51, 0.0  ;;  %v5185_v51 = vsel %vm664_vm2, %v9577_v63, 0.0 }
 0x6e8   :  { %v5379_v5 = vadd.f32 %v5378_v17, %v5377_v6  ;;  %v5184_v49 = vadd.f32 %v5183_v8, %v5182_v20 }
 0x6ea   :  { %v5381_v62 = vadd.f32 %v5380_v7, %v5379_v5  ;;  %v5186_v43 = vadd.f32 %v5185_v51, %v5184_v49 }
 0x6ec   :  { %v5383_v5 = vadd.f32 %v5382_v53, %v5381_v62 }
 0x6fe   :  { %v9605_v30 = vpop.f32.mrf.mxu1 }
 0x6ff   :  { %11059 = vst [vmem:[#allocation25_spill] sm:$0xff] %v9605_v30  ;;  %v5263_v27 = vmul.f32 %v9605_v30, %v9605_v30  ;;  %v5191_v55 = vsel %vm664_vm2, %v9605_v30, 0.0 }
 0x700   :  { %v9610_v31 = vpop.f32.mrf.mxu1 }
 0x701   :  { %11060 = vst [vmem:[#allocation26_spill] sm:$0xff] %v9610_v31  ;;  %v5187_v25 = vsel %vm664_vm2, %v9610_v31, 0.0  ;;  %v5261_v46 = vmul.f32 %v9610_v31, %v9610_v31  ;;  %v5388_v53 = vsel %vm664_vm2, %v5263_v27, 0.0 }
 0x702   :  { %v9618_v47 = vpop.f32.mrf.mxu1  ;;  %v5188_v6 = vadd.f32 %v5187_v25, %v5186_v43 }
 0x703   :  { %11061 = vst [vmem:[#allocation27_spill] sm:$0xff] %v9618_v47  ;;  %v5384_v17 = vsel %vm664_vm2, %v5261_v46, 0.0  ;;  %v5264_v25 = vmul.f32 %v9618_v47, %v9618_v47  ;;  %v5193_v31 = vsel %vm664_vm2, %v9618_v47, 0.0 }
 0x704   :  { %v9622_v20 = vpop.f32.mrf.mxu1  ;;  %v5385_v49 = vadd.f32 %v5384_v17, %v5383_v5 }
 0x705   :  { %11062 = vst [vmem:[#allocation4_spill] sm:$0xff] %v9622_v20  ;;  %v5189_v8 = vsel %vm664_vm2, %v9622_v20, 0.0  ;;  %v5262_v7 = vmul.f32 %v9622_v20, %v9622_v20  ;;  %v5390_v17 = vsel %vm664_vm2, %v5264_v25, 0.0 }
 0x706   :  { %v5190_v51 = vadd.f32 %v5189_v8, %v5188_v6 }
 0x707   :  { %v5386_v62 = vsel %vm664_vm2, %v5262_v7, 0.0 }
 0x708   :  { %v5192_v46 = vadd.f32 %v5191_v55, %v5190_v51  ;;  %v5387_v43 = vadd.f32 %v5386_v62, %v5385_v49 }
 0x70a   :  { %v5194_v63 = vadd.f32 %v5193_v31, %v5192_v46  ;;  %v5389_v44 = vadd.f32 %v5388_v53, %v5387_v43 }
 0x70c   :  { %v5195_v6 = vrot.slane %v5194_v63, 4  ;;  %v5391_v5 = vadd.f32 %v5390_v17, %v5389_v44 }
 0x70e   :  { %v5196_v8 = vadd.f32 %v5195_v6, %v5194_v63  ;;  %v5392_v30 = vrot.slane %v5391_v5, 4  ;;  %v5403_v63 = vld [vmem:[%s10878_s5] sm:$0x1] }
 0x710   :  { %v5197_v20 = vrot.slane %v5196_v8, 2  ;;  %v5393_v56 = vadd.f32 %v5392_v30, %v5391_v5  ;;  %v11064_v5 = vld [vmem:[#allocation6_spill] sm:$0xff] }
 0x712   :  { %v5198_v9 = vadd.f32 %v5197_v20, %v5196_v8  ;;  %v5394_v50 = vrot.slane %v5393_v56, 2  ;;  %v11065_v8 = vld [vmem:[#allocation5_spill] sm:$0xff] }
 0x714   :  { %v5199_v7 = vrot.slane %v5198_v9, 1  ;;  %v5395_v51 = vadd.f32 %v5394_v50, %v5393_v56  ;;  %v9645_v50 = vld [vmem:[%s10879_s6] sm:$0x1] }
 0x715   :  { %v11063_v56 = vld [vmem:[#allocation28_spill] sm:$0xff] }
 0x716   :  { %v5200_v49 = vadd.f32 %v5199_v7, %v5198_v9  ;;  %v5396_v55 = vrot.slane %v5395_v51, 1  ;;  %v11066_v7 = vld [vmem:[#allocation8_spill] sm:$0xff] }
 0x718   :  { %v5397_v27 = vadd.f32 %v5396_v55, %v5395_v51  ;;  %v5398_v62 = vmul.f32 0.001953125, %v5200_v49  ;;  %v11067_v51 = vld [vmem:[#allocation7_spill] sm:$0xff]  ;;  %v11068_v49 = vld [vmem:[#allocation12_spill] sm:$0xff] }
 0x71a   :  { %v5399_v4 = vmul.f32 0.001953125, %v5397_v27  ;;  %v5400_v47 = vmul.f32 %v5398_v62, %v5398_v62  ;;  %v11069_v27 = vld [vmem:[#allocation14_spill] sm:$0xff] }
 0x71c   :  { %v5401_v31 = vsub.f32 %v5399_v4, %v5400_v47 }
 0x71e   :  { %v5402_v46 = vmax.f32 %v5401_v31, 0.0  ;;  %v11070_v31 = vld [vmem:[#allocation10_spill] sm:$0xff] }
 0x720   :  { %v5404_v43 = vadd.f32 1e-05, %v5402_v46  ;;  %v11071_v46 = vld [vmem:[#allocation9_spill] sm:$0xff] }
 0x722   :  { %6173 = vrsqrt.f32 %v5404_v43 }
 0x72f   :  { %v6174_v44 = vpop.eup %6173 }
 0x730   :  { %v5406_v30 = vmul.f32 %v6174_v44, %v5403_v63  ;;  %v11072_v63 = vld [vmem:[#allocation13_spill] sm:$0xff] }
 0x732   :  { %v9647_v9 = vmul.f32 %v5406_v30, %v5398_v62  ;;  %v9650_v20 = vrot.slane %v5406_v30, %v11063_v56  ;;  %v11073_v30 = vld [vmem:[#allocation18_spill] sm:$0xff] }
 0x734   :  { %v5409_v4 = vsub.f32 %v9645_v50, %v9647_v9  ;;  %v9656_v47 = vmul.f32 %v9650_v20, %v9185_v54  ;;  %v9660_v25 = vmul.f32 %v9650_v20, %v9193_v58  ;;  %v9664_v53 = vmul.f32 %v9181_v34, %v9650_v20  ;;  %v11074_v9 = vld [vmem:[#allocation16_spill] sm:$0xff] }
 0x735   :  { %v9668_v17 = vmul.f32 %v9189_v12, %v9650_v20  ;;  %v9672_v6 = vmul.f32 %v9650_v20, %v9198_v1  ;;  %v9676_v54 = vmul.f32 %v9650_v20, %v9204_v48  ;;  %v9680_v58 = vmul.f32 %v9195_v15, %v9650_v20 }
 0x736   :  { %v9684_v34 = vmul.f32 %v9201_v37, %v9650_v20  ;;  %v9688_v12 = vmul.f32 %v9650_v20, %v9209_v38  ;;  %v9692_v1 = vmul.f32 %v9650_v20, %v9213_v21  ;;  %v9696_v48 = vmul.f32 %v9206_v13, %v9650_v20 }
 0x737   :  { %v9700_v15 = vmul.f32 %v9211_v18, %v9650_v20  ;;  %v9704_v37 = vmul.f32 %v9650_v20, %v9223_v10  ;;  %v9708_v38 = vmul.f32 %v9650_v20, %v9240_v52  ;;  %v9712_v21 = vmul.f32 %v9215_v60, %v9650_v20 }
 0x738   :  { %v9716_v13 = vmul.f32 %v9231_v41, %v9650_v20  ;;  %v9720_v18 = vmul.f32 %v9650_v20, %v9255_v24  ;;  %v9724_v10 = vmul.f32 %v9650_v20, %v9274_v39  ;;  %v9728_v52 = vmul.f32 %v9248_v23, %v9650_v20 }
 0x739   :  { %v9732_v60 = vmul.f32 %v9261_v32, %v9650_v20  ;;  %v9736_v41 = vmul.f32 %v9650_v20, %v9285_v16  ;;  %v9740_v24 = vmul.f32 %v9650_v20, %v9306_v14  ;;  %v9744_v39 = vmul.f32 %v9280_v11, %v9650_v20 }
 0x73a   :  { %v9748_v23 = vmul.f32 %v9294_v61, %v9650_v20  ;;  %v9752_v32 = vmul.f32 %v9650_v20, %v9315_v40  ;;  %v9756_v16 = vmul.f32 %v9650_v20, %v9335_v0  ;;  %v9760_v14 = vmul.f32 %v9309_v26, %v9650_v20 }
 0x73b   :  { %v9764_v11 = vmul.f32 %v9328_v42, %v9650_v20  ;;  %v9768_v61 = vmul.f32 %v9650_v20, %v9348_v28  ;;  %v9772_v40 = vmul.f32 %v9650_v20, %v9365_v35  ;;  %v9776_v0 = vmul.f32 %v9339_v2, %v9650_v20 }
 0x73c   :  { %v9780_v26 = vmul.f32 %v9360_v45, %v9650_v20  ;;  %v9784_v42 = vmul.f32 %v9650_v20, %v9382_v22  ;;  %v9788_v28 = vmul.f32 %v9650_v20, %v9395_v33  ;;  %v9792_v35 = vmul.f32 %v9369_v29, %v9650_v20 }
 0x73d   :  { %v9796_v2 = vmul.f32 %v9389_v36, %v9650_v20  ;;  %v9800_v45 = vmul.f32 %v9650_v20, %v9414_v19  ;;  %v9804_v22 = vmul.f32 %v9650_v20, %v9428_v3  ;;  %v9808_v33 = vmul.f32 %v9402_v59, %v9650_v20 }
 0x73e   :  { %v9812_v29 = vmul.f32 %v11064_v5, %v9650_v20  ;;  %v9816_v36 = vmul.f32 %v9650_v20, %v11065_v8  ;;  %v9820_v19 = vmul.f32 %v9650_v20, %v9462_v57  ;;  %v9824_v3 = vmul.f32 %v11066_v7, %v9650_v20  ;;  %v11076_v8 = vld [vmem:[#allocation15_spill] sm:$0xff] }
 0x73f   :  { %v9828_v59 = vmul.f32 %v11067_v51, %v9650_v20  ;;  %v9832_v55 = vmul.f32 %v9650_v20, %v11068_v49  ;;  %v9836_v62 = vmul.f32 %v9650_v20, %v11069_v27  ;;  %v9840_v57 = vmul.f32 %v11070_v31, %v9650_v20  ;;  %v11078_v51 = vld [vmem:[#allocation17_spill] sm:$0xff]  ;;  %v11080_v27 = vld [vmem:[#allocation24_spill] sm:$0xff] }
 0x740   :  { %v9844_v43 = vmul.f32 %v11071_v46, %v9650_v20  ;;  %v9848_v44 = vmul.f32 %v9650_v20, %v11072_v63  ;;  %v9852_v50 = vmul.f32 %v9650_v20, %v11073_v30  ;;  %v9856_v5 = vmul.f32 %v11074_v9, %v9650_v20  ;;  %v11082_v46 = vld [vmem:[#allocation20_spill] sm:$0xff]  ;;  %v11084_v30 = vld [vmem:[#allocation19_spill] sm:$0xff] }
 0x741   :  { %v9860_v7 = vmul.f32 %v11076_v8, %v9650_v20  ;;  %v9864_v49 = vmul.f32 %v9650_v20, %v11078_v51  ;;  %v9868_v31 = vmul.f32 %v9650_v20, %v11080_v27  ;;  %v9872_v63 = vmul.f32 %v11082_v46, %v9650_v20 }
 0x742   :  { %11075 = vst [vmem:[#allocation28_spill] sm:$0xff] %v9856_v5  ;;  %v9876_v9 = vmul.f32 %v11084_v30, %v9650_v20  ;;  %v11086_v5 = vld [vmem:[#allocation11_spill] sm:$0xff]  ;;  %v11093_v30 = vld [vmem:[#allocation26_spill] sm:$0xff] }
 0x743   :  { %11077 = vst [vmem:[#allocation6_spill] sm:$0xff] %v9860_v7  ;;  %11079 = vst [vmem:[#allocation5_spill] sm:$0xff] %v9864_v49  ;;  %v9880_v8 = vmul.f32 %v9650_v20, %v11086_v5  ;;  %v11088_v7 = vld [vmem:[#allocation23_spill] sm:$0xff]  ;;  %v11090_v49 = vld [vmem:[#allocation21_spill] sm:$0xff] }
 0x744   :  { %11081 = vst [vmem:[#allocation8_spill] sm:$0xff] %v9868_v31  ;;  %11083 = vst [vmem:[#allocation7_spill] sm:$0xff] %v9872_v63  ;;  %v9884_v51 = vmul.f32 %v9650_v20, %v11088_v7  ;;  %v9888_v27 = vmul.f32 %v11090_v49, %v9650_v20  ;;  %v11092_v31 = vld [vmem:[#allocation22_spill] sm:$0xff]  ;;  %v9895_v63 = vrot.slane %v5409_v4, %v11063_v56  ;;  %v11094_v5 = vld [vmem:[#allocation4_spill] sm:$0xff] }
 0x745   :  { %11085 = vst [vmem:[#allocation12_spill] sm:$0xff] %v9876_v9  ;;  %11087 = vst [vmem:[#allocation14_spill] sm:$0xff] %v9880_v8  ;;  %v9892_v46 = vmul.f32 %v11092_v31, %v9650_v20  ;;  %v9899_v9 = vmul.f32 %v9650_v20, %v11093_v30  ;;  %v9903_v8 = vmul.f32 %v9650_v20, %v11094_v5  ;;  %v11095_v7 = vld [vmem:[#allocation25_spill] sm:$0xff]  ;;  %v11096_v49 = vld [vmem:[#allocation27_spill] sm:$0xff] }
 0x746   :  { %11089 = vst [vmem:[#allocation10_spill] sm:$0xff] %v9884_v51  ;;  %11091 = vst [vmem:[#allocation9_spill] sm:$0xff] %v9888_v27  ;;  %v9907_v51 = vmul.f32 %v11095_v7, %v9650_v20  ;;  %v9911_v27 = vmul.f32 %v11096_v49, %v9650_v20  ;;  %v9915_v56 = vadd.f32 %v9895_v63, %v9656_v47 }
 0x747   :  { %v9919_v4 = vadd.f32 %v9895_v63, %v9660_v25  ;;  %v9923_v31 = vadd.f32 %v9895_v63, %v9664_v53  ;;  %v9927_v30 = vadd.f32 %v9895_v63, %v9668_v17  ;;  %v9931_v20 = vadd.f32 %v9895_v63, %v9672_v6 }
 0x748   :  { %v9935_v47 = vadd.f32 %v9895_v63, %v9676_v54  ;;  %v9939_v25 = vadd.f32 %v9895_v63, %v9680_v58  ;;  %v9943_v53 = vadd.f32 %v9895_v63, %v9684_v34  ;;  %v9947_v17 = vadd.f32 %v9895_v63, %v9688_v12 }
 0x749   :  { %v9951_v6 = vadd.f32 %v9895_v63, %v9692_v1  ;;  %v9955_v54 = vadd.f32 %v9895_v63, %v9696_v48  ;;  %v9959_v58 = vadd.f32 %v9895_v63, %v9700_v15  ;;  %v9963_v34 = vadd.f32 %v9895_v63, %v9704_v37  ;;  %v11113_v7 = vld [vmem:[#allocation28_spill] sm:$0xff] }
 0x74a   :  { %v9967_v12 = vadd.f32 %v9895_v63, %v9708_v38  ;;  %v9971_v1 = vadd.f32 %v9895_v63, %v9712_v21  ;;  %v9975_v48 = vadd.f32 %v9895_v63, %v9716_v13  ;;  %v9979_v15 = vadd.f32 %v9895_v63, %v9720_v18 }
 0x74b   :  { %v9983_v37 = vadd.f32 %v9895_v63, %v9724_v10  ;;  %v9987_v38 = vadd.f32 %v9895_v63, %v9728_v52  ;;  %v9991_v21 = vadd.f32 %v9895_v63, %v9732_v60  ;;  %v9995_v13 = vadd.f32 %v9895_v63, %v9736_v41 }
 0x74c   :  { %v9999_v18 = vadd.f32 %v9895_v63, %v9740_v24  ;;  %v10003_v10 = vadd.f32 %v9895_v63, %v9744_v39  ;;  %v10007_v52 = vadd.f32 %v9895_v63, %v9748_v23  ;;  %v10011_v60 = vadd.f32 %v9895_v63, %v9752_v32 }
 0x74d   :  { %v10015_v41 = vadd.f32 %v9895_v63, %v9756_v16  ;;  %v10019_v24 = vadd.f32 %v9895_v63, %v9760_v14  ;;  %v10023_v39 = vadd.f32 %v9895_v63, %v9764_v11  ;;  %v10027_v23 = vadd.f32 %v9895_v63, %v9768_v61 }
 0x74e   :  { %v10031_v32 = vadd.f32 %v9895_v63, %v9772_v40  ;;  %v10035_v16 = vadd.f32 %v9895_v63, %v9776_v0  ;;  %v10039_v14 = vadd.f32 %v9895_v63, %v9780_v26  ;;  %v10043_v11 = vadd.f32 %v9895_v63, %v9784_v42 }
 0x74f   :  { %v10047_v61 = vadd.f32 %v9895_v63, %v9788_v28  ;;  %v10051_v40 = vadd.f32 %v9895_v63, %v9792_v35  ;;  %v10055_v0 = vadd.f32 %v9895_v63, %v9796_v2  ;;  %v10059_v26 = vadd.f32 %v9895_v63, %v9800_v45 }
 0x750   :  { %v10063_v42 = vadd.f32 %v9895_v63, %v9804_v22  ;;  %v10067_v28 = vadd.f32 %v9895_v63, %v9808_v33  ;;  %v10071_v35 = vadd.f32 %v9895_v63, %v9812_v29  ;;  %v10075_v2 = vadd.f32 %v9895_v63, %v9816_v36 }
 0x751   :  { %11097 = vst [vmem:[#allocation13_spill] sm:$0xff] %v10051_v40  ;;  %11098 = vst [vmem:[#allocation18_spill] sm:$0xff] %v10055_v0  ;;  %v10079_v45 = vadd.f32 %v9895_v63, %v9820_v19  ;;  %v10083_v22 = vadd.f32 %v9895_v63, %v9824_v3  ;;  %v10087_v33 = vadd.f32 %v9895_v63, %v9828_v59  ;;  %v5550_v59 = vld [vmem:[%s10880_s7] sm:$0xff]  ;;  %v5575_v40 = vld [vmem:[%s10880_s7 + $0xc8] sm:$0xff] }
 0x752   :  { %11099 = vst [vmem:[#allocation16_spill] sm:$0xff] %v10059_v26  ;;  %11100 = vst [vmem:[#allocation15_spill] sm:$0xff] %v10063_v42  ;;  %v10091_v29 = vadd.f32 %v9895_v63, %v9832_v55  ;;  %v10095_v36 = vadd.f32 %v9895_v63, %v9836_v62  ;;  %v10099_v19 = vadd.f32 %v9895_v63, %v9840_v57  ;;  %v5551_v55 = vld [vmem:[%s10880_s7 + $0x8] sm:$0xff]  ;;  %v5552_v62 = vld [vmem:[%s10880_s7 + $0x10] sm:$0xff] }
 0x753   :  { %11101 = vst [vmem:[#allocation17_spill] sm:$0xff] %v10067_v28  ;;  %11102 = vst [vmem:[#allocation24_spill] sm:$0xff] %v10071_v35  ;;  %v10103_v3 = vadd.f32 %v9895_v63, %v9844_v43  ;;  %v5553_v57 = vld [vmem:[%s10880_s7 + $0x18] sm:$0xff]  ;;  %v10119_v43 = vadd.f32 %v9895_v63, %v9848_v44  ;;  %v10123_v5 = vadd.f32 %v9895_v63, %v9852_v50  ;;  %v5555_v44 = vld [vmem:[%s10880_s7 + $0x28] sm:$0xff] }
 0x754   :  { %11103 = vst [vmem:[#allocation20_spill] sm:$0xff] %v10075_v2  ;;  %11104 = vst [vmem:[#allocation19_spill] sm:$0xff] %v10079_v45  ;;  %v10127_v49 = vadd.f32 %v9895_v63, %v11113_v7  ;;  %v5556_v50 = vld [vmem:[%s10880_s7 + $0x30] sm:$0xff]  ;;  %v5557_v7 = vld [vmem:[%s10880_s7 + $0x38] sm:$0xff]  ;;  %v10187_v35 = vadd.f32 %v9895_v63, %v9892_v46  ;;  %v10203_v46 = vadd.f32 %v9895_v63, %v9899_v9 }
 0x755   :  { %11105 = vst [vmem:[#allocation11_spill] sm:$0xff] %v10083_v22  ;;  %11106 = vst [vmem:[#allocation23_spill] sm:$0xff] %v10087_v33  ;;  %v11123_v33 = vld [vmem:[#allocation12_spill] sm:$0xff]  ;;  %v5567_v9 = vld [vmem:[%s10880_s7 + $0x88] sm:$0xff]  ;;  %v10248_v42 = vadd.f32 %v5552_v62, %v9923_v31  ;;  %v10251_v26 = vadd.f32 %v5553_v57, %v9927_v30  ;;  %v10269_v30 = vadd.f32 %v5555_v44, %v9935_v47 }
 0x756   :  { %11107 = vst [vmem:[#allocation21_spill] sm:$0xff] %v10091_v29  ;;  %11108 = vst [vmem:[#allocation22_spill] sm:$0xff] %v10095_v36  ;;  %v5554_v36 = vld [vmem:[%s10880_s7 + $0x20] sm:$0xff]  ;;  %v10159_v22 = vadd.f32 %v9895_v63, %v11123_v33  ;;  %v5579_v57 = vld [vmem:[%s10880_s7 + $0xe8] sm:$0xff] }
 0x757   :  { %11109 = vst [vmem:[#allocation26_spill] sm:$0xff] %v10099_v19  ;;  %11110 = vst [vmem:[#allocation4_spill] sm:$0xff] %v10103_v3  ;;  %v11115_v3 = vld [vmem:[#allocation6_spill] sm:$0xff]  ;;  %v5558_v45 = vld [vmem:[%s10880_s7 + $0x40] sm:$0xff]  ;;  %v10266_v31 = vadd.f32 %v5554_v36, %v9931_v20 }
 0x758   :  { %11111 = vst [vmem:[#allocation25_spill] sm:$0xff] %v10119_v43  ;;  %11112 = vst [vmem:[#allocation27_spill] sm:$0xff] %v10123_v5  ;;  %v10131_v19 = vadd.f32 %v9895_v63, %v11115_v3  ;;  %v11121_v43 = vld [vmem:[#allocation7_spill] sm:$0xff]  ;;  %v5562_v28 = vld [vmem:[%s10880_s7 + $0x60] sm:$0xff] }
 0x759   :  { %11114 = vst [vmem:[#allocation28_spill] sm:$0xff] %v10127_v49  ;;  %v11117_v49 = vld [vmem:[#allocation5_spill] sm:$0xff]  ;;  %v10155_v29 = vadd.f32 %v9895_v63, %v11121_v43  ;;  %11124 = vst [vmem:[#allocation12_spill] sm:$0xff] %v10159_v22  ;;  %v5561_v43 = vld [vmem:[%s10880_s7 + $0x58] sm:$0xff] }
 0x75a   :  { %11116 = vst [vmem:[#allocation6_spill] sm:$0xff] %v10131_v19  ;;  %v10147_v3 = vadd.f32 %v9895_v63, %v11117_v49  ;;  %v11119_v19 = vld [vmem:[#allocation8_spill] sm:$0xff]  ;;  %v5559_v49 = vld [vmem:[%s10880_s7 + $0x48] sm:$0xff]  ;;  %v11127_v22 = vld [vmem:[#allocation10_spill] sm:$0xff]  ;;  %v10299_v44 = vadd.f32 %v5561_v43, %v9959_v58 }
 0x75b   :  { %v10151_v5 = vadd.f32 %v9895_v63, %v11119_v19  ;;  %11122 = vst [vmem:[#allocation7_spill] sm:$0xff] %v10155_v29  ;;  %v5560_v19 = vld [vmem:[%s10880_s7 + $0x50] sm:$0xff]  ;;  %11131 = vst [vmem:[#allocation29_spill] sm:$0xff] %v10187_v35  ;;  %v10207_v35 = vadd.f32 %v9895_v63, %v9903_v8  ;;  %v5574_v0 = vld [vmem:[%s10880_s7 + $0xc0] sm:$0xff] }
 0x75c   :  { %11118 = vst [vmem:[#allocation5_spill] sm:$0xff] %v10147_v3  ;;  %v11125_v29 = vld [vmem:[#allocation14_spill] sm:$0xff]  ;;  %v11129_v3 = vld [vmem:[#allocation9_spill] sm:$0xff]  ;;  %11132 = vst [vmem:[#allocation30_spill] sm:$0xff] %v10203_v46  ;;  %v10245_v46 = vadd.f32 %v5551_v55, %v9919_v4  ;;  %v10275_v55 = vadd.f32 %v5557_v7, %v9943_v53  ;;  %v10293_v53 = vadd.f32 %v5559_v49, %v9951_v6 }
 0x75d   :  { %11120 = vst [vmem:[#allocation8_spill] sm:$0xff] %v10151_v5  ;;  %v10175_v33 = vadd.f32 %v9895_v63, %v11125_v29  ;;  %v10179_v5 = vadd.f32 %v9895_v63, %v11127_v22  ;;  %v10183_v2 = vadd.f32 %v9895_v63, %v11129_v3  ;;  %v5563_v29 = vld [vmem:[%s10880_s7 + $0x68] sm:$0xff]  ;;  %v5564_v22 = vld [vmem:[%s10880_s7 + $0x70] sm:$0xff]  ;;  %v5565_v3 = vld [vmem:[%s10880_s7 + $0x78] sm:$0xff]  ;;  %v10296_v36 = vadd.f32 %v5560_v19, %v9955_v54 }
 0x75e   :  { %11133 = vst [vmem:[#allocation31_spill] sm:$0xff] %v10207_v35  ;;  %v5568_v8 = vld [vmem:[%s10880_s7 + $0x90] sm:$0xff]  ;;  %v10242_v35 = vadd.f32 %v5550_v59, %v9915_v56  ;;  %v5577_v4 = vld [vmem:[%s10880_s7 + $0xd8] sm:$0xff]  ;;  %v10272_v59 = vadd.f32 %v5556_v50, %v9939_v25  ;;  %v5578_v62 = vld [vmem:[%s10880_s7 + $0xe0] sm:$0xff]  ;;  %v10290_v25 = vadd.f32 %v5558_v45, %v9947_v17  ;;  %v10314_v54 = vadd.f32 %v5562_v28, %v9963_v34 }
 0x75f   :  { %11126 = vst [vmem:[#allocation14_spill] sm:$0xff] %v10175_v33  ;;  %11128 = vst [vmem:[#allocation10_spill] sm:$0xff] %v10179_v5  ;;  %v10215_v5 = vadd.f32 %v9895_v63, %v9911_v27  ;;  %v5566_v33 = vld [vmem:[%s10880_s7 + $0x80] sm:$0xff]  ;;  %v5571_v27 = vld [vmem:[%s10880_s7 + $0xa8] sm:$0xff]  ;;  %v10317_v58 = vadd.f32 %v5563_v29, %v9967_v12  ;;  %v10320_v45 = vadd.f32 %v5564_v22, %v9971_v1 }
 0x760   :  { %11130 = vst [vmem:[#allocation9_spill] sm:$0xff] %v10183_v2  ;;  %v10211_v2 = vadd.f32 %v9895_v63, %v9907_v51  ;;  %v5569_v51 = vld [vmem:[%s10880_s7 + $0x98] sm:$0xff]  ;;  %v5570_v63 = vld [vmem:[%s10880_s7 + $0xa0] sm:$0xff]  ;;  %v5576_v56 = vld [vmem:[%s10880_s7 + $0xd0] sm:$0xff]  ;;  %v10323_v49 = vadd.f32 %v5565_v3, %v9975_v48  ;;  %v10338_v1 = vadd.f32 %v5566_v33, %v9979_v15  ;;  %v10341_v48 = vadd.f32 %v5567_v9, %v9983_v37 }
 0x761   :  { %11135 = vst [vmem:[#allocation33_spill] sm:$0xff] %v10215_v5  ;;  %v5572_v5 = vld [vmem:[%s10880_s7 + $0xb0] sm:$0xff]  ;;  %v5581_v47 = vld [vmem:[%s10880_s7 + $0xf8] sm:$0xff]  ;;  %v5582_v50 = vld [vmem:[%s10880_s7 + $0x100] sm:$0xff]  ;;  %v10344_v28 = vadd.f32 %v5568_v8, %v9987_v38  ;;  %v10347_v29 = vadd.f32 %v5569_v51, %v9991_v21  ;;  %v10359_v37 = vadd.f32 %v5570_v63, %v9995_v13  ;;  %v10362_v38 = vadd.f32 %v5571_v27, %v9999_v18 }
 0x762   :  { %11134 = vst [vmem:[#allocation32_spill] sm:$0xff] %v10211_v2  ;;  %v5573_v2 = vld [vmem:[%s10880_s7 + $0xb8] sm:$0xff]  ;;  %v5580_v20 = vld [vmem:[%s10880_s7 + $0xf0] sm:$0xff]  ;;  %v5583_v7 = vld [vmem:[%s10880_s7 + $0x108] sm:$0xff]  ;;  %v10365_v21 = vadd.f32 %v5572_v5, %v10003_v10  ;;  %v10380_v18 = vadd.f32 %v5574_v0, %v10011_v60  ;;  %v10383_v10 = vadd.f32 %v5575_v40, %v10015_v41  ;;  %v10401_v41 = vadd.f32 %v5578_v62, %v10027_v23 }
 0x763   :  { %v5584_v17 = vld [vmem:[%s10880_s7 + $0x110] sm:$0xff]  ;;  %v5585_v6 = vld [vmem:[%s10880_s7 + $0x118] sm:$0xff]  ;;  %v5586_v19 = vld [vmem:[%s10880_s7 + $0x120] sm:$0xff]  ;;  %v10368_v33 = vadd.f32 %v5573_v2, %v10007_v52  ;;  %v10386_v52 = vadd.f32 %v5576_v56, %v10019_v24  ;;  %v10389_v2 = vadd.f32 %v5577_v4, %v10023_v39  ;;  %v10404_v24 = vadd.f32 %v5579_v57, %v10031_v32 }
 0x764   :  { %v5587_v43 = vld [vmem:[%s10880_s7 + $0x128] sm:$0xff]  ;;  %v5588_v34 = vld [vmem:[%s10880_s7 + $0x130] sm:$0xff]  ;;  %v5589_v12 = vld [vmem:[%s10880_s7 + $0x138] sm:$0xff]  ;;  %v10407_v39 = vadd.f32 %v5580_v20, %v10035_v16  ;;  %v10410_v40 = vadd.f32 %v5581_v47, %v10039_v14  ;;  %v10422_v32 = vadd.f32 %v5582_v50, %v10043_v11  ;;  %v10425_v16 = vadd.f32 %v5583_v7, %v10047_v61 }
 0x765   :  { %v5590_v22 = vld [vmem:[%s10880_s7 + $0x140] sm:$0xff]  ;;  %v5591_v3 = vld [vmem:[%s10880_s7 + $0x148] sm:$0xff]  ;;  %v5592_v15 = vld [vmem:[%s10880_s7 + $0x150] sm:$0xff] }
 0x766   :  { %v5593_v9 = vld [vmem:[%s10880_s7 + $0x158] sm:$0xff]  ;;  %v5594_v8 = vld [vmem:[%s10880_s7 + $0x160] sm:$0xff]  ;;  %v5595_v13 = vld [vmem:[%s10880_s7 + $0x168] sm:$0xff] }
 0x767   :  { %v5596_v5 = vld [vmem:[%s10880_s7 + $0x170] sm:$0xff]  ;;  %v5597_v51 = vld [vmem:[%s10880_s7 + $0x178] sm:$0xff]  ;;  %v5598_v60 = vld [vmem:[%s10880_s7 + $0x180] sm:$0xff] }
 0x768   :  { %v5599_v0 = vld [vmem:[%s10880_s7 + $0x188] sm:$0xff]  ;;  %v5600_v63 = vld [vmem:[%s10880_s7 + $0x190] sm:$0xff]  ;;  %v5601_v23 = vld [vmem:[%s10880_s7 + $0x198] sm:$0xff] }
 0x769   :  { %v11136_v14 = vld [vmem:[#allocation13_spill] sm:$0xff]  ;;  %v11138_v56 = vld [vmem:[#allocation18_spill] sm:$0xff]  ;;  %v5602_v62 = vld [vmem:[%s10880_s7 + $0x1a0] sm:$0xff] }
 0x76a   :  { %v10428_v27 = vadd.f32 %v5584_v17, %v11136_v14  ;;  %v10431_v4 = vadd.f32 %v5585_v6, %v11138_v56  ;;  %v5603_v57 = vld [vmem:[%s10880_s7 + $0x1a8] sm:$0xff]  ;;  %v5604_v11 = vld [vmem:[%s10880_s7 + $0x1b0] sm:$0xff]  ;;  %v11140_v61 = vld [vmem:[#allocation16_spill] sm:$0xff] }
 0x76b   :  { %v10443_v20 = vadd.f32 %v5586_v19, %v11140_v61  ;;  %v11142_v47 = vld [vmem:[#allocation15_spill] sm:$0xff]  ;;  %v11144_v7 = vld [vmem:[#allocation17_spill] sm:$0xff]  ;;  %v11146_v6 = vld [vmem:[#allocation24_spill] sm:$0xff] }
 0x76c   :  { %11137 = vst [vmem:[#allocation13_spill] sm:$0xff] %v10428_v27  ;;  %11139 = vst [vmem:[#allocation18_spill] sm:$0xff] %v10431_v4  ;;  %v10446_v50 = vadd.f32 %v5587_v43, %v11142_v47  ;;  %v10449_v17 = vadd.f32 %v5588_v34, %v11144_v7  ;;  %v10452_v14 = vadd.f32 %v5589_v12, %v11146_v6  ;;  %v5605_v56 = vld [vmem:[%s10880_s7 + $0x1b8] sm:$0xff]  ;;  %v5606_v4 = vld [vmem:[%s10880_s7 + $0x1c0] sm:$0xff] }
 0x76d   :  { %11141 = vst [vmem:[#allocation16_spill] sm:$0xff] %v10443_v20  ;;  %v5607_v19 = vld [vmem:[%s10880_s7 + $0x1c8] sm:$0xff]  ;;  %v11148_v43 = vld [vmem:[#allocation20_spill] sm:$0xff]  ;;  %v11150_v34 = vld [vmem:[#allocation19_spill] sm:$0xff] }
 0x76e   :  { %11143 = vst [vmem:[#allocation15_spill] sm:$0xff] %v10446_v50  ;;  %11145 = vst [vmem:[#allocation17_spill] sm:$0xff] %v10449_v17  ;;  %v10464_v61 = vadd.f32 %v5590_v22, %v11148_v43  ;;  %v10467_v47 = vadd.f32 %v5591_v3, %v11150_v34  ;;  %v11152_v12 = vld [vmem:[#allocation11_spill] sm:$0xff]  ;;  %v5608_v17 = vld [vmem:[%s10880_s7 + $0x1d0] sm:$0xff] }
 0x76f   :  { %11147 = vst [vmem:[#allocation24_spill] sm:$0xff] %v10452_v14  ;;  %v10470_v7 = vadd.f32 %v5592_v15, %v11152_v12  ;;  %v11154_v6 = vld [vmem:[#allocation23_spill] sm:$0xff]  ;;  %v5610_v22 = vld [vmem:[%s10880_s7 + $0x1e0] sm:$0xff]  ;;  %v11156_v3 = vld [vmem:[#allocation21_spill] sm:$0xff] }
 0x770   :  { %11149 = vst [vmem:[#allocation20_spill] sm:$0xff] %v10464_v61  ;;  %11151 = vst [vmem:[#allocation19_spill] sm:$0xff] %v10467_v47  ;;  %v10473_v14 = vadd.f32 %v5593_v9, %v11154_v6  ;;  %v5609_v50 = vld [vmem:[%s10880_s7 + $0x1d8] sm:$0xff]  ;;  %v10485_v43 = vadd.f32 %v5594_v8, %v11156_v3  ;;  %v11158_v15 = vld [vmem:[#allocation22_spill] sm:$0xff] }
 0x771   :  { %11153 = vst [vmem:[#allocation11_spill] sm:$0xff] %v10470_v7  ;;  %v10488_v34 = vadd.f32 %v5595_v13, %v11158_v15  ;;  %v11160_v9 = vld [vmem:[#allocation26_spill] sm:$0xff]  ;;  %v11162_v6 = vld [vmem:[#allocation4_spill] sm:$0xff]  ;;  %v5611_v7 = vld [vmem:[%s10880_s7 + $0x1e8] sm:$0xff] }
 0x772   :  { %11155 = vst [vmem:[#allocation23_spill] sm:$0xff] %v10473_v14  ;;  %11157 = vst [vmem:[#allocation21_spill] sm:$0xff] %v10485_v43  ;;  %v10491_v12 = vadd.f32 %v5596_v5, %v11160_v9  ;;  %v10494_v14 = vadd.f32 %v5597_v51, %v11162_v6  ;;  %v5612_v47 = vld [vmem:[%s10880_s7 + $0x1f0] sm:$0xff]  ;;  %v5613_v8 = vld [vmem:[%s10880_s7 + $0x1f8] sm:$0xff] }
 0x773   :  { %11159 = vst [vmem:[#allocation22_spill] sm:$0xff] %v10488_v34  ;;  %v11164_v13 = vld [vmem:[#allocation25_spill] sm:$0xff]  ;;  %v11165_v5 = vld [vmem:[#allocation27_spill] sm:$0xff]  ;;  %v11166_v51 = vld [vmem:[#allocation28_spill] sm:$0xff] }
 0x774   :  { %11161 = vst [vmem:[#allocation26_spill] sm:$0xff] %v10491_v12  ;;  %11163 = vst [vmem:[#allocation4_spill] sm:$0xff] %v10494_v14  ;;  %v10506_v3 = vadd.f32 %v5598_v60, %v11164_v13  ;;  %v10509_v15 = vadd.f32 %v5599_v0, %v11165_v5  ;;  %v10512_v9 = vadd.f32 %v5600_v63, %v11166_v51  ;;  %v11167_v6 = vld [vmem:[#allocation6_spill] sm:$0xff]  ;;  %v11168_v12 = vld [vmem:[#allocation5_spill] sm:$0xff] }
 0x775   :  { %v10515_v14 = vadd.f32 %v5601_v23, %v11167_v6  ;;  %v10518_v34 = vadd.f32 %v5602_v62, %v11168_v12  ;;  %v11169_v43 = vld [vmem:[#allocation8_spill] sm:$0xff]  ;;  %v11170_v20 = vld [vmem:[#allocation7_spill] sm:$0xff]  ;;  %v11172_v0 = vld [vmem:[#allocation14_spill] sm:$0xff] }
 0x776   :  { %v10521_v61 = vadd.f32 %v5603_v57, %v11169_v43  ;;  %v10524_v27 = vadd.f32 %v5604_v11, %v11170_v20  ;;  %v11171_v60 = vld [vmem:[#allocation12_spill] sm:$0xff]  ;;  %v10530_v5 = vadd.f32 %v5606_v4, %v11172_v0  ;;  %v11173_v63 = vld [vmem:[#allocation10_spill] sm:$0xff]  ;;  %v11174_v23 = vld [vmem:[#allocation9_spill] sm:$0xff] }
 0x777   :  { %v10527_v13 = vadd.f32 %v5605_v56, %v11171_v60  ;;  %v10533_v51 = vadd.f32 %v5607_v19, %v11173_v63  ;;  %v10536_v6 = vadd.f32 %v5608_v17, %v11174_v23  ;;  %v11175_v62 = vld [vmem:[#allocation29_spill] sm:$0xff]  ;;  %v11176_v57 = vld [vmem:[#allocation30_spill] sm:$0xff]  ;;  %v11177_v11 = vld [vmem:[#allocation31_spill] sm:$0xff]  ;;  %v5678_v19 = vmax.f32 %v10242_v35, 0.0 }
 0x778   :  { %v10539_v12 = vadd.f32 %v5609_v50, %v11175_v62  ;;  %v10542_v43 = vadd.f32 %v5610_v22, %v11176_v57  ;;  %v10545_v20 = vadd.f32 %v5611_v7, %v11177_v11  ;;  %v11178_v56 = vld [vmem:[#allocation32_spill] sm:$0xff]  ;;  %v11179_v4 = vld [vmem:[#allocation33_spill] sm:$0xff]  ;;  %v5679_v17 = vmax.f32 %v10245_v46, 0.0 }
 0x779   :  { %v10548_v60 = vadd.f32 %v5612_v47, %v11178_v56  ;;  %v10551_v0 = vadd.f32 %v5613_v8, %v11179_v4  ;;  %v5680_v63 = vmax.f32 %v10248_v42, 0.0  ;;  %v5681_v50 = vmax.f32 %v10251_v26, 0.0  ;;  %5742 = vst.msk [vmem:[%s10881_s8] sm:$0xff] %vm664_vm2, %v5678_v19  ;;  %v11185_v57 = vld [vmem:[#allocation24_spill] sm:$0xff]  ;;  %v11187_v19 = vld [vmem:[#allocation19_spill] sm:$0xff] }
 0x77a   :  { %v5682_v22 = vmax.f32 %v10266_v31, 0.0  ;;  %v5683_v23 = vmax.f32 %v10269_v30, 0.0  ;;  %v5684_v7 = vmax.f32 %v10272_v59, 0.0  ;;  %v5685_v47 = vmax.f32 %v10275_v55, 0.0  ;;  %5743 = vst.msk [vmem:[%s10881_s8 + $0x8] sm:$0xff] %vm664_vm2, %v5679_v17  ;;  %v11186_v56 = vld [vmem:[#allocation20_spill] sm:$0xff] }
 0x77b   :  { %v5686_v62 = vmax.f32 %v10290_v25, 0.0  ;;  %v5687_v8 = vmax.f32 %v10293_v53, 0.0  ;;  %v5688_v35 = vmax.f32 %v10296_v36, 0.0  ;;  %v5689_v46 = vmax.f32 %v10299_v44, 0.0  ;;  %5744 = vst.msk [vmem:[%s10881_s8 + $0x10] sm:$0xff] %vm664_vm2, %v5680_v63  ;;  %5745 = vst.msk [vmem:[%s10881_s8 + $0x18] sm:$0xff] %vm664_vm2, %v5681_v50 }
 0x77c   :  { %v5690_v26 = vmax.f32 %v10314_v54, 0.0  ;;  %v5691_v42 = vmax.f32 %v10317_v58, 0.0  ;;  %v5692_v31 = vmax.f32 %v10320_v45, 0.0  ;;  %v5693_v30 = vmax.f32 %v10323_v49, 0.0  ;;  %5746 = vst.msk [vmem:[%s10881_s8 + $0x20] sm:$0xff] %vm664_vm2, %v5682_v22  ;;  %5747 = vst.msk [vmem:[%s10881_s8 + $0x28] sm:$0xff] %vm664_vm2, %v5683_v23 }
 0x77d   :  { %5748 = vst.msk [vmem:[%s10881_s8 + $0x30] sm:$0xff] %vm664_vm2, %v5684_v7  ;;  %5749 = vst.msk [vmem:[%s10881_s8 + $0x38] sm:$0xff] %vm664_vm2, %v5685_v47  ;;  %v5694_v59 = vmax.f32 %v10338_v1, 0.0  ;;  %v5695_v55 = vmax.f32 %v10341_v48, 0.0  ;;  %v5696_v25 = vmax.f32 %v10344_v28, 0.0  ;;  %v5697_v53 = vmax.f32 %v10347_v29, 0.0 }
 0x77e   :  { %5750 = vst.msk [vmem:[%s10881_s8 + $0x40] sm:$0xff] %vm664_vm2, %v5686_v62  ;;  %5751 = vst.msk [vmem:[%s10881_s8 + $0x48] sm:$0xff] %vm664_vm2, %v5687_v8  ;;  %v5698_v36 = vmax.f32 %v10359_v37, 0.0  ;;  %v5699_v44 = vmax.f32 %v10362_v38, 0.0  ;;  %v5700_v54 = vmax.f32 %v10365_v21, 0.0  ;;  %v5701_v58 = vmax.f32 %v10368_v33, 0.0 }
 0x77f   :  { %5752 = vst.msk [vmem:[%s10881_s8 + $0x50] sm:$0xff] %vm664_vm2, %v5688_v35  ;;  %5753 = vst.msk [vmem:[%s10881_s8 + $0x58] sm:$0xff] %vm664_vm2, %v5689_v46  ;;  %v5702_v45 = vmax.f32 %v10380_v18, 0.0  ;;  %v5703_v49 = vmax.f32 %v10383_v10, 0.0  ;;  %v5704_v1 = vmax.f32 %v10386_v52, 0.0  ;;  %v5705_v48 = vmax.f32 %v10389_v2, 0.0 }
 0x780   :  { %5754 = vst.msk [vmem:[%s10881_s8 + $0x60] sm:$0xff] %vm664_vm2, %v5690_v26  ;;  %5755 = vst.msk [vmem:[%s10881_s8 + $0x68] sm:$0xff] %vm664_vm2, %v5691_v42  ;;  %v5706_v28 = vmax.f32 %v10401_v41, 0.0  ;;  %v5707_v29 = vmax.f32 %v10404_v24, 0.0  ;;  %v5708_v37 = vmax.f32 %v10407_v39, 0.0  ;;  %v5709_v38 = vmax.f32 %v10410_v40, 0.0 }
 0x781   :  { %5756 = vst.msk [vmem:[%s10881_s8 + $0x70] sm:$0xff] %vm664_vm2, %v5692_v31  ;;  %5757 = vst.msk [vmem:[%s10881_s8 + $0x78] sm:$0xff] %vm664_vm2, %v5693_v30  ;;  %v5710_v21 = vmax.f32 %v10422_v32, 0.0  ;;  %v5711_v33 = vmax.f32 %v10425_v16, 0.0  ;;  %v11180_v18 = vld [vmem:[#allocation13_spill] sm:$0xff]  ;;  %v11181_v52 = vld [vmem:[#allocation18_spill] sm:$0xff] }
 0x782   :  { %5758 = vst.msk [vmem:[%s10881_s8 + $0x80] sm:$0xff] %vm664_vm2, %v5694_v59  ;;  %5759 = vst.msk [vmem:[%s10881_s8 + $0x88] sm:$0xff] %vm664_vm2, %v5695_v55  ;;  %v5712_v10 = vmax.f32 %v11180_v18, 0.0  ;;  %v5713_v2 = vmax.f32 %v11181_v52, 0.0  ;;  %v11182_v41 = vld [vmem:[#allocation16_spill] sm:$0xff]  ;;  %v11183_v39 = vld [vmem:[#allocation15_spill] sm:$0xff] }
 0x783   :  { %5760 = vst.msk [vmem:[%s10881_s8 + $0x90] sm:$0xff] %vm664_vm2, %v5696_v25  ;;  %5761 = vst.msk [vmem:[%s10881_s8 + $0x98] sm:$0xff] %vm664_vm2, %v5697_v53  ;;  %v5714_v24 = vmax.f32 %v11182_v41, 0.0  ;;  %v5715_v40 = vmax.f32 %v11183_v39, 0.0  ;;  %v11184_v32 = vld [vmem:[#allocation17_spill] sm:$0xff]  ;;  %v5717_v11 = vmax.f32 %v11185_v57, 0.0 }
 0x784   :  { %5762 = vst.msk [vmem:[%s10881_s8 + $0xa0] sm:$0xff] %vm664_vm2, %v5698_v36  ;;  %5763 = vst.msk [vmem:[%s10881_s8 + $0xa8] sm:$0xff] %vm664_vm2, %v5699_v44  ;;  %v5716_v16 = vmax.f32 %v11184_v32, 0.0  ;;  %v5718_v4 = vmax.f32 %v11186_v56, 0.0  ;;  %v5719_v17 = vmax.f32 %v11187_v19, 0.0  ;;  %v11188_v63 = vld [vmem:[#allocation11_spill] sm:$0xff] }
 0x785   :  { %5764 = vst.msk [vmem:[%s10881_s8 + $0xb0] sm:$0xff] %vm664_vm2, %v5700_v54  ;;  %5765 = vst.msk [vmem:[%s10881_s8 + $0xb8] sm:$0xff] %vm664_vm2, %v5701_v58  ;;  %v5720_v50 = vmax.f32 %v11188_v63, 0.0  ;;  %v11189_v22 = vld [vmem:[#allocation23_spill] sm:$0xff]  ;;  %v11190_v7 = vld [vmem:[#allocation21_spill] sm:$0xff]  ;;  %v5726_v31 = vmax.f32 %v10506_v3, 0.0 }
 0x786   :  { %5766 = vst.msk [vmem:[%s10881_s8 + $0xc0] sm:$0xff] %vm664_vm2, %v5702_v45  ;;  %5767 = vst.msk [vmem:[%s10881_s8 + $0xc8] sm:$0xff] %vm664_vm2, %v5703_v49  ;;  %v5721_v23 = vmax.f32 %v11189_v22, 0.0  ;;  %v5722_v47 = vmax.f32 %v11190_v7, 0.0  ;;  %v11191_v62 = vld [vmem:[#allocation22_spill] sm:$0xff]  ;;  %v11193_v26 = vld [vmem:[#allocation4_spill] sm:$0xff] }
 0x787   :  { %5768 = vst.msk [vmem:[%s10881_s8 + $0xd0] sm:$0xff] %vm664_vm2, %v5704_v1  ;;  %5769 = vst.msk [vmem:[%s10881_s8 + $0xd8] sm:$0xff] %vm664_vm2, %v5705_v48  ;;  %v5723_v8 = vmax.f32 %v11191_v62, 0.0  ;;  %v11192_v35 = vld [vmem:[#allocation26_spill] sm:$0xff]  ;;  %v5725_v42 = vmax.f32 %v11193_v26, 0.0  ;;  %v5727_v30 = vmax.f32 %v10509_v15, 0.0 }
 0x788   :  { %5770 = vst.msk [vmem:[%s10881_s8 + $0xe0] sm:$0xff] %vm664_vm2, %v5706_v28  ;;  %5771 = vst.msk [vmem:[%s10881_s8 + $0xe8] sm:$0xff] %vm664_vm2, %v5707_v29  ;;  %v5724_v46 = vmax.f32 %v11192_v35, 0.0  ;;  %v5728_v59 = vmax.f32 %v10512_v9, 0.0  ;;  %v5729_v55 = vmax.f32 %v10515_v14, 0.0  ;;  %v5730_v14 = vmax.f32 %v10518_v34, 0.0 }
 0x789   :  { %5772 = vst.msk [vmem:[%s10881_s8 + $0xf0] sm:$0xff] %vm664_vm2, %v5708_v37  ;;  %5773 = vst.msk [vmem:[%s10881_s8 + $0xf8] sm:$0xff] %vm664_vm2, %v5709_v38  ;;  %v5731_v3 = vmax.f32 %v10521_v61, 0.0  ;;  %v5732_v15 = vmax.f32 %v10524_v27, 0.0  ;;  %v5733_v9 = vmax.f32 %v10527_v13, 0.0  ;;  %v5734_v27 = vmax.f32 %v10530_v5, 0.0 }
 0x78a   :  { %5774 = vst.msk [vmem:[%s10881_s8 + $0x100] sm:$0xff] %vm664_vm2, %v5710_v21  ;;  %5775 = vst.msk [vmem:[%s10881_s8 + $0x108] sm:$0xff] %vm664_vm2, %v5711_v33  ;;  %v5735_v61 = vmax.f32 %v10533_v51, 0.0  ;;  %v5736_v34 = vmax.f32 %v10536_v6, 0.0  ;;  %v5737_v13 = vmax.f32 %v10539_v12, 0.0  ;;  %v5738_v5 = vmax.f32 %v10542_v43, 0.0 }
 0x78b   :  { %5776 = vst.msk [vmem:[%s10881_s8 + $0x110] sm:$0xff] %vm664_vm2, %v5712_v10  ;;  %5777 = vst.msk [vmem:[%s10881_s8 + $0x118] sm:$0xff] %vm664_vm2, %v5713_v2  ;;  %v5739_v51 = vmax.f32 %v10545_v20, 0.0  ;;  %v5740_v6 = vmax.f32 %v10548_v60, 0.0  ;;  %v5741_v12 = vmax.f32 %v10551_v0, 0.0 }
 0x78c   :  { %5778 = vst.msk [vmem:[%s10881_s8 + $0x120] sm:$0xff] %vm664_vm2, %v5714_v24  ;;  %5779 = vst.msk [vmem:[%s10881_s8 + $0x128] sm:$0xff] %vm664_vm2, %v5715_v40 }
 0x78d   :  { %5780 = vst.msk [vmem:[%s10881_s8 + $0x130] sm:$0xff] %vm664_vm2, %v5716_v16  ;;  %5781 = vst.msk [vmem:[%s10881_s8 + $0x138] sm:$0xff] %vm664_vm2, %v5717_v11 }
 0x78e   :  { %5782 = vst.msk [vmem:[%s10881_s8 + $0x140] sm:$0xff] %vm664_vm2, %v5718_v4  ;;  %5783 = vst.msk [vmem:[%s10881_s8 + $0x148] sm:$0xff] %vm664_vm2, %v5719_v17 }
 0x78f   :  { %5784 = vst.msk [vmem:[%s10881_s8 + $0x150] sm:$0xff] %vm664_vm2, %v5720_v50  ;;  %5785 = vst.msk [vmem:[%s10881_s8 + $0x158] sm:$0xff] %vm664_vm2, %v5721_v23 }
 0x790   :  { %5786 = vst.msk [vmem:[%s10881_s8 + $0x160] sm:$0xff] %vm664_vm2, %v5722_v47  ;;  %5787 = vst.msk [vmem:[%s10881_s8 + $0x168] sm:$0xff] %vm664_vm2, %v5723_v8 }
 0x791   :  { %5788 = vst.msk [vmem:[%s10881_s8 + $0x170] sm:$0xff] %vm664_vm2, %v5724_v46  ;;  %5789 = vst.msk [vmem:[%s10881_s8 + $0x178] sm:$0xff] %vm664_vm2, %v5725_v42 }
 0x792   :  { %5790 = vst.msk [vmem:[%s10881_s8 + $0x180] sm:$0xff] %vm664_vm2, %v5726_v31  ;;  %5791 = vst.msk [vmem:[%s10881_s8 + $0x188] sm:$0xff] %vm664_vm2, %v5727_v30 }
 0x793   :  { %5792 = vst.msk [vmem:[%s10881_s8 + $0x190] sm:$0xff] %vm664_vm2, %v5728_v59  ;;  %5793 = vst.msk [vmem:[%s10881_s8 + $0x198] sm:$0xff] %vm664_vm2, %v5729_v55 }
 0x794   :  { %5794 = vst.msk [vmem:[%s10881_s8 + $0x1a0] sm:$0xff] %vm664_vm2, %v5730_v14  ;;  %5795 = vst.msk [vmem:[%s10881_s8 + $0x1a8] sm:$0xff] %vm664_vm2, %v5731_v3 }
 0x795   :  { %5796 = vst.msk [vmem:[%s10881_s8 + $0x1b0] sm:$0xff] %vm664_vm2, %v5732_v15  ;;  %5797 = vst.msk [vmem:[%s10881_s8 + $0x1b8] sm:$0xff] %vm664_vm2, %v5733_v9 }
 0x796   :  { %5798 = vst.msk [vmem:[%s10881_s8 + $0x1c0] sm:$0xff] %vm664_vm2, %v5734_v27  ;;  %5799 = vst.msk [vmem:[%s10881_s8 + $0x1c8] sm:$0xff] %vm664_vm2, %v5735_v61 }
 0x797   :  { %5800 = vst.msk [vmem:[%s10881_s8 + $0x1d0] sm:$0xff] %vm664_vm2, %v5736_v34  ;;  %5801 = vst.msk [vmem:[%s10881_s8 + $0x1d8] sm:$0xff] %vm664_vm2, %v5737_v13 }
 0x798   :  { %5802 = vst.msk [vmem:[%s10881_s8 + $0x1e0] sm:$0xff] %vm664_vm2, %v5738_v5  ;;  %5803 = vst.msk [vmem:[%s10881_s8 + $0x1e8] sm:$0xff] %vm664_vm2, %v5739_v51 }
 0x799   :  { %5804 = vst.msk [vmem:[%s10881_s8 + $0x1f0] sm:$0xff] %vm664_vm2, %v5740_v6  ;;  %5805 = vst.msk [vmem:[%s10881_s8 + $0x1f8] sm:$0xff] %vm664_vm2, %v5741_v12 }

</bundles_post_ra>
